<compile_context>
chip_gen: v7x
topology: tpu7x:2x2x1
jax: 0.10.0
libtpu: 0.0.40
codegen_flags: <defaults>
</compile_context>

<pallas_src>
import math

import jax
import jax.numpy as jnp
import numpy as np
from jax.experimental import pallas as pl
from jax.experimental.pallas import tpu as pltpu


def _make_kernel(n_head, n_hidden, Tf, Ts, C, compute_dtype):
    hd = n_hidden // n_head

    def kernel(freq_ref, spat_ref,
               wqkv_f_ref, bqkv_f_ref, wqkv_s_ref, bqkv_s_ref,
               wps_ref, bps_ref, wpf_ref, bpf_ref,
               spat_out_ref, freq_out_ref,
               qkv_f_scr, qkv_s_scr, att_fs_scr, att_ff_scr):
        # ---- fused QKV projections: one full-width MXU matmul per stream ----
        freq_c = freq_ref[0].astype(compute_dtype)          # (Tf, C) bf16
        spat_c = spat_ref[0].astype(compute_dtype)          # (Ts, C) bf16
        qkv_f = jnp.dot(freq_c, wqkv_f_ref[...],
                        preferred_element_type=jnp.float32)  # (Tf, 3*nh) f32
        qkv_s = jnp.dot(spat_c, wqkv_s_ref[...],
                        preferred_element_type=jnp.float32)  # (Ts, 3*nh) f32
        # bias add in f32, single cast to bf16 into VMEM scratch
        qkv_f_scr[...] = (qkv_f + bqkv_f_ref[...]).astype(compute_dtype)
        qkv_s_scr[...] = (qkv_s + bqkv_s_ref[...]).astype(compute_dtype)

        def attend(q, k, v):
            # q @ k^T: contract dim 1 of both operands (no XLU transpose).
            # 1/sqrt(hd) already folded into q at prepare time.
            s = jax.lax.dot_general(q, k, (((1,), (1,)), ((), ())),
                                    preferred_element_type=jnp.float32)
            s = s - jnp.max(s, axis=-1, keepdims=True)
            p = jnp.exp(s)                                    # (Tq, Tk) f32
            l = jnp.sum(p, axis=-1, keepdims=True)            # (Tq, 1)
            o = jnp.dot(p.astype(compute_dtype), v,
                        preferred_element_type=jnp.float32)   # (Tq, hd) f32
            # normalize AFTER p@v: Tq*hd VPU mults instead of Tq*Tk.
            return o * pl.reciprocal(l, approx=True)

        # Per-head static lane slices; each head's live values die at the
        # scratch store, so the Python loop keeps vreg pressure bounded.
        for h in range(n_head):
            o0 = h * hd
            qf = qkv_f_scr[:, o0:o0 + hd]
            kf = qkv_f_scr[:, n_hidden + o0:n_hidden + o0 + hd]
            vf = qkv_f_scr[:, 2 * n_hidden + o0:2 * n_hidden + o0 + hd]
            qs = qkv_s_scr[:, o0:o0 + hd]
            ks = qkv_s_scr[:, n_hidden + o0:n_hidden + o0 + hd]
            vs = qkv_s_scr[:, 2 * n_hidden + o0:2 * n_hidden + o0 + hd]

            att_fs_scr[:, o0:o0 + hd] = attend(qf, ks, vs).astype(compute_dtype)
            att_ff_scr[:, o0:o0 + hd] = attend(qs, kf, vf).astype(compute_dtype)

        # ---- single deep-K output projection per stream + residual add ----
        from_space = jnp.dot(att_fs_scr[...], wps_ref[...],
                             preferred_element_type=jnp.float32) + bps_ref[...]
        from_freq = jnp.dot(att_ff_scr[...], wpf_ref[...],
                            preferred_element_type=jnp.float32) + bpf_ref[...]
        spat_out_ref[0] = (spat_ref[0] + from_freq).astype(spat_out_ref.dtype)
        freq_out_ref[0] = (freq_ref[0] + from_space).astype(freq_out_ref.dtype)

    return kernel


def prepare_params(params, n_head, compute_dtype=jnp.bfloat16):
    """One-time parameter re-layout + scale folding. Call once at init."""
    n_hidden = params["w_proj_space"].shape[0]
    assert n_hidden % n_head == 0
    hd = n_hidden // n_head
    scale = 1.0 / math.sqrt(hd)

    def qkv_w(w):  # (C, 3*n_hidden), fold 1/sqrt(hd) into the Q columns
        w = w.astype(jnp.float32)
        return jnp.concatenate([w[:, :n_hidden] * scale, w[:, n_hidden:]],
                               axis=1).astype(compute_dtype)

    def qkv_b(b):  # (3*n_hidden,) -> (1, 3*n_hidden) f32, Q part scaled
        b = b.astype(jnp.float32)
        return jnp.concatenate([b[:n_hidden] * scale,
                                b[n_hidden:]]).reshape(1, 3 * n_hidden)

    return {
        "wqkv_f": qkv_w(params["w_qkv_freq"]),
        "bqkv_f": qkv_b(params["b_qkv_freq"]),
        "wqkv_s": qkv_w(params["w_qkv_spat"]),
        "bqkv_s": qkv_b(params["b_qkv_spat"]),
        "wps": params["w_proj_space"].astype(compute_dtype),   # (n_hidden, C)
        "bps": params["b_proj_space"].astype(jnp.float32).reshape(1, -1),
        "wpf": params["w_proj_freq"].astype(compute_dtype),
        "bpf": params["b_proj_freq"].astype(jnp.float32).reshape(1, -1),
        "n_hidden": n_hidden,
        "n_head": n_head,
        "compute_dtype": compute_dtype,
    }


def cross_attention_fusion(freq, spat, prepared, *, single_buffer_weights=None):
    B, Tf, C = freq.shape
    Bs, Ts, Cs = spat.shape
    assert B == Bs and C == Cs
    n_head = prepared["n_head"]
    n_hidden = prepared["n_hidden"]
    compute_dtype = prepared["compute_dtype"]

    if single_buffer_weights is None:
        single_buffer_weights = hasattr(pl, "Buffered")

    kernel = _make_kernel(n_head, n_hidden, Tf, Ts, C, compute_dtype)

    def const_spec(shape):
        zeros = (0,) * len(shape)
        if single_buffer_weights:
            return pl.BlockSpec(shape, lambda b, _z=zeros: _z,
                                pipeline_mode=pl.Buffered(1))
        return pl.BlockSpec(shape, lambda b, _z=zeros: _z)

    freq_spec = pl.BlockSpec((1, Tf, C), lambda b: (b, 0, 0))
    spat_spec = pl.BlockSpec((1, Ts, C), lambda b: (b, 0, 0))

    grid_spec = pltpu.PrefetchScalarGridSpec(
        num_scalar_prefetch=0,
        grid=(B,),
        in_specs=[
            freq_spec,                               # freq
            spat_spec,                               # spat
            const_spec((C, 3 * n_hidden)),           # W qkv_frequency (fused)
            const_spec((1, 3 * n_hidden)),           # b qkv_frequency
            const_spec((C, 3 * n_hidden)),           # W qkv_spatial
            const_spec((1, 3 * n_hidden)),           # b qkv_spatial
            const_spec((n_hidden, C)),               # W proj_from_space
            const_spec((1, C)),                      # b proj_from_space
            const_spec((n_hidden, C)),               # W proj_from_freq
            const_spec((1, C)),                      # b proj_from_freq
        ],
        out_specs=[spat_spec, freq_spec],
        scratch_shapes=[
            pltpu.VMEM((Tf, 3 * n_hidden), compute_dtype),   # fused QKV (freq)
            pltpu.VMEM((Ts, 3 * n_hidden), compute_dtype),   # fused QKV (spat)
            pltpu.VMEM((Tf, n_hidden), compute_dtype),       # heads -> from_space
            pltpu.VMEM((Ts, n_hidden), compute_dtype),       # heads -> from_freq
        ],
    )

    # ---- VMEM budget (generation-safe: cap at 40 MiB, fits v7x 64 MiB/TC) ----
    itemsize = jnp.dtype(freq.dtype).itemsize
    citem = jnp.dtype(compute_dtype).itemsize
    wbytes = sum(int(np.prod(prepared[k].shape)) * prepared[k].dtype.itemsize
                 for k in ("wqkv_f", "bqkv_f", "wqkv_s", "bqkv_s",
                           "wps", "bps", "wpf", "bpf"))
    if not single_buffer_weights:
        wbytes *= 2                                   # pipeline double-buffers
    act_bytes = 2 * 2 * (Tf + Ts) * C * itemsize      # in + out, double-buffered
    scratch_bytes = (Tf + Ts) * 4 * n_hidden * citem
    vmem_needed = wbytes + act_bytes + scratch_bytes
    vmem_limit = int(min(max(2 * vmem_needed + (2 << 20), 16 << 20), 40 << 20))

    # ---- advisory cost estimate for the XLA scheduler ----
    macs = B * (3 * n_hidden * C * (Tf + Ts)          # fused QKV
                + 4 * Tf * Ts * n_hidden              # scores + p@v, both dirs
                + n_hidden * C * (Tf + Ts))           # output projections
    cost = pl.CostEstimate(
        flops=2 * macs,
        transcendentals=2 * B * n_head * Tf * Ts,
        bytes_accessed=2 * B * (Tf + Ts) * C * itemsize + wbytes)

    out_shapes = (jax.ShapeDtypeStruct((B, Ts, C), spat.dtype),
                  jax.ShapeDtypeStruct((B, Tf, C), freq.dtype))

    # NOTE: input_output_aliases donates freq/spat; callers must not reuse
    # the original arrays after this call.
    spat_out, freq_out = pl.pallas_call(
        kernel,
        out_shape=out_shapes,
        grid_spec=grid_spec,
        input_output_aliases={0: 1, 1: 0},
        cost_estimate=cost,
        compiler_params=pltpu.CompilerParams(
            dimension_semantics=("parallel",),
            vmem_limit_bytes=vmem_limit),
    )(freq, spat,
      prepared["wqkv_f"], prepared["bqkv_f"],
      prepared["wqkv_s"], prepared["bqkv_s"],
      prepared["wps"], prepared["bps"],
      prepared["wpf"], prepared["bpf"])

    return spat_out, freq_out


def reference_jax(freq, spat, params, n_head):
    """Pure-JAX f32 reference of the intended forward pass (for validation)."""
    B, Tf, C = freq.shape
    n_hidden = params["w_proj_space"].shape[0]
    hd = n_hidden // n_head

    def split_heads(x):
        b, t, _ = x.shape
        return x.reshape(b, t, n_head, hd).transpose(0, 2, 1, 3)  # (B,H,T,hd)

    qkv_f = freq @ params["w_qkv_freq"] + params["b_qkv_freq"]
    qkv_s = spat @ params["w_qkv_spat"] + params["b_qkv_spat"]
    qf, kf, vf = jnp.split(qkv_f, 3, axis=-1)
    qs, ks, vs = jnp.split(qkv_s, 3, axis=-1)
    qf, kf, vf = map(split_heads, (qf, kf, vf))
    qs, ks, vs = map(split_heads, (qs, ks, vs))

    def sdpa(q, k, v):
        s = jnp.einsum("bhqd,bhkd->bhqk", q, k) / math.sqrt(hd)
        p = jax.nn.softmax(s, axis=-1)
        return jnp.einsum("bhqk,bhkd->bhqd", p, v)

    from_space = sdpa(qf, ks, vs).transpose(0, 2, 1, 3).reshape(B, Tf, n_hidden)
    from_freq = sdpa(qs, kf, vf).transpose(0, 2, 1, 3).reshape(
        spat.shape[0], spat.shape[1], n_hidden)
    from_space = from_space @ params["w_proj_space"] + params["b_proj_space"]
    from_freq = from_freq @ params["w_proj_freq"] + params["b_proj_freq"]
    return spat + from_freq, freq + from_space


def init_params(key, n_embd, n_hidden):
    ks = jax.random.split(key, 8)
    std = 0.02
    return {
        # weights stored as (in_features, out_features), biases 1-D
        "w_qkv_freq": std * jax.random.normal(ks[0], (n_embd, 3 * n_hidden), jnp.float32),
        "b_qkv_freq": std * jax.random.normal(ks[1], (3 * n_hidden,), jnp.float32),
        "w_qkv_spat": std * jax.random.normal(ks[2], (n_embd, 3 * n_hidden), jnp.float32),
        "b_qkv_spat": std * jax.random.normal(ks[3], (3 * n_hidden,), jnp.float32),
        "w_proj_space": std * jax.random.normal(ks[4], (n_hidden, n_embd), jnp.float32),
        "b_proj_space": std * jax.random.normal(ks[5], (n_embd,), jnp.float32),
        "w_proj_freq": std * jax.random.normal(ks[6], (n_hidden, n_embd), jnp.float32),
        "b_proj_freq": std * jax.random.normal(ks[7], (n_embd,), jnp.float32),
    }


if __name__ == "__main__":
    # Small but MXU/lane-aligned shapes: C = n_hidden = 128 keeps every load
    # and store lane-dense; T = 128 gives full-height M tiles for the matmuls.
    B, T, n_embd, n_head = 2, 128, 128, 2
    n_hidden = n_embd  # module default

    key = jax.random.PRNGKey(0)
    k_freq, k_spat, k_params = jax.random.split(key, 3)
    freq = jax.random.normal(k_freq, (B, T, n_embd), jnp.float32)
    spat = jax.random.normal(k_spat, (B, T, n_embd), jnp.float32)
    params = init_params(k_params, n_embd, n_hidden)

    # f32 reference computed first (before the aliasing kernel call).
    spat_ref, freq_ref = reference_jax(freq, spat, params, n_head)

    # One-time parameter re-layout (done once at init, not per forward call).
    prepared = prepare_params(params, n_head)

    try:
        spat_out, freq_out = cross_attention_fusion(freq, spat, prepared)
    except Exception:
        # Fallback for Pallas versions without pipeline_mode=pl.Buffered(1).
        spat_out, freq_out = cross_attention_fusion(
            freq, spat, prepared, single_buffer_weights=False)
    jax.block_until_ready((spat_out, freq_out))

    # bf16 MXU operands -> relaxed tolerance vs the pure-f32 reference.
    np.testing.assert_allclose(np.asarray(spat_out), np.asarray(spat_ref),
                               rtol=2e-2, atol=2e-2)
    np.testing.assert_allclose(np.asarray(freq_out), np.asarray(freq_ref),
                               rtol=2e-2, atol=2e-2)

    print("KERNEL_OK")
</pallas_src>

<mosaic_0001>
module attributes {stable_mosaic.version = 11 : i64} {
  func.func @kernel(%arg0: i32, %arg1: memref<1x128x128xf32, #tpu.memory_space<vmem>>, %arg2: memref<1x128x128xf32, #tpu.memory_space<vmem>>, %arg3: memref<128x384xbf16, #tpu.memory_space<vmem>>, %arg4: memref<1x384xf32, #tpu.memory_space<vmem>>, %arg5: memref<128x384xbf16, #tpu.memory_space<vmem>>, %arg6: memref<1x384xf32, #tpu.memory_space<vmem>>, %arg7: memref<128x128xbf16, #tpu.memory_space<vmem>>, %arg8: memref<1x128xf32, #tpu.memory_space<vmem>>, %arg9: memref<128x128xbf16, #tpu.memory_space<vmem>>, %arg10: memref<1x128xf32, #tpu.memory_space<vmem>>, %arg11: memref<1x128x128xf32, #tpu.memory_space<vmem>>, %arg12: memref<1x128x128xf32, #tpu.memory_space<vmem>>, %arg13: memref<128x384xbf16, #tpu.memory_space<vmem>>, %arg14: memref<128x384xbf16, #tpu.memory_space<vmem>>, %arg15: memref<128x128xbf16, #tpu.memory_space<vmem>>, %arg16: memref<128x128xbf16, #tpu.memory_space<vmem>>) attributes {dimension_semantics = [#tpu.dimension_semantics<parallel>], iteration_bounds = array<i64: 2>, scalar_prefetch = 0 : i64, scratch_operands = 4 : i64, tpu.core_type = #tpu.core_type<tc>, window_params = [{transform_indices = @transform_0, window_bounds = array<i64: 1, 128, 128>}, {transform_indices = @transform_1, window_bounds = array<i64: 1, 128, 128>}, {pipeline_mode = #tpu.pipeline_mode<synchronous>, transform_indices = @transform_2, window_bounds = array<i64: 128, 384>}, {pipeline_mode = #tpu.pipeline_mode<synchronous>, transform_indices = @transform_3, window_bounds = array<i64: 1, 384>}, {pipeline_mode = #tpu.pipeline_mode<synchronous>, transform_indices = @transform_4, window_bounds = array<i64: 128, 384>}, {pipeline_mode = #tpu.pipeline_mode<synchronous>, transform_indices = @transform_5, window_bounds = array<i64: 1, 384>}, {pipeline_mode = #tpu.pipeline_mode<synchronous>, transform_indices = @transform_6, window_bounds = array<i64: 128, 128>}, {pipeline_mode = #tpu.pipeline_mode<synchronous>, transform_indices = @transform_7, window_bounds = array<i64: 1, 128>}, {pipeline_mode = #tpu.pipeline_mode<synchronous>, transform_indices = @transform_8, window_bounds = array<i64: 128, 128>}, {pipeline_mode = #tpu.pipeline_mode<synchronous>, transform_indices = @transform_9, window_bounds = array<i64: 1, 128>}, {transform_indices = @transform_10, window_bounds = array<i64: 1, 128, 128>}, {transform_indices = @transform_11, window_bounds = array<i64: 1, 128, 128>}]} {
    %c0 = arith.constant 0 : index
    %c0_0 = arith.constant 0 : index
    %c0_1 = arith.constant 0 : index
    %0 = vector.load %arg1[%c0, %c0_0, %c0_1] : memref<1x128x128xf32, #tpu.memory_space<vmem>>, vector<1x128x128xf32>
    %1 = vector.shape_cast %0 : vector<1x128x128xf32> to vector<128x128xf32>
    %2 = arith.truncf %1 : vector<128x128xf32> to vector<128x128xbf16>
    %c0_2 = arith.constant 0 : index
    %c0_3 = arith.constant 0 : index
    %c0_4 = arith.constant 0 : index
    %3 = vector.load %arg2[%c0_2, %c0_3, %c0_4] : memref<1x128x128xf32, #tpu.memory_space<vmem>>, vector<1x128x128xf32>
    %4 = vector.shape_cast %3 : vector<1x128x128xf32> to vector<128x128xf32>
    %5 = arith.truncf %4 : vector<128x128xf32> to vector<128x128xbf16>
    %c0_5 = arith.constant 0 : index
    %c0_6 = arith.constant 0 : index
    %6 = vector.load %arg3[%c0_5, %c0_6] : memref<128x384xbf16, #tpu.memory_space<vmem>>, vector<128x384xbf16>
    %cst = arith.constant dense<0.000000e+00> : vector<128x384xf32>
    %7 = tpu.matmul %2, %6, %cst {dimension_numbers = #tpu.dot_dimension_numbers<[1], [0], [0], [1], [0, 0, 1, 1], [], []>} : vector<128x128xbf16>, vector<128x384xbf16>, vector<128x384xf32> -> vector<128x384xf32>
    %c0_7 = arith.constant 0 : index
    %c0_8 = arith.constant 0 : index
    %8 = vector.load %arg5[%c0_7, %c0_8] : memref<128x384xbf16, #tpu.memory_space<vmem>>, vector<128x384xbf16>
    %cst_9 = arith.constant dense<0.000000e+00> : vector<128x384xf32>
    %9 = tpu.matmul %5, %8, %cst_9 {dimension_numbers = #tpu.dot_dimension_numbers<[1], [0], [0], [1], [0, 0, 1, 1], [], []>} : vector<128x128xbf16>, vector<128x384xbf16>, vector<128x384xf32> -> vector<128x384xf32>
    %c0_10 = arith.constant 0 : index
    %c0_11 = arith.constant 0 : index
    %10 = vector.load %arg4[%c0_10, %c0_11] : memref<1x384xf32, #tpu.memory_space<vmem>>, vector<1x384xf32>
    %11 = vector.broadcast %10 : vector<1x384xf32> to vector<128x384xf32>
    %12 = arith.addf %7, %11 : vector<128x384xf32>
    %13 = arith.truncf %12 : vector<128x384xf32> to vector<128x384xbf16>
    %c0_12 = arith.constant 0 : index
    %c0_13 = arith.constant 0 : index
    %14 = vector.load %arg13[%c0_12, %c0_13] : memref<128x384xbf16, #tpu.memory_space<vmem>>, vector<128x384xbf16>
    tpu.vector_store %arg13[%c0_12, %c0_13], %13 {strides = array<i32>} : memref<128x384xbf16, #tpu.memory_space<vmem>>, vector<128x384xbf16>,
    %c0_14 = arith.constant 0 : index
    %c0_15 = arith.constant 0 : index
    %15 = vector.load %arg6[%c0_14, %c0_15] : memref<1x384xf32, #tpu.memory_space<vmem>>, vector<1x384xf32>
    %16 = vector.broadcast %15 : vector<1x384xf32> to vector<128x384xf32>
    %17 = arith.addf %9, %16 : vector<128x384xf32>
    %18 = arith.truncf %17 : vector<128x384xf32> to vector<128x384xbf16>
    %c0_16 = arith.constant 0 : index
    %c0_17 = arith.constant 0 : index
    %19 = vector.load %arg14[%c0_16, %c0_17] : memref<128x384xbf16, #tpu.memory_space<vmem>>, vector<128x384xbf16>
    tpu.vector_store %arg14[%c0_16, %c0_17], %18 {strides = array<i32>} : memref<128x384xbf16, #tpu.memory_space<vmem>>, vector<128x384xbf16>,
    %c0_18 = arith.constant 0 : index
    %c0_19 = arith.constant 0 : index
    %20 = vector.load %arg13[%c0_18, %c0_19] : memref<128x384xbf16, #tpu.memory_space<vmem>>, vector<128x64xbf16>
    %c0_20 = arith.constant 0 : index
    %c128 = arith.constant 128 : index
    %21 = vector.load %arg13[%c0_20, %c128] : memref<128x384xbf16, #tpu.memory_space<vmem>>, vector<128x64xbf16>
    %c0_21 = arith.constant 0 : index
    %c256 = arith.constant 256 : index
    %22 = vector.load %arg13[%c0_21, %c256] : memref<128x384xbf16, #tpu.memory_space<vmem>>, vector<128x64xbf16>
    %c0_22 = arith.constant 0 : index
    %c0_23 = arith.constant 0 : index
    %23 = vector.load %arg14[%c0_22, %c0_23] : memref<128x384xbf16, #tpu.memory_space<vmem>>, vector<128x64xbf16>
    %c0_24 = arith.constant 0 : index
    %c128_25 = arith.constant 128 : index
    %24 = vector.load %arg14[%c0_24, %c128_25] : memref<128x384xbf16, #tpu.memory_space<vmem>>, vector<128x64xbf16>
    %c0_26 = arith.constant 0 : index
    %c256_27 = arith.constant 256 : index
    %25 = vector.load %arg14[%c0_26, %c256_27] : memref<128x384xbf16, #tpu.memory_space<vmem>>, vector<128x64xbf16>
    %cst_28 = arith.constant dense<0.000000e+00> : vector<128x128xf32>
    %26 = tpu.matmul %20, %24, %cst_28 {dimension_numbers = #tpu.dot_dimension_numbers<[1], [1], [0], [0], [0, 0, 1, 0], [], []>} : vector<128x64xbf16>, vector<128x64xbf16>, vector<128x128xf32> -> vector<128x128xf32>
    %cst_29 = arith.constant dense<0xFF800000> : vector<128xf32>
    %27 = vector.multi_reduction <maximumf>, %26, %cst_29 [1] : vector<128x128xf32> to vector<128xf32>
    %28 = vector.shape_cast %27 : vector<128xf32> to vector<128x1xf32>
    %29 = vector.broadcast %28 : vector<128x1xf32> to vector<128x128xf32>
    %30 = arith.subf %26, %29 : vector<128x128xf32>
    %31 = math.exp %30 : vector<128x128xf32>
    %cst_30 = arith.constant dense<0.000000e+00> : vector<128xf32>
    %32 = vector.multi_reduction <add>, %31, %cst_30 [1] : vector<128x128xf32> to vector<128xf32>
    %33 = vector.shape_cast %32 : vector<128xf32> to vector<128x1xf32>
    %34 = arith.truncf %31 : vector<128x128xf32> to vector<128x128xbf16>
    %cst_31 = arith.constant dense<0.000000e+00> : vector<128x64xf32>
    %35 = tpu.matmul %34, %25, %cst_31 {dimension_numbers = #tpu.dot_dimension_numbers<[1], [0], [0], [1], [0, 0, 1, 1], [], []>} : vector<128x128xbf16>, vector<128x64xbf16>, vector<128x64xf32> -> vector<128x64xf32>
    %36 = tpu.reciprocal %33 {approx = true} : vector<128x1xf32> -> vector<128x1xf32>
    %37 = vector.broadcast %36 : vector<128x1xf32> to vector<128x64xf32>
    %38 = arith.mulf %35, %37 : vector<128x64xf32>
    %39 = arith.truncf %38 : vector<128x64xf32> to vector<128x64xbf16>
    %c0_32 = arith.constant 0 : index
    %c0_33 = arith.constant 0 : index
    %40 = vector.load %arg15[%c0_32, %c0_33] : memref<128x128xbf16, #tpu.memory_space<vmem>>, vector<128x64xbf16>
    tpu.vector_store %arg15[%c0_32, %c0_33], %39 {strides = array<i32>} : memref<128x128xbf16, #tpu.memory_space<vmem>>, vector<128x64xbf16>,
    %cst_34 = arith.constant dense<0.000000e+00> : vector<128x128xf32>
    %41 = tpu.matmul %23, %21, %cst_34 {dimension_numbers = #tpu.dot_dimension_numbers<[1], [1], [0], [0], [0, 0, 1, 0], [], []>} : vector<128x64xbf16>, vector<128x64xbf16>, vector<128x128xf32> -> vector<128x128xf32>
    %cst_35 = arith.constant dense<0xFF800000> : vector<128xf32>
    %42 = vector.multi_reduction <maximumf>, %41, %cst_35 [1] : vector<128x128xf32> to vector<128xf32>
    %43 = vector.shape_cast %42 : vector<128xf32> to vector<128x1xf32>
    %44 = vector.broadcast %43 : vector<128x1xf32> to vector<128x128xf32>
    %45 = arith.subf %41, %44 : vector<128x128xf32>
    %46 = math.exp %45 : vector<128x128xf32>
    %cst_36 = arith.constant dense<0.000000e+00> : vector<128xf32>
    %47 = vector.multi_reduction <add>, %46, %cst_36 [1] : vector<128x128xf32> to vector<128xf32>
    %48 = vector.shape_cast %47 : vector<128xf32> to vector<128x1xf32>
    %49 = arith.truncf %46 : vector<128x128xf32> to vector<128x128xbf16>
    %cst_37 = arith.constant dense<0.000000e+00> : vector<128x64xf32>
    %50 = tpu.matmul %49, %22, %cst_37 {dimension_numbers = #tpu.dot_dimension_numbers<[1], [0], [0], [1], [0, 0, 1, 1], [], []>} : vector<128x128xbf16>, vector<128x64xbf16>, vector<128x64xf32> -> vector<128x64xf32>
    %51 = tpu.reciprocal %48 {approx = true} : vector<128x1xf32> -> vector<128x1xf32>
    %52 = vector.broadcast %51 : vector<128x1xf32> to vector<128x64xf32>
    %53 = arith.mulf %50, %52 : vector<128x64xf32>
    %54 = arith.truncf %53 : vector<128x64xf32> to vector<128x64xbf16>
    %c0_38 = arith.constant 0 : index
    %c0_39 = arith.constant 0 : index
    %55 = vector.load %arg16[%c0_38, %c0_39] : memref<128x128xbf16, #tpu.memory_space<vmem>>, vector<128x64xbf16>
    tpu.vector_store %arg16[%c0_38, %c0_39], %54 {strides = array<i32>} : memref<128x128xbf16, #tpu.memory_space<vmem>>, vector<128x64xbf16>,
    %c0_40 = arith.constant 0 : index
    %c64 = arith.constant 64 : index
    %56 = vector.load %arg13[%c0_40, %c64] : memref<128x384xbf16, #tpu.memory_space<vmem>>, vector<128x64xbf16>
    %c0_41 = arith.constant 0 : index
    %c192 = arith.constant 192 : index
    %57 = vector.load %arg13[%c0_41, %c192] : memref<128x384xbf16, #tpu.memory_space<vmem>>, vector<128x64xbf16>
    %c0_42 = arith.constant 0 : index
    %c320 = arith.constant 320 : index
    %58 = vector.load %arg13[%c0_42, %c320] : memref<128x384xbf16, #tpu.memory_space<vmem>>, vector<128x64xbf16>
    %c0_43 = arith.constant 0 : index
    %c64_44 = arith.constant 64 : index
    %59 = vector.load %arg14[%c0_43, %c64_44] : memref<128x384xbf16, #tpu.memory_space<vmem>>, vector<128x64xbf16>
    %c0_45 = arith.constant 0 : index
    %c192_46 = arith.constant 192 : index
    %60 = vector.load %arg14[%c0_45, %c192_46] : memref<128x384xbf16, #tpu.memory_space<vmem>>, vector<128x64xbf16>
    %c0_47 = arith.constant 0 : index
    %c320_48 = arith.constant 320 : index
    %61 = vector.load %arg14[%c0_47, %c320_48] : memref<128x384xbf16, #tpu.memory_space<vmem>>, vector<128x64xbf16>
    %cst_49 = arith.constant dense<0.000000e+00> : vector<128x128xf32>
    %62 = tpu.matmul %56, %60, %cst_49 {dimension_numbers = #tpu.dot_dimension_numbers<[1], [1], [0], [0], [0, 0, 1, 0], [], []>} : vector<128x64xbf16>, vector<128x64xbf16>, vector<128x128xf32> -> vector<128x128xf32>
    %cst_50 = arith.constant dense<0xFF800000> : vector<128xf32>
    %63 = vector.multi_reduction <maximumf>, %62, %cst_50 [1] : vector<128x128xf32> to vector<128xf32>
    %64 = vector.shape_cast %63 : vector<128xf32> to vector<128x1xf32>
    %65 = vector.broadcast %64 : vector<128x1xf32> to vector<128x128xf32>
    %66 = arith.subf %62, %65 : vector<128x128xf32>
    %67 = math.exp %66 : vector<128x128xf32>
    %cst_51 = arith.constant dense<0.000000e+00> : vector<128xf32>
    %68 = vector.multi_reduction <add>, %67, %cst_51 [1] : vector<128x128xf32> to vector<128xf32>
    %69 = vector.shape_cast %68 : vector<128xf32> to vector<128x1xf32>
    %70 = arith.truncf %67 : vector<128x128xf32> to vector<128x128xbf16>
    %cst_52 = arith.constant dense<0.000000e+00> : vector<128x64xf32>
    %71 = tpu.matmul %70, %61, %cst_52 {dimension_numbers = #tpu.dot_dimension_numbers<[1], [0], [0], [1], [0, 0, 1, 1], [], []>} : vector<128x128xbf16>, vector<128x64xbf16>, vector<128x64xf32> -> vector<128x64xf32>
    %72 = tpu.reciprocal %69 {approx = true} : vector<128x1xf32> -> vector<128x1xf32>
    %73 = vector.broadcast %72 : vector<128x1xf32> to vector<128x64xf32>
    %74 = arith.mulf %71, %73 : vector<128x64xf32>
    %75 = arith.truncf %74 : vector<128x64xf32> to vector<128x64xbf16>
    %c0_53 = arith.constant 0 : index
    %c64_54 = arith.constant 64 : index
    %76 = vector.load %arg15[%c0_53, %c64_54] : memref<128x128xbf16, #tpu.memory_space<vmem>>, vector<128x64xbf16>
    tpu.vector_store %arg15[%c0_53, %c64_54], %75 {strides = array<i32>} : memref<128x128xbf16, #tpu.memory_space<vmem>>, vector<128x64xbf16>,
    %cst_55 = arith.constant dense<0.000000e+00> : vector<128x128xf32>
    %77 = tpu.matmul %59, %57, %cst_55 {dimension_numbers = #tpu.dot_dimension_numbers<[1], [1], [0], [0], [0, 0, 1, 0], [], []>} : vector<128x64xbf16>, vector<128x64xbf16>, vector<128x128xf32> -> vector<128x128xf32>
    %cst_56 = arith.constant dense<0xFF800000> : vector<128xf32>
    %78 = vector.multi_reduction <maximumf>, %77, %cst_56 [1] : vector<128x128xf32> to vector<128xf32>
    %79 = vector.shape_cast %78 : vector<128xf32> to vector<128x1xf32>
    %80 = vector.broadcast %79 : vector<128x1xf32> to vector<128x128xf32>
    %81 = arith.subf %77, %80 : vector<128x128xf32>
    %82 = math.exp %81 : vector<128x128xf32>
    %cst_57 = arith.constant dense<0.000000e+00> : vector<128xf32>
    %83 = vector.multi_reduction <add>, %82, %cst_57 [1] : vector<128x128xf32> to vector<128xf32>
    %84 = vector.shape_cast %83 : vector<128xf32> to vector<128x1xf32>
    %85 = arith.truncf %82 : vector<128x128xf32> to vector<128x128xbf16>
    %cst_58 = arith.constant dense<0.000000e+00> : vector<128x64xf32>
    %86 = tpu.matmul %85, %58, %cst_58 {dimension_numbers = #tpu.dot_dimension_numbers<[1], [0], [0], [1], [0, 0, 1, 1], [], []>} : vector<128x128xbf16>, vector<128x64xbf16>, vector<128x64xf32> -> vector<128x64xf32>
    %87 = tpu.reciprocal %84 {approx = true} : vector<128x1xf32> -> vector<128x1xf32>
    %88 = vector.broadcast %87 : vector<128x1xf32> to vector<128x64xf32>
    %89 = arith.mulf %86, %88 : vector<128x64xf32>
    %90 = arith.truncf %89 : vector<128x64xf32> to vector<128x64xbf16>
    %c0_59 = arith.constant 0 : index
    %c64_60 = arith.constant 64 : index
    %91 = vector.load %arg16[%c0_59, %c64_60] : memref<128x128xbf16, #tpu.memory_space<vmem>>, vector<128x64xbf16>
    tpu.vector_store %arg16[%c0_59, %c64_60], %90 {strides = array<i32>} : memref<128x128xbf16, #tpu.memory_space<vmem>>, vector<128x64xbf16>,
    %c0_61 = arith.constant 0 : index
    %c0_62 = arith.constant 0 : index
    %92 = vector.load %arg15[%c0_61, %c0_62] : memref<128x128xbf16, #tpu.memory_space<vmem>>, vector<128x128xbf16>
    %c0_63 = arith.constant 0 : index
    %c0_64 = arith.constant 0 : index
    %93 = vector.load %arg7[%c0_63, %c0_64] : memref<128x128xbf16, #tpu.memory_space<vmem>>, vector<128x128xbf16>
    %cst_65 = arith.constant dense<0.000000e+00> : vector<128x128xf32>
    %94 = tpu.matmul %92, %93, %cst_65 {dimension_numbers = #tpu.dot_dimension_numbers<[1], [0], [0], [1], [0, 0, 1, 1], [], []>} : vector<128x128xbf16>, vector<128x128xbf16>, vector<128x128xf32> -> vector<128x128xf32>
    %c0_66 = arith.constant 0 : index
    %c0_67 = arith.constant 0 : index
    %95 = vector.load %arg8[%c0_66, %c0_67] : memref<1x128xf32, #tpu.memory_space<vmem>>, vector<1x128xf32>
    %96 = vector.broadcast %95 : vector<1x128xf32> to vector<128x128xf32>
    %97 = arith.addf %94, %96 : vector<128x128xf32>
    %c0_68 = arith.constant 0 : index
    %c0_69 = arith.constant 0 : index
    %98 = vector.load %arg16[%c0_68, %c0_69] : memref<128x128xbf16, #tpu.memory_space<vmem>>, vector<128x128xbf16>
    %c0_70 = arith.constant 0 : index
    %c0_71 = arith.constant 0 : index
    %99 = vector.load %arg9[%c0_70, %c0_71] : memref<128x128xbf16, #tpu.memory_space<vmem>>, vector<128x128xbf16>
    %cst_72 = arith.constant dense<0.000000e+00> : vector<128x128xf32>
    %100 = tpu.matmul %98, %99, %cst_72 {dimension_numbers = #tpu.dot_dimension_numbers<[1], [0], [0], [1], [0, 0, 1, 1], [], []>} : vector<128x128xbf16>, vector<128x128xbf16>, vector<128x128xf32> -> vector<128x128xf32>
    %c0_73 = arith.constant 0 : index
    %c0_74 = arith.constant 0 : index
    %101 = vector.load %arg10[%c0_73, %c0_74] : memref<1x128xf32, #tpu.memory_space<vmem>>, vector<1x128xf32>
    %102 = vector.broadcast %101 : vector<1x128xf32> to vector<128x128xf32>
    %103 = arith.addf %100, %102 : vector<128x128xf32>
    %c0_75 = arith.constant 0 : index
    %c0_76 = arith.constant 0 : index
    %c0_77 = arith.constant 0 : index
    %104 = vector.load %arg2[%c0_75, %c0_76, %c0_77] : memref<1x128x128xf32, #tpu.memory_space<vmem>>, vector<1x128x128xf32>
    %105 = vector.shape_cast %104 : vector<1x128x128xf32> to vector<128x128xf32>
    %106 = arith.addf %105, %103 : vector<128x128xf32>
    %c0_78 = arith.constant 0 : index
    %c0_79 = arith.constant 0 : index
    %c0_80 = arith.constant 0 : index
    %107 = vector.load %arg11[%c0_78, %c0_79, %c0_80] : memref<1x128x128xf32, #tpu.memory_space<vmem>>, vector<1x128x128xf32>
    %108 = vector.shape_cast %107 : vector<1x128x128xf32> to vector<128x128xf32>
    %109 = vector.shape_cast %106 : vector<128x128xf32> to vector<1x128x128xf32>
    tpu.vector_store %arg11[%c0_78, %c0_79, %c0_80], %109 {strides = array<i32>} : memref<1x128x128xf32, #tpu.memory_space<vmem>>, vector<1x128x128xf32>,
    %c0_81 = arith.constant 0 : index
    %c0_82 = arith.constant 0 : index
    %c0_83 = arith.constant 0 : index
    %110 = vector.load %arg1[%c0_81, %c0_82, %c0_83] : memref<1x128x128xf32, #tpu.memory_space<vmem>>, vector<1x128x128xf32>
    %111 = vector.shape_cast %110 : vector<1x128x128xf32> to vector<128x128xf32>
    %112 = arith.addf %111, %97 : vector<128x128xf32>
    %c0_84 = arith.constant 0 : index
    %c0_85 = arith.constant 0 : index
    %c0_86 = arith.constant 0 : index
    %113 = vector.load %arg12[%c0_84, %c0_85, %c0_86] : memref<1x128x128xf32, #tpu.memory_space<vmem>>, vector<1x128x128xf32>
    %114 = vector.shape_cast %113 : vector<1x128x128xf32> to vector<128x128xf32>
    %115 = vector.shape_cast %112 : vector<128x128xf32> to vector<1x128x128xf32>
    tpu.vector_store %arg12[%c0_84, %c0_85, %c0_86], %115 {strides = array<i32>} : memref<1x128x128xf32, #tpu.memory_space<vmem>>, vector<1x128x128xf32>,
    return
  }
  func.func @transform_0(%arg0: i32) -> (i32, i32, i32) {
    %c0_i32 = arith.constant 0 : i32
    %c0_i32_0 = arith.constant 0 : i32
    %c0_i32_1 = arith.constant 0 : i32
    return %arg0, %c0_i32, %c0_i32_0 : i32, i32, i32
  }
  func.func @transform_1(%arg0: i32) -> (i32, i32, i32) {
    %c0_i32 = arith.constant 0 : i32
    %c0_i32_0 = arith.constant 0 : i32
    %c0_i32_1 = arith.constant 0 : i32
    return %arg0, %c0_i32, %c0_i32_0 : i32, i32, i32
  }
  func.func @transform_2(%arg0: i32) -> (i32, i32) {
    %c0_i32 = arith.constant 0 : i32
    %c0_i32_0 = arith.constant 0 : i32
    %c0_i32_1 = arith.constant 0 : i32
    return %c0_i32, %c0_i32_0 : i32, i32
  }
  func.func @transform_3(%arg0: i32) -> (i32, i32) {
    %c0_i32 = arith.constant 0 : i32
    %c0_i32_0 = arith.constant 0 : i32
    %c0_i32_1 = arith.constant 0 : i32
    return %c0_i32, %c0_i32_0 : i32, i32
  }
  func.func @transform_4(%arg0: i32) -> (i32, i32) {
    %c0_i32 = arith.constant 0 : i32
    %c0_i32_0 = arith.constant 0 : i32
    %c0_i32_1 = arith.constant 0 : i32
    return %c0_i32, %c0_i32_0 : i32, i32
  }
  func.func @transform_5(%arg0: i32) -> (i32, i32) {
    %c0_i32 = arith.constant 0 : i32
    %c0_i32_0 = arith.constant 0 : i32
    %c0_i32_1 = arith.constant 0 : i32
    return %c0_i32, %c0_i32_0 : i32, i32
  }
  func.func @transform_6(%arg0: i32) -> (i32, i32) {
    %c0_i32 = arith.constant 0 : i32
    %c0_i32_0 = arith.constant 0 : i32
    %c0_i32_1 = arith.constant 0 : i32
    return %c0_i32, %c0_i32_0 : i32, i32
  }
  func.func @transform_7(%arg0: i32) -> (i32, i32) {
    %c0_i32 = arith.constant 0 : i32
    %c0_i32_0 = arith.constant 0 : i32
    %c0_i32_1 = arith.constant 0 : i32
    return %c0_i32, %c0_i32_0 : i32, i32
  }
  func.func @transform_8(%arg0: i32) -> (i32, i32) {
    %c0_i32 = arith.constant 0 : i32
    %c0_i32_0 = arith.constant 0 : i32
    %c0_i32_1 = arith.constant 0 : i32
    return %c0_i32, %c0_i32_0 : i32, i32
  }
  func.func @transform_9(%arg0: i32) -> (i32, i32) {
    %c0_i32 = arith.constant 0 : i32
    %c0_i32_0 = arith.constant 0 : i32
    %c0_i32_1 = arith.constant 0 : i32
    return %c0_i32, %c0_i32_0 : i32, i32
  }
  func.func @transform_10(%arg0: i32) -> (i32, i32, i32) {
    %c0_i32 = arith.constant 0 : i32
    %c0_i32_0 = arith.constant 0 : i32
    %c0_i32_1 = arith.constant 0 : i32
    return %arg0, %c0_i32, %c0_i32_0 : i32, i32, i32
  }
  func.func @transform_11(%arg0: i32) -> (i32, i32, i32) {
    %c0_i32 = arith.constant 0 : i32
    %c0_i32_0 = arith.constant 0 : i32
    %c0_i32_1 = arith.constant 0 : i32
    return %arg0, %c0_i32, %c0_i32_0 : i32, i32, i32
  }
}

module attributes {stable_mosaic.version = 11 : i64} {
  func.func @kernel(%arg0: i32, %arg1: memref<1x128x128xf32, #tpu.memory_space<vmem>>, %arg2: memref<1x128x128xf32, #tpu.memory_space<vmem>>, %arg3: memref<128x384xbf16, #tpu.memory_space<vmem>>, %arg4: memref<1x384xf32, #tpu.memory_space<vmem>>, %arg5: memref<128x384xbf16, #tpu.memory_space<vmem>>, %arg6: memref<1x384xf32, #tpu.memory_space<vmem>>, %arg7: memref<128x128xbf16, #tpu.memory_space<vmem>>, %arg8: memref<1x128xf32, #tpu.memory_space<vmem>>, %arg9: memref<128x128xbf16, #tpu.memory_space<vmem>>, %arg10: memref<1x128xf32, #tpu.memory_space<vmem>>, %arg11: memref<1x128x128xf32, #tpu.memory_space<vmem>>, %arg12: memref<1x128x128xf32, #tpu.memory_space<vmem>>, %arg13: memref<128x384xbf16, #tpu.memory_space<vmem>>, %arg14: memref<128x384xbf16, #tpu.memory_space<vmem>>, %arg15: memref<128x128xbf16, #tpu.memory_space<vmem>>, %arg16: memref<128x128xbf16, #tpu.memory_space<vmem>>) attributes {dimension_semantics = [#tpu.dimension_semantics<parallel>], iteration_bounds = array<i64: 2>, scalar_prefetch = 0 : i64, scratch_operands = 4 : i64, tpu.core_type = #tpu.core_type<tc>, window_params = [{transform_indices = @transform_0, window_bounds = array<i64: 1, 128, 128>}, {transform_indices = @transform_1, window_bounds = array<i64: 1, 128, 128>}, {pipeline_mode = #tpu.pipeline_mode<synchronous>, transform_indices = @transform_2, window_bounds = array<i64: 128, 384>}, {pipeline_mode = #tpu.pipeline_mode<synchronous>, transform_indices = @transform_3, window_bounds = array<i64: 1, 384>}, {pipeline_mode = #tpu.pipeline_mode<synchronous>, transform_indices = @transform_4, window_bounds = array<i64: 128, 384>}, {pipeline_mode = #tpu.pipeline_mode<synchronous>, transform_indices = @transform_5, window_bounds = array<i64: 1, 384>}, {pipeline_mode = #tpu.pipeline_mode<synchronous>, transform_indices = @transform_6, window_bounds = array<i64: 128, 128>}, {pipeline_mode = #tpu.pipeline_mode<synchronous>, transform_indices = @transform_7, window_bounds = array<i64: 1, 128>}, {pipeline_mode = #tpu.pipeline_mode<synchronous>, transform_indices = @transform_8, window_bounds = array<i64: 128, 128>}, {pipeline_mode = #tpu.pipeline_mode<synchronous>, transform_indices = @transform_9, window_bounds = array<i64: 1, 128>}, {transform_indices = @transform_10, window_bounds = array<i64: 1, 128, 128>}, {transform_indices = @transform_11, window_bounds = array<i64: 1, 128, 128>}]} {
    %c0 = arith.constant 0 : index
    %c0_0 = arith.constant 0 : index
    %c0_1 = arith.constant 0 : index
    %0 = vector.load %arg1[%c0, %c0_0, %c0_1] : memref<1x128x128xf32, #tpu.memory_space<vmem>>, vector<1x128x128xf32>
    %1 = vector.shape_cast %0 : vector<1x128x128xf32> to vector<128x128xf32>
    %2 = arith.truncf %1 : vector<128x128xf32> to vector<128x128xbf16>
    %c0_2 = arith.constant 0 : index
    %c0_3 = arith.constant 0 : index
    %c0_4 = arith.constant 0 : index
    %3 = vector.load %arg2[%c0_2, %c0_3, %c0_4] : memref<1x128x128xf32, #tpu.memory_space<vmem>>, vector<1x128x128xf32>
    %4 = vector.shape_cast %3 : vector<1x128x128xf32> to vector<128x128xf32>
    %5 = arith.truncf %4 : vector<128x128xf32> to vector<128x128xbf16>
    %c0_5 = arith.constant 0 : index
    %c0_6 = arith.constant 0 : index
    %6 = vector.load %arg3[%c0_5, %c0_6] : memref<128x384xbf16, #tpu.memory_space<vmem>>, vector<128x384xbf16>
    %cst = arith.constant dense<0.000000e+00> : vector<128x384xf32>
    %7 = tpu.matmul %2, %6, %cst {dimension_numbers = #tpu.dot_dimension_numbers<[1], [0], [0], [1], [0, 0, 1, 1], [], []>} : vector<128x128xbf16>, vector<128x384xbf16>, vector<128x384xf32> -> vector<128x384xf32>
    %c0_7 = arith.constant 0 : index
    %c0_8 = arith.constant 0 : index
    %8 = vector.load %arg5[%c0_7, %c0_8] : memref<128x384xbf16, #tpu.memory_space<vmem>>, vector<128x384xbf16>
    %cst_9 = arith.constant dense<0.000000e+00> : vector<128x384xf32>
    %9 = tpu.matmul %5, %8, %cst_9 {dimension_numbers = #tpu.dot_dimension_numbers<[1], [0], [0], [1], [0, 0, 1, 1], [], []>} : vector<128x128xbf16>, vector<128x384xbf16>, vector<128x384xf32> -> vector<128x384xf32>
    %c0_10 = arith.constant 0 : index
    %c0_11 = arith.constant 0 : index
    %10 = vector.load %arg4[%c0_10, %c0_11] : memref<1x384xf32, #tpu.memory_space<vmem>>, vector<1x384xf32>
    %11 = vector.broadcast %10 : vector<1x384xf32> to vector<128x384xf32>
    %12 = arith.addf %7, %11 : vector<128x384xf32>
    %13 = arith.truncf %12 : vector<128x384xf32> to vector<128x384xbf16>
    %c0_12 = arith.constant 0 : index
    %c0_13 = arith.constant 0 : index
    %14 = vector.load %arg13[%c0_12, %c0_13] : memref<128x384xbf16, #tpu.memory_space<vmem>>, vector<128x384xbf16>
    tpu.vector_store %arg13[%c0_12, %c0_13], %13 {strides = array<i32>} : memref<128x384xbf16, #tpu.memory_space<vmem>>, vector<128x384xbf16>,
    %c0_14 = arith.constant 0 : index
    %c0_15 = arith.constant 0 : index
    %15 = vector.load %arg6[%c0_14, %c0_15] : memref<1x384xf32, #tpu.memory_space<vmem>>, vector<1x384xf32>
    %16 = vector.broadcast %15 : vector<1x384xf32> to vector<128x384xf32>
    %17 = arith.addf %9, %16 : vector<128x384xf32>
    %18 = arith.truncf %17 : vector<128x384xf32> to vector<128x384xbf16>
    %c0_16 = arith.constant 0 : index
    %c0_17 = arith.constant 0 : index
    %19 = vector.load %arg14[%c0_16, %c0_17] : memref<128x384xbf16, #tpu.memory_space<vmem>>, vector<128x384xbf16>
    tpu.vector_store %arg14[%c0_16, %c0_17], %18 {strides = array<i32>} : memref<128x384xbf16, #tpu.memory_space<vmem>>, vector<128x384xbf16>,
    %c0_18 = arith.constant 0 : index
    %c0_19 = arith.constant 0 : index
    %20 = vector.load %arg13[%c0_18, %c0_19] : memref<128x384xbf16, #tpu.memory_space<vmem>>, vector<128x64xbf16>
    %c0_20 = arith.constant 0 : index
    %c128 = arith.constant 128 : index
    %21 = vector.load %arg13[%c0_20, %c128] : memref<128x384xbf16, #tpu.memory_space<vmem>>, vector<128x64xbf16>
    %c0_21 = arith.constant 0 : index
    %c256 = arith.constant 256 : index
    %22 = vector.load %arg13[%c0_21, %c256] : memref<128x384xbf16, #tpu.memory_space<vmem>>, vector<128x64xbf16>
    %c0_22 = arith.constant 0 : index
    %c0_23 = arith.constant 0 : index
    %23 = vector.load %arg14[%c0_22, %c0_23] : memref<128x384xbf16, #tpu.memory_space<vmem>>, vector<128x64xbf16>
    %c0_24 = arith.constant 0 : index
    %c128_25 = arith.constant 128 : index
    %24 = vector.load %arg14[%c0_24, %c128_25] : memref<128x384xbf16, #tpu.memory_space<vmem>>, vector<128x64xbf16>
    %c0_26 = arith.constant 0 : index
    %c256_27 = arith.constant 256 : index
    %25 = vector.load %arg14[%c0_26, %c256_27] : memref<128x384xbf16, #tpu.memory_space<vmem>>, vector<128x64xbf16>
    %cst_28 = arith.constant dense<0.000000e+00> : vector<128x128xf32>
    %26 = tpu.matmul %20, %24, %cst_28 {dimension_numbers = #tpu.dot_dimension_numbers<[1], [1], [0], [0], [0, 0, 1, 0], [], []>} : vector<128x64xbf16>, vector<128x64xbf16>, vector<128x128xf32> -> vector<128x128xf32>
    %cst_29 = arith.constant dense<0xFF800000> : vector<128xf32>
    %27 = vector.multi_reduction <maximumf>, %26, %cst_29 [1] : vector<128x128xf32> to vector<128xf32>
    %28 = vector.shape_cast %27 : vector<128xf32> to vector<128x1xf32>
    %29 = vector.broadcast %28 : vector<128x1xf32> to vector<128x128xf32>
    %30 = arith.subf %26, %29 : vector<128x128xf32>
    %31 = math.exp %30 : vector<128x128xf32>
    %cst_30 = arith.constant dense<0.000000e+00> : vector<128xf32>
    %32 = vector.multi_reduction <add>, %31, %cst_30 [1] : vector<128x128xf32> to vector<128xf32>
    %33 = vector.shape_cast %32 : vector<128xf32> to vector<128x1xf32>
    %34 = arith.truncf %31 : vector<128x128xf32> to vector<128x128xbf16>
    %cst_31 = arith.constant dense<0.000000e+00> : vector<128x64xf32>
    %35 = tpu.matmul %34, %25, %cst_31 {dimension_numbers = #tpu.dot_dimension_numbers<[1], [0], [0], [1], [0, 0, 1, 1], [], []>} : vector<128x128xbf16>, vector<128x64xbf16>, vector<128x64xf32> -> vector<128x64xf32>
    %36 = tpu.reciprocal %33 {approx = true} : vector<128x1xf32> -> vector<128x1xf32>
    %37 = vector.broadcast %36 : vector<128x1xf32> to vector<128x64xf32>
    %38 = arith.mulf %35, %37 : vector<128x64xf32>
    %39 = arith.truncf %38 : vector<128x64xf32> to vector<128x64xbf16>
    %c0_32 = arith.constant 0 : index
    %c0_33 = arith.constant 0 : index
    %40 = vector.load %arg15[%c0_32, %c0_33] : memref<128x128xbf16, #tpu.memory_space<vmem>>, vector<128x64xbf16>
    tpu.vector_store %arg15[%c0_32, %c0_33], %39 {strides = array<i32>} : memref<128x128xbf16, #tpu.memory_space<vmem>>, vector<128x64xbf16>,
    %cst_34 = arith.constant dense<0.000000e+00> : vector<128x128xf32>
    %41 = tpu.matmul %23, %21, %cst_34 {dimension_numbers = #tpu.dot_dimension_numbers<[1], [1], [0], [0], [0, 0, 1, 0], [], []>} : vector<128x64xbf16>, vector<128x64xbf16>, vector<128x128xf32> -> vector<128x128xf32>
    %cst_35 = arith.constant dense<0xFF800000> : vector<128xf32>
    %42 = vector.multi_reduction <maximumf>, %41, %cst_35 [1] : vector<128x128xf32> to vector<128xf32>
    %43 = vector.shape_cast %42 : vector<128xf32> to vector<128x1xf32>
    %44 = vector.broadcast %43 : vector<128x1xf32> to vector<128x128xf32>
    %45 = arith.subf %41, %44 : vector<128x128xf32>
    %46 = math.exp %45 : vector<128x128xf32>
    %cst_36 = arith.constant dense<0.000000e+00> : vector<128xf32>
    %47 = vector.multi_reduction <add>, %46, %cst_36 [1] : vector<128x128xf32> to vector<128xf32>
    %48 = vector.shape_cast %47 : vector<128xf32> to vector<128x1xf32>
    %49 = arith.truncf %46 : vector<128x128xf32> to vector<128x128xbf16>
    %cst_37 = arith.constant dense<0.000000e+00> : vector<128x64xf32>
    %50 = tpu.matmul %49, %22, %cst_37 {dimension_numbers = #tpu.dot_dimension_numbers<[1], [0], [0], [1], [0, 0, 1, 1], [], []>} : vector<128x128xbf16>, vector<128x64xbf16>, vector<128x64xf32> -> vector<128x64xf32>
    %51 = tpu.reciprocal %48 {approx = true} : vector<128x1xf32> -> vector<128x1xf32>
    %52 = vector.broadcast %51 : vector<128x1xf32> to vector<128x64xf32>
    %53 = arith.mulf %50, %52 : vector<128x64xf32>
    %54 = arith.truncf %53 : vector<128x64xf32> to vector<128x64xbf16>
    %c0_38 = arith.constant 0 : index
    %c0_39 = arith.constant 0 : index
    %55 = vector.load %arg16[%c0_38, %c0_39] : memref<128x128xbf16, #tpu.memory_space<vmem>>, vector<128x64xbf16>
    tpu.vector_store %arg16[%c0_38, %c0_39], %54 {strides = array<i32>} : memref<128x128xbf16, #tpu.memory_space<vmem>>, vector<128x64xbf16>,
    %c0_40 = arith.constant 0 : index
    %c64 = arith.constant 64 : index
    %56 = vector.load %arg13[%c0_40, %c64] : memref<128x384xbf16, #tpu.memory_space<vmem>>, vector<128x64xbf16>
    %c0_41 = arith.constant 0 : index
    %c192 = arith.constant 192 : index
    %57 = vector.load %arg13[%c0_41, %c192] : memref<128x384xbf16, #tpu.memory_space<vmem>>, vector<128x64xbf16>
    %c0_42 = arith.constant 0 : index
    %c320 = arith.constant 320 : index
    %58 = vector.load %arg13[%c0_42, %c320] : memref<128x384xbf16, #tpu.memory_space<vmem>>, vector<128x64xbf16>
    %c0_43 = arith.constant 0 : index
    %c64_44 = arith.constant 64 : index
    %59 = vector.load %arg14[%c0_43, %c64_44] : memref<128x384xbf16, #tpu.memory_space<vmem>>, vector<128x64xbf16>
    %c0_45 = arith.constant 0 : index
    %c192_46 = arith.constant 192 : index
    %60 = vector.load %arg14[%c0_45, %c192_46] : memref<128x384xbf16, #tpu.memory_space<vmem>>, vector<128x64xbf16>
    %c0_47 = arith.constant 0 : index
    %c320_48 = arith.constant 320 : index
    %61 = vector.load %arg14[%c0_47, %c320_48] : memref<128x384xbf16, #tpu.memory_space<vmem>>, vector<128x64xbf16>
    %cst_49 = arith.constant dense<0.000000e+00> : vector<128x128xf32>
    %62 = tpu.matmul %56, %60, %cst_49 {dimension_numbers = #tpu.dot_dimension_numbers<[1], [1], [0], [0], [0, 0, 1, 0], [], []>} : vector<128x64xbf16>, vector<128x64xbf16>, vector<128x128xf32> -> vector<128x128xf32>
    %cst_50 = arith.constant dense<0xFF800000> : vector<128xf32>
    %63 = vector.multi_reduction <maximumf>, %62, %cst_50 [1] : vector<128x128xf32> to vector<128xf32>
    %64 = vector.shape_cast %63 : vector<128xf32> to vector<128x1xf32>
    %65 = vector.broadcast %64 : vector<128x1xf32> to vector<128x128xf32>
    %66 = arith.subf %62, %65 : vector<128x128xf32>
    %67 = math.exp %66 : vector<128x128xf32>
    %cst_51 = arith.constant dense<0.000000e+00> : vector<128xf32>
    %68 = vector.multi_reduction <add>, %67, %cst_51 [1] : vector<128x128xf32> to vector<128xf32>
    %69 = vector.shape_cast %68 : vector<128xf32> to vector<128x1xf32>
    %70 = arith.truncf %67 : vector<128x128xf32> to vector<128x128xbf16>
    %cst_52 = arith.constant dense<0.000000e+00> : vector<128x64xf32>
    %71 = tpu.matmul %70, %61, %cst_52 {dimension_numbers = #tpu.dot_dimension_numbers<[1], [0], [0], [1], [0, 0, 1, 1], [], []>} : vector<128x128xbf16>, vector<128x64xbf16>, vector<128x64xf32> -> vector<128x64xf32>
    %72 = tpu.reciprocal %69 {approx = true} : vector<128x1xf32> -> vector<128x1xf32>
    %73 = vector.broadcast %72 : vector<128x1xf32> to vector<128x64xf32>
    %74 = arith.mulf %71, %73 : vector<128x64xf32>
    %75 = arith.truncf %74 : vector<128x64xf32> to vector<128x64xbf16>
    %c0_53 = arith.constant 0 : index
    %c64_54 = arith.constant 64 : index
    %76 = vector.load %arg15[%c0_53, %c64_54] : memref<128x128xbf16, #tpu.memory_space<vmem>>, vector<128x64xbf16>
    tpu.vector_store %arg15[%c0_53, %c64_54], %75 {strides = array<i32>} : memref<128x128xbf16, #tpu.memory_space<vmem>>, vector<128x64xbf16>,
    %cst_55 = arith.constant dense<0.000000e+00> : vector<128x128xf32>
    %77 = tpu.matmul %59, %57, %cst_55 {dimension_numbers = #tpu.dot_dimension_numbers<[1], [1], [0], [0], [0, 0, 1, 0], [], []>} : vector<128x64xbf16>, vector<128x64xbf16>, vector<128x128xf32> -> vector<128x128xf32>
    %cst_56 = arith.constant dense<0xFF800000> : vector<128xf32>
    %78 = vector.multi_reduction <maximumf>, %77, %cst_56 [1] : vector<128x128xf32> to vector<128xf32>
    %79 = vector.shape_cast %78 : vector<128xf32> to vector<128x1xf32>
    %80 = vector.broadcast %79 : vector<128x1xf32> to vector<128x128xf32>
    %81 = arith.subf %77, %80 : vector<128x128xf32>
    %82 = math.exp %81 : vector<128x128xf32>
    %cst_57 = arith.constant dense<0.000000e+00> : vector<128xf32>
    %83 = vector.multi_reduction <add>, %82, %cst_57 [1] : vector<128x128xf32> to vector<128xf32>
    %84 = vector.shape_cast %83 : vector<128xf32> to vector<128x1xf32>
    %85 = arith.truncf %82 : vector<128x128xf32> to vector<128x128xbf16>
    %cst_58 = arith.constant dense<0.000000e+00> : vector<128x64xf32>
    %86 = tpu.matmul %85, %58, %cst_58 {dimension_numbers = #tpu.dot_dimension_numbers<[1], [0], [0], [1], [0, 0, 1, 1], [], []>} : vector<128x128xbf16>, vector<128x64xbf16>, vector<128x64xf32> -> vector<128x64xf32>
    %87 = tpu.reciprocal %84 {approx = true} : vector<128x1xf32> -> vector<128x1xf32>
    %88 = vector.broadcast %87 : vector<128x1xf32> to vector<128x64xf32>
    %89 = arith.mulf %86, %88 : vector<128x64xf32>
    %90 = arith.truncf %89 : vector<128x64xf32> to vector<128x64xbf16>
    %c0_59 = arith.constant 0 : index
    %c64_60 = arith.constant 64 : index
    %91 = vector.load %arg16[%c0_59, %c64_60] : memref<128x128xbf16, #tpu.memory_space<vmem>>, vector<128x64xbf16>
    tpu.vector_store %arg16[%c0_59, %c64_60], %90 {strides = array<i32>} : memref<128x128xbf16, #tpu.memory_space<vmem>>, vector<128x64xbf16>,
    %c0_61 = arith.constant 0 : index
    %c0_62 = arith.constant 0 : index
    %92 = vector.load %arg15[%c0_61, %c0_62] : memref<128x128xbf16, #tpu.memory_space<vmem>>, vector<128x128xbf16>
    %c0_63 = arith.constant 0 : index
    %c0_64 = arith.constant 0 : index
    %93 = vector.load %arg7[%c0_63, %c0_64] : memref<128x128xbf16, #tpu.memory_space<vmem>>, vector<128x128xbf16>
    %cst_65 = arith.constant dense<0.000000e+00> : vector<128x128xf32>
    %94 = tpu.matmul %92, %93, %cst_65 {dimension_numbers = #tpu.dot_dimension_numbers<[1], [0], [0], [1], [0, 0, 1, 1], [], []>} : vector<128x128xbf16>, vector<128x128xbf16>, vector<128x128xf32> -> vector<128x128xf32>
    %c0_66 = arith.constant 0 : index
    %c0_67 = arith.constant 0 : index
    %95 = vector.load %arg8[%c0_66, %c0_67] : memref<1x128xf32, #tpu.memory_space<vmem>>, vector<1x128xf32>
    %96 = vector.broadcast %95 : vector<1x128xf32> to vector<128x128xf32>
    %97 = arith.addf %94, %96 : vector<128x128xf32>
    %c0_68 = arith.constant 0 : index
    %c0_69 = arith.constant 0 : index
    %98 = vector.load %arg16[%c0_68, %c0_69] : memref<128x128xbf16, #tpu.memory_space<vmem>>, vector<128x128xbf16>
    %c0_70 = arith.constant 0 : index
    %c0_71 = arith.constant 0 : index
    %99 = vector.load %arg9[%c0_70, %c0_71] : memref<128x128xbf16, #tpu.memory_space<vmem>>, vector<128x128xbf16>
    %cst_72 = arith.constant dense<0.000000e+00> : vector<128x128xf32>
    %100 = tpu.matmul %98, %99, %cst_72 {dimension_numbers = #tpu.dot_dimension_numbers<[1], [0], [0], [1], [0, 0, 1, 1], [], []>} : vector<128x128xbf16>, vector<128x128xbf16>, vector<128x128xf32> -> vector<128x128xf32>
    %c0_73 = arith.constant 0 : index
    %c0_74 = arith.constant 0 : index
    %101 = vector.load %arg10[%c0_73, %c0_74] : memref<1x128xf32, #tpu.memory_space<vmem>>, vector<1x128xf32>
    %102 = vector.broadcast %101 : vector<1x128xf32> to vector<128x128xf32>
    %103 = arith.addf %100, %102 : vector<128x128xf32>
    %c0_75 = arith.constant 0 : index
    %c0_76 = arith.constant 0 : index
    %c0_77 = arith.constant 0 : index
    %104 = vector.load %arg2[%c0_75, %c0_76, %c0_77] : memref<1x128x128xf32, #tpu.memory_space<vmem>>, vector<1x128x128xf32>
    %105 = vector.shape_cast %104 : vector<1x128x128xf32> to vector<128x128xf32>
    %106 = arith.addf %105, %103 : vector<128x128xf32>
    %c0_78 = arith.constant 0 : index
    %c0_79 = arith.constant 0 : index
    %c0_80 = arith.constant 0 : index
    %107 = vector.load %arg11[%c0_78, %c0_79, %c0_80] : memref<1x128x128xf32, #tpu.memory_space<vmem>>, vector<1x128x128xf32>
    %108 = vector.shape_cast %107 : vector<1x128x128xf32> to vector<128x128xf32>
    %109 = vector.shape_cast %106 : vector<128x128xf32> to vector<1x128x128xf32>
    tpu.vector_store %arg11[%c0_78, %c0_79, %c0_80], %109 {strides = array<i32>} : memref<1x128x128xf32, #tpu.memory_space<vmem>>, vector<1x128x128xf32>,
    %c0_81 = arith.constant 0 : index
    %c0_82 = arith.constant 0 : index
    %c0_83 = arith.constant 0 : index
    %110 = vector.load %arg1[%c0_81, %c0_82, %c0_83] : memref<1x128x128xf32, #tpu.memory_space<vmem>>, vector<1x128x128xf32>
    %111 = vector.shape_cast %110 : vector<1x128x128xf32> to vector<128x128xf32>
    %112 = arith.addf %111, %97 : vector<128x128xf32>
    %c0_84 = arith.constant 0 : index
    %c0_85 = arith.constant 0 : index
    %c0_86 = arith.constant 0 : index
    %113 = vector.load %arg12[%c0_84, %c0_85, %c0_86] : memref<1x128x128xf32, #tpu.memory_space<vmem>>, vector<1x128x128xf32>
    %114 = vector.shape_cast %113 : vector<1x128x128xf32> to vector<128x128xf32>
    %115 = vector.shape_cast %112 : vector<128x128xf32> to vector<1x128x128xf32>
    tpu.vector_store %arg12[%c0_84, %c0_85, %c0_86], %115 {strides = array<i32>} : memref<1x128x128xf32, #tpu.memory_space<vmem>>, vector<1x128x128xf32>,
    return
  }
  func.func @transform_0(%arg0: i32) -> (i32, i32, i32) {
    %c0_i32 = arith.constant 0 : i32
    %c0_i32_0 = arith.constant 0 : i32
    %c0_i32_1 = arith.constant 0 : i32
    return %arg0, %c0_i32, %c0_i32_0 : i32, i32, i32
  }
  func.func @transform_1(%arg0: i32) -> (i32, i32, i32) {
    %c0_i32 = arith.constant 0 : i32
    %c0_i32_0 = arith.constant 0 : i32
    %c0_i32_1 = arith.constant 0 : i32
    return %arg0, %c0_i32, %c0_i32_0 : i32, i32, i32
  }
  func.func @transform_2(%arg0: i32) -> (i32, i32) {
    %c0_i32 = arith.constant 0 : i32
    %c0_i32_0 = arith.constant 0 : i32
    %c0_i32_1 = arith.constant 0 : i32
    return %c0_i32, %c0_i32_0 : i32, i32
  }
  func.func @transform_3(%arg0: i32) -> (i32, i32) {
    %c0_i32 = arith.constant 0 : i32
    %c0_i32_0 = arith.constant 0 : i32
    %c0_i32_1 = arith.constant 0 : i32
    return %c0_i32, %c0_i32_0 : i32, i32
  }
  func.func @transform_4(%arg0: i32) -> (i32, i32) {
    %c0_i32 = arith.constant 0 : i32
    %c0_i32_0 = arith.constant 0 : i32
    %c0_i32_1 = arith.constant 0 : i32
    return %c0_i32, %c0_i32_0 : i32, i32
  }
  func.func @transform_5(%arg0: i32) -> (i32, i32) {
    %c0_i32 = arith.constant 0 : i32
    %c0_i32_0 = arith.constant 0 : i32
    %c0_i32_1 = arith.constant 0 : i32
    return %c0_i32, %c0_i32_0 : i32, i32
  }
  func.func @transform_6(%arg0: i32) -> (i32, i32) {
    %c0_i32 = arith.constant 0 : i32
    %c0_i32_0 = arith.constant 0 : i32
    %c0_i32_1 = arith.constant 0 : i32
    return %c0_i32, %c0_i32_0 : i32, i32
  }
  func.func @transform_7(%arg0: i32) -> (i32, i32) {
    %c0_i32 = arith.constant 0 : i32
    %c0_i32_0 = arith.constant 0 : i32
    %c0_i32_1 = arith.constant 0 : i32
    return %c0_i32, %c0_i32_0 : i32, i32
  }
  func.func @transform_8(%arg0: i32) -> (i32, i32) {
    %c0_i32 = arith.constant 0 : i32
    %c0_i32_0 = arith.constant 0 : i32
    %c0_i32_1 = arith.constant 0 : i32
    return %c0_i32, %c0_i32_0 : i32, i32
  }
  func.func @transform_9(%arg0: i32) -> (i32, i32) {
    %c0_i32 = arith.constant 0 : i32
    %c0_i32_0 = arith.constant 0 : i32
    %c0_i32_1 = arith.constant 0 : i32
    return %c0_i32, %c0_i32_0 : i32, i32
  }
  func.func @transform_10(%arg0: i32) -> (i32, i32, i32) {
    %c0_i32 = arith.constant 0 : i32
    %c0_i32_0 = arith.constant 0 : i32
    %c0_i32_1 = arith.constant 0 : i32
    return %arg0, %c0_i32, %c0_i32_0 : i32, i32, i32
  }
  func.func @transform_11(%arg0: i32) -> (i32, i32, i32) {
    %c0_i32 = arith.constant 0 : i32
    %c0_i32_0 = arith.constant 0 : i32
    %c0_i32_1 = arith.constant 0 : i32
    return %arg0, %c0_i32, %c0_i32_0 : i32, i32, i32
  }
}

</mosaic_0001>

<bundles_post_ra>
// kernel: tpu_custom_call.1
= control target key start
LH: loop header
LB: loop body
LE: loop exit
PB: predicated region body
PF: predicated region fallthrough
CT: control target
= control target key end

     0   :  { %s7228_s0 = inlined_call_operand.hbm [shape: f32[2,128,128], index: 0, kind: input, shape index: {}, may-alias: {0,11}]   ;;  %s7229_s1 = inlined_call_operand.hbm [shape: f32[2,128,128], index: 1, kind: input, shape index: {}, may-alias: {1,10}]   ;;  %s7230_s2 = inlined_call_operand.vmem [shape: bf16[128,384], index: 2, kind: input, shape index: {}]   ;;  %s7231_s3 = inlined_call_operand.vmem [shape: f32[1,384], index: 3, kind: input, shape index: {}]   ;;  %s7232_s4 = inlined_call_operand.vmem [shape: bf16[128,384], index: 4, kind: input, shape index: {}]   ;;  %s7233_s5 = inlined_call_operand.vmem [shape: f32[1,384], index: 5, kind: input, shape index: {}]   ;;  %s7234_s6 = inlined_call_operand.vmem [shape: bf16[128,128], index: 6, kind: input, shape index: {}]   ;;  %s7235_s7 = inlined_call_operand.vmem [shape: f32[1,128], index: 7, kind: input, shape index: {}]   ;;  %s7236_s8 = inlined_call_operand.vmem [shape: bf16[128,128], index: 8, kind: input, shape index: {}]   ;;  %s7237_s9 = inlined_call_operand.vmem [shape: f32[1,128], index: 9, kind: input, shape index: {}]   ;;  %s7238_s10 = inlined_call_operand.hbm [shape: f32[2,128,128], index: 10, kind: output, shape index: {0}, may-alias: {1,10}]   ;;  %s7239_s11 = inlined_call_operand.hbm [shape: f32[2,128,128], index: 11, kind: output, shape index: {1}, may-alias: {0,11}]  }
   0x1   :  { %7280 = sst [smem:[#allocation78_spill]] %s7228_s0 }
   0x2   :  { %17 = vsyncpa [#allocation7], 0 }
   0x3   :  { %19 = vsyncpa [#allocation7 + $0x1], 0 }
   0x4   :  { %20 = vsyncpa [#allocation10], 0 }
   0x5   :  { %22 = vsyncpa [#allocation10 + $0x1], 0 }
   0x6   :  { %23 = vsyncpa [#allocation8], 0 }
   0x7   :  { %25 = vsyncpa [#allocation8 + $0x1], 0 }
   0x8   :  { %26 = vsyncpa [#allocation13], 0 }
   0x9   :  { %28 = vsyncpa [#allocation13 + $0x1], 0  ;;  %s5328_s17 = smov 0   ;;  %s5330_s18 = smov 0  }
   0xa   :  { %s5332_s19 = smov 0   ;;  %s5334_s20 = smov 0  }
   0xb LB: > { %7281 = sst [smem:[#allocation18_spill]] %s5244_s17  ;;  %s5349_s21 = sadd.s32 4294967295, %s5256_s20   ;;  %s5256_s20 = sphi %s5334_s20, %s7433_s20   ;;  %s5252_s19 = sphi %s5332_s19, %s7435_s19   ;;  %s5248_s18 = sphi %s5330_s18, %s7437_s18   ;;  %s5244_s17 = sphi %s5328_s17, %s7436_s17  }
   0xc   : > { %7282 = sst [smem:[#allocation19_spill]] %s5252_s19  ;;  %s3948_s22 = sadd.s32 4294967294, %s5256_s20  }
   0xd   : > { %s5353_s23 = sadd.s32 1, %s5256_s20   ;;  %s41_s24 = sadd.s32 1, %s5252_s19 }
   0xe   : > { %7283 = sst [smem:[#allocation20_spill]] %s5353_s23  ;;  %s38_s25 = ssub.s32 %s5256_s20, %s5353_s23 }
   0xf   : > { %p48_p0 = scmp.ne.s32.totalorder %s5252_s19, %s5248_s18  ;;  %p39_p1 = scmp.eq.s32.totalorder %s38_s25, 0 }
  0x10   : > { %p49_p2 = scmp.eq.s32.totalorder %s5256_s20, 0  ;;  %p54_p3 = scmp.ne.s32.totalorder %s5248_s18, %s5244_s17 }
  0x11   : > { %p55_p4 = scmp.eq.s32.totalorder %s5349_s21, 0  ;;  %p272_p7 = scmp.eq.s32.totalorder %s5349_s21, 1 }
  0x12   : > { %s5365_s26 = scalar_select %p39_p1, %s5252_s19, %s41_s24  }
  0x13   : > { %p5367_p5 = por %p49_p2, %p48_p0  ;;  %p5371_p6 = por %p55_p4, %p54_p3 }
  0x14   : > { %7284 = sst [smem:[#allocation21_spill]] %s5365_s26  ;;  %p278_p8 = scmp.eq.s32.totalorder %s3948_s22, 1 }
  0x15   : > { %s7286_s28 = scalar_select %p5371_p6, 1, 0 }
  0x16   : > { %p4718_p10 = scmp.lt.s32.totalorder %s5256_s20, 2  ;;  %p5378_p11 = por %p272_p7, %p48_p0 }
  0x17   : > { %p5382_p12 = por %p278_p8, %p54_p3  ;;  %s5387_s12 = sand.u32 1, %s5252_s19  }
  0x18   : > { %s7287_s29 = scalar_select %p5378_p11, 1, 0 }
  0x19   : > { %s7288_s30 = scalar_select %p5382_p12, 1, 0 }
  0x1a   : > { %s7242_s13 = sshll.u32 %s5256_s20, 11  ;;  %s7241_s14 = sshll.u32 %s5387_s12, 7 }
  0x1b   : > { %7289 = sst [smem:[#allocation22_spill]] %s7288_s30  ;;  %s7290_s0 = sld [smem:[#allocation78_spill]] }
  0x1c   : > { %s352_s24 = scalar_lea.vmem [#allocation6], %s7241_s14  ;;  %p5402_p13 = pnand %p4718_p10, %p5367_p5 }
  0x1d   : > { %s359_s25 = sshll.u32 %s352_s24, 4  ;;  %s5406_s25 = int_to_ptr.vmem [resolvable:$true] %s359_s25 }
  0x1e   : > { %p5096_p1 = pneg %p5402_p13 }
  0x21   : > { %s5396_s22 = scalar_lea.hbm %s7290_s0, %s7242_s13  ;;  %s5099_s27 = scalar_lea.hbm %s7290_s0, 4096 }
  0x22   : > { %s5094_s15 = scalar_lea.hbm %s5396_s22, 2048  ;;  %p5100_p4 = scmp.lt.u32.totalorder %s5396_s22, %s7290_s0 }
  0x23   : > { %p5095_p0 = scmp.ne.s32.totalorder %s5396_s22, %s5094_s15  ;;  %p5101_p5 = scmp.lt.u32.totalorder %s5099_s27, %s5094_s15 }
  0x24   : > { %p5103_p8 = scmp.lt.u32.totalorder %s5094_s15, %s5396_s22 }
  0x25   : > { %p5097_p2 = pnand %p5096_p1, %p5095_p0  ;;  %p5102_p7 = por %p5101_p5, %p5100_p4 }
  0x27   : > { %p5098_p3 = pneg %p5097_p2  ;;  %p5104_p10 = por %p5103_p8, %p5102_p7 }
  0x29   : > { %p5105_p9 = pnand %p5104_p10, %p5098_p3 }
  0x2b   : > { %5108 = shalt.err (!%p5105_p9)
}
  0x2c   : > { %s5109_s19 = scalar_lea.vmem %s5406_s25, 2048  ;;  %s5258_s16 = smov [#allocation6]  }
  0x2d   : > { %p5110_p0 = scmp.ne.s32.totalorder %s5406_s25, %s5109_s19  ;;  %s5114_s24 = sshll.u32 %s5258_s16, 4  ;;  %s5115_s24 = int_to_ptr.vmem [resolvable:$false] %s5114_s24 }
  0x2e   : > { %s5116_s13 = scalar_lea.vmem %s5115_s24, 4096  ;;  %p5117_p11 = scmp.lt.s32.totalorder %s5406_s25, %s5115_s24 }
  0x2f   : > { %p5112_p2 = pnand %p5110_p0, %p5096_p1  ;;  %p5118_p4 = scmp.lt.s32.totalorder %s5116_s13, %s5109_s19 }
  0x31   : > { %p5113_p12 = pneg %p5112_p2  ;;  %p5119_p5 = por %p5118_p4, %p5117_p11 }
  0x33   : > { %p5120_p7 = pnand %p5119_p5, %p5113_p12 }
  0x35   : > { %5123 = shalt.err (!%p5120_p7)
}
  0x36   : > { %s7248_s14 = smov 128   ;;  %s5260_s15 = smov 8  }
  0x37   : > { %s7292_s19 = scalar_lea.sflag [#allocation7], %s5387_s12  ;;  %p3957_p9 = scmp.ge.s32.totalorder %s5256_s20, 1 }
  0x38   : > { %4707 = dma.hbm_to_vmem [thread:$0]  (!%p5402_p13), %s5396_s22, 2048, %s5406_s25, %s7292_s19, %s7248_s14, %s7248_s14, %s5260_s15  }
  0x39   : > { %p388_p11 = scmp.lt.s32.totalorder %s5256_s20, 3  ;;  %s7294_s16 = sshll.u32 %s5256_s20, 11 }
  0x3a   : > { %s5450_s0 = scalar_lea.hbm %s7229_s1, %s7294_s16  ;;  %s7295_s23 = sshll.u32 %s5387_s12, 7 }
  0x3b   : > { %p5441_p12 = pnand %p3957_p9, %p388_p11  ;;  %s373_s30 = scalar_lea.vmem [#allocation9], %s7295_s23 }
  0x3c   : > { %s380_s17 = sshll.u32 %s373_s30, 4  ;;  %s370_s22 = scalar_lea.sflag [#allocation10], %s5387_s12  ;;  %s5454_s17 = int_to_ptr.vmem [resolvable:$true] %s380_s17 }
  0x3d   : > { %s5124_s25 = scalar_lea.hbm %s5450_s0, 2048  ;;  %s5129_s16 = scalar_lea.hbm %s7229_s1, 4096 }
  0x3e   : > { %p5125_p3 = scmp.ne.s32.totalorder %s5450_s0, %s5124_s25  ;;  %p5130_p0 = scmp.lt.u32.totalorder %s5450_s0, %s7229_s1 }
  0x3f   : > { %p5131_p2 = scmp.lt.u32.totalorder %s5129_s16, %s5124_s25  ;;  %p5133_p5 = scmp.lt.u32.totalorder %s5124_s25, %s5450_s0 }
  0x40   : > { %p5127_p8 = pnand %p5125_p3, %p5096_p1 }
  0x41   : > { %p5132_p4 = por %p5131_p2, %p5130_p0 }
  0x42   : > { %p5128_p10 = pneg %p5127_p8 }
  0x43   : > { %p5134_p7 = por %p5133_p5, %p5132_p4 }
  0x45   : > { %p5135_p9 = pnand %p5134_p7, %p5128_p10 }
  0x47   : > { %5138 = shalt.err (!%p5135_p9)
}
  0x48   : > { %s5139_s23 = scalar_lea.vmem %s5454_s17, 2048  ;;  %s5261_s30 = smov [#allocation9]  }
  0x49   : > { %p5140_p11 = scmp.ne.s32.totalorder %s5454_s17, %s5139_s23  ;;  %s5144_s19 = sshll.u32 %s5261_s30, 4  ;;  %s5145_s19 = int_to_ptr.vmem [resolvable:$false] %s5144_s19 }
  0x4a   : > { %s5146_s14 = scalar_lea.vmem %s5145_s19, 4096  ;;  %p5147_p6 = scmp.lt.s32.totalorder %s5454_s17, %s5145_s19 }
  0x4b   : > { %p5142_p3 = pnand %p5140_p11, %p5096_p1  ;;  %p5148_p0 = scmp.lt.s32.totalorder %s5146_s14, %s5139_s23 }
  0x4d   : > { %p5143_p8 = pneg %p5142_p3  ;;  %p5149_p2 = por %p5148_p0, %p5147_p6 }
  0x4f   : > { %p5150_p4 = pnand %p5149_p2, %p5143_p8 }
  0x51   : > { %5153 = shalt.err (!%p5150_p4)
}
  0x52   : > { %s7296_s25 = smov 128   ;;  %392 = sbr.rel (%p5441_p12) target bundleno = 2876 (0xb3c), region = 60 }
  0x53   : > { %4710 = dma.hbm_to_vmem [thread:$0]  (!%p5402_p13), %s5450_s0, 2048, %s5454_s17, %s370_s22, %s7296_s25, %s7296_s25, %s5260_s15  }
  0x59   : > { %s5488_s24 = sand.u32 1, %s5248_s18   ;;  %p7297_p6 = scmp.ne.s32.totalorder %s7286_s28, 0 }
  0x5a   : > { %s5491_s16 = sshll.u32 %s5488_s24, 7  ;;  %s395_s26 = scalar_lea.sflag [#allocation7], %s5488_s24 }
  0x5b   : > { %s5495_s13 = scalar_lea.vmem [#allocation6], %s5491_s16 }
  0x5c   : > { %5227 = dma.done.wait (%p7297_p6), %s395_s26, 2048  }
  0x5d   : > { %5229 = vsyncadd (%p7297_p6), %s395_s26, 4294965248  ;;  %s404_s0 = scalar_lea.sflag [#allocation10], %s5488_s24  ;;  %s5503_s17 = scalar_lea.vmem [#allocation9], %s5491_s16 }
  0x5e   : > { %5231 = dma.done.wait (%p7297_p6), %s404_s0, 2048  }
  0x5f   : > { %5233 = vsyncadd (%p7297_p6), %s404_s0, 4294965248  ;;  %v5262_v0 = vmov 0   ;;  %v4758_v1 = vld [vmem:[%s7230_s2 + $0x4] ss:$12 sps:$4 sm:$0xff]   ;;  %v4760_v2 = vld [vmem:[%s7230_s2 + $0x8] ss:$12 sps:$4 sm:$0xff]  }
  0x60   : > { %746 = vmatprep.mubr.bf16.mxu0 %v5262_v0  ;;  %714 = vmatprep.subr.bf16.mxu0 %v4758_v1  ;;  %v4761_v3 = vld [vmem:[%s7230_s2] ss:$12 sps:$4 sm:$0xff]   ;;  %v4762_v4 = vld [vmem:[%s7230_s2 + $0x1c] ss:$12 sps:$4 sm:$0xff]   ;;  %v4765_v6 = vld [vmem:[%s7230_s2 + $0x18] ss:$12 sps:$4 sm:$0xff]  }
  0x61   : > { %4264 = vmatprep.subr.bf16.mxu1 %v4760_v2  ;;  %715 = vmatpush1.bf16.msra.mxu0 %v4761_v3  ;;  %v4764_v5 = vld [vmem:[%s7230_s2 + $0x20] ss:$12 sps:$4 sm:$0xff]   ;;  %v4768_v8 = vld [vmem:[%s7230_s2 + $0x38] ss:$12 sps:$4 sm:$0xff]   ;;  %v4769_v9 = vld [vmem:[%s7230_s2 + $0x30] ss:$12 sps:$4 sm:$0xff]  }
  0x62   : > { %4265 = vmatpush3.bf16.msra.mxu1 %v4760_v2  ;;  %716 = vmatprep.subr.bf16.mxu0 %v4762_v4  ;;  %v4766_v7 = vld [vmem:[%s7230_s2 + $0x34] ss:$12 sps:$4 sm:$0xff]   ;;  %v4770_v10 = vld [vmem:[%s7230_s2 + $0x4c] ss:$12 sps:$4 sm:$0xff]   ;;  %v4772_v11 = vld [vmem:[%s7230_s2 + $0x50] ss:$12 sps:$4 sm:$0xff]  }
  0x63   : > { %4266 = vmatprep.subr.bf16.mxu1 %v4764_v5  ;;  %v4773_v12 = vld [vmem:[%s7230_s2 + $0x48] ss:$12 sps:$4 sm:$0xff]   ;;  %v4774_v13 = vld [vmem:[%s7230_s2 + $0x64] ss:$12 sps:$4 sm:$0xff]   ;;  %v4777_v15 = vld [vmem:[%s7230_s2 + $0x60] ss:$12 sps:$4 sm:$0xff]  }
  0x64   : > { %v4776_v14 = vld [vmem:[%s7230_s2 + $0x68] ss:$12 sps:$4 sm:$0xff]   ;;  %v4780_v17 = vld [vmem:[%s7230_s2 + $0x80] ss:$12 sps:$4 sm:$0xff]   ;;  %v4781_v19 = vld [vmem:[%s7230_s2 + $0x78] ss:$12 sps:$4 sm:$0xff]  }
  0x65   : > { %717 = vmatpush1.bf16.msra.mxu0 %v4765_v6  ;;  %v4778_v16 = vld [vmem:[%s7230_s2 + $0x7c] ss:$12 sps:$4 sm:$0xff]   ;;  %v457_v18 = vld [vmem:[%s5495_s13] sm:$0xff]  ;;  %v4786_v25 = vld [vmem:[%s7230_s2 + $0xac] ss:$12 sps:$4 sm:$0xff]   ;;  %vm1423_vm0 = vcmask 523264  }
  0x66   : > { %4267 = vmatpush3.bf16.msra.mxu1 %v4764_v5  ;;  %718 = vmatprep.subr.bf16.mxu0 %v4766_v7  ;;  %v458_v20 = vld [vmem:[%s5495_s13 + $0x8] sm:$0xff]  ;;  %v4782_v21 = vld [vmem:[%s7230_s2 + $0x94] ss:$12 sps:$4 sm:$0xff]   ;;  %v4784_v23 = vld [vmem:[%s7230_s2 + $0x98] ss:$12 sps:$4 sm:$0xff]   ;;  %s5263_s23 = smov 64  }
  0x67   : > { %4268 = vmatprep.subr.bf16.mxu1 %v4768_v8  ;;  %v473_v22 = vpack.c.bf16 %v458_v20, %v457_v18  ;;  %v4785_v24 = vld [vmem:[%s7230_s2 + $0x90] ss:$12 sps:$4 sm:$0xff]   ;;  %v4789_v27 = vld [vmem:[%s7230_s2 + $0xa8] ss:$12 sps:$4 sm:$0xff]   ;;  %v461_v31 = vld [vmem:[%s5495_s13 + $0x20] sm:$0xff]  ;;  %vm2806_vm1 = vcmask 1048064  }
  0x68   : > { %v4788_v26 = vld [vmem:[%s7230_s2 + $0xb0] ss:$12 sps:$4 sm:$0xff]   ;;  %v462_v32 = vld [vmem:[%s5495_s13 + $0x28] sm:$0xff]  ;;  %v4793_v37 = vld [vmem:[%s7232_s4 + $0x18] ss:$12 sps:$4 sm:$0xff]   ;;  %s7032_s30 = scalar_lea.vmem [#allocation12], %s5491_s16 }
  0x69   : > { %719 = vmatpush1.bf16.msra.mxu0 %v4769_v9  ;;  %4280 = vmatprep.mubr.bf16.mxu1 %v473_v22  ;;  %v459_v28 = vld [vmem:[%s5495_s13 + $0x10] sm:$0xff]  ;;  %v460_v29 = vld [vmem:[%s5495_s13 + $0x18] sm:$0xff]  ;;  %v4790_v34 = vld [vmem:[%s7232_s4] ss:$12 sps:$4 sm:$0xff]   ;;  %v475_v36 = vpack.c.bf16 %v462_v32, %v461_v31  ;;  %s4070_s19 = sshll.u32 %s5349_s21, 11  ;;  %s3820_s28 = sshll.u32 %s7032_s30, 4  ;;  %s7086_s28 = int_to_ptr.vmem [resolvable:$true] %s3820_s28 }
  0x6a   : > { %4269 = vmatpush3.bf16.msra.mxu1 %v4768_v8  ;;  %720 = vmatprep.subr.bf16.mxu0 %v4770_v10  ;;  %v4792_v30 = vld [vmem:[%s7232_s4 + $0x4] ss:$12 sps:$4 sm:$0xff]   ;;  %v474_v33 = vpack.c.bf16 %v460_v29, %v459_v28  ;;  %v4795_v35 = vld [vmem:[%s7232_s4 + $0x1c] ss:$12 sps:$4 sm:$0xff]   ;;  %v4798_v41 = vld [vmem:[%s7232_s4 + $0x34] ss:$12 sps:$4 sm:$0xff]   ;;  %s7084_s26 = scalar_lea.hbm %s7239_s11, %s4070_s19 }
  0x6b   : > { %4270 = vmatprep.subr.bf16.mxu1 %v4772_v11  ;;  %v463_v38 = vld [vmem:[%s5495_s13 + $0x30] sm:$0xff]  ;;  %v464_v39 = vld [vmem:[%s5495_s13 + $0x38] sm:$0xff]  ;;  %v465_v42 = vld [vmem:[%s5495_s13 + $0x40] sm:$0xff]  ;;  %s5154_s0 = scalar_lea.vmem %s7086_s28, 2048  ;;  %p7428_p1 = scmp.ne.s32.totalorder %s7287_s29, 0 }
  0x6c   : > { %v4814_v40 = vld [vmem:[%s7232_s4 + $0x8] ss:$12 sps:$4 sm:$0xff]   ;;  %v4815_v43 = vld [vmem:[%s7232_s4 + $0x20] ss:$12 sps:$4 sm:$0xff]   ;;  %v476_v45 = vpack.c.bf16 %v464_v39, %v463_v38  ;;  %v4796_v46 = vld [vmem:[%s7232_s4 + $0x30] ss:$12 sps:$4 sm:$0xff]   ;;  %p5155_p13 = scmp.ne.s32.totalorder %s7086_s28, %s5154_s0 }
  0x6d   : > { %721 = vmatpush1.bf16.msra.mxu0 %v4773_v12  ;;  %v466_v44 = vld [vmem:[%s5495_s13 + $0x48] sm:$0xff]  ;;  %v467_v50 = vld [vmem:[%s5495_s13 + $0x50] sm:$0xff]  ;;  %v4816_v51 = vld [vmem:[%s7232_s4 + $0x38] ss:$12 sps:$4 sm:$0xff]   ;;  %s5264_s12 = smov [#allocation12]  }
  0x6e   : > { %4271 = vmatpush3.bf16.msra.mxu1 %v4772_v11  ;;  %722 = vmatprep.subr.bf16.mxu0 %v4774_v13  ;;  %v4801_v47 = vld [vmem:[%s7232_s4 + $0x4c] ss:$12 sps:$4 sm:$0xff]   ;;  %v477_v48 = vpack.c.bf16 %v466_v44, %v465_v42  ;;  %v4799_v49 = vld [vmem:[%s7232_s4 + $0x48] ss:$12 sps:$4 sm:$0xff]   ;;  %v4804_v53 = vld [vmem:[%s7232_s4 + $0x64] ss:$12 sps:$4 sm:$0xff]   ;;  %p5156_p12 = pnand %p5155_p13, %p7428_p1 }
  0x6f   : > { %4272 = vmatprep.subr.bf16.mxu1 %v4776_v14  ;;  %v468_v52 = vld [vmem:[%s5495_s13 + $0x58] sm:$0xff]  ;;  %v469_v54 = vld [vmem:[%s5495_s13 + $0x60] sm:$0xff]  ;;  %v470_v55 = vld [vmem:[%s5495_s13 + $0x68] sm:$0xff]  ;;  %s5158_s15 = sshll.u32 %s5264_s12, 4  ;;  %s5159_s15 = int_to_ptr.vmem [resolvable:$false] %s5158_s15 }
  0x70   : > { %v478_v56 = vpack.c.bf16 %v468_v52, %v467_v50  ;;  %v4802_v57 = vld [vmem:[%s7232_s4 + $0x60] ss:$12 sps:$4 sm:$0xff]   ;;  %v4807_v58 = vld [vmem:[%s7232_s4 + $0x7c] ss:$12 sps:$4 sm:$0xff]   ;;  %v479_v60 = vpack.c.bf16 %v470_v55, %v469_v54  ;;  %v4805_v61 = vld [vmem:[%s7232_s4 + $0x78] ss:$12 sps:$4 sm:$0xff]   ;;  %p5157_p10 = pneg %p5156_p12  ;;  %p5161_p5 = scmp.lt.s32.totalorder %s7086_s28, %s5159_s15 }
  0x71   : > { %723 = vmatpush1.bf16.msra.mxu0 %v4777_v15  ;;  %v4817_v59 = vld [vmem:[%s7232_s4 + $0x50] ss:$12 sps:$4 sm:$0xff]   ;;  %v4818_v1 = vld [vmem:[%s7232_s4 + $0x68] ss:$12 sps:$4 sm:$0xff]   ;;  %v4813_v5 = vld [vmem:[%s7232_s4 + $0xac] ss:$12 sps:$4 sm:$0xff]  }
  0x72   : > { %4273 = vmatpush3.bf16.msra.mxu1 %v4776_v14  ;;  %724 = vmatprep.subr.bf16.mxu0 %v4778_v16  ;;  %v471_v62 = vld [vmem:[%s5495_s13 + $0x70] sm:$0xff]  ;;  %v472_v63 = vld [vmem:[%s5495_s13 + $0x78] sm:$0xff]  ;;  %v4819_v6 = vld [vmem:[%s7232_s4 + $0x80] ss:$12 sps:$4 sm:$0xff]   ;;  %s5160_s27 = scalar_lea.vmem %s5159_s15, 4096 }
  0x73   : > { %4274 = vmatprep.subr.bf16.mxu1 %v4780_v17  ;;  %v4810_v2 = vld [vmem:[%s7232_s4 + $0x94] ss:$12 sps:$4 sm:$0xff]   ;;  %v4808_v3 = vld [vmem:[%s7232_s4 + $0x90] ss:$12 sps:$4 sm:$0xff]   ;;  %v480_v4 = vpack.c.bf16 %v472_v63, %v471_v62  ;;  %v482_v9 = vld [vmem:[%s5503_s17 + $0x8] sm:$0xff]  ;;  %p5162_p7 = scmp.lt.s32.totalorder %s5160_s27, %s5154_s0 }
  0x74   : > { %v4811_v7 = vld [vmem:[%s7232_s4 + $0xa8] ss:$12 sps:$4 sm:$0xff]   ;;  %v481_v8 = vld [vmem:[%s5503_s17] sm:$0xff]  ;;  %v4821_v12 = vld [vmem:[%s7232_s4 + $0xb0] ss:$12 sps:$4 sm:$0xff]  }
  0x75   : > { %725 = vmatpush1.bf16.msra.mxu0 %v4781_v19  ;;  %v497_v10 = vpack.c.bf16 %v482_v9, %v481_v8  ;;  %v4820_v11 = vld [vmem:[%s7232_s4 + $0x98] ss:$12 sps:$4 sm:$0xff]   ;;  %v483_v13 = vld [vmem:[%s5503_s17 + $0x10] sm:$0xff]  ;;  %v494_v29 = vld [vmem:[%s5503_s17 + $0x68] sm:$0xff]  ;;  %p5163_p9 = por %p5162_p7, %p5161_p5 }
  0x76   : > { %4275 = vmatpush3.bf16.msra.mxu1 %v4780_v17  ;;  %726 = vmatprep.subr.bf16.mxu0 %v4782_v21  ;;  %v484_v14 = vld [vmem:[%s5503_s17 + $0x18] sm:$0xff]  ;;  %v485_v16 = vld [vmem:[%s5503_s17 + $0x20] sm:$0xff]  ;;  %v486_v17 = vld [vmem:[%s5503_s17 + $0x28] sm:$0xff] }
  0x77   : > { %4276 = vmatprep.subr.bf16.mxu1 %v4784_v23  ;;  %v498_v15 = vpack.c.bf16 %v484_v14, %v483_v13  ;;  %v499_v18 = vpack.c.bf16 %v486_v17, %v485_v16  ;;  %v487_v19 = vld [vmem:[%s5503_s17 + $0x30] sm:$0xff]  ;;  %v488_v20 = vld [vmem:[%s5503_s17 + $0x38] sm:$0xff]  ;;  %v493_v28 = vld [vmem:[%s5503_s17 + $0x60] sm:$0xff]  ;;  %p5164_p11 = pnand %p5163_p9, %p5157_p10 }
  0x78   : > { %v500_v21 = vpack.c.bf16 %v488_v20, %v487_v19  ;;  %v495_v31 = vld [vmem:[%s5503_s17 + $0x70] sm:$0xff]  ;;  %v496_v32 = vld [vmem:[%s5503_s17 + $0x78] sm:$0xff]  ;;  %v569_v39 = vld [vmem:[%s7231_s3] sm:$0x7] }
  0x79   : > { %727 = vmatpush1.bf16.msra.mxu0 %v4785_v24 }
  0x7a   : > { %4277 = vmatpush3.bf16.msra.mxu1 %v4784_v23  ;;  %728 = vmatprep.subr.bf16.mxu0 %v4786_v25  ;;  %v490_v23 = vld [vmem:[%s5503_s17 + $0x48] sm:$0xff]  ;;  %v491_v25 = vld [vmem:[%s5503_s17 + $0x50] sm:$0xff] }
  0x7b   : > { %4278 = vmatprep.subr.bf16.mxu1 %v4788_v26 }
  0x7d   : > { %729 = vmatpush1.bf16.msra.mxu0 %v4789_v27 }
  0x7e   : > { %4279 = vmatpush3.bf16.msra.mxu1 %v4788_v26  ;;  %4296 = vmatprep.subr.bf16.mxu0 %v4814_v40  ;;  %v492_v26 = vld [vmem:[%s5503_s17 + $0x58] sm:$0xff] }
  0x7f   : > { %1117 = vmatprep.subr.bf16.mxu1 %v4792_v30  ;;  %v502_v27 = vpack.c.bf16 %v492_v26, %v491_v25  ;;  %v503_v30 = vpack.c.bf16 %v494_v29, %v493_v28 }
  0x80   : > { %747 = vmatmul.mubr.bf16.vlgmr.msra.gmra.mrb[0].mxu0 %v473_v22  ;;  %v489_v22 = vld [vmem:[%s5503_s17 + $0x40] sm:$0xff] }
  0x81   : > { %4281 = vmatmul.mubr.bf16.vlgmr.msra.gmra.mrb[0].mxu1 %v474_v33  ;;  %756 = vmatprep.mubr.bf16.mxu0 %v5262_v0  ;;  %v501_v24 = vpack.c.bf16 %v490_v23, %v489_v22 }
  0x82   : > { %1118 = vmatpush1.bf16.msra.mxu1 %v4790_v34  ;;  %4284 = vmatprep.mubr.bf16.mxu1 %v475_v36  ;;  %v571_v34 = vlaneseq }
  0x83   : > { %1119 = vmatprep.subr.bf16.mxu1 %v4795_v35  ;;  %4297 = vmatpush3.bf16.msra.mxu0 %v4814_v40 }
  0x84   : > { %4298 = vmatprep.subr.bf16.mxu0 %v4815_v43  ;;  %v5701_v35 = vshrl.u32 %v571_v34, 7 }
  0x86   : > { %1120 = vmatpush1.bf16.msra.mxu1 %v4793_v37  ;;  %v5707_v37 = vld [vmem:[%s7233_s5] sm:$0x7]  ;;  %v577_v40 = vsub.s32 1, %v5701_v35 }
  0x87   : > { %1121 = vmatprep.subr.bf16.mxu1 %v4798_v41  ;;  %4299 = vmatpush3.bf16.msra.mxu0 %v4815_v43 }
  0x88   : > { %757 = vmatmul.mubr.bf16.gmra.mrb[4].mxu0 %v474_v33  ;;  %4300 = vmatprep.subr.bf16.mxu0 %v4816_v51  ;;  %v504_v33 = vpack.c.bf16 %v496_v32, %v495_v31  ;;  %v5721_v42 = vrot.slane %v569_v39, %v577_v40 }
  0x89   : > { %4285 = vmatmul.mubr.bf16.gmra.mrb[4].mxu1 %v476_v45  ;;  %766 = vmatprep.mubr.bf16.mxu0 %v5262_v0 }
  0x8a   : > { %1122 = vmatpush1.bf16.msra.mxu1 %v4796_v46  ;;  %4288 = vmatprep.mubr.bf16.mxu1 %v477_v48 }
  0x8b   : > { %1123 = vmatprep.subr.bf16.mxu1 %v4801_v47  ;;  %4301 = vmatpush3.bf16.msra.mxu0 %v4816_v51 }
  0x8c   : > { %4302 = vmatprep.subr.bf16.mxu0 %v4817_v59 }
  0x8e   : > { %1124 = vmatpush1.bf16.msra.mxu1 %v4799_v49 }
  0x8f   : > { %1125 = vmatprep.subr.bf16.mxu1 %v4804_v53  ;;  %4303 = vmatpush3.bf16.msra.mxu0 %v4817_v59 }
  0x90   : > { %767 = vmatmul.mubr.bf16.gmra.mrb[8].mxu0 %v475_v36  ;;  %4304 = vmatprep.subr.bf16.mxu0 %v4818_v1  ;;  %v573_v36 = vsub.s32 0, %v5701_v35 }
  0x91   : > { %4289 = vmatmul.mubr.bf16.gmra.mrb[8].mxu1 %v478_v56  ;;  %776 = vmatprep.mubr.bf16.mxu0 %v5262_v0 }
  0x92   : > { %1126 = vmatpush1.bf16.msra.mxu1 %v4802_v57  ;;  %4292 = vmatprep.mubr.bf16.mxu1 %v479_v60  ;;  %v5710_v38 = vrot.slane %v5707_v37, %v573_v36  ;;  %v5717_v41 = vrot.slane %v569_v39, %v573_v36 }
  0x93   : > { %1127 = vmatprep.subr.bf16.mxu1 %v4807_v58  ;;  %4305 = vmatpush3.bf16.msra.mxu0 %v4818_v1 }
  0x94   : > { %4306 = vmatprep.subr.bf16.mxu0 %v4819_v6 }
  0x96   : > { %1128 = vmatpush1.bf16.msra.mxu1 %v4805_v61 }
  0x97   : > { %1129 = vmatprep.subr.bf16.mxu1 %v4810_v2  ;;  %4307 = vmatpush3.bf16.msra.mxu0 %v4819_v6 }
  0x98   : > { %777 = vmatmul.mubr.bf16.gmra.mrb[12].mxu0 %v476_v45  ;;  %4308 = vmatprep.subr.bf16.mxu0 %v4820_v11 }
  0x99   : > { %4293 = vmatmul.mubr.bf16.gmra.mrb[12].mxu1 %v480_v4  ;;  %786 = vmatprep.mubr.bf16.mxu0 %v5262_v0 }
  0x9a   : > { %1130 = vmatpush1.bf16.msra.mxu1 %v4808_v3  ;;  %1149 = vmatprep.mubr.bf16.mxu1 %v5262_v0 }
  0x9b   : > { %1131 = vmatprep.subr.bf16.mxu1 %v4813_v5  ;;  %4309 = vmatpush3.bf16.msra.mxu0 %v4820_v11 }
  0x9c   : > { %4310 = vmatprep.subr.bf16.mxu0 %v4821_v12 }
  0x9e   : > { %1132 = vmatpush1.bf16.msra.mxu1 %v4811_v7 }
  0x9f   : > { %4311 = vmatpush3.bf16.msra.mxu0 %v4821_v12 }
  0xa0   : > { %787 = vmatmul.mubr.bf16.gmra.mrb[16].mxu0 %v477_v48 }
  0xa1   : > { %1150 = vmatmul.mubr.bf16.vlgmr.msra.gmra.mrb[16].mxu1 %v497_v10  ;;  %796 = vmatprep.mubr.bf16.mxu0 %v5262_v0 }
  0xa2   : > { %1159 = vmatprep.mubr.bf16.mxu1 %v5262_v0 }
  0xa8   : > { %797 = vmatmul.mubr.bf16.gmra.mrb[20].mxu0 %v478_v56 }
  0xa9   : > { %1160 = vmatmul.mubr.bf16.gmra.mrb[20].mxu1 %v498_v15  ;;  %806 = vmatprep.mubr.bf16.mxu0 %v5262_v0 }
  0xaa   : > { %1169 = vmatprep.mubr.bf16.mxu1 %v5262_v0 }
  0xb0   : > { %807 = vmatmul.mubr.bf16.gmra.mrb[24].mxu0 %v479_v60 }
  0xb1   : > { %1170 = vmatmul.mubr.bf16.gmra.mrb[24].mxu1 %v499_v18  ;;  %816 = vmatprep.mubr.bf16.mxu0 %v5262_v0 }
  0xb2   : > { %1179 = vmatprep.mubr.bf16.mxu1 %v5262_v0 }
  0xb8   : > { %817 = vmatmul.mubr.bf16.gmra.mrb[28].mxu0 %v480_v4 }
  0xb9   : > { %1180 = vmatmul.mubr.bf16.gmra.mrb[28].mxu1 %v500_v21  ;;  %4312 = vmatprep.mubr.bf16.mxu0 %v497_v10 }
  0xba   : > { %1189 = vmatprep.mubr.bf16.mxu1 %v5262_v0 }
  0xc0   : > { %4313 = vmatmul.mubr.bf16.vlgmr.msra.gmra.mrb[32].mxu0 %v498_v15 }
  0xc1   : > { %1190 = vmatmul.mubr.bf16.gmra.mrb[32].mxu1 %v501_v24  ;;  %4316 = vmatprep.mubr.bf16.mxu0 %v499_v18 }
  0xc2   : > { %1199 = vmatprep.mubr.bf16.mxu1 %v5262_v0 }
  0xc8   : > { %4317 = vmatmul.mubr.bf16.gmra.mrb[36].mxu0 %v500_v21 }
  0xc9   : > { %1200 = vmatmul.mubr.bf16.gmra.mrb[36].mxu1 %v502_v27  ;;  %4320 = vmatprep.mubr.bf16.mxu0 %v501_v24 }
  0xca   : > { %1209 = vmatprep.mubr.bf16.mxu1 %v5262_v0 }
  0xd0   : > { %4321 = vmatmul.mubr.bf16.gmra.mrb[40].mxu0 %v502_v27 }
  0xd1   : > { %1210 = vmatmul.mubr.bf16.gmra.mrb[40].mxu1 %v503_v30  ;;  %4324 = vmatprep.mubr.bf16.mxu0 %v503_v30 }
  0xd2   : > { %1219 = vmatprep.mubr.bf16.mxu1 %v5262_v0  ;;  %v581_v0 = vsub.s32 2, %v5701_v35 }
  0xd4   : > { %v5725_v43 = vrot.slane %v569_v39, %v581_v0 }
  0xd8   : > { %4325 = vmatmul.mubr.bf16.gmra.mrb[44].mxu0 %v504_v33 }
  0xd9   : > { %1220 = vmatmul.mubr.bf16.gmra.mrb[44].mxu1 %v504_v33 }
 0x153   : > { %v748_v45 = vpop.f32.mrb[0].mxu0 }
 0x154   : > { %v4282_v44 = vpop.f32.mrb[0].mxu1  ;;  %v749_v47 = vadd.f32 %v748_v45, %v5717_v41  ;;  %v750_v48 = vpop.f32.mrb[1].mxu0 }
 0x155   : > { %v861_v46 = vpop.f32.mrb[1].mxu1  ;;  %v751_v50 = vadd.f32 %v750_v48, %v5721_v42  ;;  %v752_v51 = vpop.f32.mrb[2].mxu0  ;;  %v870_v52 = vadd.f32 %v4282_v44, %v5725_v43 }
 0x156   : > { %v4283_v49 = vpop.f32.mrb[2].mxu1  ;;  %v753_v55 = vadd.f32 %v752_v51, %v5717_v41  ;;  %v754_v56 = vpop.f32.mrb[3].mxu0  ;;  %v862_v57 = vadd.f32 %v861_v46, %v5725_v43 }
 0x157   : > { %v873_v53 = vadd.f32 %v4283_v49, %v5725_v43  ;;  %v864_v54 = vpop.f32.mrb[3].mxu1  ;;  %v755_v59 = vadd.f32 %v754_v56, %v5721_v42 }
 0x158   : > { %v865_v58 = vadd.f32 %v864_v54, %v5725_v43  ;;  %v5737_v61 = vpack.c.bf16 %v753_v55, %v749_v47 }
 0x159   : > { %v5735_v60 = vpack.c.bf16 %v873_v53, %v870_v52  ;;  %v5741_v63 = vpack.c.bf16 %v755_v59, %v751_v50 }
 0x15a   : > { %v5739_v62 = vpack.c.bf16 %v865_v58, %v862_v57  ;;  %4344 = vmatprep.mubr.msk.bf16.mxu1 %vm1423_vm0, %v5737_v61 }
 0x15b   : > { %7298 = vst [vmem:[#allocation23_spill] sm:$0xff] %v5735_v60  ;;  %v758_v2 = vpop.f32.mrb[4].mxu0 }
 0x15c   : > { %7299 = vst [vmem:[#allocation24_spill] sm:$0xff] %v5739_v62  ;;  %v4286_v1 = vpop.f32.mrb[4].mxu1  ;;  %v759_v4 = vadd.f32 %v758_v2, %v5717_v41  ;;  %v760_v5 = vpop.f32.mrb[5].mxu0 }
 0x15d   : > { %v877_v3 = vpop.f32.mrb[5].mxu1  ;;  %v761_v7 = vadd.f32 %v760_v5, %v5721_v42  ;;  %v762_v8 = vpop.f32.mrb[6].mxu0  ;;  %v886_v9 = vadd.f32 %v4286_v1, %v5725_v43 }
 0x15e   : > { %v4287_v6 = vpop.f32.mrb[6].mxu1  ;;  %v763_v12 = vadd.f32 %v762_v8, %v5717_v41  ;;  %v764_v13 = vpop.f32.mrb[7].mxu0  ;;  %v878_v14 = vadd.f32 %v877_v3, %v5725_v43 }
 0x15f   : > { %v889_v10 = vadd.f32 %v4287_v6, %v5725_v43  ;;  %v880_v11 = vpop.f32.mrb[7].mxu1  ;;  %v765_v16 = vadd.f32 %v764_v13, %v5721_v42 }
 0x160   : > { %v881_v15 = vadd.f32 %v880_v11, %v5725_v43  ;;  %v5755_v18 = vpack.c.bf16 %v763_v12, %v759_v4 }
 0x161   : > { %v5753_v17 = vpack.c.bf16 %v889_v10, %v886_v9  ;;  %v5759_v20 = vpack.c.bf16 %v765_v16, %v761_v7  ;;  %v5796_v10 = vrot.slane %v5707_v37, %v577_v40 }
 0x162   : > { %v5757_v19 = vpack.c.bf16 %v881_v15, %v878_v14 }
 0x163   : > { %7300 = vst [vmem:[#allocation25_spill] sm:$0xff] %v5753_v17  ;;  %v768_v22 = vpop.f32.mrb[8].mxu0 }
 0x164   : > { %7301 = vst [vmem:[#allocation26_spill] sm:$0xff] %v5757_v19  ;;  %v4290_v21 = vpop.f32.mrb[8].mxu1  ;;  %v769_v24 = vadd.f32 %v768_v22, %v5717_v41  ;;  %v770_v25 = vpop.f32.mrb[9].mxu0 }
 0x165   : > { %v893_v23 = vpop.f32.mrb[9].mxu1  ;;  %v771_v27 = vadd.f32 %v770_v25, %v5721_v42  ;;  %v772_v28 = vpop.f32.mrb[10].mxu0  ;;  %v902_v29 = vadd.f32 %v4290_v21, %v5725_v43 }
 0x166   : > { %v4291_v26 = vpop.f32.mrb[10].mxu1  ;;  %v773_v32 = vadd.f32 %v772_v28, %v5717_v41  ;;  %v774_v33 = vpop.f32.mrb[11].mxu0  ;;  %v894_v34 = vadd.f32 %v893_v23, %v5725_v43 }
 0x167   : > { %v905_v30 = vadd.f32 %v4291_v26, %v5725_v43  ;;  %v896_v31 = vpop.f32.mrb[11].mxu1  ;;  %v775_v39 = vadd.f32 %v774_v33, %v5721_v42 }
 0x168   : > { %v897_v36 = vadd.f32 %v896_v31, %v5725_v43  ;;  %v5771_v45 = vpack.c.bf16 %v773_v32, %v769_v24 }
 0x169   : > { %v5769_v44 = vpack.c.bf16 %v905_v30, %v902_v29  ;;  %v5775_v47 = vpack.c.bf16 %v775_v39, %v771_v27 }
 0x16a   : > { %v5773_v46 = vpack.c.bf16 %v897_v36, %v894_v34 }
 0x16b   : > { %7302 = vst [vmem:[#allocation27_spill] sm:$0xff] %v5769_v44  ;;  %v778_v49 = vpop.f32.mrb[12].mxu0 }
 0x16c   : > { %7303 = vst [vmem:[#allocation28_spill] sm:$0xff] %v5773_v46  ;;  %v4294_v48 = vpop.f32.mrb[12].mxu1  ;;  %v779_v51 = vadd.f32 %v778_v49, %v5717_v41  ;;  %v780_v52 = vpop.f32.mrb[13].mxu0 }
 0x16d   : > { %v909_v50 = vpop.f32.mrb[13].mxu1  ;;  %v781_v54 = vadd.f32 %v780_v52, %v5721_v42  ;;  %v782_v55 = vpop.f32.mrb[14].mxu0  ;;  %v918_v56 = vadd.f32 %v4294_v48, %v5725_v43 }
 0x16e   : > { %v4295_v53 = vpop.f32.mrb[14].mxu1  ;;  %v783_v59 = vadd.f32 %v782_v55, %v5717_v41  ;;  %v784_v1 = vpop.f32.mrb[15].mxu0  ;;  %v910_v2 = vadd.f32 %v909_v50, %v5725_v43 }
 0x16f   : > { %v921_v57 = vadd.f32 %v4295_v53, %v5725_v43  ;;  %v912_v58 = vpop.f32.mrb[15].mxu1  ;;  %v785_v4 = vadd.f32 %v784_v1, %v5721_v42 }
 0x170   : > { %v913_v3 = vadd.f32 %v912_v58, %v5725_v43  ;;  %v5787_v6 = vpack.c.bf16 %v783_v59, %v779_v51 }
 0x171   : > { %v5785_v5 = vpack.c.bf16 %v921_v57, %v918_v56  ;;  %v5791_v8 = vpack.c.bf16 %v785_v4, %v781_v54 }
 0x172   : > { %v5789_v7 = vpack.c.bf16 %v913_v3, %v910_v2 }
 0x173   : > { %7304 = vst [vmem:[#allocation29_spill] sm:$0xff] %v5785_v5  ;;  %v788_v11 = vpop.f32.mrb[16].mxu0 }
 0x174   : > { %7305 = vst [vmem:[#allocation30_spill] sm:$0xff] %v5789_v7  ;;  %v1151_v9 = vpop.f32.mrb[16].mxu1  ;;  %v789_v13 = vadd.f32 %v788_v11, %v5717_v41  ;;  %v790_v14 = vpop.f32.mrb[17].mxu0 }
 0x175   : > { %v1152_v12 = vadd.f32 %v1151_v9, %v5710_v38  ;;  %v1153_v43 = vpop.f32.mrb[17].mxu1  ;;  %v791_v16 = vadd.f32 %v790_v14, %v5721_v42  ;;  %v792_v21 = vpop.f32.mrb[18].mxu0 }
 0x176   : > { %v1155_v15 = vpop.f32.mrb[18].mxu1  ;;  %v793_v24 = vadd.f32 %v792_v21, %v5717_v41  ;;  %v794_v25 = vpop.f32.mrb[19].mxu0  ;;  %v1154_v40 = vadd.f32 %v1153_v43, %v5796_v10 }
 0x177   : > { %v1156_v22 = vadd.f32 %v1155_v15, %v5710_v38  ;;  %v1157_v23 = vpop.f32.mrb[19].mxu1  ;;  %v795_v27 = vadd.f32 %v794_v25, %v5721_v42 }
 0x178   : > { %v1158_v26 = vadd.f32 %v1157_v23, %v5796_v10  ;;  %v5808_v29 = vpack.c.bf16 %v793_v24, %v789_v13 }
 0x179   : > { %v5806_v28 = vpack.c.bf16 %v1156_v22, %v1152_v12  ;;  %v5812_v31 = vpack.c.bf16 %v795_v27, %v791_v16 }
 0x17a   : > { %v5810_v30 = vpack.c.bf16 %v1158_v26, %v1154_v40 }
 0x17b   : > { %v798_v34 = vpop.f32.mrb[20].mxu0 }
 0x17c   : > { %v1161_v32 = vpop.f32.mrb[20].mxu1  ;;  %4664 = vmatprep.subr.msk.bf16.mxu1 %vm1423_vm0, %v5810_v30  ;;  %v1449_v33 = vsel %vm1423_vm0, %v5810_v30, 0  ;;  %v799_v48 = vadd.f32 %v798_v34, %v5717_v41  ;;  %v800_v49 = vpop.f32.mrb[21].mxu0 }
 0x17d   : > { %v1162_v36 = vadd.f32 %v1161_v32, %v5710_v38  ;;  %v1163_v39 = vpop.f32.mrb[21].mxu1  ;;  %4329 = vmatpush3.bf16.xpose.msra.mxu1 %v1449_v33  ;;  %v801_v51 = vadd.f32 %v800_v49, %v5721_v42  ;;  %v802_v52 = vpop.f32.mrb[22].mxu0 }
 0x17e   : > { %v1165_v50 = vpop.f32.mrb[22].mxu1  ;;  %v803_v55 = vadd.f32 %v802_v52, %v5717_v41  ;;  %v804_v56 = vpop.f32.mrb[23].mxu0  ;;  %v1164_v57 = vadd.f32 %v1163_v39, %v5796_v10 }
 0x17f   : > { %v1166_v53 = vadd.f32 %v1165_v50, %v5710_v38  ;;  %v1167_v54 = vpop.f32.mrb[23].mxu1  ;;  %v805_v59 = vadd.f32 %v804_v56, %v5721_v42 }
 0x180   : > { %v1168_v58 = vadd.f32 %v1167_v54, %v5796_v10  ;;  %v5828_v2 = vpack.c.bf16 %v803_v55, %v799_v48 }
 0x181   : > { %v5826_v1 = vpack.c.bf16 %v1166_v53, %v1162_v36  ;;  %v5832_v4 = vpack.c.bf16 %v805_v59, %v801_v51 }
 0x182   : > { %v5830_v3 = vpack.c.bf16 %v1168_v58, %v1164_v57 }
 0x183   : > { %v808_v12 = vpop.f32.mrb[24].mxu0 }
 0x184   : > { %v1171_v9 = vpop.f32.mrb[24].mxu1  ;;  %4665 = vmatprep.subr.msk.bf16.mxu1 %vm1423_vm0, %v5830_v3  ;;  %v1452_v11 = vsel %vm1423_vm0, %v5830_v3, 0  ;;  %v809_v14 = vadd.f32 %v808_v12, %v5717_v41  ;;  %v810_v15 = vpop.f32.mrb[25].mxu0 }
 0x185   : > { %v1172_v43 = vadd.f32 %v1171_v9, %v5710_v38  ;;  %v1173_v13 = vpop.f32.mrb[25].mxu1  ;;  %4331 = vmatpush3.bf16.xpose.msra.mxu1 %v1452_v11  ;;  %v811_v21 = vadd.f32 %v810_v15, %v5721_v42  ;;  %v812_v22 = vpop.f32.mrb[26].mxu0 }
 0x186   : > { %v1175_v16 = vpop.f32.mrb[26].mxu1  ;;  %v813_v25 = vadd.f32 %v812_v22, %v5717_v41  ;;  %v814_v40 = vpop.f32.mrb[27].mxu0  ;;  %v1174_v26 = vadd.f32 %v1173_v13, %v5796_v10  ;;  %v5877_v22 = vrot.slane %v5707_v37, %v581_v0 }
 0x187   : > { %v1176_v23 = vadd.f32 %v1175_v16, %v5710_v38  ;;  %v1177_v24 = vpop.f32.mrb[27].mxu1  ;;  %v815_v32 = vadd.f32 %v814_v40, %v5721_v42 }
 0x188   : > { %v1178_v27 = vadd.f32 %v1177_v24, %v5796_v10  ;;  %v5848_v34 = vpack.c.bf16 %v813_v25, %v809_v14 }
 0x189   : > { %v5846_v33 = vpack.c.bf16 %v1176_v23, %v1172_v43  ;;  %v5852_v39 = vpack.c.bf16 %v815_v32, %v811_v21 }
 0x18a   : > { %v5850_v36 = vpack.c.bf16 %v1178_v27, %v1174_v26 }
 0x18b   : > { %v818_v50 = vpop.f32.mrb[28].mxu0 }
 0x18c   : > { %v1181_v48 = vpop.f32.mrb[28].mxu1  ;;  %4666 = vmatprep.subr.msk.bf16.mxu1 %vm1423_vm0, %v5850_v36  ;;  %v1455_v49 = vsel %vm1423_vm0, %v5850_v36, 0  ;;  %v819_v53 = vadd.f32 %v818_v50, %v5717_v41  ;;  %v820_v54 = vpop.f32.mrb[29].mxu0 }
 0x18d   : > { %v1182_v51 = vadd.f32 %v1181_v48, %v5710_v38  ;;  %v1183_v52 = vpop.f32.mrb[29].mxu1  ;;  %4333 = vmatpush3.bf16.xpose.msra.mxu1 %v1455_v49  ;;  %v821_v56 = vadd.f32 %v820_v54, %v5721_v42  ;;  %v822_v57 = vpop.f32.mrb[30].mxu0 }
 0x18e   : > { %v1185_v55 = vpop.f32.mrb[30].mxu1  ;;  %v823_v9 = vadd.f32 %v822_v57, %v5717_v41  ;;  %v824_v11 = vpop.f32.mrb[31].mxu0  ;;  %v1184_v12 = vadd.f32 %v1183_v52, %v5796_v10 }
 0x18f   : > { %v1186_v58 = vadd.f32 %v1185_v55, %v5710_v38  ;;  %v1187_v59 = vpop.f32.mrb[31].mxu1  ;;  %v825_v13 = vadd.f32 %v824_v11, %v5721_v42 }
 0x190   : > { %v1188_v43 = vadd.f32 %v1187_v59, %v5796_v10  ;;  %v5868_v15 = vpack.c.bf16 %v823_v9, %v819_v53 }
 0x191   : > { %v5866_v14 = vpack.c.bf16 %v1186_v58, %v1182_v51  ;;  %v5872_v21 = vpack.c.bf16 %v825_v13, %v821_v56 }
 0x192   : > { %7306 = vst [vmem:[#allocation31_spill] sm:$0xff] %v5868_v15  ;;  %v5870_v16 = vpack.c.bf16 %v1188_v43, %v1184_v12 }
 0x193   : > { %v4314_v23 = vpop.f32.mrb[32].mxu0 }
 0x194   : > { %v1191_v41 = vpop.f32.mrb[32].mxu1  ;;  %4667 = vmatprep.subr.msk.bf16.mxu1 %vm1423_vm0, %v5870_v16  ;;  %v1458_v42 = vsel %vm1423_vm0, %v5870_v16, 0  ;;  %v1273_v25 = vadd.f32 %v4314_v23, %v5877_v22  ;;  %v1264_v26 = vpop.f32.mrb[33].mxu0 }
 0x195   : > { %v1192_v24 = vadd.f32 %v1191_v41, %v5710_v38  ;;  %v1193_v40 = vpop.f32.mrb[33].mxu1  ;;  %4335 = vmatpush3.bf16.xpose.msra.mxu1 %v1458_v42  ;;  %v1265_v35 = vadd.f32 %v1264_v26, %v5877_v22  ;;  %v4315_v37 = vpop.f32.mrb[34].mxu0 }
 0x196   : > { %v1195_v27 = vpop.f32.mrb[34].mxu1  ;;  %v1276_v32 = vadd.f32 %v4315_v37, %v5877_v22  ;;  %v1267_v49 = vpop.f32.mrb[35].mxu0  ;;  %v1194_v50 = vadd.f32 %v1193_v40, %v5796_v10 }
 0x197   : > { %v1196_v0 = vadd.f32 %v1195_v27, %v5710_v38  ;;  %v1197_v48 = vpop.f32.mrb[35].mxu1  ;;  %v1268_v52 = vadd.f32 %v1267_v49, %v5877_v22 }
 0x198   : > { %v1198_v51 = vadd.f32 %v1197_v48, %v5796_v10  ;;  %v5893_v54 = vpack.c.bf16 %v1276_v32, %v1273_v25 }
 0x199   : > { %v5891_v53 = vpack.c.bf16 %v1196_v0, %v1192_v24  ;;  %v5897_v56 = vpack.c.bf16 %v1268_v52, %v1265_v35 }
 0x19a   : > { %7307 = vst [vmem:[#allocation32_spill] sm:$0xff] %v5893_v54  ;;  %v5895_v55 = vpack.c.bf16 %v1198_v51, %v1194_v50 }
 0x19b   : > { %v4318_v58 = vpop.f32.mrb[36].mxu0  ;;  %4360 = vmatprep.subr.bf16.mxu0 %v5897_v56 }
 0x19c   : > { %v1201_v57 = vpop.f32.mrb[36].mxu1  ;;  %4668 = vmatprep.subr.msk.bf16.mxu1 %vm1423_vm0, %v5895_v55  ;;  %v1461_v59 = vsel %vm1423_vm0, %v5895_v55, 0  ;;  %v1289_v11 = vadd.f32 %v4318_v58, %v5877_v22  ;;  %v1280_v43 = vpop.f32.mrb[37].mxu0  ;;  %4361 = vmatpush3.bf16.msra.mxu0 %v5897_v56 }
 0x19d   : > { %v1202_v9 = vadd.f32 %v1201_v57, %v5710_v38  ;;  %v1203_v12 = vpop.f32.mrb[37].mxu1  ;;  %4337 = vmatpush3.bf16.xpose.msra.mxu1 %v1461_v59  ;;  %v1281_v13 = vadd.f32 %v1280_v43, %v5877_v22  ;;  %v4319_v23 = vpop.f32.mrb[38].mxu0  ;;  %4362 = vmatprep.subr.bf16.mxu0 %v5893_v54 }
 0x19e   : > { %v1205_v41 = vpop.f32.mrb[38].mxu1  ;;  %v1292_v24 = vadd.f32 %v4319_v23, %v5877_v22  ;;  %v1283_v40 = vpop.f32.mrb[39].mxu0  ;;  %v1204_v26 = vadd.f32 %v1203_v12, %v5796_v10 }
 0x19f   : > { %v1206_v42 = vadd.f32 %v1205_v41, %v5710_v38  ;;  %v1207_v25 = vpop.f32.mrb[39].mxu1  ;;  %v1284_v27 = vadd.f32 %v1283_v40, %v5877_v22 }
 0x1a0   : > { %v1208_v35 = vadd.f32 %v1207_v25, %v5796_v10  ;;  %v5916_v0 = vpack.c.bf16 %v1292_v24, %v1289_v11  ;;  %4363 = vmatpush3.bf16.msra.mxu0 %v5893_v54 }
 0x1a1   : > { %v5914_v37 = vpack.c.bf16 %v1206_v42, %v1202_v9  ;;  %v5921_v48 = vpack.c.bf16 %v1284_v27, %v1281_v13 }
 0x1a2   : > { %7308 = vst [vmem:[#allocation33_spill] sm:$0xff] %v5916_v0  ;;  %v5919_v32 = vpack.c.bf16 %v1208_v35, %v1204_v26 }
 0x1a3   : > { %v4322_v50 = vpop.f32.mrb[40].mxu0  ;;  %4364 = vmatprep.subr.bf16.mxu0 %v5921_v48 }
 0x1a4   : > { %v1211_v49 = vpop.f32.mrb[40].mxu1  ;;  %4669 = vmatprep.subr.msk.bf16.mxu1 %vm1423_vm0, %v5919_v32  ;;  %v1464_v51 = vsel %vm1423_vm0, %v5919_v32, 0  ;;  %v1305_v57 = vadd.f32 %v4322_v50, %v5877_v22  ;;  %v1296_v59 = vpop.f32.mrb[41].mxu0  ;;  %4365 = vmatpush3.bf16.msra.mxu0 %v5921_v48 }
 0x1a5   : > { %v1212_v52 = vadd.f32 %v1211_v49, %v5710_v38  ;;  %v1213_v58 = vpop.f32.mrb[41].mxu1  ;;  %4339 = vmatpush3.bf16.xpose.msra.mxu1 %v1464_v51  ;;  %v1297_v9 = vadd.f32 %v1296_v59, %v5877_v22  ;;  %v4323_v12 = vpop.f32.mrb[42].mxu0  ;;  %4366 = vmatprep.subr.bf16.mxu0 %v5916_v0 }
 0x1a6   : > { %v1215_v11 = vpop.f32.mrb[42].mxu1  ;;  %v1308_v13 = vadd.f32 %v4323_v12, %v5877_v22  ;;  %v1299_v23 = vpop.f32.mrb[43].mxu0  ;;  %v1214_v42 = vadd.f32 %v1213_v58, %v5796_v10 }
 0x1a7   : > { %v1216_v43 = vadd.f32 %v1215_v11, %v5710_v38  ;;  %v1217_v41 = vpop.f32.mrb[43].mxu1  ;;  %v1300_v25 = vadd.f32 %v1299_v23, %v5877_v22 }
 0x1a8   : > { %v1218_v24 = vadd.f32 %v1217_v41, %v5796_v10  ;;  %v5940_v26 = vpack.c.bf16 %v1308_v13, %v1305_v57  ;;  %4367 = vmatpush3.bf16.msra.mxu0 %v5916_v0 }
 0x1a9   : > { %v5938_v40 = vpack.c.bf16 %v1216_v43, %v1212_v52  ;;  %v5945_v27 = vpack.c.bf16 %v1300_v25, %v1297_v9 }
 0x1aa   : > { %7309 = vst [vmem:[#allocation34_spill] sm:$0xff] %v5940_v26  ;;  %v5943_v35 = vpack.c.bf16 %v1218_v24, %v1214_v42 }
 0x1ab   : > { %7310 = vst [vmem:[#allocation35_spill] sm:$0xff] %v5945_v27  ;;  %v4326_v50 = vpop.f32.mrb[44].mxu0  ;;  %4368 = vmatprep.subr.bf16.mxu0 %v5945_v27 }
 0x1ac   : > { %v1221_v49 = vpop.f32.mrb[44].mxu1  ;;  %4670 = vmatprep.subr.msk.bf16.mxu1 %vm1423_vm0, %v5943_v35  ;;  %v1467_v51 = vsel %vm1423_vm0, %v5943_v35, 0  ;;  %v1321_v57 = vadd.f32 %v4326_v50, %v5877_v22  ;;  %v1312_v59 = vpop.f32.mrb[45].mxu0  ;;  %4369 = vmatpush3.bf16.msra.mxu0 %v5945_v27 }
 0x1ad   : > { %v1222_v52 = vadd.f32 %v1221_v49, %v5710_v38  ;;  %v1223_v58 = vpop.f32.mrb[45].mxu1  ;;  %4341 = vmatpush3.bf16.xpose.msra.mxu1 %v1467_v51  ;;  %v1313_v9 = vadd.f32 %v1312_v59, %v5877_v22  ;;  %v4327_v12 = vpop.f32.mrb[46].mxu0  ;;  %4370 = vmatprep.subr.bf16.mxu0 %v5940_v26 }
 0x1ae   : > { %v1225_v11 = vpop.f32.mrb[46].mxu1  ;;  %v1324_v13 = vadd.f32 %v4327_v12, %v5877_v22  ;;  %v1315_v23 = vpop.f32.mrb[47].mxu0  ;;  %v1224_v42 = vadd.f32 %v1223_v58, %v5796_v10 }
 0x1af   : > { %v1226_v43 = vadd.f32 %v1225_v11, %v5710_v38  ;;  %v1227_v41 = vpop.f32.mrb[47].mxu1  ;;  %v1316_v25 = vadd.f32 %v1315_v23, %v5877_v22 }
 0x1b0   : > { %v1228_v24 = vadd.f32 %v1227_v41, %v5796_v10  ;;  %v5964_v50 = vpack.c.bf16 %v1324_v13, %v1321_v57  ;;  %4371 = vmatpush3.bf16.msra.mxu0 %v5940_v26 }
 0x1b1   : > { %v5962_v49 = vpack.c.bf16 %v1226_v43, %v1222_v52  ;;  %v5969_v59 = vpack.c.bf16 %v1316_v25, %v1313_v9 }
 0x1b2   : > { %7311 = vst [vmem:[#allocation36_spill] sm:$0xff] %v5964_v50  ;;  %v5967_v51 = vpack.c.bf16 %v1228_v24, %v1224_v42 }
 0x1b3   : > { %7312 = vst [vmem:[#allocation37_spill] sm:$0xff] %v5969_v59  ;;  %4372 = vmatprep.subr.bf16.mxu0 %v5969_v59 }
 0x1b4   : > { %4671 = vmatprep.subr.msk.bf16.mxu1 %vm1423_vm0, %v5967_v51  ;;  %v1470_v38 = vsel %vm1423_vm0, %v5967_v51, 0  ;;  %4373 = vmatpush3.bf16.msra.mxu0 %v5969_v59 }
 0x1b5   : > { %4343 = vmatpush3.bf16.xpose.msra.mxu1 %v1470_v38  ;;  %4374 = vmatprep.subr.bf16.mxu0 %v5964_v50 }
 0x1b6   : > { %4424 = vmatprep.subr.bf16.mxu1 %v5739_v62 }
 0x1b8   : > { %4375 = vmatpush3.bf16.msra.mxu0 %v5964_v50 }
 0x1b9   : > { %4672 = vmatprep.subr.msk.bf16.mxu0 %vm1423_vm0, %v5741_v63 }
 0x1bc   : > { %4345 = vmatmul.mubr.msk.bf16.vlgmr.msra.gmra.mrb[48].mxu1 %vm1423_vm0, %v5755_v18 }
 0x1bd   : > { %4425 = vmatpush3.bf16.msra.mxu1 %v5739_v62  ;;  %4348 = vmatprep.mubr.msk.bf16.mxu1 %vm1423_vm0, %v5771_v45 }
 0x1be   : > { %4426 = vmatprep.subr.bf16.mxu1 %v5735_v60 }
 0x1c1   : > { %4427 = vmatpush3.bf16.msra.mxu1 %v5735_v60 }
 0x1c2   : > { %4428 = vmatprep.subr.bf16.mxu1 %v5757_v19 }
 0x1c4   : > { %4349 = vmatmul.mubr.msk.bf16.gmra.mrb[52].mxu1 %vm1423_vm0, %v5787_v6 }
 0x1c5   : > { %4429 = vmatpush3.bf16.msra.mxu1 %v5757_v19  ;;  %4352 = vmatprep.mubr.msk.bf16.mxu1 %vm1423_vm0, %v5808_v29 }
 0x1c6   : > { %4430 = vmatprep.subr.bf16.mxu1 %v5753_v17 }
 0x1c9   : > { %4431 = vmatpush3.bf16.msra.mxu1 %v5753_v17 }
 0x1ca   : > { %4432 = vmatprep.subr.bf16.mxu1 %v5773_v46 }
 0x1cc   : > { %4353 = vmatmul.mubr.msk.bf16.gmra.mrb[56].mxu1 %vm1423_vm0, %v5828_v2 }
 0x1cd   : > { %4433 = vmatpush3.bf16.msra.mxu1 %v5773_v46  ;;  %4356 = vmatprep.mubr.msk.bf16.mxu1 %vm1423_vm0, %v5848_v34 }
 0x1ce   : > { %4434 = vmatprep.subr.bf16.mxu1 %v5769_v44 }
 0x1d1   : > { %4435 = vmatpush3.bf16.msra.mxu1 %v5769_v44 }
 0x1d2   : > { %4436 = vmatprep.subr.bf16.mxu1 %v5789_v7 }
 0x1d4   : > { %4357 = vmatmul.mubr.msk.bf16.gmra.mrb[60].mxu1 %vm1423_vm0, %v5868_v15 }
 0x1d5   : > { %4437 = vmatpush3.bf16.msra.mxu1 %v5789_v7 }
 0x1d6   : > { %4438 = vmatprep.subr.bf16.mxu1 %v5785_v5 }
 0x1d9   : > { %4439 = vmatpush3.bf16.msra.mxu1 %v5785_v5 }
 0x28f   : > { %v4346_v10 = vpop.f32.mrb[48].mxu1 }
 0x290   : > { %1573 = vmax.xlane.f32.xlu1 %v4346_v10  ;;  %v1506_v22 = vpop.f32.mrb[49].mxu1 }
 0x291   : > { %1569 = vmax.xlane.f32.xlu0 %v1506_v22  ;;  %v4347_v52 = vpop.f32.mrb[50].mxu1 }
 0x292   : > { %v1509_v57 = vpop.f32.mrb[51].mxu1 }
 0x294   : > { %1575 = vmax.xlane.f32.xlu1 %v4347_v52 }
 0x295   : > { %1571 = vmax.xlane.f32.xlu0 %v1509_v57 }
 0x297   : > { %v4350_v58 = vpop.f32.mrb[52].mxu1 }
 0x298   : > { %v1522_v9 = vpop.f32.mrb[53].mxu1 }
 0x299   : > { %1577 = vmax.xlane.f32.xlu0 %v1522_v9  ;;  %v4351_v11 = vpop.f32.mrb[54].mxu1 }
 0x29a   : > { %v1525_v12 = vpop.f32.mrb[55].mxu1 }
 0x29b   : > { %1579 = vmax.xlane.f32.xlu1 %v1525_v12 }
 0x29d   : > { %1581 = vmax.xlane.f32.xlu0 %v4350_v58 }
 0x29f   : > { %1583 = vmax.xlane.f32.xlu1 %v4351_v11  ;;  %v6011_v43 = vpop.f32.mrb[56].mxu1 }
 0x2a0   : > { %v1538_v13 = vpop.f32.mrb[57].mxu1 }
 0x2a1   : > { %1585 = vmax.xlane.f32.xlu0 %v1538_v13  ;;  %v6013_v41 = vpop.f32.mrb[58].mxu1 }
 0x2a2   : > { %v1541_v23 = vpop.f32.mrb[59].mxu1 }
 0x2a3   : > { %1587 = vmax.xlane.f32.xlu1 %v1541_v23 }
 0x2a5   : > { %1589 = vmax.xlane.f32.xlu0 %v6011_v43 }
 0x2a7   : > { %1591 = vmax.xlane.f32.xlu1 %v6013_v41  ;;  %v6017_v42 = vpop.f32.mrb[60].mxu1 }
 0x2a8   : > { %v6019_v24 = vpop.f32.mrb[61].mxu1 }
 0x2a9   : > { %1593 = vmax.xlane.f32.xlu0 %v6019_v24  ;;  %v6022_v25 = vpop.f32.mrb[62].mxu1 }
 0x2aa   : > { %v6024_v38 = vpop.f32.mrb[63].mxu1 }
 0x2ab   : > { %1595 = vmax.xlane.f32.xlu1 %v6024_v38 }
 0x2ad   : > { %1597 = vmax.xlane.f32.xlu0 %v6017_v42 }
 0x2af   : > { %1599 = vmax.xlane.f32.xlu1 %v6022_v25 }
 0x2c0   : > { %2326 = vrot.lane.b32.xlu1 %v5830_v3, %s5263_s23 }
 0x2c3   : > { %2324 = vrot.lane.b32.xlu0 %v5810_v30, %s5263_s23 }
 0x2c7   : > { %2328 = vrot.lane.b32.xlu0 %v5850_v36, %s5263_s23 }
 0x31d   : > { %v1574_v5 = vpop.xlane.xlu1 %1573 }
 0x31e   : > { %v1570_v7 = vpop.xlane.xlu0 %1569  ;;  %v1603_v17 = vsub.f32 %v4346_v10, %v1574_v5 }
 0x31f   : > { %v1601_v44 = vsub.f32 %v1506_v22, %v1570_v7 }
 0x320   : > { %v1621_v26 = vmul.f32 1.442695, %v1603_v17 }
 0x321   : > { %v1617_v19 = vmul.f32 1.442695, %v1601_v44  ;;  %v1576_v62 = vpop.xlane.xlu1 %1575 }
 0x322   : > { %v1604_v46 = vsub.f32 %v4347_v52, %v1576_v62  ;;  %v1572_v60 = vpop.xlane.xlu0 %1571 }
 0x323   : > { %v1602_v50 = vsub.f32 %v1509_v57, %v1572_v60  ;;  %4838 = vpow2.f32 %v1617_v19 }
 0x324   : > { %v1623_v27 = vmul.f32 1.442695, %v1604_v46 }
 0x325   : > { %v1619_v0 = vmul.f32 1.442695, %v1602_v50 }
 0x326   : > { %4840 = vpow2.f32 %v1623_v27  ;;  %v1578_v3 = vpop.xlane.xlu0 %1577 }
 0x327   : > { %4842 = vpow2.f32 %v1619_v0  ;;  %v1605_v30 = vsub.f32 %v1522_v9, %v1578_v3 }
 0x328   : > { %4844 = vpow2.f32 %v1621_v26  ;;  %v1580_v54 = vpop.xlane.xlu1 %1579 }
 0x329   : > { %v1625_v36 = vmul.f32 1.442695, %v1605_v30  ;;  %v1606_v59 = vsub.f32 %v1525_v12, %v1580_v54 }
 0x32a   : > { %v1582_v15 = vpop.xlane.xlu0 %1581 }
 0x32b   : > { %v1627_v7 = vmul.f32 1.442695, %v1606_v59  ;;  %v1607_v5 = vsub.f32 %v4350_v58, %v1582_v15  ;;  %4846 = vpow2.f32 %v1625_v36 }
 0x32c   : > { %v1584_v44 = vpop.xlane.xlu1 %1583 }
 0x32d   : > { %4848 = vpow2.f32 %v1627_v7  ;;  %v1629_v62 = vmul.f32 1.442695, %v1607_v5  ;;  %v1608_v60 = vsub.f32 %v4351_v11, %v1584_v44  ;;  %v6035_v46 = vpop.eup %4838 }
 0x32e   : > { %v1586_v17 = vpop.xlane.xlu0 %1585 }
 0x32f   : > { %v1631_v19 = vmul.f32 1.442695, %v1608_v60  ;;  %v1609_v27 = vsub.f32 %v1538_v13, %v1586_v17  ;;  %4850 = vpow2.f32 %v1629_v62  ;;  %v1859_v13 = vsel %vm1423_vm0, %v5741_v63, 0 }
 0x330   : > { %v6037_v50 = vpop.eup %4840  ;;  %v1588_v0 = vpop.xlane.xlu1 %1587 }
 0x331   : > { %v6039_v26 = vpop.eup %4842  ;;  %4852 = vpow2.f32 %v1631_v19  ;;  %v1633_v54 = vmul.f32 1.442695, %v1609_v27  ;;  %v1610_v59 = vsub.f32 %v1541_v23, %v1588_v0 }
 0x332   : > { %v6041_v15 = vpop.eup %4844  ;;  %v1590_v10 = vpop.xlane.xlu0 %1589  ;;  %v1681_v22 = vpack.c.bf16 %v6039_v26, %v6035_v46 }
 0x333   : > { %v1635_v52 = vmul.f32 1.442695, %v1610_v59  ;;  %v1611_v57 = vsub.f32 %v6011_v43, %v1590_v10  ;;  %v1682_v58 = vpack.c.bf16 %v6037_v50, %v6041_v15  ;;  %4854 = vpow2.f32 %v1633_v54 }
 0x334   : > { %4376 = vmatprep.mubr.bf16.mxu0 %v1681_v22  ;;  %v1592_v9 = vpop.xlane.xlu1 %1591 }
 0x335   : > { %4856 = vpow2.f32 %v1635_v52  ;;  %v1637_v11 = vmul.f32 1.442695, %v1611_v57  ;;  %v1612_v12 = vsub.f32 %v6013_v41, %v1592_v9  ;;  %4377 = vmatmul.mubr.bf16.vlgmr.msra.gmra.mrb[48].mxu0 %v1682_v58  ;;  %v6051_v23 = vpop.eup %4846 }
 0x336   : > { %4393 = vmatpush3.bf16.xpose.msra.mxu0 %v1859_v13  ;;  %v1594_v3 = vpop.xlane.xlu0 %1593 }
 0x337   : > { %v6053_v30 = vpop.eup %4848  ;;  %v1639_v43 = vmul.f32 1.442695, %v1612_v12  ;;  %4673 = vmatprep.subr.msk.bf16.mxu0 %vm1423_vm0, %v5759_v20  ;;  %v1613_v36 = vsub.f32 %v6019_v24, %v1594_v3  ;;  %4858 = vpow2.f32 %v1637_v11  ;;  %v1865_v11 = vsel %vm1423_vm0, %v5775_v47, 0 }
 0x338   : > { %v1596_v7 = vpop.xlane.xlu1 %1595  ;;  %v1683_v41 = vpack.c.bf16 %v6053_v30, %v6051_v23 }
 0x339   : > { %4860 = vpow2.f32 %v1639_v43  ;;  %v1641_v5 = vmul.f32 1.442695, %v1613_v36  ;;  %v1614_v44 = vsub.f32 %v6024_v38, %v1596_v7  ;;  %v6061_v62 = vpop.eup %4850  ;;  %v1862_v38 = vsel %vm1423_vm0, %v5759_v20, 0 }
 0x33a   : > { %4380 = vmatprep.mubr.bf16.mxu0 %v1683_v41  ;;  %v1598_v60 = vpop.xlane.xlu0 %1597  ;;  %v1868_v41 = vsel %vm1423_vm0, %v5791_v8, 0 }
 0x33b   : > { %v6063_v17 = vpop.eup %4852  ;;  %v1643_v19 = vmul.f32 1.442695, %v1614_v44  ;;  %v1615_v27 = vsub.f32 %v6017_v42, %v1598_v60  ;;  %4862 = vpow2.f32 %v1641_v5  ;;  %v1871_v5 = vsel %vm1423_vm0, %v5812_v31, 0 }
 0x33c   : > { %v1600_v24 = vpop.xlane.xlu1 %1599  ;;  %v1684_v0 = vpack.c.bf16 %v6063_v17, %v6061_v62  ;;  %v1874_v44 = vsel %vm1423_vm0, %v5832_v4, 0  ;;  %v1877_v60 = vsel %vm1423_vm0, %v5852_v39, 0 }
 0x33d   : > { %4864 = vpow2.f32 %v1643_v19  ;;  %v1645_v54 = vmul.f32 1.442695, %v1615_v27  ;;  %v1616_v59 = vsub.f32 %v6022_v25, %v1600_v24  ;;  %v6071_v10 = vpop.eup %4854  ;;  %v1880_v19 = vsel %vm1423_vm0, %v5872_v21, 0 }
 0x33e   : > { %4395 = vmatpush3.bf16.xpose.msra.mxu0 %v1862_v38  ;;  %v6073_v22 = vpop.permute.xlu0 %2324 }
 0x33f   : > { %v6075_v52 = vpop.eup %4856  ;;  %v1647_v42 = vmul.f32 1.442695, %v1616_v59  ;;  %4381 = vmatmul.mubr.bf16.gmra.mrb[52].mxu0 %v1684_v0  ;;  %4674 = vmatprep.subr.msk.bf16.mxu0 %vm1423_vm0, %v5775_v47  ;;  %4866 = vpow2.f32 %v1645_v54 }
 0x340   : > { %4680 = vmatprep.subr.msk.bf16.mxu1 %vm1423_vm0, %v6073_v22  ;;  %v1685_v25 = vpack.c.bf16 %v6075_v52, %v6071_v10 }
 0x341   : > { %4868 = vpow2.f32 %v1647_v42  ;;  %v6083_v57 = vpop.eup %4858 }
 0x342   : > { %4384 = vmatprep.mubr.bf16.mxu0 %v1685_v25 }
 0x343   : > { %v6085_v58 = vpop.eup %4860 }
 0x344   : > { %v1686_v9 = vpack.c.bf16 %v6085_v58, %v6083_v57 }
 0x345   : > { %v6091_v12 = vpop.eup %4862 }
 0x346   : > { %4397 = vmatpush3.bf16.xpose.msra.mxu0 %v1865_v11 }
 0x347   : > { %v6093_v13 = vpop.eup %4864  ;;  %4385 = vmatmul.mubr.bf16.gmra.mrb[56].mxu0 %v1686_v9  ;;  %4675 = vmatprep.subr.msk.bf16.mxu0 %vm1423_vm0, %v5791_v8 }
 0x348   : > { %v1687_v3 = vpack.c.bf16 %v6093_v13, %v6091_v12 }
 0x349   : > { %v6099_v43 = vpop.eup %4866 }
 0x34a   : > { %4388 = vmatprep.mubr.bf16.mxu0 %v1687_v3 }
 0x34b   : > { %v6101_v36 = vpop.eup %4868 }
 0x34c   : > { %v1688_v7 = vpack.c.bf16 %v6101_v36, %v6099_v43 }
 0x34e   : > { %4399 = vmatpush3.bf16.xpose.msra.mxu0 %v1868_v41 }
 0x34f   : > { %4389 = vmatmul.mubr.bf16.gmra.mrb[60].mxu0 %v1688_v7  ;;  %4676 = vmatprep.subr.msk.bf16.mxu0 %vm1423_vm0, %v5812_v31 }
 0x350   : > { %4408 = vmatprep.mubr.msk.bf16.mxu0 %vm1423_vm0, %v5806_v28 }
 0x356   : > { %4401 = vmatpush3.bf16.xpose.msra.mxu0 %v1871_v5 }
 0x357   : > { %4677 = vmatprep.subr.msk.bf16.mxu0 %vm1423_vm0, %v5832_v4 }
 0x35e   : > { %4403 = vmatpush3.bf16.xpose.msra.mxu0 %v1874_v44 }
 0x35f   : > { %4678 = vmatprep.subr.msk.bf16.mxu0 %vm1423_vm0, %v5852_v39 }
 0x366   : > { %4405 = vmatpush3.bf16.xpose.msra.mxu0 %v1877_v60 }
 0x367   : > { %4679 = vmatprep.subr.msk.bf16.mxu0 %vm1423_vm0, %v5872_v21 }
 0x36e   : > { %4407 = vmatpush3.bf16.xpose.msra.mxu0 %v1880_v19 }
 0x375   : > { %4409 = vmatmul.mubr.msk.bf16.vlgmr.msra.gmra.mrb[64].mxu0 %vm1423_vm0, %v5826_v1 }
 0x376   : > { %4412 = vmatprep.mubr.msk.bf16.mxu0 %vm1423_vm0, %v5846_v33 }
 0x37d   : > { %4413 = vmatmul.mubr.msk.bf16.gmra.mrb[68].mxu0 %vm1423_vm0, %v5866_v14 }
 0x37e   : > { %4416 = vmatprep.mubr.msk.bf16.mxu0 %vm1423_vm0, %v5891_v53 }
 0x385   : > { %4417 = vmatmul.mubr.msk.bf16.gmra.mrb[72].mxu0 %vm1423_vm0, %v5914_v37 }
 0x386   : > { %4420 = vmatprep.mubr.msk.bf16.mxu0 %vm1423_vm0, %v5938_v40 }
 0x38d   : > { %4421 = vmatmul.mubr.msk.bf16.gmra.mrb[76].mxu0 %vm1423_vm0, %v5962_v49 }
 0x408   : > { %v6139_v27 = vpop.f32.mrb[48].mxu0 }
 0x409   : > { %7313 = vst [vmem:[#allocation38_spill] sm:$0xff] %v6139_v27  ;;  %v6141_v24 = vpop.f32.mrb[49].mxu0 }
 0x40a   : > { %7314 = vst [vmem:[#allocation39_spill] sm:$0xff] %v6141_v24  ;;  %v6143_v0 = vpop.f32.mrb[50].mxu0 }
 0x40b   : > { %7315 = vst [vmem:[#allocation40_spill] sm:$0xff] %v6143_v0  ;;  %v6145_v54 = vpop.f32.mrb[51].mxu0 }
 0x40c   : > { %7316 = vst [vmem:[#allocation41_spill] sm:$0xff] %v6145_v54 }
 0x412   : > { %v6147_v59 = vpop.f32.mrb[52].mxu0 }
 0x413   : > { %7317 = vst [vmem:[#allocation42_spill] sm:$0xff] %v6147_v59  ;;  %v6149_v38 = vpop.f32.mrb[53].mxu0 }
 0x414   : > { %7318 = vst [vmem:[#allocation43_spill] sm:$0xff] %v6149_v38  ;;  %v6151_v42 = vpop.f32.mrb[54].mxu0 }
 0x415   : > { %7319 = vst [vmem:[#allocation44_spill] sm:$0xff] %v6151_v42  ;;  %v6153_v25 = vpop.f32.mrb[55].mxu0 }
 0x416   : > { %7320 = vst [vmem:[#allocation45_spill] sm:$0xff] %v6153_v25 }
 0x41a   : > { %v6155_v9 = vpop.f32.mrb[56].mxu0 }
 0x41b   : > { %7321 = vst [vmem:[#allocation46_spill] sm:$0xff] %v6155_v9  ;;  %v6157_v11 = vpop.f32.mrb[57].mxu0 }
 0x41c   : > { %7322 = vst [vmem:[#allocation47_spill] sm:$0xff] %v6157_v11  ;;  %v6159_v3 = vpop.f32.mrb[58].mxu0 }
 0x41d   : > { %7323 = vst [vmem:[#allocation48_spill] sm:$0xff] %v6159_v3  ;;  %v6161_v7 = vpop.f32.mrb[59].mxu0 }
 0x41e   : > { %7324 = vst [vmem:[#allocation49_spill] sm:$0xff] %v6161_v7 }
 0x422   : > { %v6163_v41 = vpop.f32.mrb[60].mxu0 }
 0x423   : > { %7325 = vst [vmem:[#allocation50_spill] sm:$0xff] %v6163_v41  ;;  %v6165_v5 = vpop.f32.mrb[61].mxu0 }
 0x424   : > { %7326 = vst [vmem:[#allocation51_spill] sm:$0xff] %v6165_v5  ;;  %v6167_v44 = vpop.f32.mrb[62].mxu0 }
 0x425   : > { %7327 = vst [vmem:[#allocation52_spill] sm:$0xff] %v6167_v44  ;;  %v6169_v60 = vpop.f32.mrb[63].mxu0 }
 0x426   : > { %7328 = vst [vmem:[#allocation53_spill] sm:$0xff] %v6169_v60 }
 0x448   : > { %v6171_v19 = vpop.f32.mrb[64].mxu0 }
 0x449   : > { %1983 = vmax.xlane.f32.xlu0 %v6171_v19  ;;  %v6174_v42 = vpop.f32.mrb[65].mxu0 }
 0x44a   : > { %v4411_v9 = vpop.f32.mrb[66].mxu0 }
 0x44b   : > { %1985 = vmax.xlane.f32.xlu1 %v4411_v9  ;;  %v6176_v11 = vpop.f32.mrb[67].mxu0 }
 0x44d   : > { %1979 = vmax.xlane.f32.xlu0 %v6174_v42 }
 0x44f   : > { %1981 = vmax.xlane.f32.xlu1 %v6176_v11 }
 0x450   : > { %v6180_v41 = vpop.f32.mrb[68].mxu0 }
 0x451   : > { %v6182_v5 = vpop.f32.mrb[69].mxu0 }
 0x452   : > { %v6184_v44 = vpop.f32.mrb[70].mxu0 }
 0x453   : > { %v6186_v60 = vpop.f32.mrb[71].mxu0 }
 0x458   : > { %v6188_v3 = vpop.f32.mrb[72].mxu0 }
 0x459   : > { %v6190_v7 = vpop.f32.mrb[73].mxu0 }
 0x45a   : > { %v6192_v59 = vpop.f32.mrb[74].mxu0 }
 0x45b   : > { %v6194_v25 = vpop.f32.mrb[75].mxu0 }
 0x460   : > { %2330 = vrot.lane.b32.xlu1 %v5870_v16, %s5263_s23  ;;  %v6198_v38 = vpop.f32.mrb[76].mxu0  ;;  %v2327_v16 = vpop.permute.xlu1 %2326 }
 0x461   : > { %v6200_v0 = vpop.f32.mrb[77].mxu0 }
 0x462   : > { %v6202_v27 = vpop.f32.mrb[78].mxu0 }
 0x463   : > { %2332 = vrot.lane.b32.xlu0 %v5895_v55, %s5263_s23  ;;  %v6206_v54 = vpop.f32.mrb[79].mxu0  ;;  %v7335_v55 = vld [vmem:[#allocation36_spill] sm:$0xff] }
 0x482   : > { %1991 = vmax.xlane.f32.xlu0 %v6180_v41 }
 0x484   : > { %1987 = vmax.xlane.f32.xlu1 %v6182_v5 }
 0x486   : > { %1995 = vmax.xlane.f32.xlu0 %v6190_v7 }
 0x488   : > { %1993 = vmax.xlane.f32.xlu1 %v6184_v44 }
 0x48a   : > { %1997 = vmax.xlane.f32.xlu0 %v6194_v25 }
 0x48c   : > { %1989 = vmax.xlane.f32.xlu1 %v6186_v60 }
 0x48e   : > { %2007 = vmax.xlane.f32.xlu0 %v6198_v38 }
 0x490   : > { %1999 = vmax.xlane.f32.xlu1 %v6188_v3 }
 0x494   : > { %2001 = vmax.xlane.f32.xlu1 %v6192_v59 }
 0x498   : > { %2003 = vmax.xlane.f32.xlu1 %v6200_v0 }
 0x49c   : > { %2009 = vmax.xlane.f32.xlu1 %v6202_v27 }
 0x4a0   : > { %2005 = vmax.xlane.f32.xlu1 %v6206_v54 }
 0x4a4   : > { %2336 = vrot.lane.b32.xlu0 %v5943_v35, %s5263_s23 }
 0x4a8   : > { %2338 = vrot.lane.b32.xlu0 %v5967_v51, %s5263_s23 }
 0x4ac   : > { %2300 = vrot.lane.b32.xlu0 %v5737_v61, %s5263_s23  ;;  %v7329_v61 = vld [vmem:[#allocation31_spill] sm:$0xff] }
 0x4b0   : > { %2304 = vrot.lane.b32.xlu0 %v5771_v45, %s5263_s23  ;;  %v7331_v45 = vld [vmem:[#allocation32_spill] sm:$0xff] }
 0x4b1   : > { %2334 = vrot.lane.b32.xlu1 %v5919_v32, %s5263_s23 }
 0x4b4   : > { %2308 = vrot.lane.b32.xlu0 %v5808_v29, %s5263_s23  ;;  %v7333_v29 = vld [vmem:[#allocation35_spill] sm:$0xff] }
 0x4b5   : > { %2302 = vrot.lane.b32.xlu1 %v5755_v18, %s5263_s23  ;;  %v7330_v18 = vld [vmem:[#allocation37_spill] sm:$0xff] }
 0x4b8   : > { %2312 = vrot.lane.b32.xlu0 %v5848_v34, %s5263_s23  ;;  %v2329_v34 = vpop.permute.xlu0 %2328 }
 0x4b9   : > { %2306 = vrot.lane.b32.xlu1 %v5787_v6, %s5263_s23  ;;  %v7332_v6 = vld [vmem:[#allocation33_spill] sm:$0xff] }
 0x4bc   : > { %2613 = vrot.lane.b32.xlu0 %v5897_v56, %s5263_s23 }
 0x4bd   : > { %2310 = vrot.lane.b32.xlu1 %v5828_v2, %s5263_s23  ;;  %v7334_v2 = vld [vmem:[#allocation34_spill] sm:$0xff] }
 0x4c0   : > { %2617 = vrot.lane.b32.xlu0 %v5921_v48, %s5263_s23 }
 0x4c1   : > { %2314 = vrot.lane.b32.xlu1 %v7329_v61, %s5263_s23 }
 0x4c4   : > { %2625 = vrot.lane.b32.xlu0 %v7330_v18, %s5263_s23 }
 0x4c5   : > { %2615 = vrot.lane.b32.xlu1 %v7331_v45, %s5263_s23 }
 0x4c8   : > { %2847 = vrot.lane.b32.xlu0 %v5741_v63, %s5263_s23 }
 0x4c9   : > { %2619 = vrot.lane.b32.xlu1 %v7332_v6, %s5263_s23 }
 0x4cc   : > { %2849 = vrot.lane.b32.xlu0 %v5759_v20, %s5263_s23 }
 0x4cd   : > { %2621 = vrot.lane.b32.xlu1 %v7333_v29, %s5263_s23 }
 0x4d0   : > { %2853 = vrot.lane.b32.xlu0 %v5791_v8, %s5263_s23 }
 0x4d1   : > { %2623 = vrot.lane.b32.xlu1 %v7334_v2, %s5263_s23  ;;  %v2365_v2 = vsel %vm1423_vm0, %v6073_v22, 0 }
 0x4d5   : > { %2627 = vrot.lane.b32.xlu1 %v7335_v55, %s5263_s23  ;;  %v2368_v55 = vsel %vm1423_vm0, %v2327_v16, 0 }
 0x4d6   : > { %v1984_v63 = vpop.xlane.xlu0 %1983 }
 0x4d7   : > { %v2013_v20 = vsub.f32 %v6171_v19, %v1984_v63  ;;  %v2371_v63 = vsel %vm1423_vm0, %v2329_v34, 0 }
 0x4d8   : > { %v1986_v56 = vpop.xlane.xlu1 %1985 }
 0x4d9   : > { %v2014_v32 = vsub.f32 %v4411_v9, %v1986_v56  ;;  %2851 = vrot.lane.b32.xlu1 %v5775_v47, %s5263_s23  ;;  %v2031_v45 = vmul.f32 1.442695, %v2013_v20 }
 0x4da   : > { %v1980_v48 = vpop.xlane.xlu0 %1979 }
 0x4db   : > { %v2033_v35 = vmul.f32 1.442695, %v2014_v32  ;;  %v2011_v8 = vsub.f32 %v6174_v42, %v1980_v48 }
 0x4dc   : > { %v1982_v51 = vpop.xlane.xlu1 %1981 }
 0x4dd   : > { %v2027_v61 = vmul.f32 1.442695, %v2011_v8  ;;  %v2012_v18 = vsub.f32 %v6176_v11, %v1982_v51  ;;  %4870 = vpow2.f32 %v2033_v35 }
 0x4de   : > { %v2333_v20 = vpop.permute.xlu0 %2332 }
 0x4df   : > { %v2029_v6 = vmul.f32 1.442695, %v2012_v18  ;;  %4872 = vpow2.f32 %v2027_v61  ;;  %v2377_v48 = vsel %vm1423_vm0, %v2333_v20, 0 }
 0x4e0   : > { %v2331_v56 = vpop.permute.xlu1 %2330 }
 0x4e1   : > { %4874 = vpow2.f32 %v2029_v6  ;;  %v2374_v32 = vsel %vm1423_vm0, %v2331_v56, 0 }
 0x4e2   : > { %4876 = vpow2.f32 %v2031_v45 }
 0x4e7   : > { %v6269_v9 = vpop.eup %4870 }
 0x4e8   : > { %7336 = vst [vmem:[#allocation31_spill] sm:$0xff] %v6269_v9 }
 0x4e9   : > { %v6271_v29 = vpop.eup %4872 }
 0x4ea   : > { %7337 = vst [vmem:[#allocation37_spill] sm:$0xff] %v6271_v29 }
 0x4eb   : > { %v6273_v47 = vpop.eup %4874 }
 0x4ec   : > { %v6275_v19 = vpop.eup %4876  ;;  %v2091_v42 = vpack.c.bf16 %v6273_v47, %v6271_v29 }
 0x4ed   : > { %7338 = vst [vmem:[#allocation32_spill] sm:$0xff] %v6275_v19  ;;  %v2092_v11 = vpack.c.bf16 %v6269_v9, %v6275_v19 }
 0x4ee   : > { %4440 = vmatprep.mubr.bf16.mxu1 %v2091_v42 }
 0x4ef   : > { %4441 = vmatmul.mubr.bf16.vlgmr.msra.gmra.mrb[64].mxu1 %v2092_v11 }
 0x4f0   : > { %4457 = vmatpush3.bf16.xpose.msra.mxu1 %v2365_v2 }
 0x4f1   : > { %4681 = vmatprep.subr.msk.bf16.mxu1 %vm1423_vm0, %v2327_v16 }
 0x4f8   : > { %4459 = vmatpush3.bf16.xpose.msra.mxu1 %v2368_v55 }
 0x4f9   : > { %4682 = vmatprep.subr.msk.bf16.mxu1 %vm1423_vm0, %v2329_v34 }
 0x500   : > { %4461 = vmatpush3.bf16.xpose.msra.mxu1 %v2371_v63 }
 0x501   : > { %4683 = vmatprep.subr.msk.bf16.mxu1 %vm1423_vm0, %v2331_v56 }
 0x508   : > { %4463 = vmatpush3.bf16.xpose.msra.mxu1 %v2374_v32 }
 0x509   : > { %4684 = vmatprep.subr.msk.bf16.mxu1 %vm1423_vm0, %v2333_v20 }
 0x50f   : > { %v1992_v22 = vpop.xlane.xlu0 %1991 }
 0x510   : > { %4465 = vmatpush3.bf16.xpose.msra.mxu1 %v2377_v48  ;;  %v2017_v61 = vsub.f32 %v6180_v41, %v1992_v22 }
 0x511   : > { %v1988_v16 = vpop.xlane.xlu1 %1987 }
 0x512   : > { %v2015_v35 = vsub.f32 %v6182_v5, %v1988_v16  ;;  %v2039_v56 = vmul.f32 1.442695, %v2017_v61 }
 0x513   : > { %v1996_v8 = vpop.xlane.xlu0 %1995 }
 0x514   : > { %v2035_v18 = vmul.f32 1.442695, %v2015_v35  ;;  %v2019_v6 = vsub.f32 %v6190_v7, %v1996_v8 }
 0x515   : > { %v1994_v51 = vpop.xlane.xlu1 %1993 }
 0x516   : > { %v2018_v34 = vsub.f32 %v6184_v44, %v1994_v51  ;;  %4878 = vpow2.f32 %v2035_v18  ;;  %v2043_v32 = vmul.f32 1.442695, %v2019_v6 }
 0x517   : > { %v1998_v45 = vpop.xlane.xlu0 %1997 }
 0x518   : > { %v2041_v42 = vmul.f32 1.442695, %v2018_v34  ;;  %v2020_v11 = vsub.f32 %v6194_v25, %v1998_v45 }
 0x519   : > { %v1990_v2 = vpop.xlane.xlu1 %1989 }
 0x51a   : > { %v2045_v55 = vmul.f32 1.442695, %v2020_v11  ;;  %v2016_v63 = vsub.f32 %v6186_v60, %v1990_v2  ;;  %4880 = vpow2.f32 %v2041_v42 }
 0x51b   : > { %v2008_v5 = vpop.xlane.xlu0 %2007 }
 0x51c   : > { %v2037_v20 = vmul.f32 1.442695, %v2016_v63  ;;  %4882 = vpow2.f32 %v2045_v55  ;;  %v2025_v55 = vsub.f32 %v6198_v38, %v2008_v5 }
 0x51d   : > { %v2000_v44 = vpop.xlane.xlu1 %1999 }
 0x51e   : > { %4884 = vpow2.f32 %v2037_v20  ;;  %v2021_v41 = vsub.f32 %v6188_v3, %v2000_v44 }
 0x51f   : > { %4886 = vpow2.f32 %v2039_v56  ;;  %v2337_v7 = vpop.permute.xlu0 %2336 }
 0x520   : > { %4888 = vpow2.f32 %v2043_v32  ;;  %v2047_v22 = vmul.f32 1.442695, %v2021_v41  ;;  %v6301_v35 = vpop.eup %4878 }
 0x521   : > { %v2002_v25 = vpop.xlane.xlu1 %2001  ;;  %7339 = vst [vmem:[#allocation33_spill] sm:$0xff] %v6301_v35 }
 0x522   : > { %v2022_v48 = vsub.f32 %v6192_v59, %v2002_v25  ;;  %4890 = vpow2.f32 %v2047_v22 }
 0x523   : > { %v6299_v16 = vpop.permute.xlu0 %2338 }
 0x524   : > { %v2049_v60 = vmul.f32 1.442695, %v2022_v48  ;;  %v6303_v51 = vpop.eup %4880 }
 0x525   : > { %v2004_v8 = vpop.xlane.xlu1 %2003  ;;  %7340 = vst [vmem:[#allocation35_spill] sm:$0xff] %v6303_v51 }
 0x526   : > { %4892 = vpow2.f32 %v2049_v60  ;;  %v6305_v34 = vpop.eup %4882  ;;  %v2023_v18 = vsub.f32 %v6200_v0, %v2004_v8 }
 0x527   : > { %7341 = vst [vmem:[#allocation34_spill] sm:$0xff] %v6305_v34  ;;  %v2301_v3 = vpop.permute.xlu0 %2300 }
 0x528   : > { %v6307_v61 = vpop.eup %4884  ;;  %v2051_v56 = vmul.f32 1.442695, %v2023_v18 }
 0x529   : > { %7342 = vst [vmem:[#allocation36_spill] sm:$0xff] %v6307_v61  ;;  %v6310_v45 = vpop.eup %4886  ;;  %v2010_v59 = vpop.xlane.xlu1 %2009  ;;  %v2093_v6 = vpack.c.bf16 %v6307_v61, %v6301_v35 }
 0x52a   : > { %7343 = vst [vmem:[#allocation54_spill] sm:$0xff] %v6310_v45  ;;  %v6314_v42 = vpop.eup %4888  ;;  %v2026_v11 = vsub.f32 %v6202_v27, %v2010_v59  ;;  %v2094_v2 = vpack.c.bf16 %v6303_v51, %v6310_v45  ;;  %v2055_v27 = vmul.f32 1.442695, %v2025_v55  ;;  %4894 = vpow2.f32 %v2051_v56 }
 0x52b   : > { %7344 = vst [vmem:[#allocation55_spill] sm:$0xff] %v6314_v42  ;;  %v2305_v63 = vpop.permute.xlu0 %2304  ;;  %4444 = vmatprep.mubr.bf16.mxu1 %v2093_v6  ;;  %v2095_v0 = vpack.c.bf16 %v6305_v34, %v6314_v42  ;;  %v7376_v42 = vld [vmem:[#allocation30_spill] sm:$0xff] }
 0x52c   : > { %4445 = vmatmul.mubr.bf16.gmra.mrb[68].mxu1 %v2094_v2  ;;  %v2057_v32 = vmul.f32 1.442695, %v2026_v11  ;;  %v6323_v41 = vpop.eup %4890  ;;  %v2383_v11 = vsel %vm1423_vm0, %v2337_v7, 0 }
 0x52d   : > { %4448 = vmatprep.mubr.bf16.mxu1 %v2095_v0  ;;  %v2006_v20 = vpop.xlane.xlu1 %2005  ;;  %7345 = vst [vmem:[#allocation56_spill] sm:$0xff] %v6323_v41 }
 0x52e   : > { %v2024_v44 = vsub.f32 %v6206_v54, %v2006_v20  ;;  %4896 = vpow2.f32 %v2057_v32 }
 0x52f   : > { %v2309_v22 = vpop.permute.xlu0 %2308 }
 0x530   : > { %v6325_v25 = vpop.eup %4892  ;;  %v2053_v38 = vmul.f32 1.442695, %v2024_v44  ;;  %v2386_v44 = vsel %vm1423_vm0, %v6299_v16, 0 }
 0x531   : > { %7346 = vst [vmem:[#allocation57_spill] sm:$0xff] %v6325_v25  ;;  %v2335_v5 = vpop.permute.xlu1 %2334  ;;  %v2096_v48 = vpack.c.bf16 %v6325_v25, %v6323_v41 }
 0x532   : > { %4898 = vpow2.f32 %v2053_v38  ;;  %4685 = vmatprep.subr.msk.bf16.mxu1 %vm1423_vm0, %v2335_v5  ;;  %v2380_v60 = vsel %vm1423_vm0, %v2335_v5, 0 }
 0x533   : > { %4900 = vpow2.f32 %v2055_v27  ;;  %v2313_v54 = vpop.permute.xlu0 %2312  ;;  %4467 = vmatpush3.bf16.xpose.msra.mxu1 %v2380_v60 }
 0x534   : > { %4449 = vmatmul.mubr.bf16.gmra.mrb[72].mxu1 %v2096_v48  ;;  %4686 = vmatprep.subr.msk.bf16.mxu1 %vm1423_vm0, %v2337_v7  ;;  %v6332_v6 = vpop.eup %4894 }
 0x535   : > { %v2303_v8 = vpop.permute.xlu1 %2302  ;;  %7347 = vst [vmem:[#allocation58_spill] sm:$0xff] %v6332_v6 }
 0x537   : > { %v2614_v18 = vpop.permute.xlu0 %2613 }
 0x538   : > { %4488 = vmatprep.subr.bf16.mxu0 %v2614_v18  ;;  %v6335_v2 = vpop.eup %4896 }
 0x539   : > { %4489 = vmatpush3.bf16.msra.mxu0 %v2614_v18  ;;  %v2307_v59 = vpop.permute.xlu1 %2306  ;;  %7348 = vst [vmem:[#allocation59_spill] sm:$0xff] %v6335_v2 }
 0x53b   : > { %4469 = vmatpush3.bf16.xpose.msra.mxu1 %v2383_v11  ;;  %v2618_v38 = vpop.permute.xlu0 %2617 }
 0x53c   : > { %v6337_v55 = vpop.eup %4898  ;;  %4687 = vmatprep.subr.msk.bf16.mxu1 %vm1423_vm0, %v6299_v16 }
 0x53d   : > { %7349 = vst [vmem:[#allocation60_spill] sm:$0xff] %v6337_v55  ;;  %v6341_v0 = vpop.eup %4900  ;;  %v2311_v56 = vpop.permute.xlu1 %2310  ;;  %v2097_v32 = vpack.c.bf16 %v6337_v55, %v6332_v6 }
 0x53e   : > { %7350 = vst [vmem:[#allocation61_spill] sm:$0xff] %v6341_v0  ;;  %v2098_v20 = vpack.c.bf16 %v6335_v2, %v6341_v0 }
 0x53f   : > { %4452 = vmatprep.mubr.bf16.mxu1 %v2097_v32  ;;  %v2626_v16 = vpop.permute.xlu0 %2625 }
 0x540   : > { %4453 = vmatmul.mubr.bf16.gmra.mrb[76].mxu1 %v2098_v20 }
 0x541   : > { %4472 = vmatprep.mubr.msk.bf16.mxu1 %vm1423_vm0, %v2301_v3  ;;  %v2315_v7 = vpop.permute.xlu1 %2314 }
 0x543   : > { %4471 = vmatpush3.bf16.xpose.msra.mxu1 %v2386_v44 }
 0x545   : > { %v2616_v27 = vpop.permute.xlu1 %2615 }
 0x546   : > { %4490 = vmatprep.subr.bf16.mxu0 %v2616_v27 }
 0x547   : > { %4491 = vmatpush3.bf16.msra.mxu0 %v2616_v27 }
 0x548   : > { %4492 = vmatprep.subr.bf16.mxu0 %v2618_v38 }
 0x549   : > { %v2620_v5 = vpop.permute.xlu1 %2619 }
 0x54a   : > { %4473 = vmatmul.mubr.msk.bf16.vlgmr.msra.gmra.mrb[80].mxu1 %vm1423_vm0, %v2303_v8 }
 0x54b   : > { %4476 = vmatprep.mubr.msk.bf16.mxu1 %vm1423_vm0, %v2305_v63  ;;  %4493 = vmatpush3.bf16.msra.mxu0 %v2618_v38  ;;  %v6356_v63 = vpop.permute.xlu0 %2847 }
 0x54c   : > { %4494 = vmatprep.subr.bf16.mxu0 %v2620_v5 }
 0x54d   : > { %v2622_v48 = vpop.permute.xlu1 %2621 }
 0x54f   : > { %4495 = vmatpush3.bf16.msra.mxu0 %v2620_v5 }
 0x550   : > { %4496 = vmatprep.subr.bf16.mxu0 %v2622_v48 }
 0x551   : > { %v2624_v3 = vpop.permute.xlu1 %2623 }
 0x552   : > { %4477 = vmatmul.mubr.msk.bf16.gmra.mrb[84].mxu1 %vm1423_vm0, %v2307_v59 }
 0x553   : > { %4480 = vmatprep.mubr.msk.bf16.mxu1 %vm1423_vm0, %v2309_v22  ;;  %4497 = vmatpush3.bf16.msra.mxu0 %v2622_v48 }
 0x554   : > { %4498 = vmatprep.subr.bf16.mxu0 %v2624_v3 }
 0x555   : > { %v2628_v60 = vpop.permute.xlu1 %2627 }
 0x557   : > { %4499 = vmatpush3.bf16.msra.mxu0 %v2624_v3 }
 0x558   : > { %4500 = vmatprep.subr.bf16.mxu0 %v2626_v16 }
 0x55a   : > { %4481 = vmatmul.mubr.msk.bf16.gmra.mrb[88].mxu1 %vm1423_vm0, %v2311_v56 }
 0x55b   : > { %4484 = vmatprep.mubr.msk.bf16.mxu1 %vm1423_vm0, %v2313_v54  ;;  %4501 = vmatpush3.bf16.msra.mxu0 %v2626_v16 }
 0x55c   : > { %4502 = vmatprep.subr.bf16.mxu0 %v2628_v60 }
 0x55f   : > { %4503 = vmatpush3.bf16.msra.mxu0 %v2628_v60 }
 0x560   : > { %4688 = vmatprep.subr.msk.bf16.mxu0 %vm1423_vm0, %v6356_v63 }
 0x562   : > { %4485 = vmatmul.mubr.msk.bf16.gmra.mrb[92].mxu1 %vm1423_vm0, %v2315_v7 }
 0x5c2   : > { %v6361_v22 = vpop.f32.mrb[64].mxu1 }
 0x5c3   : > { %7351 = vst [vmem:[#allocation62_spill] sm:$0xff] %v6361_v22  ;;  %v6363_v8 = vpop.f32.mrb[65].mxu1 }
 0x5c4   : > { %7352 = vst [vmem:[#allocation63_spill] sm:$0xff] %v6363_v8  ;;  %v6365_v18 = vpop.f32.mrb[66].mxu1  ;;  %v7367_v8 = vld [vmem:[#allocation23_spill] sm:$0xff] }
 0x5c5   : > { %7353 = vst [vmem:[#allocation64_spill] sm:$0xff] %v6365_v18  ;;  %v6367_v59 = vpop.f32.mrb[67].mxu1 }
 0x5c6   : > { %7354 = vst [vmem:[#allocation65_spill] sm:$0xff] %v6367_v59 }
 0x5ff   : > { %v6369_v11 = vpop.f32.mrb[68].mxu1 }
 0x600   : > { %7355 = vst [vmem:[#allocation66_spill] sm:$0xff] %v6369_v11  ;;  %v6371_v54 = vpop.f32.mrb[69].mxu1 }
 0x601   : > { %7356 = vst [vmem:[#allocation67_spill] sm:$0xff] %v6371_v54  ;;  %v6373_v56 = vpop.f32.mrb[70].mxu1 }
 0x602   : > { %7357 = vst [vmem:[#allocation68_spill] sm:$0xff] %v6373_v56  ;;  %v6375_v32 = vpop.f32.mrb[71].mxu1 }
 0x603   : > { %7358 = vst [vmem:[#allocation69_spill] sm:$0xff] %v6375_v32 }
 0x607   : > { %v6377_v20 = vpop.f32.mrb[72].mxu1 }
 0x608   : > { %7359 = vst [vmem:[#allocation70_spill] sm:$0xff] %v6377_v20  ;;  %v6379_v44 = vpop.f32.mrb[73].mxu1 }
 0x609   : > { %7360 = vst [vmem:[#allocation71_spill] sm:$0xff] %v6379_v44  ;;  %v6381_v7 = vpop.f32.mrb[74].mxu1 }
 0x60a   : > { %7361 = vst [vmem:[#allocation72_spill] sm:$0xff] %v6381_v7  ;;  %v6383_v27 = vpop.f32.mrb[75].mxu1 }
 0x60b   : > { %7362 = vst [vmem:[#allocation73_spill] sm:$0xff] %v6383_v27 }
 0x613   : > { %v6385_v38 = vpop.f32.mrb[76].mxu1 }
 0x614   : > { %7363 = vst [vmem:[#allocation74_spill] sm:$0xff] %v6385_v38  ;;  %v6387_v5 = vpop.f32.mrb[77].mxu1 }
 0x615   : > { %7364 = vst [vmem:[#allocation75_spill] sm:$0xff] %v6387_v5  ;;  %v6389_v48 = vpop.f32.mrb[78].mxu1 }
 0x616   : > { %7365 = vst [vmem:[#allocation76_spill] sm:$0xff] %v6389_v48  ;;  %v6391_v3 = vpop.f32.mrb[79].mxu1 }
 0x617   : > { %7366 = vst [vmem:[#allocation77_spill] sm:$0xff] %v6391_v3 }
 0x61d   : > { %v4474_v16 = vpop.f32.mrb[80].mxu1 }
 0x61e   : > { %2489 = vmax.xlane.f32.xlu0 %v4474_v16  ;;  %v2422_v60 = vpop.f32.mrb[81].mxu1 }
 0x61f   : > { %v6393_v56 = vpop.f32.mrb[82].mxu1 }
 0x620   : > { %v2425_v11 = vpop.f32.mrb[83].mxu1 }
 0x621   : > { %2487 = vmax.xlane.f32.xlu1 %v2425_v11 }
 0x622   : > { %2485 = vmax.xlane.f32.xlu0 %v2422_v60 }
 0x625   : > { %v6395_v54 = vpop.f32.mrb[84].mxu1 }
 0x626   : > { %2491 = vmax.xlane.f32.xlu0 %v6393_v56  ;;  %2497 = vmax.xlane.f32.xlu1 %v6395_v54  ;;  %v6399_v38 = vpop.f32.mrb[85].mxu1 }
 0x627   : > { %v6401_v5 = vpop.f32.mrb[86].mxu1 }
 0x628   : > { %v6403_v48 = vpop.f32.mrb[87].mxu1 }
 0x62a   : > { %2493 = vmax.xlane.f32.xlu1 %v6399_v38  ;;  %2495 = vmax.xlane.f32.xlu0 %v6403_v48 }
 0x62d   : > { %v6407_v3 = vpop.f32.mrb[88].mxu1 }
 0x62e   : > { %2499 = vmax.xlane.f32.xlu1 %v6401_v5  ;;  %2505 = vmax.xlane.f32.xlu0 %v6407_v3  ;;  %v6411_v32 = vpop.f32.mrb[89].mxu1 }
 0x62f   : > { %v6413_v7 = vpop.f32.mrb[90].mxu1 }
 0x630   : > { %v6415_v20 = vpop.f32.mrb[91].mxu1 }
 0x632   : > { %2501 = vmax.xlane.f32.xlu1 %v6411_v32 }
 0x635   : > { %v6418_v18 = vpop.f32.mrb[92].mxu1 }
 0x636   : > { %2507 = vmax.xlane.f32.xlu1 %v6413_v7  ;;  %v6421_v22 = vpop.f32.mrb[93].mxu1 }
 0x637   : > { %2509 = vmax.xlane.f32.xlu0 %v6421_v22  ;;  %v6424_v27 = vpop.f32.mrb[94].mxu1 }
 0x638   : > { %v6426_v44 = vpop.f32.mrb[95].mxu1 }
 0x63a   : > { %2503 = vmax.xlane.f32.xlu1 %v6415_v20 }
 0x63e   : > { %2513 = vmax.xlane.f32.xlu1 %v6418_v18 }
 0x642   : > { %2515 = vmax.xlane.f32.xlu1 %v6424_v27 }
 0x64d   : > { %2857 = vrot.lane.b32.xlu0 %v5832_v4, %s5263_s23  ;;  %v7368_v4 = vld [vmem:[#allocation28_spill] sm:$0xff] }
 0x653   : > { %2855 = vrot.lane.b32.xlu1 %v5812_v31, %s5263_s23  ;;  %v7369_v31 = vld [vmem:[#allocation24_spill] sm:$0xff] }
 0x657   : > { %2825 = vrot.lane.b32.xlu1 %v5826_v1, %s5263_s23  ;;  %v7370_v1 = vld [vmem:[#allocation26_spill] sm:$0xff] }
 0x65b   : > { %2829 = vrot.lane.b32.xlu1 %v5866_v14, %s5263_s23  ;;  %v7371_v14 = vld [vmem:[#allocation25_spill] sm:$0xff] }
 0x65f   : > { %2833 = vrot.lane.b32.xlu1 %v5914_v37, %s5263_s23 }
 0x663   : > { %2837 = vrot.lane.b32.xlu1 %v5962_v49, %s5263_s23 }
 0x667   : > { %3138 = vrot.lane.b32.xlu1 %v7367_v8, %s5263_s23 }
 0x66b   : > { %3144 = vrot.lane.b32.xlu1 %v7368_v4, %s5263_s23 }
 0x66c   : > { %2511 = vmax.xlane.f32.xlu0 %v6426_v44 }
 0x682   : > { %2859 = vrot.lane.b32.xlu0 %v5852_v39, %s5263_s23  ;;  %v6464_v39 = vpop.permute.xlu0 %2849 }
 0x686   : > { %2861 = vrot.lane.b32.xlu0 %v5872_v21, %s5263_s23  ;;  %v6472_v21 = vpop.permute.xlu1 %2851 }
 0x68a   : > { %2823 = vrot.lane.b32.xlu0 %v5806_v28, %s5263_s23  ;;  %v7372_v28 = vld [vmem:[#allocation27_spill] sm:$0xff] }
 0x68e   : > { %2827 = vrot.lane.b32.xlu0 %v5846_v33, %s5263_s23  ;;  %v6470_v33 = vpop.permute.xlu0 %2853 }
 0x692   : > { %2831 = vrot.lane.b32.xlu0 %v5891_v53, %s5263_s23 }
 0x696   : > { %2835 = vrot.lane.b32.xlu0 %v5938_v40, %s5263_s23 }
 0x69a   : > { %3136 = vrot.lane.b32.xlu0 %v7369_v31, %s5263_s23 }
 0x69e   : > { %3140 = vrot.lane.b32.xlu0 %v7370_v1, %s5263_s23 }
 0x6a2   : > { %3142 = vrot.lane.b32.xlu0 %v7371_v14, %s5263_s23 }
 0x6a6   : > { %3146 = vrot.lane.b32.xlu0 %v7372_v28, %s5263_s23 }
 0x6ab   : > { %v2490_v53 = vpop.xlane.xlu0 %2489 }
 0x6ac   : > { %v2519_v40 = vsub.f32 %v4474_v16, %v2490_v53 }
 0x6ae   : > { %v2488_v37 = vpop.xlane.xlu1 %2487  ;;  %v2537_v59 = vmul.f32 1.442695, %v2519_v40 }
 0x6af   : > { %v2518_v49 = vsub.f32 %v2425_v11, %v2488_v37  ;;  %v2486_v8 = vpop.xlane.xlu0 %2485 }
 0x6b0   : > { %v2517_v4 = vsub.f32 %v2422_v60, %v2486_v8 }
 0x6b1   : > { %v2535_v31 = vmul.f32 1.442695, %v2518_v49 }
 0x6b2   : > { %v2533_v1 = vmul.f32 1.442695, %v2517_v4 }
 0x6b3   : > { %4902 = vpow2.f32 %v2535_v31  ;;  %v2492_v2 = vpop.xlane.xlu0 %2491  ;;  %v2498_v51 = vpop.xlane.xlu1 %2497  ;;  %v2888_v31 = vsel %vm1423_vm0, %v6356_v63, 0 }
 0x6b4   : > { %4904 = vpow2.f32 %v2533_v1  ;;  %v2520_v14 = vsub.f32 %v6393_v56, %v2492_v2  ;;  %v2523_v0 = vsub.f32 %v6395_v54, %v2498_v51 }
 0x6b5   : > { %4906 = vpow2.f32 %v2537_v59 }
 0x6b6   : > { %v2539_v28 = vmul.f32 1.442695, %v2520_v14  ;;  %v2545_v40 = vmul.f32 1.442695, %v2523_v0 }
 0x6b7   : > { %v2496_v55 = vpop.xlane.xlu0 %2495  ;;  %v2494_v35 = vpop.xlane.xlu1 %2493 }
 0x6b8   : > { %4908 = vpow2.f32 %v2539_v28  ;;  %v2522_v11 = vsub.f32 %v6403_v48, %v2496_v55  ;;  %v2521_v16 = vsub.f32 %v6399_v38, %v2494_v35 }
 0x6ba   : > { %v2543_v60 = vmul.f32 1.442695, %v2522_v11  ;;  %v2541_v53 = vmul.f32 1.442695, %v2521_v16 }
 0x6bb   : > { %v2500_v37 = vpop.xlane.xlu1 %2499  ;;  %v2506_v0 = vpop.xlane.xlu0 %2505 }
 0x6bc   : > { %4910 = vpow2.f32 %v2543_v60  ;;  %v2524_v49 = vsub.f32 %v6401_v5, %v2500_v37  ;;  %v2527_v4 = vsub.f32 %v6407_v3, %v2506_v0 }
 0x6bd   : > { %v6479_v8 = vpop.eup %4902  ;;  %4912 = vpow2.f32 %v2541_v53 }
 0x6be   : > { %v6481_v2 = vpop.eup %4904  ;;  %v2547_v59 = vmul.f32 1.442695, %v2524_v49  ;;  %4914 = vpow2.f32 %v2545_v40  ;;  %v2553_v3 = vmul.f32 1.442695, %v2527_v4 }
 0x6bf   : > { %v2502_v56 = vpop.xlane.xlu1 %2501  ;;  %v2597_v51 = vpack.c.bf16 %v6479_v8, %v6481_v2  ;;  %v6485_v55 = vpop.eup %4906 }
 0x6c0   : > { %4916 = vpow2.f32 %v2547_v59  ;;  %v2525_v54 = vsub.f32 %v6411_v32, %v2502_v56 }
 0x6c1   : > { %4504 = vmatprep.mubr.bf16.mxu0 %v2597_v51  ;;  %v2894_v51 = vsel %vm1423_vm0, %v6472_v21, 0 }
 0x6c2   : > { %v6487_v35 = vpop.eup %4908  ;;  %v2549_v14 = vmul.f32 1.442695, %v2525_v54 }
 0x6c3   : > { %v2508_v38 = vpop.xlane.xlu1 %2507  ;;  %v2598_v5 = vpack.c.bf16 %v6487_v35, %v6485_v55 }
 0x6c4   : > { %v2528_v48 = vsub.f32 %v6413_v7, %v2508_v38  ;;  %4918 = vpow2.f32 %v2549_v14 }
 0x6c5   : > { %4505 = vmatmul.mubr.bf16.vlgmr.msra.gmra.mrb[80].mxu0 %v2598_v5  ;;  %v2897_v5 = vsel %vm1423_vm0, %v6470_v33, 0 }
 0x6c6   : > { %v6496_v1 = vpop.eup %4910  ;;  %4521 = vmatpush3.bf16.xpose.msra.mxu0 %v2888_v31  ;;  %v2555_v11 = vmul.f32 1.442695, %v2528_v48 }
 0x6c7   : > { %v6498_v28 = vpop.eup %4912  ;;  %4689 = vmatprep.subr.msk.bf16.mxu0 %vm1423_vm0, %v6464_v39  ;;  %v2504_v32 = vpop.xlane.xlu1 %2503 }
 0x6c8   : > { %v2526_v16 = vsub.f32 %v6415_v20, %v2504_v32  ;;  %v2599_v7 = vpack.c.bf16 %v6496_v1, %v6498_v28  ;;  %v6505_v60 = vpop.eup %4914  ;;  %4920 = vpow2.f32 %v2555_v11  ;;  %v2891_v20 = vsel %vm1423_vm0, %v6464_v39, 0 }
 0x6ca   : > { %v2551_v63 = vmul.f32 1.442695, %v2526_v16  ;;  %4508 = vmatprep.mubr.bf16.mxu0 %v2599_v7  ;;  %v6507_v53 = vpop.eup %4916 }
 0x6cb   : > { %v2600_v37 = vpack.c.bf16 %v6507_v53, %v6505_v60  ;;  %v2514_v40 = vpop.xlane.xlu1 %2513 }
 0x6cc   : > { %4922 = vpow2.f32 %v2551_v63 }
 0x6cd   : > { %4924 = vpow2.f32 %v2553_v3  ;;  %4509 = vmatmul.mubr.bf16.gmra.mrb[84].mxu0 %v2600_v37 }
 0x6ce   : > { %4523 = vmatpush3.bf16.xpose.msra.mxu0 %v2891_v20  ;;  %v6515_v49 = vpop.eup %4918 }
 0x6cf   : > { %4690 = vmatprep.subr.msk.bf16.mxu0 %vm1423_vm0, %v6472_v21  ;;  %v2516_v38 = vpop.xlane.xlu1 %2515  ;;  %v2510_v21 = vpop.xlane.xlu0 %2509 }
 0x6d0   : > { %v2529_v11 = vsub.f32 %v6421_v22, %v2510_v21  ;;  %v2532_v32 = vsub.f32 %v6424_v27, %v2516_v38 }
 0x6d2   : > { %v6517_v59 = vpop.eup %4920  ;;  %v2557_v16 = vmul.f32 1.442695, %v2529_v11  ;;  %v2563_v7 = vmul.f32 1.442695, %v2532_v32 }
 0x6d3   : > { %v2856_v48 = vpop.permute.xlu1 %2855  ;;  %v2858_v31 = vpop.permute.xlu0 %2857 }
 0x6d4   : > { %v2900_v4 = vsel %vm1423_vm0, %v2856_v48, 0  ;;  %v2903_v14 = vsel %vm1423_vm0, %v2858_v31, 0  ;;  %4926 = vpow2.f32 %v2557_v16 }
 0x6d5   : > { %4928 = vpow2.f32 %v2563_v7 }
 0x6d6   : > { %v6519_v56 = vpop.eup %4922  ;;  %4525 = vmatpush3.bf16.xpose.msra.mxu0 %v2894_v51 }
 0x6d7   : > { %v6523_v0 = vpop.eup %4924  ;;  %v2601_v39 = vpack.c.bf16 %v6519_v56, %v6515_v49  ;;  %4691 = vmatprep.subr.msk.bf16.mxu0 %vm1423_vm0, %v6470_v33  ;;  %v2531_v33 = vsub.f32 %v6418_v18, %v2514_v40  ;;  %v2826_v22 = vpop.permute.xlu1 %2825 }
 0x6d8   : > { %v2602_v54 = vpack.c.bf16 %v6517_v59, %v6523_v0 }
 0x6d9   : > { %4512 = vmatprep.mubr.bf16.mxu0 %v2601_v39  ;;  %v2561_v37 = vmul.f32 1.442695, %v2531_v33 }
 0x6da   : > { %4513 = vmatmul.mubr.bf16.gmra.mrb[88].mxu0 %v2602_v54 }
 0x6db   : > { %v2830_v18 = vpop.permute.xlu1 %2829 }
 0x6de   : > { %4527 = vmatpush3.bf16.xpose.msra.mxu0 %v2897_v5  ;;  %v6544_v54 = vpop.eup %4926 }
 0x6df   : > { %4692 = vmatprep.subr.msk.bf16.mxu0 %vm1423_vm0, %v2856_v48  ;;  %v6547_v38 = vpop.eup %4928 }
 0x6e6   : > { %4529 = vmatpush3.bf16.xpose.msra.mxu0 %v2900_v4 }
 0x6e7   : > { %4693 = vmatprep.subr.msk.bf16.mxu0 %vm1423_vm0, %v2858_v31 }
 0x6ee   : > { %4531 = vmatpush3.bf16.xpose.msra.mxu0 %v2903_v14  ;;  %v2834_v14 = vpop.permute.xlu1 %2833 }
 0x6f2   : > { %v2838_v32 = vpop.permute.xlu1 %2837 }
 0x6f6   : > { %v3139_v7 = vpop.permute.xlu1 %3138 }
 0x6f9   : > { %v2512_v3 = vpop.xlane.xlu0 %2511 }
 0x6fa   : > { %v2530_v63 = vsub.f32 %v6426_v44, %v2512_v3 }
 0x6fc   : > { %v2559_v20 = vmul.f32 1.442695, %v2530_v63 }
 0x6fd   : > { %v2860_v51 = vpop.permute.xlu0 %2859 }
 0x6fe   : > { %4930 = vpow2.f32 %v2559_v20  ;;  %4694 = vmatprep.subr.msk.bf16.mxu0 %vm1423_vm0, %v2860_v51  ;;  %v2906_v39 = vsel %vm1423_vm0, %v2860_v51, 0 }
 0x6ff   : > { %4932 = vpow2.f32 %v2561_v37  ;;  %4533 = vmatpush3.bf16.xpose.msra.mxu0 %v2906_v39  ;;  %v3145_v37 = vpop.permute.xlu1 %3144 }
 0x701   : > { %v2862_v27 = vpop.permute.xlu0 %2861 }
 0x702   : > { %4695 = vmatprep.subr.msk.bf16.mxu0 %vm1423_vm0, %v2862_v27  ;;  %v2909_v44 = vsel %vm1423_vm0, %v2862_v27, 0 }
 0x705   : > { %v2824_v40 = vpop.permute.xlu0 %2823 }
 0x707   : > { %4535 = vmatpush3.bf16.xpose.msra.mxu0 %v2909_v44 }
 0x708   : > { %v6549_v5 = vpop.eup %4930 }
 0x709   : > { %v6551_v48 = vpop.eup %4932  ;;  %v2828_v21 = vpop.permute.xlu0 %2827  ;;  %v2603_v4 = vpack.c.bf16 %v6549_v5, %v6544_v54 }
 0x70a   : > { %v2604_v31 = vpack.c.bf16 %v6547_v38, %v6551_v48 }
 0x70b   : > { %4516 = vmatprep.mubr.bf16.mxu0 %v2603_v4 }
 0x70c   : > { %4517 = vmatmul.mubr.bf16.gmra.mrb[92].mxu0 %v2604_v31 }
 0x70d   : > { %v2832_v11 = vpop.permute.xlu0 %2831  ;;  %4536 = vmatprep.mubr.msk.bf16.mxu0 %vm1423_vm0, %v2824_v40 }
 0x711   : > { %v2836_v33 = vpop.permute.xlu0 %2835 }
 0x714   : > { %4537 = vmatmul.mubr.msk.bf16.vlgmr.msra.gmra.mrb[96].mxu0 %vm1423_vm0, %v2826_v22 }
 0x715   : > { %v3137_v16 = vpop.permute.xlu0 %3136  ;;  %4540 = vmatprep.mubr.msk.bf16.mxu0 %vm1423_vm0, %v2828_v21 }
 0x716   : > { %4552 = vmatprep.subr.bf16.mxu1 %v3137_v16 }
 0x717   : > { %4553 = vmatpush3.bf16.msra.mxu1 %v3137_v16 }
 0x718   : > { %4554 = vmatprep.subr.bf16.mxu1 %v3139_v7 }
 0x719   : > { %v3141_v3 = vpop.permute.xlu0 %3140 }
 0x71b   : > { %4555 = vmatpush3.bf16.msra.mxu1 %v3139_v7 }
 0x71c   : > { %4541 = vmatmul.mubr.msk.bf16.gmra.mrb[100].mxu0 %vm1423_vm0, %v2830_v18  ;;  %4556 = vmatprep.subr.bf16.mxu1 %v3141_v3 }
 0x71d   : > { %4544 = vmatprep.mubr.msk.bf16.mxu0 %vm1423_vm0, %v2832_v11  ;;  %v3143_v63 = vpop.permute.xlu0 %3142 }
 0x71f   : > { %4557 = vmatpush3.bf16.msra.mxu1 %v3141_v3 }
 0x720   : > { %4558 = vmatprep.subr.bf16.mxu1 %v3143_v63 }
 0x721   : > { %v3147_v20 = vpop.permute.xlu0 %3146 }
 0x723   : > { %4559 = vmatpush3.bf16.msra.mxu1 %v3143_v63 }
 0x724   : > { %4545 = vmatmul.mubr.msk.bf16.gmra.mrb[104].mxu0 %vm1423_vm0, %v2834_v14  ;;  %4560 = vmatprep.subr.bf16.mxu1 %v3145_v37 }
 0x725   : > { %4548 = vmatprep.mubr.msk.bf16.mxu0 %vm1423_vm0, %v2836_v33 }
 0x727   : > { %4561 = vmatpush3.bf16.msra.mxu1 %v3145_v37 }
 0x728   : > { %4562 = vmatprep.subr.bf16.mxu1 %v3147_v20 }
 0x72b   : > { %4563 = vmatpush3.bf16.msra.mxu1 %v3147_v20 }
 0x72c   : > { %4549 = vmatmul.mubr.msk.bf16.gmra.mrb[108].mxu0 %vm1423_vm0, %v2838_v32 }
 0x798   : > { %v6565_v51 = vpop.f32.mrb[80].mxu0 }
 0x799   : > { %v6567_v39 = vpop.f32.mrb[81].mxu0 }
 0x79a   : > { %v6569_v22 = vpop.f32.mrb[82].mxu0 }
 0x79b   : > { %v6571_v27 = vpop.f32.mrb[83].mxu0 }
 0x7a0   : > { %v6573_v18 = vpop.f32.mrb[84].mxu0 }
 0x7a1   : > { %v6575_v40 = vpop.f32.mrb[85].mxu0 }
 0x7a2   : > { %v6577_v44 = vpop.f32.mrb[86].mxu0 }
 0x7a3   : > { %v6579_v21 = vpop.f32.mrb[87].mxu0 }
 0x7ad   : > { %v6581_v4 = vpop.f32.mrb[88].mxu0 }
 0x7ae   : > { %v6583_v31 = vpop.f32.mrb[89].mxu0 }
 0x7af   : > { %v6585_v14 = vpop.f32.mrb[90].mxu0 }
 0x7b0   : > { %7373 = vst [vmem:[#allocation23_spill] sm:$0xff] %v6585_v14  ;;  %v6587_v11 = vpop.f32.mrb[91].mxu0  ;;  %v7377_v14 = vld [vmem:[#allocation29_spill] sm:$0xff] }
 0x7df   : > { %v6589_v32 = vpop.f32.mrb[92].mxu0 }
 0x7e0   : > { %v6591_v33 = vpop.f32.mrb[93].mxu0 }
 0x7e1   : > { %v6593_v16 = vpop.f32.mrb[94].mxu0 }
 0x7e2   : > { %7374 = vst [vmem:[#allocation28_spill] sm:$0xff] %v6593_v16  ;;  %v6595_v7 = vpop.f32.mrb[95].mxu0 }
 0x7e3   : > { %7375 = vst [vmem:[#allocation24_spill] sm:$0xff] %v6595_v7 }
 0x7e7   : > { %v6597_v3 = vpop.f32.mrb[96].mxu0 }
 0x7e8   : > { %3012 = vmax.xlane.f32.xlu1 %v6597_v3  ;;  %v6600_v63 = vpop.f32.mrb[97].mxu0 }
 0x7e9   : > { %3008 = vmax.xlane.f32.xlu0 %v6600_v63  ;;  %v6603_v37 = vpop.f32.mrb[98].mxu0 }
 0x7ea   : > { %v6605_v20 = vpop.f32.mrb[99].mxu0 }
 0x7ec   : > { %3014 = vmax.xlane.f32.xlu1 %v6603_v37 }
 0x7ef   : > { %v6608_v45 = vpop.f32.mrb[100].mxu0 }
 0x7f0   : > { %3010 = vmax.xlane.f32.xlu1 %v6605_v20  ;;  %v6611_v6 = vpop.f32.mrb[101].mxu0 }
 0x7f1   : > { %3016 = vmax.xlane.f32.xlu0 %v6611_v6  ;;  %v6614_v61 = vpop.f32.mrb[102].mxu0 }
 0x7f2   : > { %v6616_v25 = vpop.f32.mrb[103].mxu0 }
 0x7f4   : > { %3020 = vmax.xlane.f32.xlu1 %v6608_v45 }
 0x7f7   : > { %v6619_v9 = vpop.f32.mrb[104].mxu0 }
 0x7f8   : > { %3022 = vmax.xlane.f32.xlu1 %v6614_v61  ;;  %v6622_v34 = vpop.f32.mrb[105].mxu0 }
 0x7f9   : > { %v6624_v29 = vpop.f32.mrb[106].mxu0 }
 0x7fa   : > { %3030 = vmax.xlane.f32.xlu0 %v6624_v29  ;;  %v6627_v41 = vpop.f32.mrb[107].mxu0 }
 0x7fc   : > { %3018 = vmax.xlane.f32.xlu1 %v6616_v25 }
 0x7fe   : > { %3026 = vmax.xlane.f32.xlu0 %v6627_v41 }
 0x7ff   : > { %v6631_v24 = vpop.f32.mrb[108].mxu0 }
 0x800   : > { %3028 = vmax.xlane.f32.xlu1 %v6619_v9  ;;  %v6634_v16 = vpop.f32.mrb[109].mxu0 }
 0x801   : > { %v6636_v19 = vpop.f32.mrb[110].mxu0 }
 0x802   : > { %3038 = vmax.xlane.f32.xlu0 %v6636_v19  ;;  %v6639_v7 = vpop.f32.mrb[111].mxu0 }
 0x804   : > { %3024 = vmax.xlane.f32.xlu1 %v6622_v34 }
 0x806   : > { %3034 = vmax.xlane.f32.xlu0 %v6639_v7 }
 0x815   : > { %3148 = vrot.lane.b32.xlu1 %v7376_v42, %s5263_s23 }
 0x81c   : > { %3150 = vrot.lane.b32.xlu0 %v7377_v14, %s5263_s23 }
 0x839   : > { %3032 = vmax.xlane.f32.xlu1 %v6634_v16 }
 0x83b   : > { %2567 = vadd.xlane.f32.xlu0 %v6479_v8 }
 0x83d   : > { %3036 = vmax.xlane.f32.xlu1 %v6631_v24 }
 0x83f   : > { %2585 = vadd.xlane.f32.xlu0 %v6523_v0 }
 0x841   : > { %2565 = vadd.xlane.f32.xlu1 %v6481_v2 }
 0x843   : > { %2589 = vadd.xlane.f32.xlu0 %v6544_v54 }
 0x845   : > { %2569 = vadd.xlane.f32.xlu1 %v6485_v55 }
 0x847   : > { %2593 = vadd.xlane.f32.xlu0 %v6551_v48 }
 0x849   : > { %2571 = vadd.xlane.f32.xlu1 %v6487_v35 }
 0x84b   : > { %1649 = vadd.xlane.f32.xlu0 %v6035_v46 }
 0x84d   : > { %2573 = vadd.xlane.f32.xlu1 %v6498_v28 }
 0x84f   : > { %1653 = vadd.xlane.f32.xlu0 %v6041_v15 }
 0x851   : > { %2575 = vadd.xlane.f32.xlu1 %v6496_v1 }
 0x853   : > { %1657 = vadd.xlane.f32.xlu0 %v6051_v23 }
 0x855   : > { %2577 = vadd.xlane.f32.xlu1 %v6505_v60 }
 0x857   : > { %1661 = vadd.xlane.f32.xlu0 %v6061_v62 }
 0x859   : > { %2579 = vadd.xlane.f32.xlu1 %v6507_v53 }
 0x85b   : > { %1665 = vadd.xlane.f32.xlu0 %v6071_v10 }
 0x85d   : > { %2581 = vadd.xlane.f32.xlu1 %v6515_v49 }
 0x85f   : > { %1669 = vadd.xlane.f32.xlu0 %v6083_v57 }
 0x861   : > { %2583 = vadd.xlane.f32.xlu1 %v6519_v56 }
 0x863   : > { %1673 = vadd.xlane.f32.xlu0 %v6091_v12 }
 0x865   : > { %2587 = vadd.xlane.f32.xlu1 %v6517_v59 }
 0x867   : > { %1677 = vadd.xlane.f32.xlu0 %v6099_v43 }
 0x869   : > { %2591 = vadd.xlane.f32.xlu1 %v6549_v5 }
 0x86d   : > { %2595 = vadd.xlane.f32.xlu1 %v6547_v38 }
 0x871   : > { %1651 = vadd.xlane.f32.xlu1 %v6039_v26 }
 0x875   : > { %1655 = vadd.xlane.f32.xlu1 %v6037_v50  ;;  %v3013_v46 = vpop.xlane.xlu1 %3012 }
 0x876   : > { %v3009_v15 = vpop.xlane.xlu0 %3008  ;;  %v3042_v2 = vsub.f32 %v6597_v3, %v3013_v46 }
 0x877   : > { %v3040_v23 = vsub.f32 %v6600_v63, %v3009_v15 }
 0x878   : > { %v3060_v53 = vmul.f32 1.442695, %v3042_v2  ;;  %v4823_v2 = vld [vmem:[%s7234_s6 + $0x8] sm:$0xff]  }
 0x879   : > { %1659 = vadd.xlane.f32.xlu1 %v6053_v30  ;;  %v3015_v62 = vpop.xlane.xlu1 %3014  ;;  %v3056_v10 = vmul.f32 1.442695, %v3040_v23 }
 0x87a   : > { %v3043_v8 = vsub.f32 %v6603_v37, %v3015_v62 }
 0x87b   : > { %4934 = vpow2.f32 %v3056_v10 }
 0x87d   : > { %1663 = vadd.xlane.f32.xlu1 %v6063_v17  ;;  %v3011_v57 = vpop.xlane.xlu1 %3010 }
 0x87e   : > { %v3041_v12 = vsub.f32 %v6605_v20, %v3011_v57  ;;  %v3017_v50 = vpop.xlane.xlu0 %3016 }
 0x87f   : > { %v3044_v55 = vsub.f32 %v6611_v6, %v3017_v50 }
 0x880   : > { %v3058_v43 = vmul.f32 1.442695, %v3041_v12 }
 0x881   : > { %1667 = vadd.xlane.f32.xlu1 %v6075_v52  ;;  %v3021_v26 = vpop.xlane.xlu1 %3020  ;;  %v3062_v52 = vmul.f32 1.442695, %v3043_v8 }
 0x882   : > { %4936 = vpow2.f32 %v3058_v43 }
 0x883   : > { %4938 = vpow2.f32 %v3062_v52 }
 0x885   : > { %1671 = vadd.xlane.f32.xlu1 %v6085_v58  ;;  %v3023_v42 = vpop.xlane.xlu1 %3022  ;;  %v6686_v1 = vpop.eup %4934 }
 0x886   : > { %v3047_v6 = vsub.f32 %v6614_v61, %v3023_v42 }
 0x887   : > { %v3031_v30 = vpop.xlane.xlu0 %3030 }
 0x888   : > { %v3070_v38 = vmul.f32 1.442695, %v3047_v6 }
 0x889   : > { %1675 = vadd.xlane.f32.xlu1 %v6093_v13  ;;  %v3019_v17 = vpop.xlane.xlu1 %3018  ;;  %v3064_v13 = vmul.f32 1.442695, %v3044_v55 }
 0x88a   : > { %v3045_v35 = vsub.f32 %v6616_v25, %v3019_v17  ;;  %v3046_v25 = vsub.f32 %v6608_v45, %v3021_v26 }
 0x88b   : > { %v3027_v28 = vpop.xlane.xlu0 %3026 }
 0x88c   : > { %v6688_v60 = vpop.eup %4936  ;;  %v3066_v58 = vmul.f32 1.442695, %v3045_v35  ;;  %v3049_v54 = vsub.f32 %v6627_v41, %v3027_v28  ;;  %v3068_v14 = vmul.f32 1.442695, %v3046_v25  ;;  %v3051_v41 = vsub.f32 %v6624_v29, %v3031_v30  ;;  %v4822_v30 = vld [vmem:[%s7234_s6] sm:$0xff]  }
 0x88d   : > { %1679 = vadd.xlane.f32.xlu1 %v6101_v36  ;;  %v3029_v49 = vpop.xlane.xlu1 %3028  ;;  %v3120_v59 = vpack.c.bf16 %v6688_v60, %v6686_v1  ;;  %v6698_v45 = vpop.eup %4938 }
 0x88e   : > { %4940 = vpow2.f32 %v3066_v58  ;;  %v3074_v63 = vmul.f32 1.442695, %v3049_v54  ;;  %v3050_v61 = vsub.f32 %v6619_v9, %v3029_v49  ;;  %v3078_v23 = vmul.f32 1.442695, %v3051_v41  ;;  %v4824_v58 = vld [vmem:[%s7234_s6 + $0x10] sm:$0xff]  }
 0x88f   : > { %v3039_v56 = vpop.xlane.xlu0 %3038  ;;  %4568 = vmatprep.mubr.bf16.mxu1 %v3120_v59  ;;  %4942 = vpow2.f32 %v3060_v53 }
 0x890   : > { %4944 = vpow2.f32 %v3064_v13  ;;  %v3076_v46 = vmul.f32 1.442695, %v3050_v61  ;;  %v3055_v55 = vsub.f32 %v6636_v19, %v3039_v56 }
 0x891   : > { %v3025_v0 = vpop.xlane.xlu1 %3024  ;;  %4946 = vpow2.f32 %v3070_v38 }
 0x892   : > { %v3048_v36 = vsub.f32 %v6622_v34, %v3025_v0  ;;  %v3086_v53 = vmul.f32 1.442695, %v3055_v55  ;;  %v4826_v0 = vld [vmem:[%s7234_s6 + $0x20] sm:$0xff]  }
 0x893   : > { %v3035_v5 = vpop.xlane.xlu0 %3034 }
 0x894   : > { %v3072_v48 = vmul.f32 1.442695, %v3048_v36  ;;  %v3053_v17 = vsub.f32 %v6639_v7, %v3035_v5  ;;  %v4825_v7 = vld [vmem:[%s7234_s6 + $0x18] sm:$0xff]  }
 0x895   : > { %v3149_v3 = vpop.permute.xlu1 %3148 }
 0x896   : > { %4564 = vmatprep.subr.bf16.mxu1 %v3149_v3  ;;  %4948 = vpow2.f32 %v3072_v48  ;;  %v3082_v35 = vmul.f32 1.442695, %v3053_v17 }
 0x897   : > { %v3151_v37 = vpop.permute.xlu0 %3150  ;;  %4565 = vmatpush3.bf16.msra.mxu1 %v3149_v3  ;;  %4950 = vpow2.f32 %v3068_v14 }
 0x898   : > { %4566 = vmatprep.subr.bf16.mxu1 %v3151_v37  ;;  %v6701_v34 = vpop.eup %4940  ;;  %4952 = vpow2.f32 %v3074_v63 }
 0x899   : > { %v6703_v20 = vpop.eup %4942  ;;  %4954 = vpow2.f32 %v3076_v46  ;;  %v4828_v46 = vld [vmem:[%s7234_s6 + $0x30] sm:$0xff]  }
 0x89a   : > { %v6705_v15 = vpop.eup %4944  ;;  %v3121_v9 = vpack.c.bf16 %v6698_v45, %v6703_v20  ;;  %4956 = vpow2.f32 %v3078_v23 }
 0x89b   : > { %4567 = vmatpush3.bf16.msra.mxu1 %v3151_v37  ;;  %v3122_v62 = vpack.c.bf16 %v6701_v34, %v6705_v15  ;;  %v6711_v29 = vpop.eup %4946  ;;  %4958 = vpow2.f32 %v3082_v35 }
 0x89c   : > { %4584 = vmatprep.subr.bf16.mxu1 %v4822_v30 }
 0x89e   : > { %4569 = vmatmul.mubr.bf16.vlgmr.msra.gmra.mrb[96].mxu1 %v3121_v9 }
 0x89f   : > { %4572 = vmatprep.mubr.bf16.mxu1 %v3122_v62  ;;  %4585 = vmatpush3.bf16.msra.mxu1 %v4822_v30 }
 0x8a0   : > { %v6713_v10 = vpop.eup %4948  ;;  %4586 = vmatprep.subr.bf16.mxu1 %v4823_v2 }
 0x8a1   : > { %v6715_v57 = vpop.eup %4950 }
 0x8a2   : > { %v6717_v12 = vpop.eup %4952  ;;  %v3123_v43 = vpack.c.bf16 %v6711_v29, %v6715_v57 }
 0x8a3   : > { %v3124_v26 = vpack.c.bf16 %v6717_v12, %v6713_v10  ;;  %v6723_v50 = vpop.eup %4954  ;;  %4587 = vmatpush3.bf16.msra.mxu1 %v4823_v2 }
 0x8a4   : > { %v6725_v42 = vpop.eup %4956  ;;  %4588 = vmatprep.subr.bf16.mxu1 %v4824_v58 }
 0x8a5   : > { %v3125_v8 = vpack.c.bf16 %v6725_v42, %v6723_v50  ;;  %v6751_v36 = vpop.eup %4958 }
 0x8a6   : > { %4573 = vmatmul.mubr.bf16.gmra.mrb[100].mxu1 %v3123_v43  ;;  %v4829_v43 = vld [vmem:[%s7234_s6 + $0x38] sm:$0xff]  }
 0x8a7   : > { %4576 = vmatprep.mubr.bf16.mxu1 %v3124_v26  ;;  %4589 = vmatpush3.bf16.msra.mxu1 %v4824_v58 }
 0x8a8   : > { %4590 = vmatprep.subr.bf16.mxu1 %v4825_v7 }
 0x8ab   : > { %4591 = vmatpush3.bf16.msra.mxu1 %v4825_v7 }
 0x8ac   : > { %4592 = vmatprep.subr.bf16.mxu1 %v4826_v0 }
 0x8ae   : > { %4577 = vmatmul.mubr.bf16.gmra.mrb[104].mxu1 %v3125_v8 }
 0x8af   : > { %4593 = vmatpush3.bf16.msra.mxu1 %v4826_v0 }
 0x8c6   : > { %v3033_v52 = vpop.xlane.xlu1 %3032 }
 0x8c7   : > { %v3052_v28 = vsub.f32 %v6634_v16, %v3033_v52 }
 0x8c8   : > { %v2568_v49 = vpop.xlane.xlu0 %2567 }
 0x8c9   : > { %v3080_v59 = vmul.f32 1.442695, %v3052_v28 }
 0x8ca   : > { %v3037_v19 = vpop.xlane.xlu1 %3036 }
 0x8cb   : > { %4960 = vpow2.f32 %v3080_v59  ;;  %v3054_v13 = vsub.f32 %v6631_v24, %v3037_v19  ;;  %v4827_v24 = vld [vmem:[%s7234_s6 + $0x28] sm:$0xff]  }
 0x8cc   : > { %4962 = vpow2.f32 %v3086_v53  ;;  %v2586_v16 = vpop.xlane.xlu0 %2585  ;;  %4594 = vmatprep.subr.bf16.mxu1 %v4827_v24 }
 0x8cd   : > { %v3084_v6 = vmul.f32 1.442695, %v3054_v13  ;;  %4964 = vrcp.f32 %v2586_v16  ;;  %4595 = vmatpush3.bf16.msra.mxu1 %v4827_v24 }
 0x8ce   : > { %4966 = vrcp.f32 %v2568_v49  ;;  %v2566_v56 = vpop.xlane.xlu1 %2565  ;;  %4596 = vmatprep.subr.bf16.mxu1 %v4828_v46 }
 0x8cf   : > { %4968 = vpow2.f32 %v3084_v6 }
 0x8d0   : > { %4970 = vrcp.f32 %v2566_v56  ;;  %v2590_v25 = vpop.xlane.xlu0 %2589 }
 0x8d1   : > { %4972 = vrcp.f32 %v2590_v25  ;;  %4597 = vmatpush3.bf16.msra.mxu1 %v4828_v46 }
 0x8d2   : > { %v2570_v54 = vpop.xlane.xlu1 %2569  ;;  %4598 = vmatprep.subr.bf16.mxu1 %v4829_v43 }
 0x8d3   : > { %4974 = vrcp.f32 %v2570_v54 }
 0x8d4   : > { %v2594_v38 = vpop.xlane.xlu0 %2593 }
 0x8d5   : > { %v6753_v5 = vpop.eup %4960  ;;  %4976 = vrcp.f32 %v2594_v38  ;;  %4599 = vmatpush3.bf16.msra.mxu1 %v4829_v43 }
 0x8d6   : > { %v6755_v48 = vpop.eup %4962  ;;  %v2572_v14 = vpop.xlane.xlu1 %2571  ;;  %v3126_v3 = vpack.c.bf16 %v6751_v36, %v6753_v5 }
 0x8d7   : > { %v4965_v63 = vpop.eup %4964  ;;  %4978 = vrcp.f32 %v2572_v14 }
 0x8d8   : > { %v4967_v61 = vpop.eup %4966  ;;  %4580 = vmatprep.mubr.bf16.mxu1 %v3126_v3  ;;  %v6760_v37 = vmul.f32 %v4965_v63, %v6581_v4  ;;  %v1650_v13 = vpop.xlane.xlu0 %1649 }
 0x8d9   : > { %v6762_v41 = vpop.eup %4968  ;;  %v2751_v8 = vmul.f32 %v4967_v61, %v6571_v27 }
 0x8da   : > { %v4971_v9 = vpop.eup %4970  ;;  %v2574_v23 = vpop.xlane.xlu1 %2573  ;;  %v3127_v62 = vpack.c.bf16 %v6755_v48, %v6762_v41 }
 0x8db   : > { %v4973_v26 = vpop.eup %4972  ;;  %4980 = vrcp.f32 %v2574_v23  ;;  %v2750_v4 = vmul.f32 %v4971_v9, %v6567_v39  ;;  %v7378_v23 = vld [vmem:[#allocation23_spill] sm:$0xff] }
 0x8dc   : > { %4581 = vmatmul.mubr.bf16.gmra.mrb[108].mxu1 %v3127_v62  ;;  %v6775_v30 = vmul.f32 %v4973_v26, %v6591_v33 }
 0x8dd   : > { %v2766_v2 = vpack.c.bf16 %v2751_v8, %v2750_v4  ;;  %v4975_v17 = vpop.eup %4974  ;;  %v7380_v4 = vld [vmem:[#allocation24_spill] sm:$0xff] }
 0x8de   : > { %v2576_v55 = vpop.xlane.xlu1 %2575  ;;  %v2752_v28 = vmul.f32 %v4975_v17, %v6565_v51 }
 0x8df   : > { %v4977_v35 = vpop.eup %4976  ;;  %2782 = vrot.lane.b32.xlu0 %v2766_v2, %s5263_s23  ;;  %4982 = vrcp.f32 %v2576_v55  ;;  %v7381_v55 = vld [vmem:[#allocation32_spill] sm:$0xff] }
 0x8e0   : > { %v6779_v52 = vmul.f32 %v4977_v35, %v6589_v32 }
 0x8e1   : > { %v4979_v39 = vpop.eup %4978 }
 0x8e2   : > { %v2578_v27 = vpop.xlane.xlu1 %2577  ;;  %v2753_v33 = vmul.f32 %v4979_v39, %v6569_v22  ;;  %v7382_v39 = vld [vmem:[#allocation28_spill] sm:$0xff] }
 0x8e3   : > { %4984 = vrcp.f32 %v2578_v27 }
 0x8e4   : > { %v2767_v58 = vpack.c.bf16 %v2753_v33, %v2752_v28 }
 0x8e5   : > { %v4981_v53 = vpop.eup %4980 }
 0x8e6   : > { %2784 = vrot.lane.b32.xlu1 %v2767_v58, %s5263_s23  ;;  %v2580_v49 = vpop.xlane.xlu1 %2579  ;;  %v6785_v7 = vmul.f32 %v4981_v53, %v6575_v40  ;;  %v1654_v40 = vpop.xlane.xlu0 %1653  ;;  %v7383_v53 = vld [vmem:[#allocation39_spill] sm:$0xff] }
 0x8e7   : > { %4986 = vrcp.f32 %v2580_v49 }
 0x8e9   : > { %v4983_v59 = vpop.eup %4982 }
 0x8ea   : > { %v2582_v32 = vpop.xlane.xlu1 %2581  ;;  %v6788_v19 = vmul.f32 %v4983_v59, %v6579_v21  ;;  %v1658_v14 = vpop.xlane.xlu0 %1657 }
 0x8eb   : > { %4988 = vrcp.f32 %v2582_v32  ;;  %v7384_v32 = vld [vmem:[#allocation41_spill] sm:$0xff] }
 0x8ec   : > { %v2768_v51 = vpack.c.bf16 %v6788_v19, %v6785_v7  ;;  %v7409_v7 = vld [vmem:[#allocation60_spill] sm:$0xff] }
 0x8ed   : > { %v4985_v22 = vpop.eup %4984 }
 0x8ee   : > { %v2584_v16 = vpop.xlane.xlu1 %2583  ;;  %v6793_v6 = vmul.f32 %v4985_v22, %v6573_v18  ;;  %v1662_v46 = vpop.xlane.xlu0 %1661  ;;  %v7385_v22 = vld [vmem:[#allocation56_spill] sm:$0xff] }
 0x8ef   : > { %4990 = vrcp.f32 %v2584_v16  ;;  %v7386_v16 = vld [vmem:[#allocation37_spill] sm:$0xff] }
 0x8f1   : > { %v4987_v56 = vpop.eup %4986 }
 0x8f2   : > { %v2588_v25 = vpop.xlane.xlu1 %2587  ;;  %v6796_v0 = vmul.f32 %v4987_v56, %v6577_v44  ;;  %v1666_v2 = vpop.xlane.xlu0 %1665 }
 0x8f3   : > { %4992 = vrcp.f32 %v2588_v25 }
 0x8f4   : > { %v2769_v21 = vpack.c.bf16 %v6796_v0, %v6793_v6  ;;  %v7410_v0 = vld [vmem:[#allocation35_spill] sm:$0xff] }
 0x8f5   : > { %v4989_v54 = vpop.eup %4988 }
 0x8f6   : > { %v2592_v24 = vpop.xlane.xlu1 %2591  ;;  %v6801_v38 = vmul.f32 %v4989_v54, %v6583_v31  ;;  %v1670_v59 = vpop.xlane.xlu0 %1669 }
 0x8f7   : > { %4994 = vrcp.f32 %v2592_v24  ;;  %v7387_v24 = vld [vmem:[#allocation38_spill] sm:$0xff] }
 0x8f9   : > { %v4991_v18 = vpop.eup %4990 }
 0x8fa   : > { %v2596_v3 = vpop.xlane.xlu1 %2595  ;;  %v6804_v63 = vmul.f32 %v4991_v18, %v6587_v11  ;;  %v7379_v11 = vld [vmem:[#allocation55_spill] sm:$0xff]  ;;  %v7388_v18 = vld [vmem:[#allocation40_spill] sm:$0xff] }
 0x8fb   : > { %4996 = vrcp.f32 %v2596_v3 }
 0x8fc   : > { %v2770_v44 = vpack.c.bf16 %v6804_v63, %v6801_v38  ;;  %4998 = vrcp.f32 %v1650_v13 }
 0x8fd   : > { %v4993_v61 = vpop.eup %4992 }
 0x8fe   : > { %2061 = vadd.xlane.f32.xlu0 %v6273_v47  ;;  %v1652_v9 = vpop.xlane.xlu1 %1651  ;;  %v6810_v31 = vmul.f32 %v4993_v61, %v7378_v23  ;;  %v7389_v61 = vld [vmem:[#allocation34_spill] sm:$0xff]  ;;  %v1674_v23 = vpop.xlane.xlu0 %1673 }
 0x8ff   : > { %5000 = vrcp.f32 %v1652_v9 }
 0x900   : > { %v2771_v62 = vpack.c.bf16 %v6810_v31, %v6760_v37  ;;  %5002 = vrcp.f32 %v1654_v40  ;;  %v4831_v37 = vld [vmem:[%s7236_s8 + $0x8] sm:$0xff]  }
 0x901   : > { %v4995_v43 = vpop.eup %4994 }
 0x902   : > { %2075 = vadd.xlane.f32.xlu0 %v7379_v11  ;;  %v1656_v26 = vpop.xlane.xlu1 %1655  ;;  %v6816_v8 = vmul.f32 %v4995_v43, %v7380_v4 }
 0x903   : > { %5004 = vrcp.f32 %v1656_v26  ;;  %v7390_v26 = vld [vmem:[#allocation43_spill] sm:$0xff] }
 0x904   : > { %v2772_v47 = vpack.c.bf16 %v6816_v8, %v6775_v30  ;;  %5006 = vrcp.f32 %v1658_v14  ;;  %v4832_v30 = vld [vmem:[%s7236_s8 + $0x10] sm:$0xff]  }
 0x905   : > { %v4997_v17 = vpop.eup %4996 }
 0x906   : > { %2063 = vadd.xlane.f32.xlu0 %v7381_v55  ;;  %v1660_v35 = vpop.xlane.xlu1 %1659  ;;  %v6822_v27 = vmul.f32 %v4997_v17, %v7382_v39  ;;  %v4999_v28 = vpop.eup %4998  ;;  %v7392_v55 = vld [vmem:[#allocation31_spill] sm:$0xff] }
 0x907   : > { %5008 = vrcp.f32 %v1660_v35  ;;  %v1802_v49 = vmul.f32 %v4999_v28, %v7383_v53 }
 0x908   : > { %v2773_v33 = vpack.c.bf16 %v6822_v27, %v6779_v52  ;;  %5010 = vrcp.f32 %v1662_v46  ;;  %v4830_v52 = vld [vmem:[%s7236_s8] sm:$0xff]  }
 0x909   : > { %v5001_v58 = vpop.eup %5000  ;;  %4616 = vmatprep.subr.bf16.mxu0 %v4830_v52  ;;  %4648 = vmatprep.subr.bf16.mxu1 %v4830_v52 }
 0x90a   : > { %v1803_v13 = vmul.f32 %v5001_v58, %v7384_v32  ;;  %2079 = vadd.xlane.f32.xlu0 %v7385_v22  ;;  %2059 = vadd.xlane.f32.xlu1 %v7386_v16  ;;  %v1664_v56 = vpop.xlane.xlu1 %1663  ;;  %v5003_v40 = vpop.eup %5002  ;;  %v7393_v58 = vld [vmem:[#allocation42_spill] sm:$0xff] }
 0x90b   : > { %5012 = vrcp.f32 %v1664_v56  ;;  %v1804_v14 = vmul.f32 %v5003_v40, %v7387_v24  ;;  %v7396_v40 = vld [vmem:[#allocation47_spill] sm:$0xff]  ;;  %4617 = vmatpush3.bf16.msra.mxu0 %v4830_v52 }
 0x90c   : > { %v1818_v25 = vpack.c.bf16 %v1803_v13, %v1802_v49  ;;  %5014 = vrcp.f32 %v1666_v2  ;;  %v7391_v2 = vld [vmem:[#allocation45_spill] sm:$0xff]  ;;  %v1678_v49 = vpop.xlane.xlu0 %1677  ;;  %4618 = vmatprep.subr.bf16.mxu0 %v4831_v37 }
 0x90d   : > { %v5005_v54 = vpop.eup %5004  ;;  %v7395_v13 = vld [vmem:[#allocation57_spill] sm:$0xff] }
 0x90e   : > { %v1805_v3 = vmul.f32 %v5005_v54, %v7388_v18  ;;  %3092 = vadd.xlane.f32.xlu0 %v6703_v20  ;;  %2077 = vadd.xlane.f32.xlu1 %v7389_v61  ;;  %v1668_v46 = vpop.xlane.xlu1 %1667  ;;  %1826 = vst.msk [vmem:[#allocation4] sm:$0xff] %vm1423_vm0, %v1818_v25  ;;  %v5007_v9 = vpop.eup %5006  ;;  %v7397_v54 = vld [vmem:[#allocation49_spill] sm:$0xff]  ;;  %v7398_v61 = vld [vmem:[#allocation46_spill] sm:$0xff] }
 0x90f   : > { %5016 = vrcp.f32 %v1668_v46  ;;  %v1806_v4 = vmul.f32 %v5007_v9, %v7390_v26  ;;  %v7399_v9 = vld [vmem:[#allocation48_spill] sm:$0xff]  ;;  %4619 = vmatpush3.bf16.msra.mxu0 %v4831_v37 }
 0x910   : > { %v1819_v43 = vpack.c.bf16 %v1805_v3, %v1804_v14  ;;  %5018 = vrcp.f32 %v1670_v59  ;;  %v7394_v59 = vld [vmem:[#allocation44_spill] sm:$0xff]  ;;  %4620 = vmatprep.subr.bf16.mxu0 %v4832_v30 }
 0x911   : > { %v5009_v11 = vpop.eup %5008 }
 0x912   : > { %v1807_v17 = vmul.f32 %v5009_v11, %v7391_v2  ;;  %3088 = vadd.xlane.f32.xlu0 %v6686_v1  ;;  %2065 = vadd.xlane.f32.xlu1 %v7392_v55  ;;  %v1672_v20 = vpop.xlane.xlu1 %1671  ;;  %1827 = vst.msk [vmem:[#allocation4 + $0x8] sm:$0xff] %vm1423_vm0, %v1819_v43  ;;  %v5011_v35 = vpop.eup %5010  ;;  %v7400_v11 = vld [vmem:[#allocation51_spill] sm:$0xff] }
 0x913   : > { %5020 = vrcp.f32 %v1672_v20  ;;  %v1808_v53 = vmul.f32 %v5011_v35, %v7393_v58  ;;  %v7402_v20 = vld [vmem:[#allocation50_spill] sm:$0xff]  ;;  %v7403_v35 = vld [vmem:[#allocation52_spill] sm:$0xff]  ;;  %v7411_v58 = vld [vmem:[#allocation59_spill] sm:$0xff]  ;;  %4621 = vmatpush3.bf16.msra.mxu0 %v4832_v30 }
 0x914   : > { %v1820_v39 = vpack.c.bf16 %v1807_v17, %v1806_v4  ;;  %5022 = vrcp.f32 %v1674_v23  ;;  %v7401_v4 = vld [vmem:[#allocation53_spill] sm:$0xff] }
 0x915   : > { %v5013_v28 = vpop.eup %5012 }
 0x916   : > { %v1809_v32 = vmul.f32 %v5013_v28, %v7394_v59  ;;  %3100 = vadd.xlane.f32.xlu0 %v6715_v57  ;;  %2081 = vadd.xlane.f32.xlu1 %v7395_v13  ;;  %v1676_v1 = vpop.xlane.xlu1 %1675  ;;  %1828 = vst.msk [vmem:[#allocation4 + $0x10] sm:$0xff] %vm1423_vm0, %v1820_v39  ;;  %v5015_v22 = vpop.eup %5014 }
 0x917   : > { %5024 = vrcp.f32 %v1676_v1  ;;  %v1810_v25 = vmul.f32 %v5015_v22, %v7396_v40 }
 0x918   : > { %v1821_v16 = vpack.c.bf16 %v1809_v32, %v1808_v53  ;;  %5026 = vrcp.f32 %v1678_v49 }
 0x919   : > { %v5017_v56 = vpop.eup %5016 }
 0x91a   : > { %v1811_v24 = vmul.f32 %v5017_v56, %v7397_v54  ;;  %3096 = vadd.xlane.f32.xlu0 %v6705_v15  ;;  %3094 = vadd.xlane.f32.xlu1 %v6698_v45  ;;  %v1680_v14 = vpop.xlane.xlu1 %1679  ;;  %1829 = vst.msk [vmem:[#allocation4 + $0x18] sm:$0xff] %vm1423_vm0, %v1821_v16  ;;  %v5019_v57 = vpop.eup %5018 }
 0x91b   : > { %5028 = vrcp.f32 %v1680_v14  ;;  %v1812_v46 = vmul.f32 %v5019_v57, %v7398_v61  ;;  %v7412_v14 = vld [vmem:[#allocation65_spill] sm:$0xff] }
 0x91c   : > { %v1822_v18 = vpack.c.bf16 %v1811_v24, %v1810_v25 }
 0x91d   : > { %v5021_v3 = vpop.eup %5020 }
 0x91e   : > { %v1813_v23 = vmul.f32 %v5021_v3, %v7399_v9  ;;  %3108 = vadd.xlane.f32.xlu0 %v6723_v50  ;;  %3090 = vadd.xlane.f32.xlu1 %v6688_v60  ;;  %1830 = vst.msk [vmem:[#allocation4 + $0x20] sm:$0xff] %vm1423_vm0, %v1822_v18  ;;  %v5023_v15 = vpop.eup %5022  ;;  %v7413_v18 = vld [vmem:[#allocation63_spill] sm:$0xff] }
 0x91f   : > { %v1814_v26 = vmul.f32 %v5023_v15, %v7400_v11 }
 0x920   : > { %v1823_v43 = vpack.c.bf16 %v1813_v23, %v1812_v46  ;;  %v4834_v46 = vld [vmem:[%s7236_s8 + $0x20] sm:$0xff]  }
 0x921   : > { %v5025_v45 = vpop.eup %5024 }
 0x922   : > { %v1815_v2 = vmul.f32 %v5025_v45, %v7401_v4  ;;  %3104 = vadd.xlane.f32.xlu0 %v6713_v10  ;;  %3102 = vadd.xlane.f32.xlu1 %v6711_v29  ;;  %1831 = vst.msk [vmem:[#allocation4 + $0x28] sm:$0xff] %vm1423_vm0, %v1823_v43  ;;  %v5027_v17 = vpop.eup %5026  ;;  %v7414_v45 = vld [vmem:[#allocation71_spill] sm:$0xff] }
 0x923   : > { %v1816_v60 = vmul.f32 %v5027_v17, %v7402_v20 }
 0x924   : > { %v1824_v55 = vpack.c.bf16 %v1815_v2, %v1814_v26  ;;  %v7415_v26 = vld [vmem:[#allocation73_spill] sm:$0xff] }
 0x925   : > { %v5029_v50 = vpop.eup %5028 }
 0x926   : > { %v1817_v39 = vmul.f32 %v5029_v50, %v7403_v35  ;;  %3116 = vadd.xlane.f32.xlu0 %v6762_v41  ;;  %3098 = vadd.xlane.f32.xlu1 %v6701_v34  ;;  %1832 = vst.msk [vmem:[#allocation4 + $0x30] sm:$0xff] %vm1423_vm0, %v1824_v55  ;;  %v7408_v41 = vld [vmem:[#allocation33_spill] sm:$0xff] }
 0x928   : > { %v1825_v28 = vpack.c.bf16 %v1817_v39, %v1816_v60  ;;  %v7416_v60 = vld [vmem:[#allocation62_spill] sm:$0xff]  ;;  %v7417_v39 = vld [vmem:[#allocation64_spill] sm:$0xff] }
 0x92a   : > { %3112 = vadd.xlane.f32.xlu0 %v6753_v5  ;;  %3110 = vadd.xlane.f32.xlu1 %v6725_v42  ;;  %1833 = vst.msk [vmem:[#allocation4 + $0x38] sm:$0xff] %vm1423_vm0, %v1825_v28  ;;  %v7406_v5 = vld [vmem:[#allocation54_spill] sm:$0xff] }
 0x92e   : > { %3106 = vadd.xlane.f32.xlu1 %v6717_v12  ;;  %v7404_v12 = vld [vmem:[#allocation36_spill] sm:$0xff] }
 0x932   : > { %3118 = vadd.xlane.f32.xlu1 %v6755_v48  ;;  %v7407_v48 = vld [vmem:[#allocation61_spill] sm:$0xff] }
 0x936   : > { %3114 = vadd.xlane.f32.xlu1 %v6751_v36  ;;  %v7405_v36 = vld [vmem:[#allocation58_spill] sm:$0xff] }
 0x940   : > { %2786 = vrot.lane.b32.xlu0 %v2768_v51, %s5263_s23 }
 0x947   : > { %2788 = vrot.lane.b32.xlu1 %v2769_v21, %s5263_s23 }
 0x951   : > { %v2783_v34 = vpop.permute.xlu0 %2782 }
 0x952   : > { %2807 = vst.msk [vmem:[#allocation4] sm:$0xff] %vm2806_vm1, %v2783_v34 }
 0x958   : > { %v2785_v29 = vpop.permute.xlu1 %2784 }
 0x959   : > { %2808 = vst.msk [vmem:[#allocation4 + $0x8] sm:$0xff] %vm2806_vm1, %v2785_v29  ;;  %v3337_v10 = vld [vmem:[#allocation4] sm:$0xff]  ;;  %v4835_v29 = vld [vmem:[%s7236_s8 + $0x28] sm:$0xff]  }
 0x95a   : > { %4600 = vmatprep.mubr.bf16.mxu1 %v3337_v10 }
 0x95f   : > { %2069 = vadd.xlane.f32.xlu0 %v7404_v12 }
 0x960   : > { %v3338_v42 = vld [vmem:[#allocation4 + $0x8] sm:$0xff] }
 0x961   : > { %4601 = vmatmul.mubr.bf16.vlgmr.msra.gmra.mrb[112].mxu1 %v3338_v42 }
 0x962   : > { %4656 = vmatpush3.bf16.msra.mxu1 %v4830_v52 }
 0x963   : > { %2083 = vadd.xlane.f32.xlu0 %v7405_v36  ;;  %4649 = vmatprep.subr.bf16.mxu1 %v4831_v37 }
 0x966   : > { %4657 = vmatpush3.bf16.msra.mxu1 %v4831_v37 }
 0x967   : > { %2071 = vadd.xlane.f32.xlu0 %v7406_v5  ;;  %4650 = vmatprep.subr.bf16.mxu1 %v4832_v30  ;;  %v7418_v5 = vld [vmem:[#allocation70_spill] sm:$0xff] }
 0x96a   : > { %4658 = vmatpush3.bf16.msra.mxu1 %v4832_v30 }
 0x96b   : > { %2087 = vadd.xlane.f32.xlu0 %v7407_v48  ;;  %2067 = vadd.xlane.f32.xlu1 %v7408_v41  ;;  %v7419_v41 = vld [vmem:[#allocation72_spill] sm:$0xff] }
 0x96f   : > { %2085 = vadd.xlane.f32.xlu1 %v7409_v7 }
 0x971   : > { %v6887_v19 = vpop.f32.mrb[96].mxu1 }
 0x972   : > { %v6889_v51 = vpop.f32.mrb[97].mxu1 }
 0x973   : > { %v6891_v6 = vpop.f32.mrb[98].mxu1  ;;  %2073 = vadd.xlane.f32.xlu1 %v7410_v0 }
 0x974   : > { %v6894_v21 = vpop.f32.mrb[99].mxu1 }
 0x977   : > { %2089 = vadd.xlane.f32.xlu1 %v7411_v58 }
 0x979   : > { %v6897_v53 = vpop.f32.mrb[100].mxu1 }
 0x97a   : > { %v6899_v49 = vpop.f32.mrb[101].mxu1 }
 0x97b   : > { %v6901_v59 = vpop.f32.mrb[102].mxu1 }
 0x97c   : > { %v6903_v32 = vpop.f32.mrb[103].mxu1 }
 0x981   : > { %2790 = vrot.lane.b32.xlu0 %v2770_v44, %s5263_s23  ;;  %v6909_v13 = vpop.f32.mrb[104].mxu1 }
 0x982   : > { %v6911_v1 = vpop.f32.mrb[105].mxu1 }
 0x983   : > { %v6913_v22 = vpop.f32.mrb[106].mxu1 }
 0x984   : > { %v6915_v16 = vpop.f32.mrb[107].mxu1 }
 0x985   : > { %2796 = vrot.lane.b32.xlu0 %v2773_v33, %s5263_s23  ;;  %v4833_v33 = vld [vmem:[%s7236_s8 + $0x18] sm:$0xff]  }
 0x986   : > { %4622 = vmatprep.subr.bf16.mxu0 %v4833_v33  ;;  %4651 = vmatprep.subr.bf16.mxu1 %v4833_v33 }
 0x987   : > { %4623 = vmatpush3.bf16.msra.mxu0 %v4833_v33  ;;  %4659 = vmatpush3.bf16.msra.mxu1 %v4833_v33 }
 0x988   : > { %2792 = vrot.lane.b32.xlu1 %v2771_v62, %s5263_s23  ;;  %4624 = vmatprep.subr.bf16.mxu0 %v4834_v46 }
 0x989   : > { %4652 = vmatprep.subr.bf16.mxu1 %v4834_v46 }
 0x98b   : > { %v2062_v38 = vpop.xlane.xlu0 %2061  ;;  %4625 = vmatpush3.bf16.msra.mxu0 %v4834_v46  ;;  %4660 = vmatpush3.bf16.msra.mxu1 %v4834_v46 }
 0x98c   : > { %2794 = vrot.lane.b32.xlu1 %v2772_v47, %s5263_s23  ;;  %5030 = vrcp.f32 %v2062_v38  ;;  %4626 = vmatprep.subr.bf16.mxu0 %v4835_v29 }
 0x98d   : > { %4653 = vmatprep.subr.bf16.mxu1 %v4835_v29 }
 0x98f   : > { %v2076_v63 = vpop.xlane.xlu0 %2075  ;;  %4627 = vmatpush3.bf16.msra.mxu0 %v4835_v29  ;;  %4661 = vmatpush3.bf16.msra.mxu1 %v4835_v29 }
 0x993   : > { %v2064_v44 = vpop.xlane.xlu0 %2063 }
 0x996   : > { %v5031_v27 = vpop.eup %5030 }
 0x997   : > { %v2080_v56 = vpop.xlane.xlu0 %2079  ;;  %v2060_v40 = vpop.xlane.xlu1 %2059  ;;  %v2213_v57 = vmul.f32 %v5031_v27, %v7412_v14  ;;  %v4837_v27 = vld [vmem:[%s7236_s8 + $0x38] sm:$0xff]  }
 0x998   : > { %5032 = vrcp.f32 %v2060_v40 }
 0x999   : > { %5034 = vrcp.f32 %v2076_v63 }
 0x99b   : > { %v3093_v31 = vpop.xlane.xlu0 %3092  ;;  %v2078_v62 = vpop.xlane.xlu1 %2077 }
 0x99c   : > { %5036 = vrcp.f32 %v2078_v62 }
 0x99d   : > { %5038 = vrcp.f32 %v2064_v44 }
 0x99f   : > { %v3089_v8 = vpop.xlane.xlu0 %3088  ;;  %v2066_v47 = vpop.xlane.xlu1 %2065 }
 0x9a0   : > { %5040 = vrcp.f32 %v2066_v47 }
 0x9a1   : > { %5042 = vrcp.f32 %v2080_v56  ;;  %v4836_v56 = vld [vmem:[%s7236_s8 + $0x30] sm:$0xff]  }
 0x9a2   : > { %v5033_v25 = vpop.eup %5032  ;;  %4628 = vmatprep.subr.bf16.mxu0 %v4836_v56  ;;  %4654 = vmatprep.subr.bf16.mxu1 %v4836_v56 }
 0x9a3   : > { %v3101_v54 = vpop.xlane.xlu0 %3100  ;;  %v2082_v24 = vpop.xlane.xlu1 %2081  ;;  %v2212_v3 = vmul.f32 %v5033_v25, %v7413_v18  ;;  %4629 = vmatpush3.bf16.msra.mxu0 %v4836_v56  ;;  %4662 = vmatpush3.bf16.msra.mxu1 %v4836_v56 }
 0x9a4   : > { %v5035_v61 = vpop.eup %5034  ;;  %5044 = vrcp.f32 %v2082_v24  ;;  %4630 = vmatprep.subr.bf16.mxu0 %v4837_v27  ;;  %4655 = vmatprep.subr.bf16.mxu1 %v4837_v27 }
 0x9a5   : > { %v2228_v9 = vpack.c.bf16 %v2213_v57, %v2212_v3  ;;  %5046 = vrcp.f32 %v3093_v31  ;;  %v2220_v11 = vmul.f32 %v5035_v61, %v7414_v45 }
 0x9a6   : > { %v5037_v23 = vpop.eup %5036 }
 0x9a7   : > { %v3097_v15 = vpop.xlane.xlu0 %3096  ;;  %v3095_v43 = vpop.xlane.xlu1 %3094  ;;  %v2221_v4 = vmul.f32 %v5037_v23, %v7415_v26  ;;  %2236 = vst.msk [vmem:[#allocation5] sm:$0xff] %vm1423_vm0, %v2228_v9  ;;  %4631 = vmatpush3.bf16.msra.mxu0 %v4837_v27  ;;  %4663 = vmatpush3.bf16.msra.mxu1 %v4837_v27  ;;  %v7422_v27 = vld [vmem:[#allocation75_spill] sm:$0xff] }
 0x9a8   : > { %v5039_v2 = vpop.eup %5038  ;;  %5048 = vrcp.f32 %v3095_v43 }
 0x9a9   : > { %v2232_v17 = vpack.c.bf16 %v2221_v4, %v2220_v11  ;;  %5050 = vrcp.f32 %v3089_v8  ;;  %v2214_v35 = vmul.f32 %v5039_v2, %v7416_v60 }
 0x9aa   : > { %v5041_v55 = vpop.eup %5040 }
 0x9ab   : > { %v3109_v50 = vpop.xlane.xlu0 %3108  ;;  %v3091_v20 = vpop.xlane.xlu1 %3090  ;;  %v2215_v28 = vmul.f32 %v5041_v55, %v7417_v39  ;;  %2240 = vst.msk [vmem:[#allocation5 + $0x20] sm:$0xff] %vm1423_vm0, %v2232_v17 }
 0x9ac   : > { %v5043_v34 = vpop.eup %5042  ;;  %5052 = vrcp.f32 %v3091_v20 }
 0x9ad   : > { %v2229_v10 = vpack.c.bf16 %v2215_v28, %v2214_v35  ;;  %5054 = vrcp.f32 %v3101_v54  ;;  %v2222_v48 = vmul.f32 %v5043_v34, %v7418_v5 }
 0x9ae   : > { %v5045_v12 = vpop.eup %5044 }
 0x9af   : > { %v3105_v42 = vpop.xlane.xlu0 %3104  ;;  %v6955_v36 = vpop.f32.mrb[108].mxu1  ;;  %v2223_v7 = vmul.f32 %v5045_v12, %v7419_v41  ;;  %2237 = vst.msk [vmem:[#allocation5 + $0x8] sm:$0xff] %vm1423_vm0, %v2229_v10 }
 0x9b0   : > { %v3103_v0 = vpop.xlane.xlu1 %3102  ;;  %v6959_v58 = vpop.f32.mrb[109].mxu1 }
 0x9b1   : > { %v5047_v38 = vpop.eup %5046  ;;  %5056 = vrcp.f32 %v3103_v0  ;;  %v6962_v63 = vpop.f32.mrb[110].mxu1  ;;  %v2233_v40 = vpack.c.bf16 %v2223_v7, %v2222_v48 }
 0x9b2   : > { %v6964_v44 = vpop.f32.mrb[111].mxu1  ;;  %v5049_v52 = vpop.eup %5048  ;;  %5058 = vrcp.f32 %v3097_v15  ;;  %v3275_v62 = vmul.f32 %v5047_v38, %v6887_v19 }
 0x9b3   : > { %v3117_v37 = vpop.xlane.xlu0 %3116  ;;  %v3276_v30 = vmul.f32 %v5049_v52, %v6891_v6  ;;  %2241 = vst.msk [vmem:[#allocation5 + $0x28] sm:$0xff] %vm1423_vm0, %v2233_v40  ;;  %v5051_v8 = vpop.eup %5050 }
 0x9b4   : > { %v3099_v31 = vpop.xlane.xlu1 %3098  ;;  %v3273_v19 = vmul.f32 %v5051_v8, %v6889_v51 }
 0x9b5   : > { %5060 = vrcp.f32 %v3099_v31  ;;  %v3290_v47 = vpack.c.bf16 %v3276_v30, %v3275_v62  ;;  %v7421_v62 = vld [vmem:[#allocation67_spill] sm:$0xff] }
 0x9b6   : > { %v5053_v33 = vpop.eup %5052  ;;  %5062 = vrcp.f32 %v3109_v50 }
 0x9b7   : > { %v3113_v25 = vpop.xlane.xlu0 %3112  ;;  %v3274_v6 = vmul.f32 %v5053_v33, %v6894_v21  ;;  %v5055_v24 = vpop.eup %5054 }
 0x9b8   : > { %v3111_v54 = vpop.xlane.xlu1 %3110  ;;  %v3279_v61 = vmul.f32 %v5055_v24, %v6897_v53 }
 0x9b9   : > { %5064 = vrcp.f32 %v3111_v54  ;;  %v3289_v14 = vpack.c.bf16 %v3274_v6, %v3273_v19 }
 0x9ba   : > { %5066 = vrcp.f32 %v3105_v42 }
 0x9bb   : > { %v5057_v57 = vpop.eup %5056  ;;  %v2787_v18 = vpop.permute.xlu0 %2786  ;;  %3305 = vrot.lane.b32.xlu1 %v3289_v14, %s5263_s23 }
 0x9bc   : > { %2809 = vst.msk [vmem:[#allocation4 + $0x10] sm:$0xff] %vm2806_vm1, %v2787_v18  ;;  %v3107_v3 = vpop.xlane.xlu1 %3106  ;;  %v3280_v51 = vmul.f32 %v5057_v57, %v6901_v59  ;;  %v5059_v21 = vpop.eup %5058  ;;  %v7424_v57 = vld [vmem:[#allocation66_spill] sm:$0xff] }
 0x9bd   : > { %5068 = vrcp.f32 %v3107_v3  ;;  %v3277_v15 = vmul.f32 %v5059_v21, %v6899_v49  ;;  %v7425_v3 = vld [vmem:[#allocation68_spill] sm:$0xff] }
 0x9be   : > { %v3292_v46 = vpack.c.bf16 %v3280_v51, %v3279_v61  ;;  %5070 = vrcp.f32 %v3117_v37  ;;  %v7420_v37 = vld [vmem:[#allocation69_spill] sm:$0xff] }
 0x9bf   : > { %v5061_v9 = vpop.eup %5060  ;;  %3307 = vrot.lane.b32.xlu1 %v3290_v47, %s5263_s23 }
 0x9c0   : > { %v3119_v23 = vpop.xlane.xlu1 %3118  ;;  %v3278_v43 = vmul.f32 %v5061_v9, %v6903_v32  ;;  %v5063_v45 = vpop.eup %5062 }
 0x9c1   : > { %5072 = vrcp.f32 %v3119_v23  ;;  %v3283_v4 = vmul.f32 %v5063_v45, %v6909_v13  ;;  %v7426_v23 = vld [vmem:[#allocation74_spill] sm:$0xff] }
 0x9c2   : > { %v3291_v11 = vpack.c.bf16 %v3278_v43, %v3277_v15  ;;  %5074 = vrcp.f32 %v3113_v25  ;;  %v7423_v25 = vld [vmem:[#allocation77_spill] sm:$0xff]  ;;  %v7427_v43 = vld [vmem:[#allocation76_spill] sm:$0xff] }
 0x9c3   : > { %v5065_v26 = vpop.eup %5064  ;;  %v3339_v53 = vld [vmem:[#allocation4 + $0x10] sm:$0xff] }
 0x9c4   : > { %4604 = vmatprep.mubr.bf16.mxu1 %v3339_v53  ;;  %3309 = vrot.lane.b32.xlu1 %v3291_v11, %s5263_s23  ;;  %v3115_v59 = vpop.xlane.xlu1 %3114  ;;  %v3284_v2 = vmul.f32 %v5065_v26, %v6913_v22  ;;  %v5067_v17 = vpop.eup %5066 }
 0x9c5   : > { %5076 = vrcp.f32 %v3115_v59  ;;  %v3281_v50 = vmul.f32 %v5067_v17, %v6911_v1  ;;  %v7019_v17 = vld [vmem:[%s7235_s7] ss:$0 sm:$0xff] }
 0x9c6   : > { %v3294_v55 = vpack.c.bf16 %v3284_v2, %v3283_v4 }
 0x9c7   : > { %v5069_v49 = vpop.eup %5068 }
 0x9c8   : > { %3311 = vrot.lane.b32.xlu1 %v3292_v46, %s5263_s23  ;;  %v2789_v32 = vpop.permute.xlu1 %2788  ;;  %v3282_v20 = vmul.f32 %v5069_v49, %v6915_v16  ;;  %v5071_v60 = vpop.eup %5070  ;;  %v3739_v49 = vld [vmem:[%s5495_s13 + $0x10] sm:$0xff] }
 0x9c9   : > { %2810 = vst.msk [vmem:[#allocation4 + $0x18] sm:$0xff] %vm2806_vm1, %v2789_v32  ;;  %v3287_v13 = vmul.f32 %v5071_v60, %v6955_v36 }
 0x9ca   : > { %v3293_v35 = vpack.c.bf16 %v3282_v20, %v3281_v50  ;;  %v3737_v20 = vld [vmem:[%s5495_s13] sm:$0xff] }
 0x9cb   : > { %v5073_v39 = vpop.eup %5072 }
 0x9cc   : > { %3313 = vrot.lane.b32.xlu0 %v3293_v35, %s5263_s23  ;;  %v3288_v22 = vmul.f32 %v5073_v39, %v6962_v63  ;;  %v5075_v28 = vpop.eup %5074 }
 0x9cd   : > { %v3285_v1 = vmul.f32 %v5075_v28, %v6959_v58 }
 0x9ce   : > { %v3296_v34 = vpack.c.bf16 %v3288_v22, %v3287_v13  ;;  %v3740_v13 = vld [vmem:[%s5495_s13 + $0x18] sm:$0xff] }
 0x9cf   : > { %v5077_v29 = vpop.eup %5076 }
 0x9d0   : > { %3315 = vrot.lane.b32.xlu0 %v3294_v55, %s5263_s23  ;;  %v3340_v10 = vld [vmem:[#allocation4 + $0x18] sm:$0xff]  ;;  %v3286_v16 = vmul.f32 %v5077_v29, %v6964_v44 }
 0x9d1   : > { %4605 = vmatmul.mubr.bf16.gmra.mrb[116].mxu1 %v3340_v10  ;;  %v3738_v10 = vld [vmem:[%s5495_s13 + $0x8] sm:$0xff] }
 0x9d2   : > { %v3295_v12 = vpack.c.bf16 %v3286_v16, %v3285_v1 }
 0x9d4   : > { %3317 = vrot.lane.b32.xlu0 %v3295_v12, %s5263_s23 }
 0x9d8   : > { %3319 = vrot.lane.b32.xlu0 %v3296_v34, %s5263_s23 }
 0x9ec   : > { %v2070_v42 = vpop.xlane.xlu0 %2069 }
 0x9ed   : > { %5078 = vrcp.f32 %v2070_v42 }
 0x9f0   : > { %v2084_v36 = vpop.xlane.xlu0 %2083 }
 0x9f4   : > { %v2072_v5 = vpop.xlane.xlu0 %2071 }
 0x9f7   : > { %v5079_v63 = vpop.eup %5078 }
 0x9f8   : > { %v2088_v48 = vpop.xlane.xlu0 %2087  ;;  %v2068_v41 = vpop.xlane.xlu1 %2067  ;;  %v2217_v31 = vmul.f32 %v5079_v63, %v7420_v37  ;;  %v3743_v37 = vld [vmem:[%s5495_s13 + $0x30] sm:$0xff] }
 0x9f9   : > { %5080 = vrcp.f32 %v2068_v41 }
 0x9fa   : > { %5082 = vrcp.f32 %v2084_v36 }
 0x9fc   : > { %v2791_v7 = vpop.permute.xlu0 %2790  ;;  %v2086_v0 = vpop.xlane.xlu1 %2085 }
 0x9fd   : > { %2811 = vst.msk [vmem:[#allocation4 + $0x20] sm:$0xff] %vm2806_vm1, %v2791_v7  ;;  %5084 = vrcp.f32 %v2086_v0 }
 0x9fe   : > { %5086 = vrcp.f32 %v2072_v5 }
 0xa00   : > { %v2797_v58 = vpop.permute.xlu0 %2796  ;;  %v2074_v38 = vpop.xlane.xlu1 %2073 }
 0xa01   : > { %2814 = vst.msk [vmem:[#allocation4 + $0x38] sm:$0xff] %vm2806_vm1, %v2797_v58  ;;  %5088 = vrcp.f32 %v2074_v38 }
 0xa02   : > { %5090 = vrcp.f32 %v2088_v48 }
 0xa03   : > { %v5081_v44 = vpop.eup %5080 }
 0xa04   : > { %v3341_v56 = vld [vmem:[#allocation4 + $0x20] sm:$0xff]  ;;  %v2090_v40 = vpop.xlane.xlu1 %2089  ;;  %v5083_v52 = vpop.eup %5082  ;;  %v2216_v30 = vmul.f32 %v5081_v44, %v7421_v62 }
 0xa05   : > { %4608 = vmatprep.mubr.bf16.mxu1 %v3341_v56  ;;  %5092 = vrcp.f32 %v2090_v40  ;;  %v2224_v33 = vmul.f32 %v5083_v52, %v7422_v27  ;;  %v3744_v27 = vld [vmem:[%s5495_s13 + $0x38] sm:$0xff] }
 0xa06   : > { %v2230_v47 = vpack.c.bf16 %v2217_v31, %v2216_v30  ;;  %v3741_v30 = vld [vmem:[%s5495_s13 + $0x20] sm:$0xff] }
 0xa07   : > { %v5085_v8 = vpop.eup %5084 }
 0xa08   : > { %v2225_v54 = vmul.f32 %v5085_v8, %v7423_v25  ;;  %v2793_v19 = vpop.permute.xlu1 %2792  ;;  %v5087_v6 = vpop.eup %5086  ;;  %2238 = vst.msk [vmem:[#allocation5 + $0x10] sm:$0xff] %vm1423_vm0, %v2230_v47  ;;  %v3344_v59 = vld [vmem:[#allocation4 + $0x38] sm:$0xff] }
 0xa09   : > { %2812 = vst.msk [vmem:[#allocation4 + $0x28] sm:$0xff] %vm2806_vm1, %v2793_v19  ;;  %v2218_v18 = vmul.f32 %v5087_v6, %v7424_v57  ;;  %v3742_v19 = vld [vmem:[%s5495_s13 + $0x28] sm:$0xff] }
 0xa0a   : > { %v2234_v24 = vpack.c.bf16 %v2225_v54, %v2224_v33 }
 0xa0b   : > { %v5089_v14 = vpop.eup %5088 }
 0xa0c   : > { %v2219_v61 = vmul.f32 %v5089_v14, %v7425_v3  ;;  %v2795_v51 = vpop.permute.xlu1 %2794  ;;  %2242 = vst.msk [vmem:[#allocation5 + $0x30] sm:$0xff] %vm1423_vm0, %v2234_v24  ;;  %v5091_v21 = vpop.eup %5090  ;;  %v3747_v3 = vld [vmem:[%s5495_s13 + $0x50] sm:$0xff] }
 0xa0d   : > { %2813 = vst.msk [vmem:[#allocation4 + $0x30] sm:$0xff] %vm2806_vm1, %v2795_v51  ;;  %v2226_v15 = vmul.f32 %v5091_v21, %v7426_v23  ;;  %v3745_v21 = vld [vmem:[%s5495_s13 + $0x40] sm:$0xff]  ;;  %v3748_v23 = vld [vmem:[%s5495_s13 + $0x58] sm:$0xff] }
 0xa0e   : > { %v2231_v46 = vpack.c.bf16 %v2219_v61, %v2218_v18 }
 0xa0f   : > { %v5093_v9 = vpop.eup %5092 }
 0xa10   : > { %v2227_v45 = vmul.f32 %v5093_v9, %v7427_v43  ;;  %v3342_v11 = vld [vmem:[#allocation4 + $0x28] sm:$0xff]  ;;  %2239 = vst.msk [vmem:[#allocation5 + $0x18] sm:$0xff] %vm1423_vm0, %v2231_v46 }
 0xa11   : > { %4609 = vmatmul.mubr.bf16.gmra.mrb[120].mxu1 %v3342_v11  ;;  %v3746_v11 = vld [vmem:[%s5495_s13 + $0x48] sm:$0xff] }
 0xa12   : > { %v2235_v26 = vpack.c.bf16 %v2227_v45, %v2226_v15 }
 0xa14   : > { %v3343_v53 = vld [vmem:[#allocation4 + $0x30] sm:$0xff]  ;;  %2243 = vst.msk [vmem:[#allocation5 + $0x38] sm:$0xff] %vm1423_vm0, %v2235_v26 }
 0xa15   : > { %4612 = vmatprep.mubr.bf16.mxu1 %v3343_v53 }
 0xa19   : > { %4613 = vmatmul.mubr.bf16.gmra.mrb[124].mxu1 %v3344_v59 }
 0xa2d   : > { %v3306_v4 = vpop.permute.xlu1 %3305 }
 0xa2e   : > { %3329 = vst.msk [vmem:[#allocation5] sm:$0xff] %vm2806_vm1, %v3306_v4 }
 0xa31   : > { %v3308_v2 = vpop.permute.xlu1 %3307 }
 0xa32   : > { %3330 = vst.msk [vmem:[#allocation5 + $0x8] sm:$0xff] %vm2806_vm1, %v3308_v2 }
 0xa34   : > { %v4602_v55 = vpop.f32.mrb[112].mxu1 }
 0xa35   : > { %v3459_v32 = vadd.f32 %v4602_v55, %v7019_v17  ;;  %v3450_v50 = vpop.f32.mrb[113].mxu1  ;;  %v3513_v22 = vld [vmem:[#allocation5] sm:$0xff]  ;;  %v3751_v55 = vld [vmem:[%s5495_s13 + $0x70] sm:$0xff] }
 0xa36   : > { %v3451_v60 = vadd.f32 %v7019_v17, %v3450_v50  ;;  %v3310_v35 = vpop.permute.xlu1 %3309  ;;  %v4603_v39 = vpop.f32.mrb[114].mxu1  ;;  %4632 = vmatprep.mubr.bf16.mxu0 %v3513_v22  ;;  %v3749_v50 = vld [vmem:[%s5495_s13 + $0x60] sm:$0xff] }
 0xa37   : > { %v3755_v28 = vadd.f32 %v3739_v49, %v3459_v32  ;;  %3331 = vst.msk [vmem:[#allocation5 + $0x10] sm:$0xff] %vm2806_vm1, %v3310_v35  ;;  %v3462_v34 = vadd.f32 %v4603_v39, %v7019_v17  ;;  %v3453_v29 = vpop.f32.mrb[115].mxu1  ;;  %v3752_v35 = vld [vmem:[%s5495_s13 + $0x78] sm:$0xff] }
 0xa38   : > { %v3753_v1 = vadd.f32 %v3737_v20, %v3451_v60  ;;  %v3454_v16 = vadd.f32 %v7019_v17, %v3453_v29 }
 0xa39   : > { %3771 = vst [vmem:[%s7032_s30 + $0x10] sm:$0xff] %v3755_v28  ;;  %v3756_v12 = vadd.f32 %v3740_v13, %v3462_v34  ;;  %v3514_v5 = vld [vmem:[#allocation5 + $0x8] sm:$0xff] }
 0xa3a   : > { %3769 = vst [vmem:[%s7032_s30] sm:$0xff] %v3753_v1  ;;  %v3754_v42 = vadd.f32 %v3738_v10, %v3454_v16  ;;  %v3312_v36 = vpop.permute.xlu1 %3311  ;;  %4633 = vmatmul.mubr.bf16.vlgmr.msra.gmra.mrb[112].mxu0 %v3514_v5  ;;  %v3750_v28 = vld [vmem:[%s5495_s13 + $0x68] sm:$0xff]  ;;  %s3791_s13 = scalar_lea.sflag [#allocation13], %s5488_s24 }
 0xa3b   : > { %3772 = vst [vmem:[%s7032_s30 + $0x18] sm:$0xff] %v3756_v12  ;;  %3332 = vst.msk [vmem:[#allocation5 + $0x18] sm:$0xff] %vm2806_vm1, %v3312_v36 }
 0xa3c   : > { %3770 = vst [vmem:[%s7032_s30 + $0x8] sm:$0xff] %v3754_v42 }
 0xa3e   : > { %v3314_v48 = vpop.permute.xlu0 %3313  ;;  %v3515_v41 = vld [vmem:[#allocation5 + $0x10] sm:$0xff] }
 0xa3f   : > { %3333 = vst.msk [vmem:[#allocation5 + $0x20] sm:$0xff] %vm2806_vm1, %v3314_v48  ;;  %4636 = vmatprep.mubr.bf16.mxu0 %v3515_v41 }
 0xa42   : > { %v3316_v7 = vpop.permute.xlu0 %3315  ;;  %v3516_v0 = vld [vmem:[#allocation5 + $0x18] sm:$0xff] }
 0xa43   : > { %3334 = vst.msk [vmem:[#allocation5 + $0x28] sm:$0xff] %vm2806_vm1, %v3316_v7  ;;  %4637 = vmatmul.mubr.bf16.gmra.mrb[116].mxu0 %v3516_v0 }
 0xa46   : > { %v3318_v58 = vpop.permute.xlu0 %3317  ;;  %v3517_v38 = vld [vmem:[#allocation5 + $0x20] sm:$0xff] }
 0xa47   : > { %3335 = vst.msk [vmem:[#allocation5 + $0x30] sm:$0xff] %vm2806_vm1, %v3318_v58  ;;  %4640 = vmatprep.mubr.bf16.mxu1 %v3517_v38 }
 0xa4a   : > { %v3320_v63 = vpop.permute.xlu0 %3319  ;;  %v3518_v44 = vld [vmem:[#allocation5 + $0x28] sm:$0xff] }
 0xa4b   : > { %3336 = vst.msk [vmem:[#allocation5 + $0x38] sm:$0xff] %vm2806_vm1, %v3320_v63  ;;  %4641 = vmatmul.mubr.bf16.vlgmr.msra.gmra.mrb[128].mxu1 %v3518_v44 }
 0xa4e   : > { %v3519_v56 = vld [vmem:[#allocation5 + $0x30] sm:$0xff] }
 0xa4f   : > { %4644 = vmatprep.mubr.bf16.mxu1 %v3519_v56 }
 0xa52   : > { %v3520_v40 = vld [vmem:[#allocation5 + $0x38] sm:$0xff] }
 0xa53   : > { %4645 = vmatmul.mubr.bf16.gmra.mrb[132].mxu1 %v3520_v40 }
 0xaa4   : > { %v4606_v52 = vpop.f32.mrb[116].mxu1 }
 0xaa5   : > { %v3475_v31 = vadd.f32 %v4606_v52, %v7019_v17  ;;  %v3466_v62 = vpop.f32.mrb[117].mxu1 }
 0xaa6   : > { %v3467_v8 = vadd.f32 %v7019_v17, %v3466_v62  ;;  %v4607_v47 = vpop.f32.mrb[118].mxu1 }
 0xaa7   : > { %v3759_v33 = vadd.f32 %v3743_v37, %v3475_v31  ;;  %v3478_v25 = vadd.f32 %v4607_v47, %v7019_v17  ;;  %v3469_v54 = vpop.f32.mrb[119].mxu1 }
 0xaa8   : > { %v3757_v6 = vadd.f32 %v3741_v30, %v3467_v8  ;;  %v3470_v24 = vadd.f32 %v7019_v17, %v3469_v54 }
 0xaa9   : > { %3775 = vst [vmem:[%s7032_s30 + $0x30] sm:$0xff] %v3759_v33  ;;  %v3760_v14 = vadd.f32 %v3744_v27, %v3478_v25 }
 0xaaa   : > { %3773 = vst [vmem:[%s7032_s30 + $0x20] sm:$0xff] %v3757_v6  ;;  %v3758_v57 = vadd.f32 %v3742_v19, %v3470_v24 }
 0xaab   : > { %3776 = vst [vmem:[%s7032_s30 + $0x38] sm:$0xff] %v3760_v14 }
 0xaac   : > { %3774 = vst [vmem:[%s7032_s30 + $0x28] sm:$0xff] %v3758_v57 }
 0xae4   : > { %v4610_v18 = vpop.f32.mrb[120].mxu1 }
 0xae5   : > { %v3491_v61 = vadd.f32 %v4610_v18, %v7019_v17  ;;  %v3482_v51 = vpop.f32.mrb[121].mxu1 }
 0xae6   : > { %v3483_v46 = vadd.f32 %v7019_v17, %v3482_v51  ;;  %v4611_v9 = vpop.f32.mrb[122].mxu1 }
 0xae7   : > { %v3763_v15 = vadd.f32 %v3747_v3, %v3491_v61  ;;  %v3494_v43 = vadd.f32 %v4611_v9, %v7019_v17  ;;  %v3485_v45 = vpop.f32.mrb[123].mxu1 }
 0xae8   : > { %v3761_v26 = vadd.f32 %v3745_v21, %v3483_v46  ;;  %v3486_v53 = vadd.f32 %v7019_v17, %v3485_v45 }
 0xae9   : > { %3779 = vst [vmem:[%s7032_s30 + $0x50] sm:$0xff] %v3763_v15  ;;  %v3764_v59 = vadd.f32 %v3748_v23, %v3494_v43 }
 0xaea   : > { %3777 = vst [vmem:[%s7032_s30 + $0x40] sm:$0xff] %v3761_v26  ;;  %v3762_v4 = vadd.f32 %v3746_v11, %v3486_v53 }
 0xaeb   : > { %3780 = vst [vmem:[%s7032_s30 + $0x58] sm:$0xff] %v3764_v59 }
 0xaec   : > { %3778 = vst [vmem:[%s7032_s30 + $0x48] sm:$0xff] %v3762_v4  ;;  %v4614_v2 = vpop.f32.mrb[124].mxu1 }
 0xaed   : > { %v3507_v49 = vadd.f32 %v4614_v2, %v7019_v17  ;;  %v3498_v32 = vpop.f32.mrb[125].mxu1 }
 0xaee   : > { %v3499_v20 = vadd.f32 %v7019_v17, %v3498_v32  ;;  %v4615_v60 = vpop.f32.mrb[126].mxu1 }
 0xaef   : > { %v3767_v39 = vadd.f32 %v3751_v55, %v3507_v49  ;;  %v3510_v13 = vadd.f32 %v4615_v60, %v7019_v17  ;;  %v3501_v22 = vpop.f32.mrb[127].mxu1 }
 0xaf0   : > { %v3765_v34 = vadd.f32 %v3749_v50, %v3499_v20  ;;  %v3502_v29 = vadd.f32 %v7019_v17, %v3501_v22 }
 0xaf1   : > { %3783 = vst [vmem:[%s7032_s30 + $0x70] sm:$0xff] %v3767_v39  ;;  %v3768_v10 = vadd.f32 %v3752_v35, %v3510_v13 }
 0xaf2   : > { %3781 = vst [vmem:[%s7032_s30 + $0x60] sm:$0xff] %v3765_v34  ;;  %v3766_v1 = vadd.f32 %v3750_v28, %v3502_v29 }
 0xaf3   : > { %3784 = vst [vmem:[%s7032_s30 + $0x78] sm:$0xff] %v3768_v10 }
 0xaf4   : > { %3782 = vst [vmem:[%s7032_s30 + $0x68] sm:$0xff] %v3766_v1 }
 0xaf5   : > { %5167 = shalt.err (!%p5164_p11)
}
 0xaf6   : > { %s5168_s23 = scalar_lea.hbm %s7084_s26, 2048  ;;  %s5172_s14 = scalar_lea.hbm %s7239_s11, 4096 }
 0xaf7   : > { %p5169_p3 = scmp.ne.s32.totalorder %s7084_s26, %s5168_s23  ;;  %p5173_p2 = scmp.lt.u32.totalorder %s7084_s26, %s7239_s11 }
 0xaf8   : > { %p5174_p4 = scmp.lt.u32.totalorder %s5172_s14, %s5168_s23  ;;  %p5176_p13 = scmp.lt.u32.totalorder %s5168_s23, %s7084_s26 }
 0xaf9   : > { %p5170_p8 = pnand %p5169_p3, %p7428_p1 }
 0xafa   : > { %p5175_p6 = por %p5174_p4, %p5173_p2 }
 0xafb   : > { %p5171_p0 = pneg %p5170_p8 }
 0xafc   : > { %p5177_p12 = por %p5176_p13, %p5175_p6 }
 0xafe   : > { %p5178_p10 = pnand %p5177_p12, %p5171_p0 }
 0xb00   : > { %5181 = shalt.err (!%p5178_p10)
}
 0xb01   : > { %s5265_s0 = smov 128   ;;  %s5266_s15 = smov 8   ;;  %v7120_v17 = vld [vmem:[%s7237_s9] ss:$0 sm:$0xff]  ;;  %v3691_v12 = vld [vmem:[%s5503_s17 + $0x10] sm:$0xff]  ;;  %v3692_v7 = vld [vmem:[%s5503_s17 + $0x18] sm:$0xff] }
 0xb02   : > { %4701 = dma.vmem_to_hbm [thread:$0]  (%p7428_p1), %s7086_s28, 2048, %s7084_s26, %s3791_s13, %s5265_s0, %s5265_s0, %s5266_s15  }
 0xb03   : > { %v3689_v5 = vld [vmem:[%s5503_s17] sm:$0xff]  ;;  %v3690_v63 = vld [vmem:[%s5503_s17 + $0x8] sm:$0xff]  ;;  %s7131_s28 = scalar_lea.vmem [#allocation11], %s5491_s16  ;;  %v3695_v31 = vld [vmem:[%s5503_s17 + $0x30] sm:$0xff]  ;;  %s7177_s22 = scalar_lea.hbm %s7238_s10, %s4070_s19 }
 0xb04   : > { %v3693_v8 = vld [vmem:[%s5503_s17 + $0x20] sm:$0xff]  ;;  %v3696_v33 = vld [vmem:[%s5503_s17 + $0x38] sm:$0xff]  ;;  %v3694_v6 = vld [vmem:[%s5503_s17 + $0x28] sm:$0xff]  ;;  %s3804_s16 = sshll.u32 %s7131_s28, 4  ;;  %s5267_s14 = smov [#allocation11]   ;;  %s7179_s16 = int_to_ptr.vmem [resolvable:$true] %s3804_s16 }
 0xb05   : > { %v3699_v61 = vld [vmem:[%s5503_s17 + $0x50] sm:$0xff]  ;;  %v3697_v46 = vld [vmem:[%s5503_s17 + $0x40] sm:$0xff]  ;;  %v3700_v15 = vld [vmem:[%s5503_s17 + $0x58] sm:$0xff]  ;;  %s5182_s30 = scalar_lea.vmem %s7179_s16, 2048  ;;  %s5186_s21 = sshll.u32 %s5267_s14, 4  ;;  %s5187_s21 = int_to_ptr.vmem [resolvable:$false] %s5186_s21 }
 0xb06   : > { %v3698_v26 = vld [vmem:[%s5503_s17 + $0x48] sm:$0xff]  ;;  %v3703_v49 = vld [vmem:[%s5503_s17 + $0x70] sm:$0xff]  ;;  %v3701_v20 = vld [vmem:[%s5503_s17 + $0x60] sm:$0xff]  ;;  %p5183_p5 = scmp.ne.s32.totalorder %s7179_s16, %s5182_s30  ;;  %s5188_s25 = scalar_lea.vmem %s5187_s21, 4096 }
 0xb07   : > { %v3704_v39 = vld [vmem:[%s5503_s17 + $0x78] sm:$0xff]  ;;  %v3702_v34 = vld [vmem:[%s5503_s17 + $0x68] sm:$0xff]  ;;  %s3786_s17 = scalar_lea.sflag [#allocation8], %s5488_s24  ;;  %p5189_p11 = scmp.lt.s32.totalorder %s7179_s16, %s5187_s21 }
 0xb08   : > { %p5184_p7 = pnand %p5183_p5, %p7428_p1  ;;  %p5190_p3 = scmp.lt.s32.totalorder %s5188_s25, %s5182_s30 }
 0xb0a   : > { %p5185_p9 = pneg %p5184_p7  ;;  %p5191_p8 = por %p5190_p3, %p5189_p11 }
 0xb0c   : > { %p5192_p0 = pnand %p5191_p8, %p5185_p9 }
 0xb0d   : > { %v4634_v16 = vpop.f32.mrb[112].mxu0 }
 0xb0e   : > { %v3635_v42 = vadd.f32 %v4634_v16, %v7120_v17  ;;  %v3626_v36 = vpop.f32.mrb[113].mxu0 }
 0xb0f   : > { %v3627_v48 = vadd.f32 %v7120_v17, %v3626_v36  ;;  %v4635_v41 = vpop.f32.mrb[114].mxu0 }
 0xb10   : > { %v3707_v0 = vadd.f32 %v3691_v12, %v3635_v42  ;;  %v3638_v58 = vadd.f32 %v4635_v41, %v7120_v17  ;;  %v3629_v38 = vpop.f32.mrb[115].mxu0 }
 0xb11   : > { %v3705_v44 = vadd.f32 %v3689_v5, %v3627_v48  ;;  %v3630_v56 = vadd.f32 %v7120_v17, %v3629_v38 }
 0xb12   : > { %3723 = vst [vmem:[%s7131_s28 + $0x10] sm:$0xff] %v3707_v0  ;;  %v3708_v40 = vadd.f32 %v3692_v7, %v3638_v58 }
 0xb13   : > { %3721 = vst [vmem:[%s7131_s28] sm:$0xff] %v3705_v44  ;;  %v3706_v52 = vadd.f32 %v3690_v63, %v3630_v56 }
 0xb14   : > { %3724 = vst [vmem:[%s7131_s28 + $0x18] sm:$0xff] %v3708_v40 }
 0xb15   : > { %3722 = vst [vmem:[%s7131_s28 + $0x8] sm:$0xff] %v3706_v52 }
 0xb16   : > { %v4638_v37 = vpop.f32.mrb[116].mxu0 }
 0xb17   : > { %v3651_v62 = vadd.f32 %v4638_v37, %v7120_v17  ;;  %v3642_v30 = vpop.f32.mrb[117].mxu0 }
 0xb18   : > { %v3643_v47 = vadd.f32 %v7120_v17, %v3642_v30  ;;  %v4639_v27 = vpop.f32.mrb[118].mxu0 }
 0xb19   : > { %v3711_v25 = vadd.f32 %v3695_v31, %v3651_v62  ;;  %v3654_v54 = vadd.f32 %v4639_v27, %v7120_v17  ;;  %v3645_v19 = vpop.f32.mrb[119].mxu0 }
 0xb1a   : > { %v3709_v24 = vadd.f32 %v3693_v8, %v3643_v47  ;;  %v3646_v14 = vadd.f32 %v7120_v17, %v3645_v19 }
 0xb1b   : > { %3727 = vst [vmem:[%s7131_s28 + $0x30] sm:$0xff] %v3711_v25  ;;  %v3712_v57 = vadd.f32 %v3696_v33, %v3654_v54 }
 0xb1c   : > { %3725 = vst [vmem:[%s7131_s28 + $0x20] sm:$0xff] %v3709_v24  ;;  %v3710_v18 = vadd.f32 %v3694_v6, %v3646_v14 }
 0xb1d   : > { %3728 = vst [vmem:[%s7131_s28 + $0x38] sm:$0xff] %v3712_v57 }
 0xb1e   : > { %3726 = vst [vmem:[%s7131_s28 + $0x28] sm:$0xff] %v3710_v18  ;;  %v4642_v3 = vpop.f32.mrb[128].mxu1 }
 0xb1f   : > { %v3667_v51 = vadd.f32 %v4642_v3, %v7120_v17  ;;  %v3658_v21 = vpop.f32.mrb[129].mxu1 }
 0xb20   : > { %v3659_v9 = vadd.f32 %v7120_v17, %v3658_v21  ;;  %v4643_v23 = vpop.f32.mrb[130].mxu1 }
 0xb21   : > { %v3715_v43 = vadd.f32 %v3699_v61, %v3667_v51  ;;  %v3670_v45 = vadd.f32 %v4643_v23, %v7120_v17  ;;  %v3661_v11 = vpop.f32.mrb[131].mxu1 }
 0xb22   : > { %v3713_v53 = vadd.f32 %v3697_v46, %v3659_v9  ;;  %v3662_v59 = vadd.f32 %v7120_v17, %v3661_v11 }
 0xb23   : > { %3731 = vst [vmem:[%s7131_s28 + $0x50] sm:$0xff] %v3715_v43  ;;  %v3716_v4 = vadd.f32 %v3700_v15, %v3670_v45 }
 0xb24   : > { %3729 = vst [vmem:[%s7131_s28 + $0x40] sm:$0xff] %v3713_v53  ;;  %v3714_v2 = vadd.f32 %v3698_v26, %v3662_v59 }
 0xb25   : > { %3732 = vst [vmem:[%s7131_s28 + $0x58] sm:$0xff] %v3716_v4 }
 0xb26   : > { %3730 = vst [vmem:[%s7131_s28 + $0x48] sm:$0xff] %v3714_v2  ;;  %v4646_v55 = vpop.f32.mrb[132].mxu1 }
 0xb27   : > { %v3683_v32 = vadd.f32 %v4646_v55, %v7120_v17  ;;  %v3674_v50 = vpop.f32.mrb[133].mxu1 }
 0xb28   : > { %v3675_v60 = vadd.f32 %v7120_v17, %v3674_v50  ;;  %v4647_v35 = vpop.f32.mrb[134].mxu1 }
 0xb29   : > { %v3719_v13 = vadd.f32 %v3703_v49, %v3683_v32  ;;  %v3686_v22 = vadd.f32 %v4647_v35, %v7120_v17  ;;  %v3677_v28 = vpop.f32.mrb[135].mxu1 }
 0xb2a   : > { %v3717_v29 = vadd.f32 %v3701_v20, %v3675_v60  ;;  %v3678_v10 = vadd.f32 %v7120_v17, %v3677_v28 }
 0xb2b   : > { %3735 = vst [vmem:[%s7131_s28 + $0x70] sm:$0xff] %v3719_v13  ;;  %v3720_v1 = vadd.f32 %v3704_v39, %v3686_v22 }
 0xb2c   : > { %3733 = vst [vmem:[%s7131_s28 + $0x60] sm:$0xff] %v3717_v29  ;;  %v3718_v16 = vadd.f32 %v3702_v34, %v3678_v10 }
 0xb2d   : > { %3736 = vst [vmem:[%s7131_s28 + $0x78] sm:$0xff] %v3720_v1 }
 0xb2e   : > { %3734 = vst [vmem:[%s7131_s28 + $0x68] sm:$0xff] %v3718_v16 }
 0xb2f   : > { %5195 = shalt.err (!%p5192_p0)
}
 0xb30   : > { %s5196_s19 = scalar_lea.hbm %s7177_s22, 2048  ;;  %s5200_s23 = scalar_lea.hbm %s7238_s10, 4096 }
 0xb31   : > { %p5197_p2 = scmp.ne.s32.totalorder %s7177_s22, %s5196_s19  ;;  %p5201_p13 = scmp.lt.u32.totalorder %s7177_s22, %s7238_s10 }
 0xb32   : > { %p5202_p12 = scmp.lt.u32.totalorder %s5200_s23, %s5196_s19  ;;  %p5204_p5 = scmp.lt.u32.totalorder %s5196_s19, %s7177_s22 }
 0xb33   : > { %p5198_p4 = pnand %p5197_p2, %p7428_p1 }
 0xb34   : > { %p5203_p10 = por %p5202_p12, %p5201_p13 }
 0xb35   : > { %p5199_p6 = pneg %p5198_p4 }
 0xb36   : > { %p5205_p7 = por %p5204_p5, %p5203_p10 }
 0xb38   : > { %p5206_p9 = pnand %p5205_p7, %p5199_p6 }
 0xb3a   : > { %5209 = shalt.err (!%p5206_p9)
}
 0xb3b   : > { %4700 = dma.vmem_to_hbm [thread:$0]  (%p7428_p1), %s7179_s16, 2048, %s7177_s22, %s3786_s17, %s5265_s0, %s5265_s0, %s5266_s15  }
 0xb3c PF: > { %s7429_s13 = sld [smem:[#allocation18_spill]]  ;;  %s7430_s30 = sld [smem:[#allocation22_spill]] }
 0xb3d   : > { %p7432_p3 = scmp.ge.s32.totalorder %s5256_s20, 2 }
 0xb42   : > { %s3835_s14 = sand.u32 1, %s7429_s13   ;;  %p7431_p11 = scmp.ne.s32.totalorder %s7430_s30, 0 }
 0xb43   : > { %s3836_s21 = scalar_lea.sflag [#allocation8], %s3835_s14 }
 0xb44   : > { %p4712_p8 = pnand %p7432_p3, %p7431_p11 }
 0xb46   : > { %5235 = dma.done.wait (!%p4712_p8), %s3836_s21, 2048  }
 0xb47   : > { %5237 = vsyncadd (!%p4712_p8), %s3836_s21, 4294965248  ;;  %s3845_s29 = scalar_lea.sflag [#allocation13], %s3835_s14 }
 0xb48   : > { %5239 = dma.done.wait (!%p4712_p8), %s3845_s29, 2048  }
 0xb49   : > { %5241 = vsyncadd (!%p4712_p8), %s3845_s29, 4294965248  ;;  %s7433_s20 = sld [smem:[#allocation20_spill]]  ;;  %s7434_s24 = sld [smem:[#allocation19_spill]] }
 0xb4a   : > { %s7435_s19 = sld [smem:[#allocation21_spill]]  ;;  %s7436_s17 = smov %s5248_s18 }
 0xb4f   : > { %p31_p1 = scmp.ge.s32.totalorder %s7433_s20, 4   ;;  %s7437_s18 = smov %s7434_s24 }
 0xb51   :  { %33 = sbr.rel (!%p31_p1) target bundleno = 11 (0xb), region = 135 }
 0xb58   :  { %3850 = vsyncpa [#allocation7], 1 }
 0xb59   :  { %3852 = vsyncpa [#allocation7 + $0x1], 1 }
 0xb5a   :  { %3853 = vsyncpa [#allocation10], 1 }
 0xb5b   :  { %3855 = vsyncpa [#allocation10 + $0x1], 1 }
 0xb5c   :  { %3856 = vsyncpa [#allocation8], 1 }
 0xb5d   :  { %3858 = vsyncpa [#allocation8 + $0x1], 1 }
 0xb5e   :  { %3859 = vsyncpa [#allocation13], 1 }
 0xb5f   :  { %3861 = vsyncpa [#allocation13 + $0x1], 1 }

// kernel: tpu_custom_call.1
= control target key start
LH: loop header
LB: loop body
LE: loop exit
PB: predicated region body
PF: predicated region fallthrough
CT: control target
= control target key end

     0   :  { %s7228_s0 = inlined_call_operand.hbm [shape: f32[2,128,128], index: 0, kind: input, shape index: {}, may-alias: {0,11}]   ;;  %s7229_s1 = inlined_call_operand.hbm [shape: f32[2,128,128], index: 1, kind: input, shape index: {}, may-alias: {1,10}]   ;;  %s7230_s2 = inlined_call_operand.vmem [shape: bf16[128,384], index: 2, kind: input, shape index: {}]   ;;  %s7231_s3 = inlined_call_operand.vmem [shape: f32[1,384], index: 3, kind: input, shape index: {}]   ;;  %s7232_s4 = inlined_call_operand.vmem [shape: bf16[128,384], index: 4, kind: input, shape index: {}]   ;;  %s7233_s5 = inlined_call_operand.vmem [shape: f32[1,384], index: 5, kind: input, shape index: {}]   ;;  %s7234_s6 = inlined_call_operand.vmem [shape: bf16[128,128], index: 6, kind: input, shape index: {}]   ;;  %s7235_s7 = inlined_call_operand.vmem [shape: f32[1,128], index: 7, kind: input, shape index: {}]   ;;  %s7236_s8 = inlined_call_operand.vmem [shape: bf16[128,128], index: 8, kind: input, shape index: {}]   ;;  %s7237_s9 = inlined_call_operand.vmem [shape: f32[1,128], index: 9, kind: input, shape index: {}]   ;;  %s7238_s10 = inlined_call_operand.hbm [shape: f32[2,128,128], index: 10, kind: output, shape index: {0}, may-alias: {1,10}]   ;;  %s7239_s11 = inlined_call_operand.hbm [shape: f32[2,128,128], index: 11, kind: output, shape index: {1}, may-alias: {0,11}]  }
   0x1   :  { %7280 = sst [smem:[#allocation78_spill]] %s7228_s0 }
   0x2   :  { %17 = vsyncpa [#allocation7], 0 }
   0x3   :  { %19 = vsyncpa [#allocation7 + $0x1], 0 }
   0x4   :  { %20 = vsyncpa [#allocation10], 0 }
   0x5   :  { %22 = vsyncpa [#allocation10 + $0x1], 0 }
   0x6   :  { %23 = vsyncpa [#allocation8], 0 }
   0x7   :  { %25 = vsyncpa [#allocation8 + $0x1], 0 }
   0x8   :  { %26 = vsyncpa [#allocation13], 0 }
   0x9   :  { %28 = vsyncpa [#allocation13 + $0x1], 0  ;;  %s5328_s17 = smov 0   ;;  %s5330_s18 = smov 0  }
   0xa   :  { %s5332_s19 = smov 0   ;;  %s5334_s20 = smov 0  }
   0xb LB: > { %7281 = sst [smem:[#allocation18_spill]] %s5244_s17  ;;  %s5349_s21 = sadd.s32 4294967295, %s5256_s20   ;;  %s5256_s20 = sphi %s5334_s20, %s7433_s20   ;;  %s5252_s19 = sphi %s5332_s19, %s7435_s19   ;;  %s5248_s18 = sphi %s5330_s18, %s7437_s18   ;;  %s5244_s17 = sphi %s5328_s17, %s7436_s17  }
   0xc   : > { %7282 = sst [smem:[#allocation19_spill]] %s5252_s19  ;;  %s3948_s22 = sadd.s32 4294967294, %s5256_s20  }
   0xd   : > { %s5353_s23 = sadd.s32 1, %s5256_s20   ;;  %s41_s24 = sadd.s32 1, %s5252_s19 }
   0xe   : > { %7283 = sst [smem:[#allocation20_spill]] %s5353_s23  ;;  %s38_s25 = ssub.s32 %s5256_s20, %s5353_s23 }
   0xf   : > { %p48_p0 = scmp.ne.s32.totalorder %s5252_s19, %s5248_s18  ;;  %p39_p1 = scmp.eq.s32.totalorder %s38_s25, 0 }
  0x10   : > { %p49_p2 = scmp.eq.s32.totalorder %s5256_s20, 0  ;;  %p54_p3 = scmp.ne.s32.totalorder %s5248_s18, %s5244_s17 }
  0x11   : > { %p55_p4 = scmp.eq.s32.totalorder %s5349_s21, 0  ;;  %p272_p7 = scmp.eq.s32.totalorder %s5349_s21, 1 }
  0x12   : > { %s5365_s26 = scalar_select %p39_p1, %s5252_s19, %s41_s24  }
  0x13   : > { %p5367_p5 = por %p49_p2, %p48_p0  ;;  %p5371_p6 = por %p55_p4, %p54_p3 }
  0x14   : > { %7284 = sst [smem:[#allocation21_spill]] %s5365_s26  ;;  %p278_p8 = scmp.eq.s32.totalorder %s3948_s22, 1 }
  0x15   : > { %s7286_s28 = scalar_select %p5371_p6, 1, 0 }
  0x16   : > { %p4718_p10 = scmp.lt.s32.totalorder %s5256_s20, 2  ;;  %p5378_p11 = por %p272_p7, %p48_p0 }
  0x17   : > { %p5382_p12 = por %p278_p8, %p54_p3  ;;  %s5387_s12 = sand.u32 1, %s5252_s19  }
  0x18   : > { %s7287_s29 = scalar_select %p5378_p11, 1, 0 }
  0x19   : > { %s7288_s30 = scalar_select %p5382_p12, 1, 0 }
  0x1a   : > { %s7242_s13 = sshll.u32 %s5256_s20, 11  ;;  %s7241_s14 = sshll.u32 %s5387_s12, 7 }
  0x1b   : > { %7289 = sst [smem:[#allocation22_spill]] %s7288_s30  ;;  %s7290_s0 = sld [smem:[#allocation78_spill]] }
  0x1c   : > { %s352_s24 = scalar_lea.vmem [#allocation6], %s7241_s14  ;;  %p5402_p13 = pnand %p4718_p10, %p5367_p5 }
  0x1d   : > { %s359_s25 = sshll.u32 %s352_s24, 4  ;;  %s5406_s25 = int_to_ptr.vmem [resolvable:$true] %s359_s25 }
  0x1e   : > { %p5096_p1 = pneg %p5402_p13 }
  0x21   : > { %s5396_s22 = scalar_lea.hbm %s7290_s0, %s7242_s13  ;;  %s5099_s27 = scalar_lea.hbm %s7290_s0, 4096 }
  0x22   : > { %s5094_s15 = scalar_lea.hbm %s5396_s22, 2048  ;;  %p5100_p4 = scmp.lt.u32.totalorder %s5396_s22, %s7290_s0 }
  0x23   : > { %p5095_p0 = scmp.ne.s32.totalorder %s5396_s22, %s5094_s15  ;;  %p5101_p5 = scmp.lt.u32.totalorder %s5099_s27, %s5094_s15 }
  0x24   : > { %p5103_p8 = scmp.lt.u32.totalorder %s5094_s15, %s5396_s22 }
  0x25   : > { %p5097_p2 = pnand %p5096_p1, %p5095_p0  ;;  %p5102_p7 = por %p5101_p5, %p5100_p4 }
  0x27   : > { %p5098_p3 = pneg %p5097_p2  ;;  %p5104_p10 = por %p5103_p8, %p5102_p7 }
  0x29   : > { %p5105_p9 = pnand %p5104_p10, %p5098_p3 }
  0x2b   : > { %5108 = shalt.err (!%p5105_p9)
}
  0x2c   : > { %s5109_s19 = scalar_lea.vmem %s5406_s25, 2048  ;;  %s5258_s16 = smov [#allocation6]  }
  0x2d   : > { %p5110_p0 = scmp.ne.s32.totalorder %s5406_s25, %s5109_s19  ;;  %s5114_s24 = sshll.u32 %s5258_s16, 4  ;;  %s5115_s24 = int_to_ptr.vmem [resolvable:$false] %s5114_s24 }
  0x2e   : > { %s5116_s13 = scalar_lea.vmem %s5115_s24, 4096  ;;  %p5117_p11 = scmp.lt.s32.totalorder %s5406_s25, %s5115_s24 }
  0x2f   : > { %p5112_p2 = pnand %p5110_p0, %p5096_p1  ;;  %p5118_p4 = scmp.lt.s32.totalorder %s5116_s13, %s5109_s19 }
  0x31   : > { %p5113_p12 = pneg %p5112_p2  ;;  %p5119_p5 = por %p5118_p4, %p5117_p11 }
  0x33   : > { %p5120_p7 = pnand %p5119_p5, %p5113_p12 }
  0x35   : > { %5123 = shalt.err (!%p5120_p7)
}
  0x36   : > { %s7248_s14 = smov 128   ;;  %s5260_s15 = smov 8  }
  0x37   : > { %s7292_s19 = scalar_lea.sflag [#allocation7], %s5387_s12  ;;  %p3957_p9 = scmp.ge.s32.totalorder %s5256_s20, 1 }
  0x38   : > { %4707 = dma.hbm_to_vmem [thread:$0]  (!%p5402_p13), %s5396_s22, 2048, %s5406_s25, %s7292_s19, %s7248_s14, %s7248_s14, %s5260_s15  }
  0x39   : > { %p388_p11 = scmp.lt.s32.totalorder %s5256_s20, 3  ;;  %s7294_s16 = sshll.u32 %s5256_s20, 11 }
  0x3a   : > { %s5450_s0 = scalar_lea.hbm %s7229_s1, %s7294_s16  ;;  %s7295_s23 = sshll.u32 %s5387_s12, 7 }
  0x3b   : > { %p5441_p12 = pnand %p3957_p9, %p388_p11  ;;  %s373_s30 = scalar_lea.vmem [#allocation9], %s7295_s23 }
  0x3c   : > { %s380_s17 = sshll.u32 %s373_s30, 4  ;;  %s370_s22 = scalar_lea.sflag [#allocation10], %s5387_s12  ;;  %s5454_s17 = int_to_ptr.vmem [resolvable:$true] %s380_s17 }
  0x3d   : > { %s5124_s25 = scalar_lea.hbm %s5450_s0, 2048  ;;  %s5129_s16 = scalar_lea.hbm %s7229_s1, 4096 }
  0x3e   : > { %p5125_p3 = scmp.ne.s32.totalorder %s5450_s0, %s5124_s25  ;;  %p5130_p0 = scmp.lt.u32.totalorder %s5450_s0, %s7229_s1 }
  0x3f   : > { %p5131_p2 = scmp.lt.u32.totalorder %s5129_s16, %s5124_s25  ;;  %p5133_p5 = scmp.lt.u32.totalorder %s5124_s25, %s5450_s0 }
  0x40   : > { %p5127_p8 = pnand %p5125_p3, %p5096_p1 }
  0x41   : > { %p5132_p4 = por %p5131_p2, %p5130_p0 }
  0x42   : > { %p5128_p10 = pneg %p5127_p8 }
  0x43   : > { %p5134_p7 = por %p5133_p5, %p5132_p4 }
  0x45   : > { %p5135_p9 = pnand %p5134_p7, %p5128_p10 }
  0x47   : > { %5138 = shalt.err (!%p5135_p9)
}
  0x48   : > { %s5139_s23 = scalar_lea.vmem %s5454_s17, 2048  ;;  %s5261_s30 = smov [#allocation9]  }
  0x49   : > { %p5140_p11 = scmp.ne.s32.totalorder %s5454_s17, %s5139_s23  ;;  %s5144_s19 = sshll.u32 %s5261_s30, 4  ;;  %s5145_s19 = int_to_ptr.vmem [resolvable:$false] %s5144_s19 }
  0x4a   : > { %s5146_s14 = scalar_lea.vmem %s5145_s19, 4096  ;;  %p5147_p6 = scmp.lt.s32.totalorder %s5454_s17, %s5145_s19 }
  0x4b   : > { %p5142_p3 = pnand %p5140_p11, %p5096_p1  ;;  %p5148_p0 = scmp.lt.s32.totalorder %s5146_s14, %s5139_s23 }
  0x4d   : > { %p5143_p8 = pneg %p5142_p3  ;;  %p5149_p2 = por %p5148_p0, %p5147_p6 }
  0x4f   : > { %p5150_p4 = pnand %p5149_p2, %p5143_p8 }
  0x51   : > { %5153 = shalt.err (!%p5150_p4)
}
  0x52   : > { %s7296_s25 = smov 128   ;;  %392 = sbr.rel (%p5441_p12) target bundleno = 2876 (0xb3c), region = 60 }
  0x53   : > { %4710 = dma.hbm_to_vmem [thread:$0]  (!%p5402_p13), %s5450_s0, 2048, %s5454_s17, %s370_s22, %s7296_s25, %s7296_s25, %s5260_s15  }
  0x59   : > { %s5488_s24 = sand.u32 1, %s5248_s18   ;;  %p7297_p6 = scmp.ne.s32.totalorder %s7286_s28, 0 }
  0x5a   : > { %s5491_s16 = sshll.u32 %s5488_s24, 7  ;;  %s395_s26 = scalar_lea.sflag [#allocation7], %s5488_s24 }
  0x5b   : > { %s5495_s13 = scalar_lea.vmem [#allocation6], %s5491_s16 }
  0x5c   : > { %5227 = dma.done.wait (%p7297_p6), %s395_s26, 2048  }
  0x5d   : > { %5229 = vsyncadd (%p7297_p6), %s395_s26, 4294965248  ;;  %s404_s0 = scalar_lea.sflag [#allocation10], %s5488_s24  ;;  %s5503_s17 = scalar_lea.vmem [#allocation9], %s5491_s16 }
  0x5e   : > { %5231 = dma.done.wait (%p7297_p6), %s404_s0, 2048  }
  0x5f   : > { %5233 = vsyncadd (%p7297_p6), %s404_s0, 4294965248  ;;  %v5262_v0 = vmov 0   ;;  %v4758_v1 = vld [vmem:[%s7230_s2 + $0x4] ss:$12 sps:$4 sm:$0xff]   ;;  %v4760_v2 = vld [vmem:[%s7230_s2 + $0x8] ss:$12 sps:$4 sm:$0xff]  }
  0x60   : > { %746 = vmatprep.mubr.bf16.mxu0 %v5262_v0  ;;  %714 = vmatprep.subr.bf16.mxu0 %v4758_v1  ;;  %v4761_v3 = vld [vmem:[%s7230_s2] ss:$12 sps:$4 sm:$0xff]   ;;  %v4762_v4 = vld [vmem:[%s7230_s2 + $0x1c] ss:$12 sps:$4 sm:$0xff]   ;;  %v4765_v6 = vld [vmem:[%s7230_s2 + $0x18] ss:$12 sps:$4 sm:$0xff]  }
  0x61   : > { %4264 = vmatprep.subr.bf16.mxu1 %v4760_v2  ;;  %715 = vmatpush1.bf16.msra.mxu0 %v4761_v3  ;;  %v4764_v5 = vld [vmem:[%s7230_s2 + $0x20] ss:$12 sps:$4 sm:$0xff]   ;;  %v4768_v8 = vld [vmem:[%s7230_s2 + $0x38] ss:$12 sps:$4 sm:$0xff]   ;;  %v4769_v9 = vld [vmem:[%s7230_s2 + $0x30] ss:$12 sps:$4 sm:$0xff]  }
  0x62   : > { %4265 = vmatpush3.bf16.msra.mxu1 %v4760_v2  ;;  %716 = vmatprep.subr.bf16.mxu0 %v4762_v4  ;;  %v4766_v7 = vld [vmem:[%s7230_s2 + $0x34] ss:$12 sps:$4 sm:$0xff]   ;;  %v4770_v10 = vld [vmem:[%s7230_s2 + $0x4c] ss:$12 sps:$4 sm:$0xff]   ;;  %v4772_v11 = vld [vmem:[%s7230_s2 + $0x50] ss:$12 sps:$4 sm:$0xff]  }
  0x63   : > { %4266 = vmatprep.subr.bf16.mxu1 %v4764_v5  ;;  %v4773_v12 = vld [vmem:[%s7230_s2 + $0x48] ss:$12 sps:$4 sm:$0xff]   ;;  %v4774_v13 = vld [vmem:[%s7230_s2 + $0x64] ss:$12 sps:$4 sm:$0xff]   ;;  %v4777_v15 = vld [vmem:[%s7230_s2 + $0x60] ss:$12 sps:$4 sm:$0xff]  }
  0x64   : > { %v4776_v14 = vld [vmem:[%s7230_s2 + $0x68] ss:$12 sps:$4 sm:$0xff]   ;;  %v4780_v17 = vld [vmem:[%s7230_s2 + $0x80] ss:$12 sps:$4 sm:$0xff]   ;;  %v4781_v19 = vld [vmem:[%s7230_s2 + $0x78] ss:$12 sps:$4 sm:$0xff]  }
  0x65   : > { %717 = vmatpush1.bf16.msra.mxu0 %v4765_v6  ;;  %v4778_v16 = vld [vmem:[%s7230_s2 + $0x7c] ss:$12 sps:$4 sm:$0xff]   ;;  %v457_v18 = vld [vmem:[%s5495_s13] sm:$0xff]  ;;  %v4786_v25 = vld [vmem:[%s7230_s2 + $0xac] ss:$12 sps:$4 sm:$0xff]   ;;  %vm1423_vm0 = vcmask 523264  }
  0x66   : > { %4267 = vmatpush3.bf16.msra.mxu1 %v4764_v5  ;;  %718 = vmatprep.subr.bf16.mxu0 %v4766_v7  ;;  %v458_v20 = vld [vmem:[%s5495_s13 + $0x8] sm:$0xff]  ;;  %v4782_v21 = vld [vmem:[%s7230_s2 + $0x94] ss:$12 sps:$4 sm:$0xff]   ;;  %v4784_v23 = vld [vmem:[%s7230_s2 + $0x98] ss:$12 sps:$4 sm:$0xff]   ;;  %s5263_s23 = smov 64  }
  0x67   : > { %4268 = vmatprep.subr.bf16.mxu1 %v4768_v8  ;;  %v473_v22 = vpack.c.bf16 %v458_v20, %v457_v18  ;;  %v4785_v24 = vld [vmem:[%s7230_s2 + $0x90] ss:$12 sps:$4 sm:$0xff]   ;;  %v4789_v27 = vld [vmem:[%s7230_s2 + $0xa8] ss:$12 sps:$4 sm:$0xff]   ;;  %v461_v31 = vld [vmem:[%s5495_s13 + $0x20] sm:$0xff]  ;;  %vm2806_vm1 = vcmask 1048064  }
  0x68   : > { %v4788_v26 = vld [vmem:[%s7230_s2 + $0xb0] ss:$12 sps:$4 sm:$0xff]   ;;  %v462_v32 = vld [vmem:[%s5495_s13 + $0x28] sm:$0xff]  ;;  %v4793_v37 = vld [vmem:[%s7232_s4 + $0x18] ss:$12 sps:$4 sm:$0xff]   ;;  %s7032_s30 = scalar_lea.vmem [#allocation12], %s5491_s16 }
  0x69   : > { %719 = vmatpush1.bf16.msra.mxu0 %v4769_v9  ;;  %4280 = vmatprep.mubr.bf16.mxu1 %v473_v22  ;;  %v459_v28 = vld [vmem:[%s5495_s13 + $0x10] sm:$0xff]  ;;  %v460_v29 = vld [vmem:[%s5495_s13 + $0x18] sm:$0xff]  ;;  %v4790_v34 = vld [vmem:[%s7232_s4] ss:$12 sps:$4 sm:$0xff]   ;;  %v475_v36 = vpack.c.bf16 %v462_v32, %v461_v31  ;;  %s4070_s19 = sshll.u32 %s5349_s21, 11  ;;  %s3820_s28 = sshll.u32 %s7032_s30, 4  ;;  %s7086_s28 = int_to_ptr.vmem [resolvable:$true] %s3820_s28 }
  0x6a   : > { %4269 = vmatpush3.bf16.msra.mxu1 %v4768_v8  ;;  %720 = vmatprep.subr.bf16.mxu0 %v4770_v10  ;;  %v4792_v30 = vld [vmem:[%s7232_s4 + $0x4] ss:$12 sps:$4 sm:$0xff]   ;;  %v474_v33 = vpack.c.bf16 %v460_v29, %v459_v28  ;;  %v4795_v35 = vld [vmem:[%s7232_s4 + $0x1c] ss:$12 sps:$4 sm:$0xff]   ;;  %v4798_v41 = vld [vmem:[%s7232_s4 + $0x34] ss:$12 sps:$4 sm:$0xff]   ;;  %s7084_s26 = scalar_lea.hbm %s7239_s11, %s4070_s19 }
  0x6b   : > { %4270 = vmatprep.subr.bf16.mxu1 %v4772_v11  ;;  %v463_v38 = vld [vmem:[%s5495_s13 + $0x30] sm:$0xff]  ;;  %v464_v39 = vld [vmem:[%s5495_s13 + $0x38] sm:$0xff]  ;;  %v465_v42 = vld [vmem:[%s5495_s13 + $0x40] sm:$0xff]  ;;  %s5154_s0 = scalar_lea.vmem %s7086_s28, 2048  ;;  %p7428_p1 = scmp.ne.s32.totalorder %s7287_s29, 0 }
  0x6c   : > { %v4814_v40 = vld [vmem:[%s7232_s4 + $0x8] ss:$12 sps:$4 sm:$0xff]   ;;  %v4815_v43 = vld [vmem:[%s7232_s4 + $0x20] ss:$12 sps:$4 sm:$0xff]   ;;  %v476_v45 = vpack.c.bf16 %v464_v39, %v463_v38  ;;  %v4796_v46 = vld [vmem:[%s7232_s4 + $0x30] ss:$12 sps:$4 sm:$0xff]   ;;  %p5155_p13 = scmp.ne.s32.totalorder %s7086_s28, %s5154_s0 }
  0x6d   : > { %721 = vmatpush1.bf16.msra.mxu0 %v4773_v12  ;;  %v466_v44 = vld [vmem:[%s5495_s13 + $0x48] sm:$0xff]  ;;  %v467_v50 = vld [vmem:[%s5495_s13 + $0x50] sm:$0xff]  ;;  %v4816_v51 = vld [vmem:[%s7232_s4 + $0x38] ss:$12 sps:$4 sm:$0xff]   ;;  %s5264_s12 = smov [#allocation12]  }
  0x6e   : > { %4271 = vmatpush3.bf16.msra.mxu1 %v4772_v11  ;;  %722 = vmatprep.subr.bf16.mxu0 %v4774_v13  ;;  %v4801_v47 = vld [vmem:[%s7232_s4 + $0x4c] ss:$12 sps:$4 sm:$0xff]   ;;  %v477_v48 = vpack.c.bf16 %v466_v44, %v465_v42  ;;  %v4799_v49 = vld [vmem:[%s7232_s4 + $0x48] ss:$12 sps:$4 sm:$0xff]   ;;  %v4804_v53 = vld [vmem:[%s7232_s4 + $0x64] ss:$12 sps:$4 sm:$0xff]   ;;  %p5156_p12 = pnand %p5155_p13, %p7428_p1 }
  0x6f   : > { %4272 = vmatprep.subr.bf16.mxu1 %v4776_v14  ;;  %v468_v52 = vld [vmem:[%s5495_s13 + $0x58] sm:$0xff]  ;;  %v469_v54 = vld [vmem:[%s5495_s13 + $0x60] sm:$0xff]  ;;  %v470_v55 = vld [vmem:[%s5495_s13 + $0x68] sm:$0xff]  ;;  %s5158_s15 = sshll.u32 %s5264_s12, 4  ;;  %s5159_s15 = int_to_ptr.vmem [resolvable:$false] %s5158_s15 }
  0x70   : > { %v478_v56 = vpack.c.bf16 %v468_v52, %v467_v50  ;;  %v4802_v57 = vld [vmem:[%s7232_s4 + $0x60] ss:$12 sps:$4 sm:$0xff]   ;;  %v4807_v58 = vld [vmem:[%s7232_s4 + $0x7c] ss:$12 sps:$4 sm:$0xff]   ;;  %v479_v60 = vpack.c.bf16 %v470_v55, %v469_v54  ;;  %v4805_v61 = vld [vmem:[%s7232_s4 + $0x78] ss:$12 sps:$4 sm:$0xff]   ;;  %p5157_p10 = pneg %p5156_p12  ;;  %p5161_p5 = scmp.lt.s32.totalorder %s7086_s28, %s5159_s15 }
  0x71   : > { %723 = vmatpush1.bf16.msra.mxu0 %v4777_v15  ;;  %v4817_v59 = vld [vmem:[%s7232_s4 + $0x50] ss:$12 sps:$4 sm:$0xff]   ;;  %v4818_v1 = vld [vmem:[%s7232_s4 + $0x68] ss:$12 sps:$4 sm:$0xff]   ;;  %v4813_v5 = vld [vmem:[%s7232_s4 + $0xac] ss:$12 sps:$4 sm:$0xff]  }
  0x72   : > { %4273 = vmatpush3.bf16.msra.mxu1 %v4776_v14  ;;  %724 = vmatprep.subr.bf16.mxu0 %v4778_v16  ;;  %v471_v62 = vld [vmem:[%s5495_s13 + $0x70] sm:$0xff]  ;;  %v472_v63 = vld [vmem:[%s5495_s13 + $0x78] sm:$0xff]  ;;  %v4819_v6 = vld [vmem:[%s7232_s4 + $0x80] ss:$12 sps:$4 sm:$0xff]   ;;  %s5160_s27 = scalar_lea.vmem %s5159_s15, 4096 }
  0x73   : > { %4274 = vmatprep.subr.bf16.mxu1 %v4780_v17  ;;  %v4810_v2 = vld [vmem:[%s7232_s4 + $0x94] ss:$12 sps:$4 sm:$0xff]   ;;  %v4808_v3 = vld [vmem:[%s7232_s4 + $0x90] ss:$12 sps:$4 sm:$0xff]   ;;  %v480_v4 = vpack.c.bf16 %v472_v63, %v471_v62  ;;  %v482_v9 = vld [vmem:[%s5503_s17 + $0x8] sm:$0xff]  ;;  %p5162_p7 = scmp.lt.s32.totalorder %s5160_s27, %s5154_s0 }
  0x74   : > { %v4811_v7 = vld [vmem:[%s7232_s4 + $0xa8] ss:$12 sps:$4 sm:$0xff]   ;;  %v481_v8 = vld [vmem:[%s5503_s17] sm:$0xff]  ;;  %v4821_v12 = vld [vmem:[%s7232_s4 + $0xb0] ss:$12 sps:$4 sm:$0xff]  }
  0x75   : > { %725 = vmatpush1.bf16.msra.mxu0 %v4781_v19  ;;  %v497_v10 = vpack.c.bf16 %v482_v9, %v481_v8  ;;  %v4820_v11 = vld [vmem:[%s7232_s4 + $0x98] ss:$12 sps:$4 sm:$0xff]   ;;  %v483_v13 = vld [vmem:[%s5503_s17 + $0x10] sm:$0xff]  ;;  %v494_v29 = vld [vmem:[%s5503_s17 + $0x68] sm:$0xff]  ;;  %p5163_p9 = por %p5162_p7, %p5161_p5 }
  0x76   : > { %4275 = vmatpush3.bf16.msra.mxu1 %v4780_v17  ;;  %726 = vmatprep.subr.bf16.mxu0 %v4782_v21  ;;  %v484_v14 = vld [vmem:[%s5503_s17 + $0x18] sm:$0xff]  ;;  %v485_v16 = vld [vmem:[%s5503_s17 + $0x20] sm:$0xff]  ;;  %v486_v17 = vld [vmem:[%s5503_s17 + $0x28] sm:$0xff] }
  0x77   : > { %4276 = vmatprep.subr.bf16.mxu1 %v4784_v23  ;;  %v498_v15 = vpack.c.bf16 %v484_v14, %v483_v13  ;;  %v499_v18 = vpack.c.bf16 %v486_v17, %v485_v16  ;;  %v487_v19 = vld [vmem:[%s5503_s17 + $0x30] sm:$0xff]  ;;  %v488_v20 = vld [vmem:[%s5503_s17 + $0x38] sm:$0xff]  ;;  %v493_v28 = vld [vmem:[%s5503_s17 + $0x60] sm:$0xff]  ;;  %p5164_p11 = pnand %p5163_p9, %p5157_p10 }
  0x78   : > { %v500_v21 = vpack.c.bf16 %v488_v20, %v487_v19  ;;  %v495_v31 = vld [vmem:[%s5503_s17 + $0x70] sm:$0xff]  ;;  %v496_v32 = vld [vmem:[%s5503_s17 + $0x78] sm:$0xff]  ;;  %v569_v39 = vld [vmem:[%s7231_s3] sm:$0x7] }
  0x79   : > { %727 = vmatpush1.bf16.msra.mxu0 %v4785_v24 }
  0x7a   : > { %4277 = vmatpush3.bf16.msra.mxu1 %v4784_v23  ;;  %728 = vmatprep.subr.bf16.mxu0 %v4786_v25  ;;  %v490_v23 = vld [vmem:[%s5503_s17 + $0x48] sm:$0xff]  ;;  %v491_v25 = vld [vmem:[%s5503_s17 + $0x50] sm:$0xff] }
  0x7b   : > { %4278 = vmatprep.subr.bf16.mxu1 %v4788_v26 }
  0x7d   : > { %729 = vmatpush1.bf16.msra.mxu0 %v4789_v27 }
  0x7e   : > { %4279 = vmatpush3.bf16.msra.mxu1 %v4788_v26  ;;  %4296 = vmatprep.subr.bf16.mxu0 %v4814_v40  ;;  %v492_v26 = vld [vmem:[%s5503_s17 + $0x58] sm:$0xff] }
  0x7f   : > { %1117 = vmatprep.subr.bf16.mxu1 %v4792_v30  ;;  %v502_v27 = vpack.c.bf16 %v492_v26, %v491_v25  ;;  %v503_v30 = vpack.c.bf16 %v494_v29, %v493_v28 }
  0x80   : > { %747 = vmatmul.mubr.bf16.vlgmr.msra.gmra.mrb[0].mxu0 %v473_v22  ;;  %v489_v22 = vld [vmem:[%s5503_s17 + $0x40] sm:$0xff] }
  0x81   : > { %4281 = vmatmul.mubr.bf16.vlgmr.msra.gmra.mrb[0].mxu1 %v474_v33  ;;  %756 = vmatprep.mubr.bf16.mxu0 %v5262_v0  ;;  %v501_v24 = vpack.c.bf16 %v490_v23, %v489_v22 }
  0x82   : > { %1118 = vmatpush1.bf16.msra.mxu1 %v4790_v34  ;;  %4284 = vmatprep.mubr.bf16.mxu1 %v475_v36  ;;  %v571_v34 = vlaneseq }
  0x83   : > { %1119 = vmatprep.subr.bf16.mxu1 %v4795_v35  ;;  %4297 = vmatpush3.bf16.msra.mxu0 %v4814_v40 }
  0x84   : > { %4298 = vmatprep.subr.bf16.mxu0 %v4815_v43  ;;  %v5701_v35 = vshrl.u32 %v571_v34, 7 }
  0x86   : > { %1120 = vmatpush1.bf16.msra.mxu1 %v4793_v37  ;;  %v5707_v37 = vld [vmem:[%s7233_s5] sm:$0x7]  ;;  %v577_v40 = vsub.s32 1, %v5701_v35 }
  0x87   : > { %1121 = vmatprep.subr.bf16.mxu1 %v4798_v41  ;;  %4299 = vmatpush3.bf16.msra.mxu0 %v4815_v43 }
  0x88   : > { %757 = vmatmul.mubr.bf16.gmra.mrb[4].mxu0 %v474_v33  ;;  %4300 = vmatprep.subr.bf16.mxu0 %v4816_v51  ;;  %v504_v33 = vpack.c.bf16 %v496_v32, %v495_v31  ;;  %v5721_v42 = vrot.slane %v569_v39, %v577_v40 }
  0x89   : > { %4285 = vmatmul.mubr.bf16.gmra.mrb[4].mxu1 %v476_v45  ;;  %766 = vmatprep.mubr.bf16.mxu0 %v5262_v0 }
  0x8a   : > { %1122 = vmatpush1.bf16.msra.mxu1 %v4796_v46  ;;  %4288 = vmatprep.mubr.bf16.mxu1 %v477_v48 }
  0x8b   : > { %1123 = vmatprep.subr.bf16.mxu1 %v4801_v47  ;;  %4301 = vmatpush3.bf16.msra.mxu0 %v4816_v51 }
  0x8c   : > { %4302 = vmatprep.subr.bf16.mxu0 %v4817_v59 }
  0x8e   : > { %1124 = vmatpush1.bf16.msra.mxu1 %v4799_v49 }
  0x8f   : > { %1125 = vmatprep.subr.bf16.mxu1 %v4804_v53  ;;  %4303 = vmatpush3.bf16.msra.mxu0 %v4817_v59 }
  0x90   : > { %767 = vmatmul.mubr.bf16.gmra.mrb[8].mxu0 %v475_v36  ;;  %4304 = vmatprep.subr.bf16.mxu0 %v4818_v1  ;;  %v573_v36 = vsub.s32 0, %v5701_v35 }
  0x91   : > { %4289 = vmatmul.mubr.bf16.gmra.mrb[8].mxu1 %v478_v56  ;;  %776 = vmatprep.mubr.bf16.mxu0 %v5262_v0 }
  0x92   : > { %1126 = vmatpush1.bf16.msra.mxu1 %v4802_v57  ;;  %4292 = vmatprep.mubr.bf16.mxu1 %v479_v60  ;;  %v5710_v38 = vrot.slane %v5707_v37, %v573_v36  ;;  %v5717_v41 = vrot.slane %v569_v39, %v573_v36 }
  0x93   : > { %1127 = vmatprep.subr.bf16.mxu1 %v4807_v58  ;;  %4305 = vmatpush3.bf16.msra.mxu0 %v4818_v1 }
  0x94   : > { %4306 = vmatprep.subr.bf16.mxu0 %v4819_v6 }
  0x96   : > { %1128 = vmatpush1.bf16.msra.mxu1 %v4805_v61 }
  0x97   : > { %1129 = vmatprep.subr.bf16.mxu1 %v4810_v2  ;;  %4307 = vmatpush3.bf16.msra.mxu0 %v4819_v6 }
  0x98   : > { %777 = vmatmul.mubr.bf16.gmra.mrb[12].mxu0 %v476_v45  ;;  %4308 = vmatprep.subr.bf16.mxu0 %v4820_v11 }
  0x99   : > { %4293 = vmatmul.mubr.bf16.gmra.mrb[12].mxu1 %v480_v4  ;;  %786 = vmatprep.mubr.bf16.mxu0 %v5262_v0 }
  0x9a   : > { %1130 = vmatpush1.bf16.msra.mxu1 %v4808_v3  ;;  %1149 = vmatprep.mubr.bf16.mxu1 %v5262_v0 }
  0x9b   : > { %1131 = vmatprep.subr.bf16.mxu1 %v4813_v5  ;;  %4309 = vmatpush3.bf16.msra.mxu0 %v4820_v11 }
  0x9c   : > { %4310 = vmatprep.subr.bf16.mxu0 %v4821_v12 }
  0x9e   : > { %1132 = vmatpush1.bf16.msra.mxu1 %v4811_v7 }
  0x9f   : > { %4311 = vmatpush3.bf16.msra.mxu0 %v4821_v12 }
  0xa0   : > { %787 = vmatmul.mubr.bf16.gmra.mrb[16].mxu0 %v477_v48 }
  0xa1   : > { %1150 = vmatmul.mubr.bf16.vlgmr.msra.gmra.mrb[16].mxu1 %v497_v10  ;;  %796 = vmatprep.mubr.bf16.mxu0 %v5262_v0 }
  0xa2   : > { %1159 = vmatprep.mubr.bf16.mxu1 %v5262_v0 }
  0xa8   : > { %797 = vmatmul.mubr.bf16.gmra.mrb[20].mxu0 %v478_v56 }
  0xa9   : > { %1160 = vmatmul.mubr.bf16.gmra.mrb[20].mxu1 %v498_v15  ;;  %806 = vmatprep.mubr.bf16.mxu0 %v5262_v0 }
  0xaa   : > { %1169 = vmatprep.mubr.bf16.mxu1 %v5262_v0 }
  0xb0   : > { %807 = vmatmul.mubr.bf16.gmra.mrb[24].mxu0 %v479_v60 }
  0xb1   : > { %1170 = vmatmul.mubr.bf16.gmra.mrb[24].mxu1 %v499_v18  ;;  %816 = vmatprep.mubr.bf16.mxu0 %v5262_v0 }
  0xb2   : > { %1179 = vmatprep.mubr.bf16.mxu1 %v5262_v0 }
  0xb8   : > { %817 = vmatmul.mubr.bf16.gmra.mrb[28].mxu0 %v480_v4 }
  0xb9   : > { %1180 = vmatmul.mubr.bf16.gmra.mrb[28].mxu1 %v500_v21  ;;  %4312 = vmatprep.mubr.bf16.mxu0 %v497_v10 }
  0xba   : > { %1189 = vmatprep.mubr.bf16.mxu1 %v5262_v0 }
  0xc0   : > { %4313 = vmatmul.mubr.bf16.vlgmr.msra.gmra.mrb[32].mxu0 %v498_v15 }
  0xc1   : > { %1190 = vmatmul.mubr.bf16.gmra.mrb[32].mxu1 %v501_v24  ;;  %4316 = vmatprep.mubr.bf16.mxu0 %v499_v18 }
  0xc2   : > { %1199 = vmatprep.mubr.bf16.mxu1 %v5262_v0 }
  0xc8   : > { %4317 = vmatmul.mubr.bf16.gmra.mrb[36].mxu0 %v500_v21 }
  0xc9   : > { %1200 = vmatmul.mubr.bf16.gmra.mrb[36].mxu1 %v502_v27  ;;  %4320 = vmatprep.mubr.bf16.mxu0 %v501_v24 }
  0xca   : > { %1209 = vmatprep.mubr.bf16.mxu1 %v5262_v0 }
  0xd0   : > { %4321 = vmatmul.mubr.bf16.gmra.mrb[40].mxu0 %v502_v27 }
  0xd1   : > { %1210 = vmatmul.mubr.bf16.gmra.mrb[40].mxu1 %v503_v30  ;;  %4324 = vmatprep.mubr.bf16.mxu0 %v503_v30 }
  0xd2   : > { %1219 = vmatprep.mubr.bf16.mxu1 %v5262_v0  ;;  %v581_v0 = vsub.s32 2, %v5701_v35 }
  0xd4   : > { %v5725_v43 = vrot.slane %v569_v39, %v581_v0 }
  0xd8   : > { %4325 = vmatmul.mubr.bf16.gmra.mrb[44].mxu0 %v504_v33 }
  0xd9   : > { %1220 = vmatmul.mubr.bf16.gmra.mrb[44].mxu1 %v504_v33 }
 0x153   : > { %v748_v45 = vpop.f32.mrb[0].mxu0 }
 0x154   : > { %v4282_v44 = vpop.f32.mrb[0].mxu1  ;;  %v749_v47 = vadd.f32 %v748_v45, %v5717_v41  ;;  %v750_v48 = vpop.f32.mrb[1].mxu0 }
 0x155   : > { %v861_v46 = vpop.f32.mrb[1].mxu1  ;;  %v751_v50 = vadd.f32 %v750_v48, %v5721_v42  ;;  %v752_v51 = vpop.f32.mrb[2].mxu0  ;;  %v870_v52 = vadd.f32 %v4282_v44, %v5725_v43 }
 0x156   : > { %v4283_v49 = vpop.f32.mrb[2].mxu1  ;;  %v753_v55 = vadd.f32 %v752_v51, %v5717_v41  ;;  %v754_v56 = vpop.f32.mrb[3].mxu0  ;;  %v862_v57 = vadd.f32 %v861_v46, %v5725_v43 }
 0x157   : > { %v873_v53 = vadd.f32 %v4283_v49, %v5725_v43  ;;  %v864_v54 = vpop.f32.mrb[3].mxu1  ;;  %v755_v59 = vadd.f32 %v754_v56, %v5721_v42 }
 0x158   : > { %v865_v58 = vadd.f32 %v864_v54, %v5725_v43  ;;  %v5737_v61 = vpack.c.bf16 %v753_v55, %v749_v47 }
 0x159   : > { %v5735_v60 = vpack.c.bf16 %v873_v53, %v870_v52  ;;  %v5741_v63 = vpack.c.bf16 %v755_v59, %v751_v50 }
 0x15a   : > { %v5739_v62 = vpack.c.bf16 %v865_v58, %v862_v57  ;;  %4344 = vmatprep.mubr.msk.bf16.mxu1 %vm1423_vm0, %v5737_v61 }
 0x15b   : > { %7298 = vst [vmem:[#allocation23_spill] sm:$0xff] %v5735_v60  ;;  %v758_v2 = vpop.f32.mrb[4].mxu0 }
 0x15c   : > { %7299 = vst [vmem:[#allocation24_spill] sm:$0xff] %v5739_v62  ;;  %v4286_v1 = vpop.f32.mrb[4].mxu1  ;;  %v759_v4 = vadd.f32 %v758_v2, %v5717_v41  ;;  %v760_v5 = vpop.f32.mrb[5].mxu0 }
 0x15d   : > { %v877_v3 = vpop.f32.mrb[5].mxu1  ;;  %v761_v7 = vadd.f32 %v760_v5, %v5721_v42  ;;  %v762_v8 = vpop.f32.mrb[6].mxu0  ;;  %v886_v9 = vadd.f32 %v4286_v1, %v5725_v43 }
 0x15e   : > { %v4287_v6 = vpop.f32.mrb[6].mxu1  ;;  %v763_v12 = vadd.f32 %v762_v8, %v5717_v41  ;;  %v764_v13 = vpop.f32.mrb[7].mxu0  ;;  %v878_v14 = vadd.f32 %v877_v3, %v5725_v43 }
 0x15f   : > { %v889_v10 = vadd.f32 %v4287_v6, %v5725_v43  ;;  %v880_v11 = vpop.f32.mrb[7].mxu1  ;;  %v765_v16 = vadd.f32 %v764_v13, %v5721_v42 }
 0x160   : > { %v881_v15 = vadd.f32 %v880_v11, %v5725_v43  ;;  %v5755_v18 = vpack.c.bf16 %v763_v12, %v759_v4 }
 0x161   : > { %v5753_v17 = vpack.c.bf16 %v889_v10, %v886_v9  ;;  %v5759_v20 = vpack.c.bf16 %v765_v16, %v761_v7  ;;  %v5796_v10 = vrot.slane %v5707_v37, %v577_v40 }
 0x162   : > { %v5757_v19 = vpack.c.bf16 %v881_v15, %v878_v14 }
 0x163   : > { %7300 = vst [vmem:[#allocation25_spill] sm:$0xff] %v5753_v17  ;;  %v768_v22 = vpop.f32.mrb[8].mxu0 }
 0x164   : > { %7301 = vst [vmem:[#allocation26_spill] sm:$0xff] %v5757_v19  ;;  %v4290_v21 = vpop.f32.mrb[8].mxu1  ;;  %v769_v24 = vadd.f32 %v768_v22, %v5717_v41  ;;  %v770_v25 = vpop.f32.mrb[9].mxu0 }
 0x165   : > { %v893_v23 = vpop.f32.mrb[9].mxu1  ;;  %v771_v27 = vadd.f32 %v770_v25, %v5721_v42  ;;  %v772_v28 = vpop.f32.mrb[10].mxu0  ;;  %v902_v29 = vadd.f32 %v4290_v21, %v5725_v43 }
 0x166   : > { %v4291_v26 = vpop.f32.mrb[10].mxu1  ;;  %v773_v32 = vadd.f32 %v772_v28, %v5717_v41  ;;  %v774_v33 = vpop.f32.mrb[11].mxu0  ;;  %v894_v34 = vadd.f32 %v893_v23, %v5725_v43 }
 0x167   : > { %v905_v30 = vadd.f32 %v4291_v26, %v5725_v43  ;;  %v896_v31 = vpop.f32.mrb[11].mxu1  ;;  %v775_v39 = vadd.f32 %v774_v33, %v5721_v42 }
 0x168   : > { %v897_v36 = vadd.f32 %v896_v31, %v5725_v43  ;;  %v5771_v45 = vpack.c.bf16 %v773_v32, %v769_v24 }
 0x169   : > { %v5769_v44 = vpack.c.bf16 %v905_v30, %v902_v29  ;;  %v5775_v47 = vpack.c.bf16 %v775_v39, %v771_v27 }
 0x16a   : > { %v5773_v46 = vpack.c.bf16 %v897_v36, %v894_v34 }
 0x16b   : > { %7302 = vst [vmem:[#allocation27_spill] sm:$0xff] %v5769_v44  ;;  %v778_v49 = vpop.f32.mrb[12].mxu0 }
 0x16c   : > { %7303 = vst [vmem:[#allocation28_spill] sm:$0xff] %v5773_v46  ;;  %v4294_v48 = vpop.f32.mrb[12].mxu1  ;;  %v779_v51 = vadd.f32 %v778_v49, %v5717_v41  ;;  %v780_v52 = vpop.f32.mrb[13].mxu0 }
 0x16d   : > { %v909_v50 = vpop.f32.mrb[13].mxu1  ;;  %v781_v54 = vadd.f32 %v780_v52, %v5721_v42  ;;  %v782_v55 = vpop.f32.mrb[14].mxu0  ;;  %v918_v56 = vadd.f32 %v4294_v48, %v5725_v43 }
 0x16e   : > { %v4295_v53 = vpop.f32.mrb[14].mxu1  ;;  %v783_v59 = vadd.f32 %v782_v55, %v5717_v41  ;;  %v784_v1 = vpop.f32.mrb[15].mxu0  ;;  %v910_v2 = vadd.f32 %v909_v50, %v5725_v43 }
 0x16f   : > { %v921_v57 = vadd.f32 %v4295_v53, %v5725_v43  ;;  %v912_v58 = vpop.f32.mrb[15].mxu1  ;;  %v785_v4 = vadd.f32 %v784_v1, %v5721_v42 }
 0x170   : > { %v913_v3 = vadd.f32 %v912_v58, %v5725_v43  ;;  %v5787_v6 = vpack.c.bf16 %v783_v59, %v779_v51 }
 0x171   : > { %v5785_v5 = vpack.c.bf16 %v921_v57, %v918_v56  ;;  %v5791_v8 = vpack.c.bf16 %v785_v4, %v781_v54 }
 0x172   : > { %v5789_v7 = vpack.c.bf16 %v913_v3, %v910_v2 }
 0x173   : > { %7304 = vst [vmem:[#allocation29_spill] sm:$0xff] %v5785_v5  ;;  %v788_v11 = vpop.f32.mrb[16].mxu0 }
 0x174   : > { %7305 = vst [vmem:[#allocation30_spill] sm:$0xff] %v5789_v7  ;;  %v1151_v9 = vpop.f32.mrb[16].mxu1  ;;  %v789_v13 = vadd.f32 %v788_v11, %v5717_v41  ;;  %v790_v14 = vpop.f32.mrb[17].mxu0 }
 0x175   : > { %v1152_v12 = vadd.f32 %v1151_v9, %v5710_v38  ;;  %v1153_v43 = vpop.f32.mrb[17].mxu1  ;;  %v791_v16 = vadd.f32 %v790_v14, %v5721_v42  ;;  %v792_v21 = vpop.f32.mrb[18].mxu0 }
 0x176   : > { %v1155_v15 = vpop.f32.mrb[18].mxu1  ;;  %v793_v24 = vadd.f32 %v792_v21, %v5717_v41  ;;  %v794_v25 = vpop.f32.mrb[19].mxu0  ;;  %v1154_v40 = vadd.f32 %v1153_v43, %v5796_v10 }
 0x177   : > { %v1156_v22 = vadd.f32 %v1155_v15, %v5710_v38  ;;  %v1157_v23 = vpop.f32.mrb[19].mxu1  ;;  %v795_v27 = vadd.f32 %v794_v25, %v5721_v42 }
 0x178   : > { %v1158_v26 = vadd.f32 %v1157_v23, %v5796_v10  ;;  %v5808_v29 = vpack.c.bf16 %v793_v24, %v789_v13 }
 0x179   : > { %v5806_v28 = vpack.c.bf16 %v1156_v22, %v1152_v12  ;;  %v5812_v31 = vpack.c.bf16 %v795_v27, %v791_v16 }
 0x17a   : > { %v5810_v30 = vpack.c.bf16 %v1158_v26, %v1154_v40 }
 0x17b   : > { %v798_v34 = vpop.f32.mrb[20].mxu0 }
 0x17c   : > { %v1161_v32 = vpop.f32.mrb[20].mxu1  ;;  %4664 = vmatprep.subr.msk.bf16.mxu1 %vm1423_vm0, %v5810_v30  ;;  %v1449_v33 = vsel %vm1423_vm0, %v5810_v30, 0  ;;  %v799_v48 = vadd.f32 %v798_v34, %v5717_v41  ;;  %v800_v49 = vpop.f32.mrb[21].mxu0 }
 0x17d   : > { %v1162_v36 = vadd.f32 %v1161_v32, %v5710_v38  ;;  %v1163_v39 = vpop.f32.mrb[21].mxu1  ;;  %4329 = vmatpush3.bf16.xpose.msra.mxu1 %v1449_v33  ;;  %v801_v51 = vadd.f32 %v800_v49, %v5721_v42  ;;  %v802_v52 = vpop.f32.mrb[22].mxu0 }
 0x17e   : > { %v1165_v50 = vpop.f32.mrb[22].mxu1  ;;  %v803_v55 = vadd.f32 %v802_v52, %v5717_v41  ;;  %v804_v56 = vpop.f32.mrb[23].mxu0  ;;  %v1164_v57 = vadd.f32 %v1163_v39, %v5796_v10 }
 0x17f   : > { %v1166_v53 = vadd.f32 %v1165_v50, %v5710_v38  ;;  %v1167_v54 = vpop.f32.mrb[23].mxu1  ;;  %v805_v59 = vadd.f32 %v804_v56, %v5721_v42 }
 0x180   : > { %v1168_v58 = vadd.f32 %v1167_v54, %v5796_v10  ;;  %v5828_v2 = vpack.c.bf16 %v803_v55, %v799_v48 }
 0x181   : > { %v5826_v1 = vpack.c.bf16 %v1166_v53, %v1162_v36  ;;  %v5832_v4 = vpack.c.bf16 %v805_v59, %v801_v51 }
 0x182   : > { %v5830_v3 = vpack.c.bf16 %v1168_v58, %v1164_v57 }
 0x183   : > { %v808_v12 = vpop.f32.mrb[24].mxu0 }
 0x184   : > { %v1171_v9 = vpop.f32.mrb[24].mxu1  ;;  %4665 = vmatprep.subr.msk.bf16.mxu1 %vm1423_vm0, %v5830_v3  ;;  %v1452_v11 = vsel %vm1423_vm0, %v5830_v3, 0  ;;  %v809_v14 = vadd.f32 %v808_v12, %v5717_v41  ;;  %v810_v15 = vpop.f32.mrb[25].mxu0 }
 0x185   : > { %v1172_v43 = vadd.f32 %v1171_v9, %v5710_v38  ;;  %v1173_v13 = vpop.f32.mrb[25].mxu1  ;;  %4331 = vmatpush3.bf16.xpose.msra.mxu1 %v1452_v11  ;;  %v811_v21 = vadd.f32 %v810_v15, %v5721_v42  ;;  %v812_v22 = vpop.f32.mrb[26].mxu0 }
 0x186   : > { %v1175_v16 = vpop.f32.mrb[26].mxu1  ;;  %v813_v25 = vadd.f32 %v812_v22, %v5717_v41  ;;  %v814_v40 = vpop.f32.mrb[27].mxu0  ;;  %v1174_v26 = vadd.f32 %v1173_v13, %v5796_v10  ;;  %v5877_v22 = vrot.slane %v5707_v37, %v581_v0 }
 0x187   : > { %v1176_v23 = vadd.f32 %v1175_v16, %v5710_v38  ;;  %v1177_v24 = vpop.f32.mrb[27].mxu1  ;;  %v815_v32 = vadd.f32 %v814_v40, %v5721_v42 }
 0x188   : > { %v1178_v27 = vadd.f32 %v1177_v24, %v5796_v10  ;;  %v5848_v34 = vpack.c.bf16 %v813_v25, %v809_v14 }
 0x189   : > { %v5846_v33 = vpack.c.bf16 %v1176_v23, %v1172_v43  ;;  %v5852_v39 = vpack.c.bf16 %v815_v32, %v811_v21 }
 0x18a   : > { %v5850_v36 = vpack.c.bf16 %v1178_v27, %v1174_v26 }
 0x18b   : > { %v818_v50 = vpop.f32.mrb[28].mxu0 }
 0x18c   : > { %v1181_v48 = vpop.f32.mrb[28].mxu1  ;;  %4666 = vmatprep.subr.msk.bf16.mxu1 %vm1423_vm0, %v5850_v36  ;;  %v1455_v49 = vsel %vm1423_vm0, %v5850_v36, 0  ;;  %v819_v53 = vadd.f32 %v818_v50, %v5717_v41  ;;  %v820_v54 = vpop.f32.mrb[29].mxu0 }
 0x18d   : > { %v1182_v51 = vadd.f32 %v1181_v48, %v5710_v38  ;;  %v1183_v52 = vpop.f32.mrb[29].mxu1  ;;  %4333 = vmatpush3.bf16.xpose.msra.mxu1 %v1455_v49  ;;  %v821_v56 = vadd.f32 %v820_v54, %v5721_v42  ;;  %v822_v57 = vpop.f32.mrb[30].mxu0 }
 0x18e   : > { %v1185_v55 = vpop.f32.mrb[30].mxu1  ;;  %v823_v9 = vadd.f32 %v822_v57, %v5717_v41  ;;  %v824_v11 = vpop.f32.mrb[31].mxu0  ;;  %v1184_v12 = vadd.f32 %v1183_v52, %v5796_v10 }
 0x18f   : > { %v1186_v58 = vadd.f32 %v1185_v55, %v5710_v38  ;;  %v1187_v59 = vpop.f32.mrb[31].mxu1  ;;  %v825_v13 = vadd.f32 %v824_v11, %v5721_v42 }
 0x190   : > { %v1188_v43 = vadd.f32 %v1187_v59, %v5796_v10  ;;  %v5868_v15 = vpack.c.bf16 %v823_v9, %v819_v53 }
 0x191   : > { %v5866_v14 = vpack.c.bf16 %v1186_v58, %v1182_v51  ;;  %v5872_v21 = vpack.c.bf16 %v825_v13, %v821_v56 }
 0x192   : > { %7306 = vst [vmem:[#allocation31_spill] sm:$0xff] %v5868_v15  ;;  %v5870_v16 = vpack.c.bf16 %v1188_v43, %v1184_v12 }
 0x193   : > { %v4314_v23 = vpop.f32.mrb[32].mxu0 }
 0x194   : > { %v1191_v41 = vpop.f32.mrb[32].mxu1  ;;  %4667 = vmatprep.subr.msk.bf16.mxu1 %vm1423_vm0, %v5870_v16  ;;  %v1458_v42 = vsel %vm1423_vm0, %v5870_v16, 0  ;;  %v1273_v25 = vadd.f32 %v4314_v23, %v5877_v22  ;;  %v1264_v26 = vpop.f32.mrb[33].mxu0 }
 0x195   : > { %v1192_v24 = vadd.f32 %v1191_v41, %v5710_v38  ;;  %v1193_v40 = vpop.f32.mrb[33].mxu1  ;;  %4335 = vmatpush3.bf16.xpose.msra.mxu1 %v1458_v42  ;;  %v1265_v35 = vadd.f32 %v1264_v26, %v5877_v22  ;;  %v4315_v37 = vpop.f32.mrb[34].mxu0 }
 0x196   : > { %v1195_v27 = vpop.f32.mrb[34].mxu1  ;;  %v1276_v32 = vadd.f32 %v4315_v37, %v5877_v22  ;;  %v1267_v49 = vpop.f32.mrb[35].mxu0  ;;  %v1194_v50 = vadd.f32 %v1193_v40, %v5796_v10 }
 0x197   : > { %v1196_v0 = vadd.f32 %v1195_v27, %v5710_v38  ;;  %v1197_v48 = vpop.f32.mrb[35].mxu1  ;;  %v1268_v52 = vadd.f32 %v1267_v49, %v5877_v22 }
 0x198   : > { %v1198_v51 = vadd.f32 %v1197_v48, %v5796_v10  ;;  %v5893_v54 = vpack.c.bf16 %v1276_v32, %v1273_v25 }
 0x199   : > { %v5891_v53 = vpack.c.bf16 %v1196_v0, %v1192_v24  ;;  %v5897_v56 = vpack.c.bf16 %v1268_v52, %v1265_v35 }
 0x19a   : > { %7307 = vst [vmem:[#allocation32_spill] sm:$0xff] %v5893_v54  ;;  %v5895_v55 = vpack.c.bf16 %v1198_v51, %v1194_v50 }
 0x19b   : > { %v4318_v58 = vpop.f32.mrb[36].mxu0  ;;  %4360 = vmatprep.subr.bf16.mxu0 %v5897_v56 }
 0x19c   : > { %v1201_v57 = vpop.f32.mrb[36].mxu1  ;;  %4668 = vmatprep.subr.msk.bf16.mxu1 %vm1423_vm0, %v5895_v55  ;;  %v1461_v59 = vsel %vm1423_vm0, %v5895_v55, 0  ;;  %v1289_v11 = vadd.f32 %v4318_v58, %v5877_v22  ;;  %v1280_v43 = vpop.f32.mrb[37].mxu0  ;;  %4361 = vmatpush3.bf16.msra.mxu0 %v5897_v56 }
 0x19d   : > { %v1202_v9 = vadd.f32 %v1201_v57, %v5710_v38  ;;  %v1203_v12 = vpop.f32.mrb[37].mxu1  ;;  %4337 = vmatpush3.bf16.xpose.msra.mxu1 %v1461_v59  ;;  %v1281_v13 = vadd.f32 %v1280_v43, %v5877_v22  ;;  %v4319_v23 = vpop.f32.mrb[38].mxu0  ;;  %4362 = vmatprep.subr.bf16.mxu0 %v5893_v54 }
 0x19e   : > { %v1205_v41 = vpop.f32.mrb[38].mxu1  ;;  %v1292_v24 = vadd.f32 %v4319_v23, %v5877_v22  ;;  %v1283_v40 = vpop.f32.mrb[39].mxu0  ;;  %v1204_v26 = vadd.f32 %v1203_v12, %v5796_v10 }
 0x19f   : > { %v1206_v42 = vadd.f32 %v1205_v41, %v5710_v38  ;;  %v1207_v25 = vpop.f32.mrb[39].mxu1  ;;  %v1284_v27 = vadd.f32 %v1283_v40, %v5877_v22 }
 0x1a0   : > { %v1208_v35 = vadd.f32 %v1207_v25, %v5796_v10  ;;  %v5916_v0 = vpack.c.bf16 %v1292_v24, %v1289_v11  ;;  %4363 = vmatpush3.bf16.msra.mxu0 %v5893_v54 }
 0x1a1   : > { %v5914_v37 = vpack.c.bf16 %v1206_v42, %v1202_v9  ;;  %v5921_v48 = vpack.c.bf16 %v1284_v27, %v1281_v13 }
 0x1a2   : > { %7308 = vst [vmem:[#allocation33_spill] sm:$0xff] %v5916_v0  ;;  %v5919_v32 = vpack.c.bf16 %v1208_v35, %v1204_v26 }
 0x1a3   : > { %v4322_v50 = vpop.f32.mrb[40].mxu0  ;;  %4364 = vmatprep.subr.bf16.mxu0 %v5921_v48 }
 0x1a4   : > { %v1211_v49 = vpop.f32.mrb[40].mxu1  ;;  %4669 = vmatprep.subr.msk.bf16.mxu1 %vm1423_vm0, %v5919_v32  ;;  %v1464_v51 = vsel %vm1423_vm0, %v5919_v32, 0  ;;  %v1305_v57 = vadd.f32 %v4322_v50, %v5877_v22  ;;  %v1296_v59 = vpop.f32.mrb[41].mxu0  ;;  %4365 = vmatpush3.bf16.msra.mxu0 %v5921_v48 }
 0x1a5   : > { %v1212_v52 = vadd.f32 %v1211_v49, %v5710_v38  ;;  %v1213_v58 = vpop.f32.mrb[41].mxu1  ;;  %4339 = vmatpush3.bf16.xpose.msra.mxu1 %v1464_v51  ;;  %v1297_v9 = vadd.f32 %v1296_v59, %v5877_v22  ;;  %v4323_v12 = vpop.f32.mrb[42].mxu0  ;;  %4366 = vmatprep.subr.bf16.mxu0 %v5916_v0 }
 0x1a6   : > { %v1215_v11 = vpop.f32.mrb[42].mxu1  ;;  %v1308_v13 = vadd.f32 %v4323_v12, %v5877_v22  ;;  %v1299_v23 = vpop.f32.mrb[43].mxu0  ;;  %v1214_v42 = vadd.f32 %v1213_v58, %v5796_v10 }
 0x1a7   : > { %v1216_v43 = vadd.f32 %v1215_v11, %v5710_v38  ;;  %v1217_v41 = vpop.f32.mrb[43].mxu1  ;;  %v1300_v25 = vadd.f32 %v1299_v23, %v5877_v22 }
 0x1a8   : > { %v1218_v24 = vadd.f32 %v1217_v41, %v5796_v10  ;;  %v5940_v26 = vpack.c.bf16 %v1308_v13, %v1305_v57  ;;  %4367 = vmatpush3.bf16.msra.mxu0 %v5916_v0 }
 0x1a9   : > { %v5938_v40 = vpack.c.bf16 %v1216_v43, %v1212_v52  ;;  %v5945_v27 = vpack.c.bf16 %v1300_v25, %v1297_v9 }
 0x1aa   : > { %7309 = vst [vmem:[#allocation34_spill] sm:$0xff] %v5940_v26  ;;  %v5943_v35 = vpack.c.bf16 %v1218_v24, %v1214_v42 }
 0x1ab   : > { %7310 = vst [vmem:[#allocation35_spill] sm:$0xff] %v5945_v27  ;;  %v4326_v50 = vpop.f32.mrb[44].mxu0  ;;  %4368 = vmatprep.subr.bf16.mxu0 %v5945_v27 }
 0x1ac   : > { %v1221_v49 = vpop.f32.mrb[44].mxu1  ;;  %4670 = vmatprep.subr.msk.bf16.mxu1 %vm1423_vm0, %v5943_v35  ;;  %v1467_v51 = vsel %vm1423_vm0, %v5943_v35, 0  ;;  %v1321_v57 = vadd.f32 %v4326_v50, %v5877_v22  ;;  %v1312_v59 = vpop.f32.mrb[45].mxu0  ;;  %4369 = vmatpush3.bf16.msra.mxu0 %v5945_v27 }
 0x1ad   : > { %v1222_v52 = vadd.f32 %v1221_v49, %v5710_v38  ;;  %v1223_v58 = vpop.f32.mrb[45].mxu1  ;;  %4341 = vmatpush3.bf16.xpose.msra.mxu1 %v1467_v51  ;;  %v1313_v9 = vadd.f32 %v1312_v59, %v5877_v22  ;;  %v4327_v12 = vpop.f32.mrb[46].mxu0  ;;  %4370 = vmatprep.subr.bf16.mxu0 %v5940_v26 }
 0x1ae   : > { %v1225_v11 = vpop.f32.mrb[46].mxu1  ;;  %v1324_v13 = vadd.f32 %v4327_v12, %v5877_v22  ;;  %v1315_v23 = vpop.f32.mrb[47].mxu0  ;;  %v1224_v42 = vadd.f32 %v1223_v58, %v5796_v10 }
 0x1af   : > { %v1226_v43 = vadd.f32 %v1225_v11, %v5710_v38  ;;  %v1227_v41 = vpop.f32.mrb[47].mxu1  ;;  %v1316_v25 = vadd.f32 %v1315_v23, %v5877_v22 }
 0x1b0   : > { %v1228_v24 = vadd.f32 %v1227_v41, %v5796_v10  ;;  %v5964_v50 = vpack.c.bf16 %v1324_v13, %v1321_v57  ;;  %4371 = vmatpush3.bf16.msra.mxu0 %v5940_v26 }
 0x1b1   : > { %v5962_v49 = vpack.c.bf16 %v1226_v43, %v1222_v52  ;;  %v5969_v59 = vpack.c.bf16 %v1316_v25, %v1313_v9 }
 0x1b2   : > { %7311 = vst [vmem:[#allocation36_spill] sm:$0xff] %v5964_v50  ;;  %v5967_v51 = vpack.c.bf16 %v1228_v24, %v1224_v42 }
 0x1b3   : > { %7312 = vst [vmem:[#allocation37_spill] sm:$0xff] %v5969_v59  ;;  %4372 = vmatprep.subr.bf16.mxu0 %v5969_v59 }
 0x1b4   : > { %4671 = vmatprep.subr.msk.bf16.mxu1 %vm1423_vm0, %v5967_v51  ;;  %v1470_v38 = vsel %vm1423_vm0, %v5967_v51, 0  ;;  %4373 = vmatpush3.bf16.msra.mxu0 %v5969_v59 }
 0x1b5   : > { %4343 = vmatpush3.bf16.xpose.msra.mxu1 %v1470_v38  ;;  %4374 = vmatprep.subr.bf16.mxu0 %v5964_v50 }
 0x1b6   : > { %4424 = vmatprep.subr.bf16.mxu1 %v5739_v62 }
 0x1b8   : > { %4375 = vmatpush3.bf16.msra.mxu0 %v5964_v50 }
 0x1b9   : > { %4672 = vmatprep.subr.msk.bf16.mxu0 %vm1423_vm0, %v5741_v63 }
 0x1bc   : > { %4345 = vmatmul.mubr.msk.bf16.vlgmr.msra.gmra.mrb[48].mxu1 %vm1423_vm0, %v5755_v18 }
 0x1bd   : > { %4425 = vmatpush3.bf16.msra.mxu1 %v5739_v62  ;;  %4348 = vmatprep.mubr.msk.bf16.mxu1 %vm1423_vm0, %v5771_v45 }
 0x1be   : > { %4426 = vmatprep.subr.bf16.mxu1 %v5735_v60 }
 0x1c1   : > { %4427 = vmatpush3.bf16.msra.mxu1 %v5735_v60 }
 0x1c2   : > { %4428 = vmatprep.subr.bf16.mxu1 %v5757_v19 }
 0x1c4   : > { %4349 = vmatmul.mubr.msk.bf16.gmra.mrb[52].mxu1 %vm1423_vm0, %v5787_v6 }
 0x1c5   : > { %4429 = vmatpush3.bf16.msra.mxu1 %v5757_v19  ;;  %4352 = vmatprep.mubr.msk.bf16.mxu1 %vm1423_vm0, %v5808_v29 }
 0x1c6   : > { %4430 = vmatprep.subr.bf16.mxu1 %v5753_v17 }
 0x1c9   : > { %4431 = vmatpush3.bf16.msra.mxu1 %v5753_v17 }
 0x1ca   : > { %4432 = vmatprep.subr.bf16.mxu1 %v5773_v46 }
 0x1cc   : > { %4353 = vmatmul.mubr.msk.bf16.gmra.mrb[56].mxu1 %vm1423_vm0, %v5828_v2 }
 0x1cd   : > { %4433 = vmatpush3.bf16.msra.mxu1 %v5773_v46  ;;  %4356 = vmatprep.mubr.msk.bf16.mxu1 %vm1423_vm0, %v5848_v34 }
 0x1ce   : > { %4434 = vmatprep.subr.bf16.mxu1 %v5769_v44 }
 0x1d1   : > { %4435 = vmatpush3.bf16.msra.mxu1 %v5769_v44 }
 0x1d2   : > { %4436 = vmatprep.subr.bf16.mxu1 %v5789_v7 }
 0x1d4   : > { %4357 = vmatmul.mubr.msk.bf16.gmra.mrb[60].mxu1 %vm1423_vm0, %v5868_v15 }
 0x1d5   : > { %4437 = vmatpush3.bf16.msra.mxu1 %v5789_v7 }
 0x1d6   : > { %4438 = vmatprep.subr.bf16.mxu1 %v5785_v5 }
 0x1d9   : > { %4439 = vmatpush3.bf16.msra.mxu1 %v5785_v5 }
 0x28f   : > { %v4346_v10 = vpop.f32.mrb[48].mxu1 }
 0x290   : > { %1573 = vmax.xlane.f32.xlu1 %v4346_v10  ;;  %v1506_v22 = vpop.f32.mrb[49].mxu1 }
 0x291   : > { %1569 = vmax.xlane.f32.xlu0 %v1506_v22  ;;  %v4347_v52 = vpop.f32.mrb[50].mxu1 }
 0x292   : > { %v1509_v57 = vpop.f32.mrb[51].mxu1 }
 0x294   : > { %1575 = vmax.xlane.f32.xlu1 %v4347_v52 }
 0x295   : > { %1571 = vmax.xlane.f32.xlu0 %v1509_v57 }
 0x297   : > { %v4350_v58 = vpop.f32.mrb[52].mxu1 }
 0x298   : > { %v1522_v9 = vpop.f32.mrb[53].mxu1 }
 0x299   : > { %1577 = vmax.xlane.f32.xlu0 %v1522_v9  ;;  %v4351_v11 = vpop.f32.mrb[54].mxu1 }
 0x29a   : > { %v1525_v12 = vpop.f32.mrb[55].mxu1 }
 0x29b   : > { %1579 = vmax.xlane.f32.xlu1 %v1525_v12 }
 0x29d   : > { %1581 = vmax.xlane.f32.xlu0 %v4350_v58 }
 0x29f   : > { %1583 = vmax.xlane.f32.xlu1 %v4351_v11  ;;  %v6011_v43 = vpop.f32.mrb[56].mxu1 }
 0x2a0   : > { %v1538_v13 = vpop.f32.mrb[57].mxu1 }
 0x2a1   : > { %1585 = vmax.xlane.f32.xlu0 %v1538_v13  ;;  %v6013_v41 = vpop.f32.mrb[58].mxu1 }
 0x2a2   : > { %v1541_v23 = vpop.f32.mrb[59].mxu1 }
 0x2a3   : > { %1587 = vmax.xlane.f32.xlu1 %v1541_v23 }
 0x2a5   : > { %1589 = vmax.xlane.f32.xlu0 %v6011_v43 }
 0x2a7   : > { %1591 = vmax.xlane.f32.xlu1 %v6013_v41  ;;  %v6017_v42 = vpop.f32.mrb[60].mxu1 }
 0x2a8   : > { %v6019_v24 = vpop.f32.mrb[61].mxu1 }
 0x2a9   : > { %1593 = vmax.xlane.f32.xlu0 %v6019_v24  ;;  %v6022_v25 = vpop.f32.mrb[62].mxu1 }
 0x2aa   : > { %v6024_v38 = vpop.f32.mrb[63].mxu1 }
 0x2ab   : > { %1595 = vmax.xlane.f32.xlu1 %v6024_v38 }
 0x2ad   : > { %1597 = vmax.xlane.f32.xlu0 %v6017_v42 }
 0x2af   : > { %1599 = vmax.xlane.f32.xlu1 %v6022_v25 }
 0x2c0   : > { %2326 = vrot.lane.b32.xlu1 %v5830_v3, %s5263_s23 }
 0x2c3   : > { %2324 = vrot.lane.b32.xlu0 %v5810_v30, %s5263_s23 }
 0x2c7   : > { %2328 = vrot.lane.b32.xlu0 %v5850_v36, %s5263_s23 }
 0x31d   : > { %v1574_v5 = vpop.xlane.xlu1 %1573 }
 0x31e   : > { %v1570_v7 = vpop.xlane.xlu0 %1569  ;;  %v1603_v17 = vsub.f32 %v4346_v10, %v1574_v5 }
 0x31f   : > { %v1601_v44 = vsub.f32 %v1506_v22, %v1570_v7 }
 0x320   : > { %v1621_v26 = vmul.f32 1.442695, %v1603_v17 }
 0x321   : > { %v1617_v19 = vmul.f32 1.442695, %v1601_v44  ;;  %v1576_v62 = vpop.xlane.xlu1 %1575 }
 0x322   : > { %v1604_v46 = vsub.f32 %v4347_v52, %v1576_v62  ;;  %v1572_v60 = vpop.xlane.xlu0 %1571 }
 0x323   : > { %v1602_v50 = vsub.f32 %v1509_v57, %v1572_v60  ;;  %4838 = vpow2.f32 %v1617_v19 }
 0x324   : > { %v1623_v27 = vmul.f32 1.442695, %v1604_v46 }
 0x325   : > { %v1619_v0 = vmul.f32 1.442695, %v1602_v50 }
 0x326   : > { %4840 = vpow2.f32 %v1623_v27  ;;  %v1578_v3 = vpop.xlane.xlu0 %1577 }
 0x327   : > { %4842 = vpow2.f32 %v1619_v0  ;;  %v1605_v30 = vsub.f32 %v1522_v9, %v1578_v3 }
 0x328   : > { %4844 = vpow2.f32 %v1621_v26  ;;  %v1580_v54 = vpop.xlane.xlu1 %1579 }
 0x329   : > { %v1625_v36 = vmul.f32 1.442695, %v1605_v30  ;;  %v1606_v59 = vsub.f32 %v1525_v12, %v1580_v54 }
 0x32a   : > { %v1582_v15 = vpop.xlane.xlu0 %1581 }
 0x32b   : > { %v1627_v7 = vmul.f32 1.442695, %v1606_v59  ;;  %v1607_v5 = vsub.f32 %v4350_v58, %v1582_v15  ;;  %4846 = vpow2.f32 %v1625_v36 }
 0x32c   : > { %v1584_v44 = vpop.xlane.xlu1 %1583 }
 0x32d   : > { %4848 = vpow2.f32 %v1627_v7  ;;  %v1629_v62 = vmul.f32 1.442695, %v1607_v5  ;;  %v1608_v60 = vsub.f32 %v4351_v11, %v1584_v44  ;;  %v6035_v46 = vpop.eup %4838 }
 0x32e   : > { %v1586_v17 = vpop.xlane.xlu0 %1585 }
 0x32f   : > { %v1631_v19 = vmul.f32 1.442695, %v1608_v60  ;;  %v1609_v27 = vsub.f32 %v1538_v13, %v1586_v17  ;;  %4850 = vpow2.f32 %v1629_v62  ;;  %v1859_v13 = vsel %vm1423_vm0, %v5741_v63, 0 }
 0x330   : > { %v6037_v50 = vpop.eup %4840  ;;  %v1588_v0 = vpop.xlane.xlu1 %1587 }
 0x331   : > { %v6039_v26 = vpop.eup %4842  ;;  %4852 = vpow2.f32 %v1631_v19  ;;  %v1633_v54 = vmul.f32 1.442695, %v1609_v27  ;;  %v1610_v59 = vsub.f32 %v1541_v23, %v1588_v0 }
 0x332   : > { %v6041_v15 = vpop.eup %4844  ;;  %v1590_v10 = vpop.xlane.xlu0 %1589  ;;  %v1681_v22 = vpack.c.bf16 %v6039_v26, %v6035_v46 }
 0x333   : > { %v1635_v52 = vmul.f32 1.442695, %v1610_v59  ;;  %v1611_v57 = vsub.f32 %v6011_v43, %v1590_v10  ;;  %v1682_v58 = vpack.c.bf16 %v6037_v50, %v6041_v15  ;;  %4854 = vpow2.f32 %v1633_v54 }
 0x334   : > { %4376 = vmatprep.mubr.bf16.mxu0 %v1681_v22  ;;  %v1592_v9 = vpop.xlane.xlu1 %1591 }
 0x335   : > { %4856 = vpow2.f32 %v1635_v52  ;;  %v1637_v11 = vmul.f32 1.442695, %v1611_v57  ;;  %v1612_v12 = vsub.f32 %v6013_v41, %v1592_v9  ;;  %4377 = vmatmul.mubr.bf16.vlgmr.msra.gmra.mrb[48].mxu0 %v1682_v58  ;;  %v6051_v23 = vpop.eup %4846 }
 0x336   : > { %4393 = vmatpush3.bf16.xpose.msra.mxu0 %v1859_v13  ;;  %v1594_v3 = vpop.xlane.xlu0 %1593 }
 0x337   : > { %v6053_v30 = vpop.eup %4848  ;;  %v1639_v43 = vmul.f32 1.442695, %v1612_v12  ;;  %4673 = vmatprep.subr.msk.bf16.mxu0 %vm1423_vm0, %v5759_v20  ;;  %v1613_v36 = vsub.f32 %v6019_v24, %v1594_v3  ;;  %4858 = vpow2.f32 %v1637_v11  ;;  %v1865_v11 = vsel %vm1423_vm0, %v5775_v47, 0 }
 0x338   : > { %v1596_v7 = vpop.xlane.xlu1 %1595  ;;  %v1683_v41 = vpack.c.bf16 %v6053_v30, %v6051_v23 }
 0x339   : > { %4860 = vpow2.f32 %v1639_v43  ;;  %v1641_v5 = vmul.f32 1.442695, %v1613_v36  ;;  %v1614_v44 = vsub.f32 %v6024_v38, %v1596_v7  ;;  %v6061_v62 = vpop.eup %4850  ;;  %v1862_v38 = vsel %vm1423_vm0, %v5759_v20, 0 }
 0x33a   : > { %4380 = vmatprep.mubr.bf16.mxu0 %v1683_v41  ;;  %v1598_v60 = vpop.xlane.xlu0 %1597  ;;  %v1868_v41 = vsel %vm1423_vm0, %v5791_v8, 0 }
 0x33b   : > { %v6063_v17 = vpop.eup %4852  ;;  %v1643_v19 = vmul.f32 1.442695, %v1614_v44  ;;  %v1615_v27 = vsub.f32 %v6017_v42, %v1598_v60  ;;  %4862 = vpow2.f32 %v1641_v5  ;;  %v1871_v5 = vsel %vm1423_vm0, %v5812_v31, 0 }
 0x33c   : > { %v1600_v24 = vpop.xlane.xlu1 %1599  ;;  %v1684_v0 = vpack.c.bf16 %v6063_v17, %v6061_v62  ;;  %v1874_v44 = vsel %vm1423_vm0, %v5832_v4, 0  ;;  %v1877_v60 = vsel %vm1423_vm0, %v5852_v39, 0 }
 0x33d   : > { %4864 = vpow2.f32 %v1643_v19  ;;  %v1645_v54 = vmul.f32 1.442695, %v1615_v27  ;;  %v1616_v59 = vsub.f32 %v6022_v25, %v1600_v24  ;;  %v6071_v10 = vpop.eup %4854  ;;  %v1880_v19 = vsel %vm1423_vm0, %v5872_v21, 0 }
 0x33e   : > { %4395 = vmatpush3.bf16.xpose.msra.mxu0 %v1862_v38  ;;  %v6073_v22 = vpop.permute.xlu0 %2324 }
 0x33f   : > { %v6075_v52 = vpop.eup %4856  ;;  %v1647_v42 = vmul.f32 1.442695, %v1616_v59  ;;  %4381 = vmatmul.mubr.bf16.gmra.mrb[52].mxu0 %v1684_v0  ;;  %4674 = vmatprep.subr.msk.bf16.mxu0 %vm1423_vm0, %v5775_v47  ;;  %4866 = vpow2.f32 %v1645_v54 }
 0x340   : > { %4680 = vmatprep.subr.msk.bf16.mxu1 %vm1423_vm0, %v6073_v22  ;;  %v1685_v25 = vpack.c.bf16 %v6075_v52, %v6071_v10 }
 0x341   : > { %4868 = vpow2.f32 %v1647_v42  ;;  %v6083_v57 = vpop.eup %4858 }
 0x342   : > { %4384 = vmatprep.mubr.bf16.mxu0 %v1685_v25 }
 0x343   : > { %v6085_v58 = vpop.eup %4860 }
 0x344   : > { %v1686_v9 = vpack.c.bf16 %v6085_v58, %v6083_v57 }
 0x345   : > { %v6091_v12 = vpop.eup %4862 }
 0x346   : > { %4397 = vmatpush3.bf16.xpose.msra.mxu0 %v1865_v11 }
 0x347   : > { %v6093_v13 = vpop.eup %4864  ;;  %4385 = vmatmul.mubr.bf16.gmra.mrb[56].mxu0 %v1686_v9  ;;  %4675 = vmatprep.subr.msk.bf16.mxu0 %vm1423_vm0, %v5791_v8 }
 0x348   : > { %v1687_v3 = vpack.c.bf16 %v6093_v13, %v6091_v12 }
 0x349   : > { %v6099_v43 = vpop.eup %4866 }
 0x34a   : > { %4388 = vmatprep.mubr.bf16.mxu0 %v1687_v3 }
 0x34b   : > { %v6101_v36 = vpop.eup %4868 }
 0x34c   : > { %v1688_v7 = vpack.c.bf16 %v6101_v36, %v6099_v43 }
 0x34e   : > { %4399 = vmatpush3.bf16.xpose.msra.mxu0 %v1868_v41 }
 0x34f   : > { %4389 = vmatmul.mubr.bf16.gmra.mrb[60].mxu0 %v1688_v7  ;;  %4676 = vmatprep.subr.msk.bf16.mxu0 %vm1423_vm0, %v5812_v31 }
 0x350   : > { %4408 = vmatprep.mubr.msk.bf16.mxu0 %vm1423_vm0, %v5806_v28 }
 0x356   : > { %4401 = vmatpush3.bf16.xpose.msra.mxu0 %v1871_v5 }
 0x357   : > { %4677 = vmatprep.subr.msk.bf16.mxu0 %vm1423_vm0, %v5832_v4 }
 0x35e   : > { %4403 = vmatpush3.bf16.xpose.msra.mxu0 %v1874_v44 }
 0x35f   : > { %4678 = vmatprep.subr.msk.bf16.mxu0 %vm1423_vm0, %v5852_v39 }
 0x366   : > { %4405 = vmatpush3.bf16.xpose.msra.mxu0 %v1877_v60 }
 0x367   : > { %4679 = vmatprep.subr.msk.bf16.mxu0 %vm1423_vm0, %v5872_v21 }
 0x36e   : > { %4407 = vmatpush3.bf16.xpose.msra.mxu0 %v1880_v19 }
 0x375   : > { %4409 = vmatmul.mubr.msk.bf16.vlgmr.msra.gmra.mrb[64].mxu0 %vm1423_vm0, %v5826_v1 }
 0x376   : > { %4412 = vmatprep.mubr.msk.bf16.mxu0 %vm1423_vm0, %v5846_v33 }
 0x37d   : > { %4413 = vmatmul.mubr.msk.bf16.gmra.mrb[68].mxu0 %vm1423_vm0, %v5866_v14 }
 0x37e   : > { %4416 = vmatprep.mubr.msk.bf16.mxu0 %vm1423_vm0, %v5891_v53 }
 0x385   : > { %4417 = vmatmul.mubr.msk.bf16.gmra.mrb[72].mxu0 %vm1423_vm0, %v5914_v37 }
 0x386   : > { %4420 = vmatprep.mubr.msk.bf16.mxu0 %vm1423_vm0, %v5938_v40 }
 0x38d   : > { %4421 = vmatmul.mubr.msk.bf16.gmra.mrb[76].mxu0 %vm1423_vm0, %v5962_v49 }
 0x408   : > { %v6139_v27 = vpop.f32.mrb[48].mxu0 }
 0x409   : > { %7313 = vst [vmem:[#allocation38_spill] sm:$0xff] %v6139_v27  ;;  %v6141_v24 = vpop.f32.mrb[49].mxu0 }
 0x40a   : > { %7314 = vst [vmem:[#allocation39_spill] sm:$0xff] %v6141_v24  ;;  %v6143_v0 = vpop.f32.mrb[50].mxu0 }
 0x40b   : > { %7315 = vst [vmem:[#allocation40_spill] sm:$0xff] %v6143_v0  ;;  %v6145_v54 = vpop.f32.mrb[51].mxu0 }
 0x40c   : > { %7316 = vst [vmem:[#allocation41_spill] sm:$0xff] %v6145_v54 }
 0x412   : > { %v6147_v59 = vpop.f32.mrb[52].mxu0 }
 0x413   : > { %7317 = vst [vmem:[#allocation42_spill] sm:$0xff] %v6147_v59  ;;  %v6149_v38 = vpop.f32.mrb[53].mxu0 }
 0x414   : > { %7318 = vst [vmem:[#allocation43_spill] sm:$0xff] %v6149_v38  ;;  %v6151_v42 = vpop.f32.mrb[54].mxu0 }
 0x415   : > { %7319 = vst [vmem:[#allocation44_spill] sm:$0xff] %v6151_v42  ;;  %v6153_v25 = vpop.f32.mrb[55].mxu0 }
 0x416   : > { %7320 = vst [vmem:[#allocation45_spill] sm:$0xff] %v6153_v25 }
 0x41a   : > { %v6155_v9 = vpop.f32.mrb[56].mxu0 }
 0x41b   : > { %7321 = vst [vmem:[#allocation46_spill] sm:$0xff] %v6155_v9  ;;  %v6157_v11 = vpop.f32.mrb[57].mxu0 }
 0x41c   : > { %7322 = vst [vmem:[#allocation47_spill] sm:$0xff] %v6157_v11  ;;  %v6159_v3 = vpop.f32.mrb[58].mxu0 }
 0x41d   : > { %7323 = vst [vmem:[#allocation48_spill] sm:$0xff] %v6159_v3  ;;  %v6161_v7 = vpop.f32.mrb[59].mxu0 }
 0x41e   : > { %7324 = vst [vmem:[#allocation49_spill] sm:$0xff] %v6161_v7 }
 0x422   : > { %v6163_v41 = vpop.f32.mrb[60].mxu0 }
 0x423   : > { %7325 = vst [vmem:[#allocation50_spill] sm:$0xff] %v6163_v41  ;;  %v6165_v5 = vpop.f32.mrb[61].mxu0 }
 0x424   : > { %7326 = vst [vmem:[#allocation51_spill] sm:$0xff] %v6165_v5  ;;  %v6167_v44 = vpop.f32.mrb[62].mxu0 }
 0x425   : > { %7327 = vst [vmem:[#allocation52_spill] sm:$0xff] %v6167_v44  ;;  %v6169_v60 = vpop.f32.mrb[63].mxu0 }
 0x426   : > { %7328 = vst [vmem:[#allocation53_spill] sm:$0xff] %v6169_v60 }
 0x448   : > { %v6171_v19 = vpop.f32.mrb[64].mxu0 }
 0x449   : > { %1983 = vmax.xlane.f32.xlu0 %v6171_v19  ;;  %v6174_v42 = vpop.f32.mrb[65].mxu0 }
 0x44a   : > { %v4411_v9 = vpop.f32.mrb[66].mxu0 }
 0x44b   : > { %1985 = vmax.xlane.f32.xlu1 %v4411_v9  ;;  %v6176_v11 = vpop.f32.mrb[67].mxu0 }
 0x44d   : > { %1979 = vmax.xlane.f32.xlu0 %v6174_v42 }
 0x44f   : > { %1981 = vmax.xlane.f32.xlu1 %v6176_v11 }
 0x450   : > { %v6180_v41 = vpop.f32.mrb[68].mxu0 }
 0x451   : > { %v6182_v5 = vpop.f32.mrb[69].mxu0 }
 0x452   : > { %v6184_v44 = vpop.f32.mrb[70].mxu0 }
 0x453   : > { %v6186_v60 = vpop.f32.mrb[71].mxu0 }
 0x458   : > { %v6188_v3 = vpop.f32.mrb[72].mxu0 }
 0x459   : > { %v6190_v7 = vpop.f32.mrb[73].mxu0 }
 0x45a   : > { %v6192_v59 = vpop.f32.mrb[74].mxu0 }
 0x45b   : > { %v6194_v25 = vpop.f32.mrb[75].mxu0 }
 0x460   : > { %2330 = vrot.lane.b32.xlu1 %v5870_v16, %s5263_s23  ;;  %v6198_v38 = vpop.f32.mrb[76].mxu0  ;;  %v2327_v16 = vpop.permute.xlu1 %2326 }
 0x461   : > { %v6200_v0 = vpop.f32.mrb[77].mxu0 }
 0x462   : > { %v6202_v27 = vpop.f32.mrb[78].mxu0 }
 0x463   : > { %2332 = vrot.lane.b32.xlu0 %v5895_v55, %s5263_s23  ;;  %v6206_v54 = vpop.f32.mrb[79].mxu0  ;;  %v7335_v55 = vld [vmem:[#allocation36_spill] sm:$0xff] }
 0x482   : > { %1991 = vmax.xlane.f32.xlu0 %v6180_v41 }
 0x484   : > { %1987 = vmax.xlane.f32.xlu1 %v6182_v5 }
 0x486   : > { %1995 = vmax.xlane.f32.xlu0 %v6190_v7 }
 0x488   : > { %1993 = vmax.xlane.f32.xlu1 %v6184_v44 }
 0x48a   : > { %1997 = vmax.xlane.f32.xlu0 %v6194_v25 }
 0x48c   : > { %1989 = vmax.xlane.f32.xlu1 %v6186_v60 }
 0x48e   : > { %2007 = vmax.xlane.f32.xlu0 %v6198_v38 }
 0x490   : > { %1999 = vmax.xlane.f32.xlu1 %v6188_v3 }
 0x494   : > { %2001 = vmax.xlane.f32.xlu1 %v6192_v59 }
 0x498   : > { %2003 = vmax.xlane.f32.xlu1 %v6200_v0 }
 0x49c   : > { %2009 = vmax.xlane.f32.xlu1 %v6202_v27 }
 0x4a0   : > { %2005 = vmax.xlane.f32.xlu1 %v6206_v54 }
 0x4a4   : > { %2336 = vrot.lane.b32.xlu0 %v5943_v35, %s5263_s23 }
 0x4a8   : > { %2338 = vrot.lane.b32.xlu0 %v5967_v51, %s5263_s23 }
 0x4ac   : > { %2300 = vrot.lane.b32.xlu0 %v5737_v61, %s5263_s23  ;;  %v7329_v61 = vld [vmem:[#allocation31_spill] sm:$0xff] }
 0x4b0   : > { %2304 = vrot.lane.b32.xlu0 %v5771_v45, %s5263_s23  ;;  %v7331_v45 = vld [vmem:[#allocation32_spill] sm:$0xff] }
 0x4b1   : > { %2334 = vrot.lane.b32.xlu1 %v5919_v32, %s5263_s23 }
 0x4b4   : > { %2308 = vrot.lane.b32.xlu0 %v5808_v29, %s5263_s23  ;;  %v7333_v29 = vld [vmem:[#allocation35_spill] sm:$0xff] }
 0x4b5   : > { %2302 = vrot.lane.b32.xlu1 %v5755_v18, %s5263_s23  ;;  %v7330_v18 = vld [vmem:[#allocation37_spill] sm:$0xff] }
 0x4b8   : > { %2312 = vrot.lane.b32.xlu0 %v5848_v34, %s5263_s23  ;;  %v2329_v34 = vpop.permute.xlu0 %2328 }
 0x4b9   : > { %2306 = vrot.lane.b32.xlu1 %v5787_v6, %s5263_s23  ;;  %v7332_v6 = vld [vmem:[#allocation33_spill] sm:$0xff] }
 0x4bc   : > { %2613 = vrot.lane.b32.xlu0 %v5897_v56, %s5263_s23 }
 0x4bd   : > { %2310 = vrot.lane.b32.xlu1 %v5828_v2, %s5263_s23  ;;  %v7334_v2 = vld [vmem:[#allocation34_spill] sm:$0xff] }
 0x4c0   : > { %2617 = vrot.lane.b32.xlu0 %v5921_v48, %s5263_s23 }
 0x4c1   : > { %2314 = vrot.lane.b32.xlu1 %v7329_v61, %s5263_s23 }
 0x4c4   : > { %2625 = vrot.lane.b32.xlu0 %v7330_v18, %s5263_s23 }
 0x4c5   : > { %2615 = vrot.lane.b32.xlu1 %v7331_v45, %s5263_s23 }
 0x4c8   : > { %2847 = vrot.lane.b32.xlu0 %v5741_v63, %s5263_s23 }
 0x4c9   : > { %2619 = vrot.lane.b32.xlu1 %v7332_v6, %s5263_s23 }
 0x4cc   : > { %2849 = vrot.lane.b32.xlu0 %v5759_v20, %s5263_s23 }
 0x4cd   : > { %2621 = vrot.lane.b32.xlu1 %v7333_v29, %s5263_s23 }
 0x4d0   : > { %2853 = vrot.lane.b32.xlu0 %v5791_v8, %s5263_s23 }
 0x4d1   : > { %2623 = vrot.lane.b32.xlu1 %v7334_v2, %s5263_s23  ;;  %v2365_v2 = vsel %vm1423_vm0, %v6073_v22, 0 }
 0x4d5   : > { %2627 = vrot.lane.b32.xlu1 %v7335_v55, %s5263_s23  ;;  %v2368_v55 = vsel %vm1423_vm0, %v2327_v16, 0 }
 0x4d6   : > { %v1984_v63 = vpop.xlane.xlu0 %1983 }
 0x4d7   : > { %v2013_v20 = vsub.f32 %v6171_v19, %v1984_v63  ;;  %v2371_v63 = vsel %vm1423_vm0, %v2329_v34, 0 }
 0x4d8   : > { %v1986_v56 = vpop.xlane.xlu1 %1985 }
 0x4d9   : > { %v2014_v32 = vsub.f32 %v4411_v9, %v1986_v56  ;;  %2851 = vrot.lane.b32.xlu1 %v5775_v47, %s5263_s23  ;;  %v2031_v45 = vmul.f32 1.442695, %v2013_v20 }
 0x4da   : > { %v1980_v48 = vpop.xlane.xlu0 %1979 }
 0x4db   : > { %v2033_v35 = vmul.f32 1.442695, %v2014_v32  ;;  %v2011_v8 = vsub.f32 %v6174_v42, %v1980_v48 }
 0x4dc   : > { %v1982_v51 = vpop.xlane.xlu1 %1981 }
 0x4dd   : > { %v2027_v61 = vmul.f32 1.442695, %v2011_v8  ;;  %v2012_v18 = vsub.f32 %v6176_v11, %v1982_v51  ;;  %4870 = vpow2.f32 %v2033_v35 }
 0x4de   : > { %v2333_v20 = vpop.permute.xlu0 %2332 }
 0x4df   : > { %v2029_v6 = vmul.f32 1.442695, %v2012_v18  ;;  %4872 = vpow2.f32 %v2027_v61  ;;  %v2377_v48 = vsel %vm1423_vm0, %v2333_v20, 0 }
 0x4e0   : > { %v2331_v56 = vpop.permute.xlu1 %2330 }
 0x4e1   : > { %4874 = vpow2.f32 %v2029_v6  ;;  %v2374_v32 = vsel %vm1423_vm0, %v2331_v56, 0 }
 0x4e2   : > { %4876 = vpow2.f32 %v2031_v45 }
 0x4e7   : > { %v6269_v9 = vpop.eup %4870 }
 0x4e8   : > { %7336 = vst [vmem:[#allocation31_spill] sm:$0xff] %v6269_v9 }
 0x4e9   : > { %v6271_v29 = vpop.eup %4872 }
 0x4ea   : > { %7337 = vst [vmem:[#allocation37_spill] sm:$0xff] %v6271_v29 }
 0x4eb   : > { %v6273_v47 = vpop.eup %4874 }
 0x4ec   : > { %v6275_v19 = vpop.eup %4876  ;;  %v2091_v42 = vpack.c.bf16 %v6273_v47, %v6271_v29 }
 0x4ed   : > { %7338 = vst [vmem:[#allocation32_spill] sm:$0xff] %v6275_v19  ;;  %v2092_v11 = vpack.c.bf16 %v6269_v9, %v6275_v19 }
 0x4ee   : > { %4440 = vmatprep.mubr.bf16.mxu1 %v2091_v42 }
 0x4ef   : > { %4441 = vmatmul.mubr.bf16.vlgmr.msra.gmra.mrb[64].mxu1 %v2092_v11 }
 0x4f0   : > { %4457 = vmatpush3.bf16.xpose.msra.mxu1 %v2365_v2 }
 0x4f1   : > { %4681 = vmatprep.subr.msk.bf16.mxu1 %vm1423_vm0, %v2327_v16 }
 0x4f8   : > { %4459 = vmatpush3.bf16.xpose.msra.mxu1 %v2368_v55 }
 0x4f9   : > { %4682 = vmatprep.subr.msk.bf16.mxu1 %vm1423_vm0, %v2329_v34 }
 0x500   : > { %4461 = vmatpush3.bf16.xpose.msra.mxu1 %v2371_v63 }
 0x501   : > { %4683 = vmatprep.subr.msk.bf16.mxu1 %vm1423_vm0, %v2331_v56 }
 0x508   : > { %4463 = vmatpush3.bf16.xpose.msra.mxu1 %v2374_v32 }
 0x509   : > { %4684 = vmatprep.subr.msk.bf16.mxu1 %vm1423_vm0, %v2333_v20 }
 0x50f   : > { %v1992_v22 = vpop.xlane.xlu0 %1991 }
 0x510   : > { %4465 = vmatpush3.bf16.xpose.msra.mxu1 %v2377_v48  ;;  %v2017_v61 = vsub.f32 %v6180_v41, %v1992_v22 }
 0x511   : > { %v1988_v16 = vpop.xlane.xlu1 %1987 }
 0x512   : > { %v2015_v35 = vsub.f32 %v6182_v5, %v1988_v16  ;;  %v2039_v56 = vmul.f32 1.442695, %v2017_v61 }
 0x513   : > { %v1996_v8 = vpop.xlane.xlu0 %1995 }
 0x514   : > { %v2035_v18 = vmul.f32 1.442695, %v2015_v35  ;;  %v2019_v6 = vsub.f32 %v6190_v7, %v1996_v8 }
 0x515   : > { %v1994_v51 = vpop.xlane.xlu1 %1993 }
 0x516   : > { %v2018_v34 = vsub.f32 %v6184_v44, %v1994_v51  ;;  %4878 = vpow2.f32 %v2035_v18  ;;  %v2043_v32 = vmul.f32 1.442695, %v2019_v6 }
 0x517   : > { %v1998_v45 = vpop.xlane.xlu0 %1997 }
 0x518   : > { %v2041_v42 = vmul.f32 1.442695, %v2018_v34  ;;  %v2020_v11 = vsub.f32 %v6194_v25, %v1998_v45 }
 0x519   : > { %v1990_v2 = vpop.xlane.xlu1 %1989 }
 0x51a   : > { %v2045_v55 = vmul.f32 1.442695, %v2020_v11  ;;  %v2016_v63 = vsub.f32 %v6186_v60, %v1990_v2  ;;  %4880 = vpow2.f32 %v2041_v42 }
 0x51b   : > { %v2008_v5 = vpop.xlane.xlu0 %2007 }
 0x51c   : > { %v2037_v20 = vmul.f32 1.442695, %v2016_v63  ;;  %4882 = vpow2.f32 %v2045_v55  ;;  %v2025_v55 = vsub.f32 %v6198_v38, %v2008_v5 }
 0x51d   : > { %v2000_v44 = vpop.xlane.xlu1 %1999 }
 0x51e   : > { %4884 = vpow2.f32 %v2037_v20  ;;  %v2021_v41 = vsub.f32 %v6188_v3, %v2000_v44 }
 0x51f   : > { %4886 = vpow2.f32 %v2039_v56  ;;  %v2337_v7 = vpop.permute.xlu0 %2336 }
 0x520   : > { %4888 = vpow2.f32 %v2043_v32  ;;  %v2047_v22 = vmul.f32 1.442695, %v2021_v41  ;;  %v6301_v35 = vpop.eup %4878 }
 0x521   : > { %v2002_v25 = vpop.xlane.xlu1 %2001  ;;  %7339 = vst [vmem:[#allocation33_spill] sm:$0xff] %v6301_v35 }
 0x522   : > { %v2022_v48 = vsub.f32 %v6192_v59, %v2002_v25  ;;  %4890 = vpow2.f32 %v2047_v22 }
 0x523   : > { %v6299_v16 = vpop.permute.xlu0 %2338 }
 0x524   : > { %v2049_v60 = vmul.f32 1.442695, %v2022_v48  ;;  %v6303_v51 = vpop.eup %4880 }
 0x525   : > { %v2004_v8 = vpop.xlane.xlu1 %2003  ;;  %7340 = vst [vmem:[#allocation35_spill] sm:$0xff] %v6303_v51 }
 0x526   : > { %4892 = vpow2.f32 %v2049_v60  ;;  %v6305_v34 = vpop.eup %4882  ;;  %v2023_v18 = vsub.f32 %v6200_v0, %v2004_v8 }
 0x527   : > { %7341 = vst [vmem:[#allocation34_spill] sm:$0xff] %v6305_v34  ;;  %v2301_v3 = vpop.permute.xlu0 %2300 }
 0x528   : > { %v6307_v61 = vpop.eup %4884  ;;  %v2051_v56 = vmul.f32 1.442695, %v2023_v18 }
 0x529   : > { %7342 = vst [vmem:[#allocation36_spill] sm:$0xff] %v6307_v61  ;;  %v6310_v45 = vpop.eup %4886  ;;  %v2010_v59 = vpop.xlane.xlu1 %2009  ;;  %v2093_v6 = vpack.c.bf16 %v6307_v61, %v6301_v35 }
 0x52a   : > { %7343 = vst [vmem:[#allocation54_spill] sm:$0xff] %v6310_v45  ;;  %v6314_v42 = vpop.eup %4888  ;;  %v2026_v11 = vsub.f32 %v6202_v27, %v2010_v59  ;;  %v2094_v2 = vpack.c.bf16 %v6303_v51, %v6310_v45  ;;  %v2055_v27 = vmul.f32 1.442695, %v2025_v55  ;;  %4894 = vpow2.f32 %v2051_v56 }
 0x52b   : > { %7344 = vst [vmem:[#allocation55_spill] sm:$0xff] %v6314_v42  ;;  %v2305_v63 = vpop.permute.xlu0 %2304  ;;  %4444 = vmatprep.mubr.bf16.mxu1 %v2093_v6  ;;  %v2095_v0 = vpack.c.bf16 %v6305_v34, %v6314_v42  ;;  %v7376_v42 = vld [vmem:[#allocation30_spill] sm:$0xff] }
 0x52c   : > { %4445 = vmatmul.mubr.bf16.gmra.mrb[68].mxu1 %v2094_v2  ;;  %v2057_v32 = vmul.f32 1.442695, %v2026_v11  ;;  %v6323_v41 = vpop.eup %4890  ;;  %v2383_v11 = vsel %vm1423_vm0, %v2337_v7, 0 }
 0x52d   : > { %4448 = vmatprep.mubr.bf16.mxu1 %v2095_v0  ;;  %v2006_v20 = vpop.xlane.xlu1 %2005  ;;  %7345 = vst [vmem:[#allocation56_spill] sm:$0xff] %v6323_v41 }
 0x52e   : > { %v2024_v44 = vsub.f32 %v6206_v54, %v2006_v20  ;;  %4896 = vpow2.f32 %v2057_v32 }
 0x52f   : > { %v2309_v22 = vpop.permute.xlu0 %2308 }
 0x530   : > { %v6325_v25 = vpop.eup %4892  ;;  %v2053_v38 = vmul.f32 1.442695, %v2024_v44  ;;  %v2386_v44 = vsel %vm1423_vm0, %v6299_v16, 0 }
 0x531   : > { %7346 = vst [vmem:[#allocation57_spill] sm:$0xff] %v6325_v25  ;;  %v2335_v5 = vpop.permute.xlu1 %2334  ;;  %v2096_v48 = vpack.c.bf16 %v6325_v25, %v6323_v41 }
 0x532   : > { %4898 = vpow2.f32 %v2053_v38  ;;  %4685 = vmatprep.subr.msk.bf16.mxu1 %vm1423_vm0, %v2335_v5  ;;  %v2380_v60 = vsel %vm1423_vm0, %v2335_v5, 0 }
 0x533   : > { %4900 = vpow2.f32 %v2055_v27  ;;  %v2313_v54 = vpop.permute.xlu0 %2312  ;;  %4467 = vmatpush3.bf16.xpose.msra.mxu1 %v2380_v60 }
 0x534   : > { %4449 = vmatmul.mubr.bf16.gmra.mrb[72].mxu1 %v2096_v48  ;;  %4686 = vmatprep.subr.msk.bf16.mxu1 %vm1423_vm0, %v2337_v7  ;;  %v6332_v6 = vpop.eup %4894 }
 0x535   : > { %v2303_v8 = vpop.permute.xlu1 %2302  ;;  %7347 = vst [vmem:[#allocation58_spill] sm:$0xff] %v6332_v6 }
 0x537   : > { %v2614_v18 = vpop.permute.xlu0 %2613 }
 0x538   : > { %4488 = vmatprep.subr.bf16.mxu0 %v2614_v18  ;;  %v6335_v2 = vpop.eup %4896 }
 0x539   : > { %4489 = vmatpush3.bf16.msra.mxu0 %v2614_v18  ;;  %v2307_v59 = vpop.permute.xlu1 %2306  ;;  %7348 = vst [vmem:[#allocation59_spill] sm:$0xff] %v6335_v2 }
 0x53b   : > { %4469 = vmatpush3.bf16.xpose.msra.mxu1 %v2383_v11  ;;  %v2618_v38 = vpop.permute.xlu0 %2617 }
 0x53c   : > { %v6337_v55 = vpop.eup %4898  ;;  %4687 = vmatprep.subr.msk.bf16.mxu1 %vm1423_vm0, %v6299_v16 }
 0x53d   : > { %7349 = vst [vmem:[#allocation60_spill] sm:$0xff] %v6337_v55  ;;  %v6341_v0 = vpop.eup %4900  ;;  %v2311_v56 = vpop.permute.xlu1 %2310  ;;  %v2097_v32 = vpack.c.bf16 %v6337_v55, %v6332_v6 }
 0x53e   : > { %7350 = vst [vmem:[#allocation61_spill] sm:$0xff] %v6341_v0  ;;  %v2098_v20 = vpack.c.bf16 %v6335_v2, %v6341_v0 }
 0x53f   : > { %4452 = vmatprep.mubr.bf16.mxu1 %v2097_v32  ;;  %v2626_v16 = vpop.permute.xlu0 %2625 }
 0x540   : > { %4453 = vmatmul.mubr.bf16.gmra.mrb[76].mxu1 %v2098_v20 }
 0x541   : > { %4472 = vmatprep.mubr.msk.bf16.mxu1 %vm1423_vm0, %v2301_v3  ;;  %v2315_v7 = vpop.permute.xlu1 %2314 }
 0x543   : > { %4471 = vmatpush3.bf16.xpose.msra.mxu1 %v2386_v44 }
 0x545   : > { %v2616_v27 = vpop.permute.xlu1 %2615 }
 0x546   : > { %4490 = vmatprep.subr.bf16.mxu0 %v2616_v27 }
 0x547   : > { %4491 = vmatpush3.bf16.msra.mxu0 %v2616_v27 }
 0x548   : > { %4492 = vmatprep.subr.bf16.mxu0 %v2618_v38 }
 0x549   : > { %v2620_v5 = vpop.permute.xlu1 %2619 }
 0x54a   : > { %4473 = vmatmul.mubr.msk.bf16.vlgmr.msra.gmra.mrb[80].mxu1 %vm1423_vm0, %v2303_v8 }
 0x54b   : > { %4476 = vmatprep.mubr.msk.bf16.mxu1 %vm1423_vm0, %v2305_v63  ;;  %4493 = vmatpush3.bf16.msra.mxu0 %v2618_v38  ;;  %v6356_v63 = vpop.permute.xlu0 %2847 }
 0x54c   : > { %4494 = vmatprep.subr.bf16.mxu0 %v2620_v5 }
 0x54d   : > { %v2622_v48 = vpop.permute.xlu1 %2621 }
 0x54f   : > { %4495 = vmatpush3.bf16.msra.mxu0 %v2620_v5 }
 0x550   : > { %4496 = vmatprep.subr.bf16.mxu0 %v2622_v48 }
 0x551   : > { %v2624_v3 = vpop.permute.xlu1 %2623 }
 0x552   : > { %4477 = vmatmul.mubr.msk.bf16.gmra.mrb[84].mxu1 %vm1423_vm0, %v2307_v59 }
 0x553   : > { %4480 = vmatprep.mubr.msk.bf16.mxu1 %vm1423_vm0, %v2309_v22  ;;  %4497 = vmatpush3.bf16.msra.mxu0 %v2622_v48 }
 0x554   : > { %4498 = vmatprep.subr.bf16.mxu0 %v2624_v3 }
 0x555   : > { %v2628_v60 = vpop.permute.xlu1 %2627 }
 0x557   : > { %4499 = vmatpush3.bf16.msra.mxu0 %v2624_v3 }
 0x558   : > { %4500 = vmatprep.subr.bf16.mxu0 %v2626_v16 }
 0x55a   : > { %4481 = vmatmul.mubr.msk.bf16.gmra.mrb[88].mxu1 %vm1423_vm0, %v2311_v56 }
 0x55b   : > { %4484 = vmatprep.mubr.msk.bf16.mxu1 %vm1423_vm0, %v2313_v54  ;;  %4501 = vmatpush3.bf16.msra.mxu0 %v2626_v16 }
 0x55c   : > { %4502 = vmatprep.subr.bf16.mxu0 %v2628_v60 }
 0x55f   : > { %4503 = vmatpush3.bf16.msra.mxu0 %v2628_v60 }
 0x560   : > { %4688 = vmatprep.subr.msk.bf16.mxu0 %vm1423_vm0, %v6356_v63 }
 0x562   : > { %4485 = vmatmul.mubr.msk.bf16.gmra.mrb[92].mxu1 %vm1423_vm0, %v2315_v7 }
 0x5c2   : > { %v6361_v22 = vpop.f32.mrb[64].mxu1 }
 0x5c3   : > { %7351 = vst [vmem:[#allocation62_spill] sm:$0xff] %v6361_v22  ;;  %v6363_v8 = vpop.f32.mrb[65].mxu1 }
 0x5c4   : > { %7352 = vst [vmem:[#allocation63_spill] sm:$0xff] %v6363_v8  ;;  %v6365_v18 = vpop.f32.mrb[66].mxu1  ;;  %v7367_v8 = vld [vmem:[#allocation23_spill] sm:$0xff] }
 0x5c5   : > { %7353 = vst [vmem:[#allocation64_spill] sm:$0xff] %v6365_v18  ;;  %v6367_v59 = vpop.f32.mrb[67].mxu1 }
 0x5c6   : > { %7354 = vst [vmem:[#allocation65_spill] sm:$0xff] %v6367_v59 }
 0x5ff   : > { %v6369_v11 = vpop.f32.mrb[68].mxu1 }
 0x600   : > { %7355 = vst [vmem:[#allocation66_spill] sm:$0xff] %v6369_v11  ;;  %v6371_v54 = vpop.f32.mrb[69].mxu1 }
 0x601   : > { %7356 = vst [vmem:[#allocation67_spill] sm:$0xff] %v6371_v54  ;;  %v6373_v56 = vpop.f32.mrb[70].mxu1 }
 0x602   : > { %7357 = vst [vmem:[#allocation68_spill] sm:$0xff] %v6373_v56  ;;  %v6375_v32 = vpop.f32.mrb[71].mxu1 }
 0x603   : > { %7358 = vst [vmem:[#allocation69_spill] sm:$0xff] %v6375_v32 }
 0x607   : > { %v6377_v20 = vpop.f32.mrb[72].mxu1 }
 0x608   : > { %7359 = vst [vmem:[#allocation70_spill] sm:$0xff] %v6377_v20  ;;  %v6379_v44 = vpop.f32.mrb[73].mxu1 }
 0x609   : > { %7360 = vst [vmem:[#allocation71_spill] sm:$0xff] %v6379_v44  ;;  %v6381_v7 = vpop.f32.mrb[74].mxu1 }
 0x60a   : > { %7361 = vst [vmem:[#allocation72_spill] sm:$0xff] %v6381_v7  ;;  %v6383_v27 = vpop.f32.mrb[75].mxu1 }
 0x60b   : > { %7362 = vst [vmem:[#allocation73_spill] sm:$0xff] %v6383_v27 }
 0x613   : > { %v6385_v38 = vpop.f32.mrb[76].mxu1 }
 0x614   : > { %7363 = vst [vmem:[#allocation74_spill] sm:$0xff] %v6385_v38  ;;  %v6387_v5 = vpop.f32.mrb[77].mxu1 }
 0x615   : > { %7364 = vst [vmem:[#allocation75_spill] sm:$0xff] %v6387_v5  ;;  %v6389_v48 = vpop.f32.mrb[78].mxu1 }
 0x616   : > { %7365 = vst [vmem:[#allocation76_spill] sm:$0xff] %v6389_v48  ;;  %v6391_v3 = vpop.f32.mrb[79].mxu1 }
 0x617   : > { %7366 = vst [vmem:[#allocation77_spill] sm:$0xff] %v6391_v3 }
 0x61d   : > { %v4474_v16 = vpop.f32.mrb[80].mxu1 }
 0x61e   : > { %2489 = vmax.xlane.f32.xlu0 %v4474_v16  ;;  %v2422_v60 = vpop.f32.mrb[81].mxu1 }
 0x61f   : > { %v6393_v56 = vpop.f32.mrb[82].mxu1 }
 0x620   : > { %v2425_v11 = vpop.f32.mrb[83].mxu1 }
 0x621   : > { %2487 = vmax.xlane.f32.xlu1 %v2425_v11 }
 0x622   : > { %2485 = vmax.xlane.f32.xlu0 %v2422_v60 }
 0x625   : > { %v6395_v54 = vpop.f32.mrb[84].mxu1 }
 0x626   : > { %2491 = vmax.xlane.f32.xlu0 %v6393_v56  ;;  %2497 = vmax.xlane.f32.xlu1 %v6395_v54  ;;  %v6399_v38 = vpop.f32.mrb[85].mxu1 }
 0x627   : > { %v6401_v5 = vpop.f32.mrb[86].mxu1 }
 0x628   : > { %v6403_v48 = vpop.f32.mrb[87].mxu1 }
 0x62a   : > { %2493 = vmax.xlane.f32.xlu1 %v6399_v38  ;;  %2495 = vmax.xlane.f32.xlu0 %v6403_v48 }
 0x62d   : > { %v6407_v3 = vpop.f32.mrb[88].mxu1 }
 0x62e   : > { %2499 = vmax.xlane.f32.xlu1 %v6401_v5  ;;  %2505 = vmax.xlane.f32.xlu0 %v6407_v3  ;;  %v6411_v32 = vpop.f32.mrb[89].mxu1 }
 0x62f   : > { %v6413_v7 = vpop.f32.mrb[90].mxu1 }
 0x630   : > { %v6415_v20 = vpop.f32.mrb[91].mxu1 }
 0x632   : > { %2501 = vmax.xlane.f32.xlu1 %v6411_v32 }
 0x635   : > { %v6418_v18 = vpop.f32.mrb[92].mxu1 }
 0x636   : > { %2507 = vmax.xlane.f32.xlu1 %v6413_v7  ;;  %v6421_v22 = vpop.f32.mrb[93].mxu1 }
 0x637   : > { %2509 = vmax.xlane.f32.xlu0 %v6421_v22  ;;  %v6424_v27 = vpop.f32.mrb[94].mxu1 }
 0x638   : > { %v6426_v44 = vpop.f32.mrb[95].mxu1 }
 0x63a   : > { %2503 = vmax.xlane.f32.xlu1 %v6415_v20 }
 0x63e   : > { %2513 = vmax.xlane.f32.xlu1 %v6418_v18 }
 0x642   : > { %2515 = vmax.xlane.f32.xlu1 %v6424_v27 }
 0x64d   : > { %2857 = vrot.lane.b32.xlu0 %v5832_v4, %s5263_s23  ;;  %v7368_v4 = vld [vmem:[#allocation28_spill] sm:$0xff] }
 0x653   : > { %2855 = vrot.lane.b32.xlu1 %v5812_v31, %s5263_s23  ;;  %v7369_v31 = vld [vmem:[#allocation24_spill] sm:$0xff] }
 0x657   : > { %2825 = vrot.lane.b32.xlu1 %v5826_v1, %s5263_s23  ;;  %v7370_v1 = vld [vmem:[#allocation26_spill] sm:$0xff] }
 0x65b   : > { %2829 = vrot.lane.b32.xlu1 %v5866_v14, %s5263_s23  ;;  %v7371_v14 = vld [vmem:[#allocation25_spill] sm:$0xff] }
 0x65f   : > { %2833 = vrot.lane.b32.xlu1 %v5914_v37, %s5263_s23 }
 0x663   : > { %2837 = vrot.lane.b32.xlu1 %v5962_v49, %s5263_s23 }
 0x667   : > { %3138 = vrot.lane.b32.xlu1 %v7367_v8, %s5263_s23 }
 0x66b   : > { %3144 = vrot.lane.b32.xlu1 %v7368_v4, %s5263_s23 }
 0x66c   : > { %2511 = vmax.xlane.f32.xlu0 %v6426_v44 }
 0x682   : > { %2859 = vrot.lane.b32.xlu0 %v5852_v39, %s5263_s23  ;;  %v6464_v39 = vpop.permute.xlu0 %2849 }
 0x686   : > { %2861 = vrot.lane.b32.xlu0 %v5872_v21, %s5263_s23  ;;  %v6472_v21 = vpop.permute.xlu1 %2851 }
 0x68a   : > { %2823 = vrot.lane.b32.xlu0 %v5806_v28, %s5263_s23  ;;  %v7372_v28 = vld [vmem:[#allocation27_spill] sm:$0xff] }
 0x68e   : > { %2827 = vrot.lane.b32.xlu0 %v5846_v33, %s5263_s23  ;;  %v6470_v33 = vpop.permute.xlu0 %2853 }
 0x692   : > { %2831 = vrot.lane.b32.xlu0 %v5891_v53, %s5263_s23 }
 0x696   : > { %2835 = vrot.lane.b32.xlu0 %v5938_v40, %s5263_s23 }
 0x69a   : > { %3136 = vrot.lane.b32.xlu0 %v7369_v31, %s5263_s23 }
 0x69e   : > { %3140 = vrot.lane.b32.xlu0 %v7370_v1, %s5263_s23 }
 0x6a2   : > { %3142 = vrot.lane.b32.xlu0 %v7371_v14, %s5263_s23 }
 0x6a6   : > { %3146 = vrot.lane.b32.xlu0 %v7372_v28, %s5263_s23 }
 0x6ab   : > { %v2490_v53 = vpop.xlane.xlu0 %2489 }
 0x6ac   : > { %v2519_v40 = vsub.f32 %v4474_v16, %v2490_v53 }
 0x6ae   : > { %v2488_v37 = vpop.xlane.xlu1 %2487  ;;  %v2537_v59 = vmul.f32 1.442695, %v2519_v40 }
 0x6af   : > { %v2518_v49 = vsub.f32 %v2425_v11, %v2488_v37  ;;  %v2486_v8 = vpop.xlane.xlu0 %2485 }
 0x6b0   : > { %v2517_v4 = vsub.f32 %v2422_v60, %v2486_v8 }
 0x6b1   : > { %v2535_v31 = vmul.f32 1.442695, %v2518_v49 }
 0x6b2   : > { %v2533_v1 = vmul.f32 1.442695, %v2517_v4 }
 0x6b3   : > { %4902 = vpow2.f32 %v2535_v31  ;;  %v2492_v2 = vpop.xlane.xlu0 %2491  ;;  %v2498_v51 = vpop.xlane.xlu1 %2497  ;;  %v2888_v31 = vsel %vm1423_vm0, %v6356_v63, 0 }
 0x6b4   : > { %4904 = vpow2.f32 %v2533_v1  ;;  %v2520_v14 = vsub.f32 %v6393_v56, %v2492_v2  ;;  %v2523_v0 = vsub.f32 %v6395_v54, %v2498_v51 }
 0x6b5   : > { %4906 = vpow2.f32 %v2537_v59 }
 0x6b6   : > { %v2539_v28 = vmul.f32 1.442695, %v2520_v14  ;;  %v2545_v40 = vmul.f32 1.442695, %v2523_v0 }
 0x6b7   : > { %v2496_v55 = vpop.xlane.xlu0 %2495  ;;  %v2494_v35 = vpop.xlane.xlu1 %2493 }
 0x6b8   : > { %4908 = vpow2.f32 %v2539_v28  ;;  %v2522_v11 = vsub.f32 %v6403_v48, %v2496_v55  ;;  %v2521_v16 = vsub.f32 %v6399_v38, %v2494_v35 }
 0x6ba   : > { %v2543_v60 = vmul.f32 1.442695, %v2522_v11  ;;  %v2541_v53 = vmul.f32 1.442695, %v2521_v16 }
 0x6bb   : > { %v2500_v37 = vpop.xlane.xlu1 %2499  ;;  %v2506_v0 = vpop.xlane.xlu0 %2505 }
 0x6bc   : > { %4910 = vpow2.f32 %v2543_v60  ;;  %v2524_v49 = vsub.f32 %v6401_v5, %v2500_v37  ;;  %v2527_v4 = vsub.f32 %v6407_v3, %v2506_v0 }
 0x6bd   : > { %v6479_v8 = vpop.eup %4902  ;;  %4912 = vpow2.f32 %v2541_v53 }
 0x6be   : > { %v6481_v2 = vpop.eup %4904  ;;  %v2547_v59 = vmul.f32 1.442695, %v2524_v49  ;;  %4914 = vpow2.f32 %v2545_v40  ;;  %v2553_v3 = vmul.f32 1.442695, %v2527_v4 }
 0x6bf   : > { %v2502_v56 = vpop.xlane.xlu1 %2501  ;;  %v2597_v51 = vpack.c.bf16 %v6479_v8, %v6481_v2  ;;  %v6485_v55 = vpop.eup %4906 }
 0x6c0   : > { %4916 = vpow2.f32 %v2547_v59  ;;  %v2525_v54 = vsub.f32 %v6411_v32, %v2502_v56 }
 0x6c1   : > { %4504 = vmatprep.mubr.bf16.mxu0 %v2597_v51  ;;  %v2894_v51 = vsel %vm1423_vm0, %v6472_v21, 0 }
 0x6c2   : > { %v6487_v35 = vpop.eup %4908  ;;  %v2549_v14 = vmul.f32 1.442695, %v2525_v54 }
 0x6c3   : > { %v2508_v38 = vpop.xlane.xlu1 %2507  ;;  %v2598_v5 = vpack.c.bf16 %v6487_v35, %v6485_v55 }
 0x6c4   : > { %v2528_v48 = vsub.f32 %v6413_v7, %v2508_v38  ;;  %4918 = vpow2.f32 %v2549_v14 }
 0x6c5   : > { %4505 = vmatmul.mubr.bf16.vlgmr.msra.gmra.mrb[80].mxu0 %v2598_v5  ;;  %v2897_v5 = vsel %vm1423_vm0, %v6470_v33, 0 }
 0x6c6   : > { %v6496_v1 = vpop.eup %4910  ;;  %4521 = vmatpush3.bf16.xpose.msra.mxu0 %v2888_v31  ;;  %v2555_v11 = vmul.f32 1.442695, %v2528_v48 }
 0x6c7   : > { %v6498_v28 = vpop.eup %4912  ;;  %4689 = vmatprep.subr.msk.bf16.mxu0 %vm1423_vm0, %v6464_v39  ;;  %v2504_v32 = vpop.xlane.xlu1 %2503 }
 0x6c8   : > { %v2526_v16 = vsub.f32 %v6415_v20, %v2504_v32  ;;  %v2599_v7 = vpack.c.bf16 %v6496_v1, %v6498_v28  ;;  %v6505_v60 = vpop.eup %4914  ;;  %4920 = vpow2.f32 %v2555_v11  ;;  %v2891_v20 = vsel %vm1423_vm0, %v6464_v39, 0 }
 0x6ca   : > { %v2551_v63 = vmul.f32 1.442695, %v2526_v16  ;;  %4508 = vmatprep.mubr.bf16.mxu0 %v2599_v7  ;;  %v6507_v53 = vpop.eup %4916 }
 0x6cb   : > { %v2600_v37 = vpack.c.bf16 %v6507_v53, %v6505_v60  ;;  %v2514_v40 = vpop.xlane.xlu1 %2513 }
 0x6cc   : > { %4922 = vpow2.f32 %v2551_v63 }
 0x6cd   : > { %4924 = vpow2.f32 %v2553_v3  ;;  %4509 = vmatmul.mubr.bf16.gmra.mrb[84].mxu0 %v2600_v37 }
 0x6ce   : > { %4523 = vmatpush3.bf16.xpose.msra.mxu0 %v2891_v20  ;;  %v6515_v49 = vpop.eup %4918 }
 0x6cf   : > { %4690 = vmatprep.subr.msk.bf16.mxu0 %vm1423_vm0, %v6472_v21  ;;  %v2516_v38 = vpop.xlane.xlu1 %2515  ;;  %v2510_v21 = vpop.xlane.xlu0 %2509 }
 0x6d0   : > { %v2529_v11 = vsub.f32 %v6421_v22, %v2510_v21  ;;  %v2532_v32 = vsub.f32 %v6424_v27, %v2516_v38 }
 0x6d2   : > { %v6517_v59 = vpop.eup %4920  ;;  %v2557_v16 = vmul.f32 1.442695, %v2529_v11  ;;  %v2563_v7 = vmul.f32 1.442695, %v2532_v32 }
 0x6d3   : > { %v2856_v48 = vpop.permute.xlu1 %2855  ;;  %v2858_v31 = vpop.permute.xlu0 %2857 }
 0x6d4   : > { %v2900_v4 = vsel %vm1423_vm0, %v2856_v48, 0  ;;  %v2903_v14 = vsel %vm1423_vm0, %v2858_v31, 0  ;;  %4926 = vpow2.f32 %v2557_v16 }
 0x6d5   : > { %4928 = vpow2.f32 %v2563_v7 }
 0x6d6   : > { %v6519_v56 = vpop.eup %4922  ;;  %4525 = vmatpush3.bf16.xpose.msra.mxu0 %v2894_v51 }
 0x6d7   : > { %v6523_v0 = vpop.eup %4924  ;;  %v2601_v39 = vpack.c.bf16 %v6519_v56, %v6515_v49  ;;  %4691 = vmatprep.subr.msk.bf16.mxu0 %vm1423_vm0, %v6470_v33  ;;  %v2531_v33 = vsub.f32 %v6418_v18, %v2514_v40  ;;  %v2826_v22 = vpop.permute.xlu1 %2825 }
 0x6d8   : > { %v2602_v54 = vpack.c.bf16 %v6517_v59, %v6523_v0 }
 0x6d9   : > { %4512 = vmatprep.mubr.bf16.mxu0 %v2601_v39  ;;  %v2561_v37 = vmul.f32 1.442695, %v2531_v33 }
 0x6da   : > { %4513 = vmatmul.mubr.bf16.gmra.mrb[88].mxu0 %v2602_v54 }
 0x6db   : > { %v2830_v18 = vpop.permute.xlu1 %2829 }
 0x6de   : > { %4527 = vmatpush3.bf16.xpose.msra.mxu0 %v2897_v5  ;;  %v6544_v54 = vpop.eup %4926 }
 0x6df   : > { %4692 = vmatprep.subr.msk.bf16.mxu0 %vm1423_vm0, %v2856_v48  ;;  %v6547_v38 = vpop.eup %4928 }
 0x6e6   : > { %4529 = vmatpush3.bf16.xpose.msra.mxu0 %v2900_v4 }
 0x6e7   : > { %4693 = vmatprep.subr.msk.bf16.mxu0 %vm1423_vm0, %v2858_v31 }
 0x6ee   : > { %4531 = vmatpush3.bf16.xpose.msra.mxu0 %v2903_v14  ;;  %v2834_v14 = vpop.permute.xlu1 %2833 }
 0x6f2   : > { %v2838_v32 = vpop.permute.xlu1 %2837 }
 0x6f6   : > { %v3139_v7 = vpop.permute.xlu1 %3138 }
 0x6f9   : > { %v2512_v3 = vpop.xlane.xlu0 %2511 }
 0x6fa   : > { %v2530_v63 = vsub.f32 %v6426_v44, %v2512_v3 }
 0x6fc   : > { %v2559_v20 = vmul.f32 1.442695, %v2530_v63 }
 0x6fd   : > { %v2860_v51 = vpop.permute.xlu0 %2859 }
 0x6fe   : > { %4930 = vpow2.f32 %v2559_v20  ;;  %4694 = vmatprep.subr.msk.bf16.mxu0 %vm1423_vm0, %v2860_v51  ;;  %v2906_v39 = vsel %vm1423_vm0, %v2860_v51, 0 }
 0x6ff   : > { %4932 = vpow2.f32 %v2561_v37  ;;  %4533 = vmatpush3.bf16.xpose.msra.mxu0 %v2906_v39  ;;  %v3145_v37 = vpop.permute.xlu1 %3144 }
 0x701   : > { %v2862_v27 = vpop.permute.xlu0 %2861 }
 0x702   : > { %4695 = vmatprep.subr.msk.bf16.mxu0 %vm1423_vm0, %v2862_v27  ;;  %v2909_v44 = vsel %vm1423_vm0, %v2862_v27, 0 }
 0x705   : > { %v2824_v40 = vpop.permute.xlu0 %2823 }
 0x707   : > { %4535 = vmatpush3.bf16.xpose.msra.mxu0 %v2909_v44 }
 0x708   : > { %v6549_v5 = vpop.eup %4930 }
 0x709   : > { %v6551_v48 = vpop.eup %4932  ;;  %v2828_v21 = vpop.permute.xlu0 %2827  ;;  %v2603_v4 = vpack.c.bf16 %v6549_v5, %v6544_v54 }
 0x70a   : > { %v2604_v31 = vpack.c.bf16 %v6547_v38, %v6551_v48 }
 0x70b   : > { %4516 = vmatprep.mubr.bf16.mxu0 %v2603_v4 }
 0x70c   : > { %4517 = vmatmul.mubr.bf16.gmra.mrb[92].mxu0 %v2604_v31 }
 0x70d   : > { %v2832_v11 = vpop.permute.xlu0 %2831  ;;  %4536 = vmatprep.mubr.msk.bf16.mxu0 %vm1423_vm0, %v2824_v40 }
 0x711   : > { %v2836_v33 = vpop.permute.xlu0 %2835 }
 0x714   : > { %4537 = vmatmul.mubr.msk.bf16.vlgmr.msra.gmra.mrb[96].mxu0 %vm1423_vm0, %v2826_v22 }
 0x715   : > { %v3137_v16 = vpop.permute.xlu0 %3136  ;;  %4540 = vmatprep.mubr.msk.bf16.mxu0 %vm1423_vm0, %v2828_v21 }
 0x716   : > { %4552 = vmatprep.subr.bf16.mxu1 %v3137_v16 }
 0x717   : > { %4553 = vmatpush3.bf16.msra.mxu1 %v3137_v16 }
 0x718   : > { %4554 = vmatprep.subr.bf16.mxu1 %v3139_v7 }
 0x719   : > { %v3141_v3 = vpop.permute.xlu0 %3140 }
 0x71b   : > { %4555 = vmatpush3.bf16.msra.mxu1 %v3139_v7 }
 0x71c   : > { %4541 = vmatmul.mubr.msk.bf16.gmra.mrb[100].mxu0 %vm1423_vm0, %v2830_v18  ;;  %4556 = vmatprep.subr.bf16.mxu1 %v3141_v3 }
 0x71d   : > { %4544 = vmatprep.mubr.msk.bf16.mxu0 %vm1423_vm0, %v2832_v11  ;;  %v3143_v63 = vpop.permute.xlu0 %3142 }
 0x71f   : > { %4557 = vmatpush3.bf16.msra.mxu1 %v3141_v3 }
 0x720   : > { %4558 = vmatprep.subr.bf16.mxu1 %v3143_v63 }
 0x721   : > { %v3147_v20 = vpop.permute.xlu0 %3146 }
 0x723   : > { %4559 = vmatpush3.bf16.msra.mxu1 %v3143_v63 }
 0x724   : > { %4545 = vmatmul.mubr.msk.bf16.gmra.mrb[104].mxu0 %vm1423_vm0, %v2834_v14  ;;  %4560 = vmatprep.subr.bf16.mxu1 %v3145_v37 }
 0x725   : > { %4548 = vmatprep.mubr.msk.bf16.mxu0 %vm1423_vm0, %v2836_v33 }
 0x727   : > { %4561 = vmatpush3.bf16.msra.mxu1 %v3145_v37 }
 0x728   : > { %4562 = vmatprep.subr.bf16.mxu1 %v3147_v20 }
 0x72b   : > { %4563 = vmatpush3.bf16.msra.mxu1 %v3147_v20 }
 0x72c   : > { %4549 = vmatmul.mubr.msk.bf16.gmra.mrb[108].mxu0 %vm1423_vm0, %v2838_v32 }
 0x798   : > { %v6565_v51 = vpop.f32.mrb[80].mxu0 }
 0x799   : > { %v6567_v39 = vpop.f32.mrb[81].mxu0 }
 0x79a   : > { %v6569_v22 = vpop.f32.mrb[82].mxu0 }
 0x79b   : > { %v6571_v27 = vpop.f32.mrb[83].mxu0 }
 0x7a0   : > { %v6573_v18 = vpop.f32.mrb[84].mxu0 }
 0x7a1   : > { %v6575_v40 = vpop.f32.mrb[85].mxu0 }
 0x7a2   : > { %v6577_v44 = vpop.f32.mrb[86].mxu0 }
 0x7a3   : > { %v6579_v21 = vpop.f32.mrb[87].mxu0 }
 0x7ad   : > { %v6581_v4 = vpop.f32.mrb[88].mxu0 }
 0x7ae   : > { %v6583_v31 = vpop.f32.mrb[89].mxu0 }
 0x7af   : > { %v6585_v14 = vpop.f32.mrb[90].mxu0 }
 0x7b0   : > { %7373 = vst [vmem:[#allocation23_spill] sm:$0xff] %v6585_v14  ;;  %v6587_v11 = vpop.f32.mrb[91].mxu0  ;;  %v7377_v14 = vld [vmem:[#allocation29_spill] sm:$0xff] }
 0x7df   : > { %v6589_v32 = vpop.f32.mrb[92].mxu0 }
 0x7e0   : > { %v6591_v33 = vpop.f32.mrb[93].mxu0 }
 0x7e1   : > { %v6593_v16 = vpop.f32.mrb[94].mxu0 }
 0x7e2   : > { %7374 = vst [vmem:[#allocation28_spill] sm:$0xff] %v6593_v16  ;;  %v6595_v7 = vpop.f32.mrb[95].mxu0 }
 0x7e3   : > { %7375 = vst [vmem:[#allocation24_spill] sm:$0xff] %v6595_v7 }
 0x7e7   : > { %v6597_v3 = vpop.f32.mrb[96].mxu0 }
 0x7e8   : > { %3012 = vmax.xlane.f32.xlu1 %v6597_v3  ;;  %v6600_v63 = vpop.f32.mrb[97].mxu0 }
 0x7e9   : > { %3008 = vmax.xlane.f32.xlu0 %v6600_v63  ;;  %v6603_v37 = vpop.f32.mrb[98].mxu0 }
 0x7ea   : > { %v6605_v20 = vpop.f32.mrb[99].mxu0 }
 0x7ec   : > { %3014 = vmax.xlane.f32.xlu1 %v6603_v37 }
 0x7ef   : > { %v6608_v45 = vpop.f32.mrb[100].mxu0 }
 0x7f0   : > { %3010 = vmax.xlane.f32.xlu1 %v6605_v20  ;;  %v6611_v6 = vpop.f32.mrb[101].mxu0 }
 0x7f1   : > { %3016 = vmax.xlane.f32.xlu0 %v6611_v6  ;;  %v6614_v61 = vpop.f32.mrb[102].mxu0 }
 0x7f2   : > { %v6616_v25 = vpop.f32.mrb[103].mxu0 }
 0x7f4   : > { %3020 = vmax.xlane.f32.xlu1 %v6608_v45 }
 0x7f7   : > { %v6619_v9 = vpop.f32.mrb[104].mxu0 }
 0x7f8   : > { %3022 = vmax.xlane.f32.xlu1 %v6614_v61  ;;  %v6622_v34 = vpop.f32.mrb[105].mxu0 }
 0x7f9   : > { %v6624_v29 = vpop.f32.mrb[106].mxu0 }
 0x7fa   : > { %3030 = vmax.xlane.f32.xlu0 %v6624_v29  ;;  %v6627_v41 = vpop.f32.mrb[107].mxu0 }
 0x7fc   : > { %3018 = vmax.xlane.f32.xlu1 %v6616_v25 }
 0x7fe   : > { %3026 = vmax.xlane.f32.xlu0 %v6627_v41 }
 0x7ff   : > { %v6631_v24 = vpop.f32.mrb[108].mxu0 }
 0x800   : > { %3028 = vmax.xlane.f32.xlu1 %v6619_v9  ;;  %v6634_v16 = vpop.f32.mrb[109].mxu0 }
 0x801   : > { %v6636_v19 = vpop.f32.mrb[110].mxu0 }
 0x802   : > { %3038 = vmax.xlane.f32.xlu0 %v6636_v19  ;;  %v6639_v7 = vpop.f32.mrb[111].mxu0 }
 0x804   : > { %3024 = vmax.xlane.f32.xlu1 %v6622_v34 }
 0x806   : > { %3034 = vmax.xlane.f32.xlu0 %v6639_v7 }
 0x815   : > { %3148 = vrot.lane.b32.xlu1 %v7376_v42, %s5263_s23 }
 0x81c   : > { %3150 = vrot.lane.b32.xlu0 %v7377_v14, %s5263_s23 }
 0x839   : > { %3032 = vmax.xlane.f32.xlu1 %v6634_v16 }
 0x83b   : > { %2567 = vadd.xlane.f32.xlu0 %v6479_v8 }
 0x83d   : > { %3036 = vmax.xlane.f32.xlu1 %v6631_v24 }
 0x83f   : > { %2585 = vadd.xlane.f32.xlu0 %v6523_v0 }
 0x841   : > { %2565 = vadd.xlane.f32.xlu1 %v6481_v2 }
 0x843   : > { %2589 = vadd.xlane.f32.xlu0 %v6544_v54 }
 0x845   : > { %2569 = vadd.xlane.f32.xlu1 %v6485_v55 }
 0x847   : > { %2593 = vadd.xlane.f32.xlu0 %v6551_v48 }
 0x849   : > { %2571 = vadd.xlane.f32.xlu1 %v6487_v35 }
 0x84b   : > { %1649 = vadd.xlane.f32.xlu0 %v6035_v46 }
 0x84d   : > { %2573 = vadd.xlane.f32.xlu1 %v6498_v28 }
 0x84f   : > { %1653 = vadd.xlane.f32.xlu0 %v6041_v15 }
 0x851   : > { %2575 = vadd.xlane.f32.xlu1 %v6496_v1 }
 0x853   : > { %1657 = vadd.xlane.f32.xlu0 %v6051_v23 }
 0x855   : > { %2577 = vadd.xlane.f32.xlu1 %v6505_v60 }
 0x857   : > { %1661 = vadd.xlane.f32.xlu0 %v6061_v62 }
 0x859   : > { %2579 = vadd.xlane.f32.xlu1 %v6507_v53 }
 0x85b   : > { %1665 = vadd.xlane.f32.xlu0 %v6071_v10 }
 0x85d   : > { %2581 = vadd.xlane.f32.xlu1 %v6515_v49 }
 0x85f   : > { %1669 = vadd.xlane.f32.xlu0 %v6083_v57 }
 0x861   : > { %2583 = vadd.xlane.f32.xlu1 %v6519_v56 }
 0x863   : > { %1673 = vadd.xlane.f32.xlu0 %v6091_v12 }
 0x865   : > { %2587 = vadd.xlane.f32.xlu1 %v6517_v59 }
 0x867   : > { %1677 = vadd.xlane.f32.xlu0 %v6099_v43 }
 0x869   : > { %2591 = vadd.xlane.f32.xlu1 %v6549_v5 }
 0x86d   : > { %2595 = vadd.xlane.f32.xlu1 %v6547_v38 }
 0x871   : > { %1651 = vadd.xlane.f32.xlu1 %v6039_v26 }
 0x875   : > { %1655 = vadd.xlane.f32.xlu1 %v6037_v50  ;;  %v3013_v46 = vpop.xlane.xlu1 %3012 }
 0x876   : > { %v3009_v15 = vpop.xlane.xlu0 %3008  ;;  %v3042_v2 = vsub.f32 %v6597_v3, %v3013_v46 }
 0x877   : > { %v3040_v23 = vsub.f32 %v6600_v63, %v3009_v15 }
 0x878   : > { %v3060_v53 = vmul.f32 1.442695, %v3042_v2  ;;  %v4823_v2 = vld [vmem:[%s7234_s6 + $0x8] sm:$0xff]  }
 0x879   : > { %1659 = vadd.xlane.f32.xlu1 %v6053_v30  ;;  %v3015_v62 = vpop.xlane.xlu1 %3014  ;;  %v3056_v10 = vmul.f32 1.442695, %v3040_v23 }
 0x87a   : > { %v3043_v8 = vsub.f32 %v6603_v37, %v3015_v62 }
 0x87b   : > { %4934 = vpow2.f32 %v3056_v10 }
 0x87d   : > { %1663 = vadd.xlane.f32.xlu1 %v6063_v17  ;;  %v3011_v57 = vpop.xlane.xlu1 %3010 }
 0x87e   : > { %v3041_v12 = vsub.f32 %v6605_v20, %v3011_v57  ;;  %v3017_v50 = vpop.xlane.xlu0 %3016 }
 0x87f   : > { %v3044_v55 = vsub.f32 %v6611_v6, %v3017_v50 }
 0x880   : > { %v3058_v43 = vmul.f32 1.442695, %v3041_v12 }
 0x881   : > { %1667 = vadd.xlane.f32.xlu1 %v6075_v52  ;;  %v3021_v26 = vpop.xlane.xlu1 %3020  ;;  %v3062_v52 = vmul.f32 1.442695, %v3043_v8 }
 0x882   : > { %4936 = vpow2.f32 %v3058_v43 }
 0x883   : > { %4938 = vpow2.f32 %v3062_v52 }
 0x885   : > { %1671 = vadd.xlane.f32.xlu1 %v6085_v58  ;;  %v3023_v42 = vpop.xlane.xlu1 %3022  ;;  %v6686_v1 = vpop.eup %4934 }
 0x886   : > { %v3047_v6 = vsub.f32 %v6614_v61, %v3023_v42 }
 0x887   : > { %v3031_v30 = vpop.xlane.xlu0 %3030 }
 0x888   : > { %v3070_v38 = vmul.f32 1.442695, %v3047_v6 }
 0x889   : > { %1675 = vadd.xlane.f32.xlu1 %v6093_v13  ;;  %v3019_v17 = vpop.xlane.xlu1 %3018  ;;  %v3064_v13 = vmul.f32 1.442695, %v3044_v55 }
 0x88a   : > { %v3045_v35 = vsub.f32 %v6616_v25, %v3019_v17  ;;  %v3046_v25 = vsub.f32 %v6608_v45, %v3021_v26 }
 0x88b   : > { %v3027_v28 = vpop.xlane.xlu0 %3026 }
 0x88c   : > { %v6688_v60 = vpop.eup %4936  ;;  %v3066_v58 = vmul.f32 1.442695, %v3045_v35  ;;  %v3049_v54 = vsub.f32 %v6627_v41, %v3027_v28  ;;  %v3068_v14 = vmul.f32 1.442695, %v3046_v25  ;;  %v3051_v41 = vsub.f32 %v6624_v29, %v3031_v30  ;;  %v4822_v30 = vld [vmem:[%s7234_s6] sm:$0xff]  }
 0x88d   : > { %1679 = vadd.xlane.f32.xlu1 %v6101_v36  ;;  %v3029_v49 = vpop.xlane.xlu1 %3028  ;;  %v3120_v59 = vpack.c.bf16 %v6688_v60, %v6686_v1  ;;  %v6698_v45 = vpop.eup %4938 }
 0x88e   : > { %4940 = vpow2.f32 %v3066_v58  ;;  %v3074_v63 = vmul.f32 1.442695, %v3049_v54  ;;  %v3050_v61 = vsub.f32 %v6619_v9, %v3029_v49  ;;  %v3078_v23 = vmul.f32 1.442695, %v3051_v41  ;;  %v4824_v58 = vld [vmem:[%s7234_s6 + $0x10] sm:$0xff]  }
 0x88f   : > { %v3039_v56 = vpop.xlane.xlu0 %3038  ;;  %4568 = vmatprep.mubr.bf16.mxu1 %v3120_v59  ;;  %4942 = vpow2.f32 %v3060_v53 }
 0x890   : > { %4944 = vpow2.f32 %v3064_v13  ;;  %v3076_v46 = vmul.f32 1.442695, %v3050_v61  ;;  %v3055_v55 = vsub.f32 %v6636_v19, %v3039_v56 }
 0x891   : > { %v3025_v0 = vpop.xlane.xlu1 %3024  ;;  %4946 = vpow2.f32 %v3070_v38 }
 0x892   : > { %v3048_v36 = vsub.f32 %v6622_v34, %v3025_v0  ;;  %v3086_v53 = vmul.f32 1.442695, %v3055_v55  ;;  %v4826_v0 = vld [vmem:[%s7234_s6 + $0x20] sm:$0xff]  }
 0x893   : > { %v3035_v5 = vpop.xlane.xlu0 %3034 }
 0x894   : > { %v3072_v48 = vmul.f32 1.442695, %v3048_v36  ;;  %v3053_v17 = vsub.f32 %v6639_v7, %v3035_v5  ;;  %v4825_v7 = vld [vmem:[%s7234_s6 + $0x18] sm:$0xff]  }
 0x895   : > { %v3149_v3 = vpop.permute.xlu1 %3148 }
 0x896   : > { %4564 = vmatprep.subr.bf16.mxu1 %v3149_v3  ;;  %4948 = vpow2.f32 %v3072_v48  ;;  %v3082_v35 = vmul.f32 1.442695, %v3053_v17 }
 0x897   : > { %v3151_v37 = vpop.permute.xlu0 %3150  ;;  %4565 = vmatpush3.bf16.msra.mxu1 %v3149_v3  ;;  %4950 = vpow2.f32 %v3068_v14 }
 0x898   : > { %4566 = vmatprep.subr.bf16.mxu1 %v3151_v37  ;;  %v6701_v34 = vpop.eup %4940  ;;  %4952 = vpow2.f32 %v3074_v63 }
 0x899   : > { %v6703_v20 = vpop.eup %4942  ;;  %4954 = vpow2.f32 %v3076_v46  ;;  %v4828_v46 = vld [vmem:[%s7234_s6 + $0x30] sm:$0xff]  }
 0x89a   : > { %v6705_v15 = vpop.eup %4944  ;;  %v3121_v9 = vpack.c.bf16 %v6698_v45, %v6703_v20  ;;  %4956 = vpow2.f32 %v3078_v23 }
 0x89b   : > { %4567 = vmatpush3.bf16.msra.mxu1 %v3151_v37  ;;  %v3122_v62 = vpack.c.bf16 %v6701_v34, %v6705_v15  ;;  %v6711_v29 = vpop.eup %4946  ;;  %4958 = vpow2.f32 %v3082_v35 }
 0x89c   : > { %4584 = vmatprep.subr.bf16.mxu1 %v4822_v30 }
 0x89e   : > { %4569 = vmatmul.mubr.bf16.vlgmr.msra.gmra.mrb[96].mxu1 %v3121_v9 }
 0x89f   : > { %4572 = vmatprep.mubr.bf16.mxu1 %v3122_v62  ;;  %4585 = vmatpush3.bf16.msra.mxu1 %v4822_v30 }
 0x8a0   : > { %v6713_v10 = vpop.eup %4948  ;;  %4586 = vmatprep.subr.bf16.mxu1 %v4823_v2 }
 0x8a1   : > { %v6715_v57 = vpop.eup %4950 }
 0x8a2   : > { %v6717_v12 = vpop.eup %4952  ;;  %v3123_v43 = vpack.c.bf16 %v6711_v29, %v6715_v57 }
 0x8a3   : > { %v3124_v26 = vpack.c.bf16 %v6717_v12, %v6713_v10  ;;  %v6723_v50 = vpop.eup %4954  ;;  %4587 = vmatpush3.bf16.msra.mxu1 %v4823_v2 }
 0x8a4   : > { %v6725_v42 = vpop.eup %4956  ;;  %4588 = vmatprep.subr.bf16.mxu1 %v4824_v58 }
 0x8a5   : > { %v3125_v8 = vpack.c.bf16 %v6725_v42, %v6723_v50  ;;  %v6751_v36 = vpop.eup %4958 }
 0x8a6   : > { %4573 = vmatmul.mubr.bf16.gmra.mrb[100].mxu1 %v3123_v43  ;;  %v4829_v43 = vld [vmem:[%s7234_s6 + $0x38] sm:$0xff]  }
 0x8a7   : > { %4576 = vmatprep.mubr.bf16.mxu1 %v3124_v26  ;;  %4589 = vmatpush3.bf16.msra.mxu1 %v4824_v58 }
 0x8a8   : > { %4590 = vmatprep.subr.bf16.mxu1 %v4825_v7 }
 0x8ab   : > { %4591 = vmatpush3.bf16.msra.mxu1 %v4825_v7 }
 0x8ac   : > { %4592 = vmatprep.subr.bf16.mxu1 %v4826_v0 }
 0x8ae   : > { %4577 = vmatmul.mubr.bf16.gmra.mrb[104].mxu1 %v3125_v8 }
 0x8af   : > { %4593 = vmatpush3.bf16.msra.mxu1 %v4826_v0 }
 0x8c6   : > { %v3033_v52 = vpop.xlane.xlu1 %3032 }
 0x8c7   : > { %v3052_v28 = vsub.f32 %v6634_v16, %v3033_v52 }
 0x8c8   : > { %v2568_v49 = vpop.xlane.xlu0 %2567 }
 0x8c9   : > { %v3080_v59 = vmul.f32 1.442695, %v3052_v28 }
 0x8ca   : > { %v3037_v19 = vpop.xlane.xlu1 %3036 }
 0x8cb   : > { %4960 = vpow2.f32 %v3080_v59  ;;  %v3054_v13 = vsub.f32 %v6631_v24, %v3037_v19  ;;  %v4827_v24 = vld [vmem:[%s7234_s6 + $0x28] sm:$0xff]  }
 0x8cc   : > { %4962 = vpow2.f32 %v3086_v53  ;;  %v2586_v16 = vpop.xlane.xlu0 %2585  ;;  %4594 = vmatprep.subr.bf16.mxu1 %v4827_v24 }
 0x8cd   : > { %v3084_v6 = vmul.f32 1.442695, %v3054_v13  ;;  %4964 = vrcp.f32 %v2586_v16  ;;  %4595 = vmatpush3.bf16.msra.mxu1 %v4827_v24 }
 0x8ce   : > { %4966 = vrcp.f32 %v2568_v49  ;;  %v2566_v56 = vpop.xlane.xlu1 %2565  ;;  %4596 = vmatprep.subr.bf16.mxu1 %v4828_v46 }
 0x8cf   : > { %4968 = vpow2.f32 %v3084_v6 }
 0x8d0   : > { %4970 = vrcp.f32 %v2566_v56  ;;  %v2590_v25 = vpop.xlane.xlu0 %2589 }
 0x8d1   : > { %4972 = vrcp.f32 %v2590_v25  ;;  %4597 = vmatpush3.bf16.msra.mxu1 %v4828_v46 }
 0x8d2   : > { %v2570_v54 = vpop.xlane.xlu1 %2569  ;;  %4598 = vmatprep.subr.bf16.mxu1 %v4829_v43 }
 0x8d3   : > { %4974 = vrcp.f32 %v2570_v54 }
 0x8d4   : > { %v2594_v38 = vpop.xlane.xlu0 %2593 }
 0x8d5   : > { %v6753_v5 = vpop.eup %4960  ;;  %4976 = vrcp.f32 %v2594_v38  ;;  %4599 = vmatpush3.bf16.msra.mxu1 %v4829_v43 }
 0x8d6   : > { %v6755_v48 = vpop.eup %4962  ;;  %v2572_v14 = vpop.xlane.xlu1 %2571  ;;  %v3126_v3 = vpack.c.bf16 %v6751_v36, %v6753_v5 }
 0x8d7   : > { %v4965_v63 = vpop.eup %4964  ;;  %4978 = vrcp.f32 %v2572_v14 }
 0x8d8   : > { %v4967_v61 = vpop.eup %4966  ;;  %4580 = vmatprep.mubr.bf16.mxu1 %v3126_v3  ;;  %v6760_v37 = vmul.f32 %v4965_v63, %v6581_v4  ;;  %v1650_v13 = vpop.xlane.xlu0 %1649 }
 0x8d9   : > { %v6762_v41 = vpop.eup %4968  ;;  %v2751_v8 = vmul.f32 %v4967_v61, %v6571_v27 }
 0x8da   : > { %v4971_v9 = vpop.eup %4970  ;;  %v2574_v23 = vpop.xlane.xlu1 %2573  ;;  %v3127_v62 = vpack.c.bf16 %v6755_v48, %v6762_v41 }
 0x8db   : > { %v4973_v26 = vpop.eup %4972  ;;  %4980 = vrcp.f32 %v2574_v23  ;;  %v2750_v4 = vmul.f32 %v4971_v9, %v6567_v39  ;;  %v7378_v23 = vld [vmem:[#allocation23_spill] sm:$0xff] }
 0x8dc   : > { %4581 = vmatmul.mubr.bf16.gmra.mrb[108].mxu1 %v3127_v62  ;;  %v6775_v30 = vmul.f32 %v4973_v26, %v6591_v33 }
 0x8dd   : > { %v2766_v2 = vpack.c.bf16 %v2751_v8, %v2750_v4  ;;  %v4975_v17 = vpop.eup %4974  ;;  %v7380_v4 = vld [vmem:[#allocation24_spill] sm:$0xff] }
 0x8de   : > { %v2576_v55 = vpop.xlane.xlu1 %2575  ;;  %v2752_v28 = vmul.f32 %v4975_v17, %v6565_v51 }
 0x8df   : > { %v4977_v35 = vpop.eup %4976  ;;  %2782 = vrot.lane.b32.xlu0 %v2766_v2, %s5263_s23  ;;  %4982 = vrcp.f32 %v2576_v55  ;;  %v7381_v55 = vld [vmem:[#allocation32_spill] sm:$0xff] }
 0x8e0   : > { %v6779_v52 = vmul.f32 %v4977_v35, %v6589_v32 }
 0x8e1   : > { %v4979_v39 = vpop.eup %4978 }
 0x8e2   : > { %v2578_v27 = vpop.xlane.xlu1 %2577  ;;  %v2753_v33 = vmul.f32 %v4979_v39, %v6569_v22  ;;  %v7382_v39 = vld [vmem:[#allocation28_spill] sm:$0xff] }
 0x8e3   : > { %4984 = vrcp.f32 %v2578_v27 }
 0x8e4   : > { %v2767_v58 = vpack.c.bf16 %v2753_v33, %v2752_v28 }
 0x8e5   : > { %v4981_v53 = vpop.eup %4980 }
 0x8e6   : > { %2784 = vrot.lane.b32.xlu1 %v2767_v58, %s5263_s23  ;;  %v2580_v49 = vpop.xlane.xlu1 %2579  ;;  %v6785_v7 = vmul.f32 %v4981_v53, %v6575_v40  ;;  %v1654_v40 = vpop.xlane.xlu0 %1653  ;;  %v7383_v53 = vld [vmem:[#allocation39_spill] sm:$0xff] }
 0x8e7   : > { %4986 = vrcp.f32 %v2580_v49 }
 0x8e9   : > { %v4983_v59 = vpop.eup %4982 }
 0x8ea   : > { %v2582_v32 = vpop.xlane.xlu1 %2581  ;;  %v6788_v19 = vmul.f32 %v4983_v59, %v6579_v21  ;;  %v1658_v14 = vpop.xlane.xlu0 %1657 }
 0x8eb   : > { %4988 = vrcp.f32 %v2582_v32  ;;  %v7384_v32 = vld [vmem:[#allocation41_spill] sm:$0xff] }
 0x8ec   : > { %v2768_v51 = vpack.c.bf16 %v6788_v19, %v6785_v7  ;;  %v7409_v7 = vld [vmem:[#allocation60_spill] sm:$0xff] }
 0x8ed   : > { %v4985_v22 = vpop.eup %4984 }
 0x8ee   : > { %v2584_v16 = vpop.xlane.xlu1 %2583  ;;  %v6793_v6 = vmul.f32 %v4985_v22, %v6573_v18  ;;  %v1662_v46 = vpop.xlane.xlu0 %1661  ;;  %v7385_v22 = vld [vmem:[#allocation56_spill] sm:$0xff] }
 0x8ef   : > { %4990 = vrcp.f32 %v2584_v16  ;;  %v7386_v16 = vld [vmem:[#allocation37_spill] sm:$0xff] }
 0x8f1   : > { %v4987_v56 = vpop.eup %4986 }
 0x8f2   : > { %v2588_v25 = vpop.xlane.xlu1 %2587  ;;  %v6796_v0 = vmul.f32 %v4987_v56, %v6577_v44  ;;  %v1666_v2 = vpop.xlane.xlu0 %1665 }
 0x8f3   : > { %4992 = vrcp.f32 %v2588_v25 }
 0x8f4   : > { %v2769_v21 = vpack.c.bf16 %v6796_v0, %v6793_v6  ;;  %v7410_v0 = vld [vmem:[#allocation35_spill] sm:$0xff] }
 0x8f5   : > { %v4989_v54 = vpop.eup %4988 }
 0x8f6   : > { %v2592_v24 = vpop.xlane.xlu1 %2591  ;;  %v6801_v38 = vmul.f32 %v4989_v54, %v6583_v31  ;;  %v1670_v59 = vpop.xlane.xlu0 %1669 }
 0x8f7   : > { %4994 = vrcp.f32 %v2592_v24  ;;  %v7387_v24 = vld [vmem:[#allocation38_spill] sm:$0xff] }
 0x8f9   : > { %v4991_v18 = vpop.eup %4990 }
 0x8fa   : > { %v2596_v3 = vpop.xlane.xlu1 %2595  ;;  %v6804_v63 = vmul.f32 %v4991_v18, %v6587_v11  ;;  %v7379_v11 = vld [vmem:[#allocation55_spill] sm:$0xff]  ;;  %v7388_v18 = vld [vmem:[#allocation40_spill] sm:$0xff] }
 0x8fb   : > { %4996 = vrcp.f32 %v2596_v3 }
 0x8fc   : > { %v2770_v44 = vpack.c.bf16 %v6804_v63, %v6801_v38  ;;  %4998 = vrcp.f32 %v1650_v13 }
 0x8fd   : > { %v4993_v61 = vpop.eup %4992 }
 0x8fe   : > { %2061 = vadd.xlane.f32.xlu0 %v6273_v47  ;;  %v1652_v9 = vpop.xlane.xlu1 %1651  ;;  %v6810_v31 = vmul.f32 %v4993_v61, %v7378_v23  ;;  %v7389_v61 = vld [vmem:[#allocation34_spill] sm:$0xff]  ;;  %v1674_v23 = vpop.xlane.xlu0 %1673 }
 0x8ff   : > { %5000 = vrcp.f32 %v1652_v9 }
 0x900   : > { %v2771_v62 = vpack.c.bf16 %v6810_v31, %v6760_v37  ;;  %5002 = vrcp.f32 %v1654_v40  ;;  %v4831_v37 = vld [vmem:[%s7236_s8 + $0x8] sm:$0xff]  }
 0x901   : > { %v4995_v43 = vpop.eup %4994 }
 0x902   : > { %2075 = vadd.xlane.f32.xlu0 %v7379_v11  ;;  %v1656_v26 = vpop.xlane.xlu1 %1655  ;;  %v6816_v8 = vmul.f32 %v4995_v43, %v7380_v4 }
 0x903   : > { %5004 = vrcp.f32 %v1656_v26  ;;  %v7390_v26 = vld [vmem:[#allocation43_spill] sm:$0xff] }
 0x904   : > { %v2772_v47 = vpack.c.bf16 %v6816_v8, %v6775_v30  ;;  %5006 = vrcp.f32 %v1658_v14  ;;  %v4832_v30 = vld [vmem:[%s7236_s8 + $0x10] sm:$0xff]  }
 0x905   : > { %v4997_v17 = vpop.eup %4996 }
 0x906   : > { %2063 = vadd.xlane.f32.xlu0 %v7381_v55  ;;  %v1660_v35 = vpop.xlane.xlu1 %1659  ;;  %v6822_v27 = vmul.f32 %v4997_v17, %v7382_v39  ;;  %v4999_v28 = vpop.eup %4998  ;;  %v7392_v55 = vld [vmem:[#allocation31_spill] sm:$0xff] }
 0x907   : > { %5008 = vrcp.f32 %v1660_v35  ;;  %v1802_v49 = vmul.f32 %v4999_v28, %v7383_v53 }
 0x908   : > { %v2773_v33 = vpack.c.bf16 %v6822_v27, %v6779_v52  ;;  %5010 = vrcp.f32 %v1662_v46  ;;  %v4830_v52 = vld [vmem:[%s7236_s8] sm:$0xff]  }
 0x909   : > { %v5001_v58 = vpop.eup %5000  ;;  %4616 = vmatprep.subr.bf16.mxu0 %v4830_v52  ;;  %4648 = vmatprep.subr.bf16.mxu1 %v4830_v52 }
 0x90a   : > { %v1803_v13 = vmul.f32 %v5001_v58, %v7384_v32  ;;  %2079 = vadd.xlane.f32.xlu0 %v7385_v22  ;;  %2059 = vadd.xlane.f32.xlu1 %v7386_v16  ;;  %v1664_v56 = vpop.xlane.xlu1 %1663  ;;  %v5003_v40 = vpop.eup %5002  ;;  %v7393_v58 = vld [vmem:[#allocation42_spill] sm:$0xff] }
 0x90b   : > { %5012 = vrcp.f32 %v1664_v56  ;;  %v1804_v14 = vmul.f32 %v5003_v40, %v7387_v24  ;;  %v7396_v40 = vld [vmem:[#allocation47_spill] sm:$0xff]  ;;  %4617 = vmatpush3.bf16.msra.mxu0 %v4830_v52 }
 0x90c   : > { %v1818_v25 = vpack.c.bf16 %v1803_v13, %v1802_v49  ;;  %5014 = vrcp.f32 %v1666_v2  ;;  %v7391_v2 = vld [vmem:[#allocation45_spill] sm:$0xff]  ;;  %v1678_v49 = vpop.xlane.xlu0 %1677  ;;  %4618 = vmatprep.subr.bf16.mxu0 %v4831_v37 }
 0x90d   : > { %v5005_v54 = vpop.eup %5004  ;;  %v7395_v13 = vld [vmem:[#allocation57_spill] sm:$0xff] }
 0x90e   : > { %v1805_v3 = vmul.f32 %v5005_v54, %v7388_v18  ;;  %3092 = vadd.xlane.f32.xlu0 %v6703_v20  ;;  %2077 = vadd.xlane.f32.xlu1 %v7389_v61  ;;  %v1668_v46 = vpop.xlane.xlu1 %1667  ;;  %1826 = vst.msk [vmem:[#allocation4] sm:$0xff] %vm1423_vm0, %v1818_v25  ;;  %v5007_v9 = vpop.eup %5006  ;;  %v7397_v54 = vld [vmem:[#allocation49_spill] sm:$0xff]  ;;  %v7398_v61 = vld [vmem:[#allocation46_spill] sm:$0xff] }
 0x90f   : > { %5016 = vrcp.f32 %v1668_v46  ;;  %v1806_v4 = vmul.f32 %v5007_v9, %v7390_v26  ;;  %v7399_v9 = vld [vmem:[#allocation48_spill] sm:$0xff]  ;;  %4619 = vmatpush3.bf16.msra.mxu0 %v4831_v37 }
 0x910   : > { %v1819_v43 = vpack.c.bf16 %v1805_v3, %v1804_v14  ;;  %5018 = vrcp.f32 %v1670_v59  ;;  %v7394_v59 = vld [vmem:[#allocation44_spill] sm:$0xff]  ;;  %4620 = vmatprep.subr.bf16.mxu0 %v4832_v30 }
 0x911   : > { %v5009_v11 = vpop.eup %5008 }
 0x912   : > { %v1807_v17 = vmul.f32 %v5009_v11, %v7391_v2  ;;  %3088 = vadd.xlane.f32.xlu0 %v6686_v1  ;;  %2065 = vadd.xlane.f32.xlu1 %v7392_v55  ;;  %v1672_v20 = vpop.xlane.xlu1 %1671  ;;  %1827 = vst.msk [vmem:[#allocation4 + $0x8] sm:$0xff] %vm1423_vm0, %v1819_v43  ;;  %v5011_v35 = vpop.eup %5010  ;;  %v7400_v11 = vld [vmem:[#allocation51_spill] sm:$0xff] }
 0x913   : > { %5020 = vrcp.f32 %v1672_v20  ;;  %v1808_v53 = vmul.f32 %v5011_v35, %v7393_v58  ;;  %v7402_v20 = vld [vmem:[#allocation50_spill] sm:$0xff]  ;;  %v7403_v35 = vld [vmem:[#allocation52_spill] sm:$0xff]  ;;  %v7411_v58 = vld [vmem:[#allocation59_spill] sm:$0xff]  ;;  %4621 = vmatpush3.bf16.msra.mxu0 %v4832_v30 }
 0x914   : > { %v1820_v39 = vpack.c.bf16 %v1807_v17, %v1806_v4  ;;  %5022 = vrcp.f32 %v1674_v23  ;;  %v7401_v4 = vld [vmem:[#allocation53_spill] sm:$0xff] }
 0x915   : > { %v5013_v28 = vpop.eup %5012 }
 0x916   : > { %v1809_v32 = vmul.f32 %v5013_v28, %v7394_v59  ;;  %3100 = vadd.xlane.f32.xlu0 %v6715_v57  ;;  %2081 = vadd.xlane.f32.xlu1 %v7395_v13  ;;  %v1676_v1 = vpop.xlane.xlu1 %1675  ;;  %1828 = vst.msk [vmem:[#allocation4 + $0x10] sm:$0xff] %vm1423_vm0, %v1820_v39  ;;  %v5015_v22 = vpop.eup %5014 }
 0x917   : > { %5024 = vrcp.f32 %v1676_v1  ;;  %v1810_v25 = vmul.f32 %v5015_v22, %v7396_v40 }
 0x918   : > { %v1821_v16 = vpack.c.bf16 %v1809_v32, %v1808_v53  ;;  %5026 = vrcp.f32 %v1678_v49 }
 0x919   : > { %v5017_v56 = vpop.eup %5016 }
 0x91a   : > { %v1811_v24 = vmul.f32 %v5017_v56, %v7397_v54  ;;  %3096 = vadd.xlane.f32.xlu0 %v6705_v15  ;;  %3094 = vadd.xlane.f32.xlu1 %v6698_v45  ;;  %v1680_v14 = vpop.xlane.xlu1 %1679  ;;  %1829 = vst.msk [vmem:[#allocation4 + $0x18] sm:$0xff] %vm1423_vm0, %v1821_v16  ;;  %v5019_v57 = vpop.eup %5018 }
 0x91b   : > { %5028 = vrcp.f32 %v1680_v14  ;;  %v1812_v46 = vmul.f32 %v5019_v57, %v7398_v61  ;;  %v7412_v14 = vld [vmem:[#allocation65_spill] sm:$0xff] }
 0x91c   : > { %v1822_v18 = vpack.c.bf16 %v1811_v24, %v1810_v25 }
 0x91d   : > { %v5021_v3 = vpop.eup %5020 }
 0x91e   : > { %v1813_v23 = vmul.f32 %v5021_v3, %v7399_v9  ;;  %3108 = vadd.xlane.f32.xlu0 %v6723_v50  ;;  %3090 = vadd.xlane.f32.xlu1 %v6688_v60  ;;  %1830 = vst.msk [vmem:[#allocation4 + $0x20] sm:$0xff] %vm1423_vm0, %v1822_v18  ;;  %v5023_v15 = vpop.eup %5022  ;;  %v7413_v18 = vld [vmem:[#allocation63_spill] sm:$0xff] }
 0x91f   : > { %v1814_v26 = vmul.f32 %v5023_v15, %v7400_v11 }
 0x920   : > { %v1823_v43 = vpack.c.bf16 %v1813_v23, %v1812_v46  ;;  %v4834_v46 = vld [vmem:[%s7236_s8 + $0x20] sm:$0xff]  }
 0x921   : > { %v5025_v45 = vpop.eup %5024 }
 0x922   : > { %v1815_v2 = vmul.f32 %v5025_v45, %v7401_v4  ;;  %3104 = vadd.xlane.f32.xlu0 %v6713_v10  ;;  %3102 = vadd.xlane.f32.xlu1 %v6711_v29  ;;  %1831 = vst.msk [vmem:[#allocation4 + $0x28] sm:$0xff] %vm1423_vm0, %v1823_v43  ;;  %v5027_v17 = vpop.eup %5026  ;;  %v7414_v45 = vld [vmem:[#allocation71_spill] sm:$0xff] }
 0x923   : > { %v1816_v60 = vmul.f32 %v5027_v17, %v7402_v20 }
 0x924   : > { %v1824_v55 = vpack.c.bf16 %v1815_v2, %v1814_v26  ;;  %v7415_v26 = vld [vmem:[#allocation73_spill] sm:$0xff] }
 0x925   : > { %v5029_v50 = vpop.eup %5028 }
 0x926   : > { %v1817_v39 = vmul.f32 %v5029_v50, %v7403_v35  ;;  %3116 = vadd.xlane.f32.xlu0 %v6762_v41  ;;  %3098 = vadd.xlane.f32.xlu1 %v6701_v34  ;;  %1832 = vst.msk [vmem:[#allocation4 + $0x30] sm:$0xff] %vm1423_vm0, %v1824_v55  ;;  %v7408_v41 = vld [vmem:[#allocation33_spill] sm:$0xff] }
 0x928   : > { %v1825_v28 = vpack.c.bf16 %v1817_v39, %v1816_v60  ;;  %v7416_v60 = vld [vmem:[#allocation62_spill] sm:$0xff]  ;;  %v7417_v39 = vld [vmem:[#allocation64_spill] sm:$0xff] }
 0x92a   : > { %3112 = vadd.xlane.f32.xlu0 %v6753_v5  ;;  %3110 = vadd.xlane.f32.xlu1 %v6725_v42  ;;  %1833 = vst.msk [vmem:[#allocation4 + $0x38] sm:$0xff] %vm1423_vm0, %v1825_v28  ;;  %v7406_v5 = vld [vmem:[#allocation54_spill] sm:$0xff] }
 0x92e   : > { %3106 = vadd.xlane.f32.xlu1 %v6717_v12  ;;  %v7404_v12 = vld [vmem:[#allocation36_spill] sm:$0xff] }
 0x932   : > { %3118 = vadd.xlane.f32.xlu1 %v6755_v48  ;;  %v7407_v48 = vld [vmem:[#allocation61_spill] sm:$0xff] }
 0x936   : > { %3114 = vadd.xlane.f32.xlu1 %v6751_v36  ;;  %v7405_v36 = vld [vmem:[#allocation58_spill] sm:$0xff] }
 0x940   : > { %2786 = vrot.lane.b32.xlu0 %v2768_v51, %s5263_s23 }
 0x947   : > { %2788 = vrot.lane.b32.xlu1 %v2769_v21, %s5263_s23 }
 0x951   : > { %v2783_v34 = vpop.permute.xlu0 %2782 }
 0x952   : > { %2807 = vst.msk [vmem:[#allocation4] sm:$0xff] %vm2806_vm1, %v2783_v34 }
 0x958   : > { %v2785_v29 = vpop.permute.xlu1 %2784 }
 0x959   : > { %2808 = vst.msk [vmem:[#allocation4 + $0x8] sm:$0xff] %vm2806_vm1, %v2785_v29  ;;  %v3337_v10 = vld [vmem:[#allocation4] sm:$0xff]  ;;  %v4835_v29 = vld [vmem:[%s7236_s8 + $0x28] sm:$0xff]  }
 0x95a   : > { %4600 = vmatprep.mubr.bf16.mxu1 %v3337_v10 }
 0x95f   : > { %2069 = vadd.xlane.f32.xlu0 %v7404_v12 }
 0x960   : > { %v3338_v42 = vld [vmem:[#allocation4 + $0x8] sm:$0xff] }
 0x961   : > { %4601 = vmatmul.mubr.bf16.vlgmr.msra.gmra.mrb[112].mxu1 %v3338_v42 }
 0x962   : > { %4656 = vmatpush3.bf16.msra.mxu1 %v4830_v52 }
 0x963   : > { %2083 = vadd.xlane.f32.xlu0 %v7405_v36  ;;  %4649 = vmatprep.subr.bf16.mxu1 %v4831_v37 }
 0x966   : > { %4657 = vmatpush3.bf16.msra.mxu1 %v4831_v37 }
 0x967   : > { %2071 = vadd.xlane.f32.xlu0 %v7406_v5  ;;  %4650 = vmatprep.subr.bf16.mxu1 %v4832_v30  ;;  %v7418_v5 = vld [vmem:[#allocation70_spill] sm:$0xff] }
 0x96a   : > { %4658 = vmatpush3.bf16.msra.mxu1 %v4832_v30 }
 0x96b   : > { %2087 = vadd.xlane.f32.xlu0 %v7407_v48  ;;  %2067 = vadd.xlane.f32.xlu1 %v7408_v41  ;;  %v7419_v41 = vld [vmem:[#allocation72_spill] sm:$0xff] }
 0x96f   : > { %2085 = vadd.xlane.f32.xlu1 %v7409_v7 }
 0x971   : > { %v6887_v19 = vpop.f32.mrb[96].mxu1 }
 0x972   : > { %v6889_v51 = vpop.f32.mrb[97].mxu1 }
 0x973   : > { %v6891_v6 = vpop.f32.mrb[98].mxu1  ;;  %2073 = vadd.xlane.f32.xlu1 %v7410_v0 }
 0x974   : > { %v6894_v21 = vpop.f32.mrb[99].mxu1 }
 0x977   : > { %2089 = vadd.xlane.f32.xlu1 %v7411_v58 }
 0x979   : > { %v6897_v53 = vpop.f32.mrb[100].mxu1 }
 0x97a   : > { %v6899_v49 = vpop.f32.mrb[101].mxu1 }
 0x97b   : > { %v6901_v59 = vpop.f32.mrb[102].mxu1 }
 0x97c   : > { %v6903_v32 = vpop.f32.mrb[103].mxu1 }
 0x981   : > { %2790 = vrot.lane.b32.xlu0 %v2770_v44, %s5263_s23  ;;  %v6909_v13 = vpop.f32.mrb[104].mxu1 }
 0x982   : > { %v6911_v1 = vpop.f32.mrb[105].mxu1 }
 0x983   : > { %v6913_v22 = vpop.f32.mrb[106].mxu1 }
 0x984   : > { %v6915_v16 = vpop.f32.mrb[107].mxu1 }
 0x985   : > { %2796 = vrot.lane.b32.xlu0 %v2773_v33, %s5263_s23  ;;  %v4833_v33 = vld [vmem:[%s7236_s8 + $0x18] sm:$0xff]  }
 0x986   : > { %4622 = vmatprep.subr.bf16.mxu0 %v4833_v33  ;;  %4651 = vmatprep.subr.bf16.mxu1 %v4833_v33 }
 0x987   : > { %4623 = vmatpush3.bf16.msra.mxu0 %v4833_v33  ;;  %4659 = vmatpush3.bf16.msra.mxu1 %v4833_v33 }
 0x988   : > { %2792 = vrot.lane.b32.xlu1 %v2771_v62, %s5263_s23  ;;  %4624 = vmatprep.subr.bf16.mxu0 %v4834_v46 }
 0x989   : > { %4652 = vmatprep.subr.bf16.mxu1 %v4834_v46 }
 0x98b   : > { %v2062_v38 = vpop.xlane.xlu0 %2061  ;;  %4625 = vmatpush3.bf16.msra.mxu0 %v4834_v46  ;;  %4660 = vmatpush3.bf16.msra.mxu1 %v4834_v46 }
 0x98c   : > { %2794 = vrot.lane.b32.xlu1 %v2772_v47, %s5263_s23  ;;  %5030 = vrcp.f32 %v2062_v38  ;;  %4626 = vmatprep.subr.bf16.mxu0 %v4835_v29 }
 0x98d   : > { %4653 = vmatprep.subr.bf16.mxu1 %v4835_v29 }
 0x98f   : > { %v2076_v63 = vpop.xlane.xlu0 %2075  ;;  %4627 = vmatpush3.bf16.msra.mxu0 %v4835_v29  ;;  %4661 = vmatpush3.bf16.msra.mxu1 %v4835_v29 }
 0x993   : > { %v2064_v44 = vpop.xlane.xlu0 %2063 }
 0x996   : > { %v5031_v27 = vpop.eup %5030 }
 0x997   : > { %v2080_v56 = vpop.xlane.xlu0 %2079  ;;  %v2060_v40 = vpop.xlane.xlu1 %2059  ;;  %v2213_v57 = vmul.f32 %v5031_v27, %v7412_v14  ;;  %v4837_v27 = vld [vmem:[%s7236_s8 + $0x38] sm:$0xff]  }
 0x998   : > { %5032 = vrcp.f32 %v2060_v40 }
 0x999   : > { %5034 = vrcp.f32 %v2076_v63 }
 0x99b   : > { %v3093_v31 = vpop.xlane.xlu0 %3092  ;;  %v2078_v62 = vpop.xlane.xlu1 %2077 }
 0x99c   : > { %5036 = vrcp.f32 %v2078_v62 }
 0x99d   : > { %5038 = vrcp.f32 %v2064_v44 }
 0x99f   : > { %v3089_v8 = vpop.xlane.xlu0 %3088  ;;  %v2066_v47 = vpop.xlane.xlu1 %2065 }
 0x9a0   : > { %5040 = vrcp.f32 %v2066_v47 }
 0x9a1   : > { %5042 = vrcp.f32 %v2080_v56  ;;  %v4836_v56 = vld [vmem:[%s7236_s8 + $0x30] sm:$0xff]  }
 0x9a2   : > { %v5033_v25 = vpop.eup %5032  ;;  %4628 = vmatprep.subr.bf16.mxu0 %v4836_v56  ;;  %4654 = vmatprep.subr.bf16.mxu1 %v4836_v56 }
 0x9a3   : > { %v3101_v54 = vpop.xlane.xlu0 %3100  ;;  %v2082_v24 = vpop.xlane.xlu1 %2081  ;;  %v2212_v3 = vmul.f32 %v5033_v25, %v7413_v18  ;;  %4629 = vmatpush3.bf16.msra.mxu0 %v4836_v56  ;;  %4662 = vmatpush3.bf16.msra.mxu1 %v4836_v56 }
 0x9a4   : > { %v5035_v61 = vpop.eup %5034  ;;  %5044 = vrcp.f32 %v2082_v24  ;;  %4630 = vmatprep.subr.bf16.mxu0 %v4837_v27  ;;  %4655 = vmatprep.subr.bf16.mxu1 %v4837_v27 }
 0x9a5   : > { %v2228_v9 = vpack.c.bf16 %v2213_v57, %v2212_v3  ;;  %5046 = vrcp.f32 %v3093_v31  ;;  %v2220_v11 = vmul.f32 %v5035_v61, %v7414_v45 }
 0x9a6   : > { %v5037_v23 = vpop.eup %5036 }
 0x9a7   : > { %v3097_v15 = vpop.xlane.xlu0 %3096  ;;  %v3095_v43 = vpop.xlane.xlu1 %3094  ;;  %v2221_v4 = vmul.f32 %v5037_v23, %v7415_v26  ;;  %2236 = vst.msk [vmem:[#allocation5] sm:$0xff] %vm1423_vm0, %v2228_v9  ;;  %4631 = vmatpush3.bf16.msra.mxu0 %v4837_v27  ;;  %4663 = vmatpush3.bf16.msra.mxu1 %v4837_v27  ;;  %v7422_v27 = vld [vmem:[#allocation75_spill] sm:$0xff] }
 0x9a8   : > { %v5039_v2 = vpop.eup %5038  ;;  %5048 = vrcp.f32 %v3095_v43 }
 0x9a9   : > { %v2232_v17 = vpack.c.bf16 %v2221_v4, %v2220_v11  ;;  %5050 = vrcp.f32 %v3089_v8  ;;  %v2214_v35 = vmul.f32 %v5039_v2, %v7416_v60 }
 0x9aa   : > { %v5041_v55 = vpop.eup %5040 }
 0x9ab   : > { %v3109_v50 = vpop.xlane.xlu0 %3108  ;;  %v3091_v20 = vpop.xlane.xlu1 %3090  ;;  %v2215_v28 = vmul.f32 %v5041_v55, %v7417_v39  ;;  %2240 = vst.msk [vmem:[#allocation5 + $0x20] sm:$0xff] %vm1423_vm0, %v2232_v17 }
 0x9ac   : > { %v5043_v34 = vpop.eup %5042  ;;  %5052 = vrcp.f32 %v3091_v20 }
 0x9ad   : > { %v2229_v10 = vpack.c.bf16 %v2215_v28, %v2214_v35  ;;  %5054 = vrcp.f32 %v3101_v54  ;;  %v2222_v48 = vmul.f32 %v5043_v34, %v7418_v5 }
 0x9ae   : > { %v5045_v12 = vpop.eup %5044 }
 0x9af   : > { %v3105_v42 = vpop.xlane.xlu0 %3104  ;;  %v6955_v36 = vpop.f32.mrb[108].mxu1  ;;  %v2223_v7 = vmul.f32 %v5045_v12, %v7419_v41  ;;  %2237 = vst.msk [vmem:[#allocation5 + $0x8] sm:$0xff] %vm1423_vm0, %v2229_v10 }
 0x9b0   : > { %v3103_v0 = vpop.xlane.xlu1 %3102  ;;  %v6959_v58 = vpop.f32.mrb[109].mxu1 }
 0x9b1   : > { %v5047_v38 = vpop.eup %5046  ;;  %5056 = vrcp.f32 %v3103_v0  ;;  %v6962_v63 = vpop.f32.mrb[110].mxu1  ;;  %v2233_v40 = vpack.c.bf16 %v2223_v7, %v2222_v48 }
 0x9b2   : > { %v6964_v44 = vpop.f32.mrb[111].mxu1  ;;  %v5049_v52 = vpop.eup %5048  ;;  %5058 = vrcp.f32 %v3097_v15  ;;  %v3275_v62 = vmul.f32 %v5047_v38, %v6887_v19 }
 0x9b3   : > { %v3117_v37 = vpop.xlane.xlu0 %3116  ;;  %v3276_v30 = vmul.f32 %v5049_v52, %v6891_v6  ;;  %2241 = vst.msk [vmem:[#allocation5 + $0x28] sm:$0xff] %vm1423_vm0, %v2233_v40  ;;  %v5051_v8 = vpop.eup %5050 }
 0x9b4   : > { %v3099_v31 = vpop.xlane.xlu1 %3098  ;;  %v3273_v19 = vmul.f32 %v5051_v8, %v6889_v51 }
 0x9b5   : > { %5060 = vrcp.f32 %v3099_v31  ;;  %v3290_v47 = vpack.c.bf16 %v3276_v30, %v3275_v62  ;;  %v7421_v62 = vld [vmem:[#allocation67_spill] sm:$0xff] }
 0x9b6   : > { %v5053_v33 = vpop.eup %5052  ;;  %5062 = vrcp.f32 %v3109_v50 }
 0x9b7   : > { %v3113_v25 = vpop.xlane.xlu0 %3112  ;;  %v3274_v6 = vmul.f32 %v5053_v33, %v6894_v21  ;;  %v5055_v24 = vpop.eup %5054 }
 0x9b8   : > { %v3111_v54 = vpop.xlane.xlu1 %3110  ;;  %v3279_v61 = vmul.f32 %v5055_v24, %v6897_v53 }
 0x9b9   : > { %5064 = vrcp.f32 %v3111_v54  ;;  %v3289_v14 = vpack.c.bf16 %v3274_v6, %v3273_v19 }
 0x9ba   : > { %5066 = vrcp.f32 %v3105_v42 }
 0x9bb   : > { %v5057_v57 = vpop.eup %5056  ;;  %v2787_v18 = vpop.permute.xlu0 %2786  ;;  %3305 = vrot.lane.b32.xlu1 %v3289_v14, %s5263_s23 }
 0x9bc   : > { %2809 = vst.msk [vmem:[#allocation4 + $0x10] sm:$0xff] %vm2806_vm1, %v2787_v18  ;;  %v3107_v3 = vpop.xlane.xlu1 %3106  ;;  %v3280_v51 = vmul.f32 %v5057_v57, %v6901_v59  ;;  %v5059_v21 = vpop.eup %5058  ;;  %v7424_v57 = vld [vmem:[#allocation66_spill] sm:$0xff] }
 0x9bd   : > { %5068 = vrcp.f32 %v3107_v3  ;;  %v3277_v15 = vmul.f32 %v5059_v21, %v6899_v49  ;;  %v7425_v3 = vld [vmem:[#allocation68_spill] sm:$0xff] }
 0x9be   : > { %v3292_v46 = vpack.c.bf16 %v3280_v51, %v3279_v61  ;;  %5070 = vrcp.f32 %v3117_v37  ;;  %v7420_v37 = vld [vmem:[#allocation69_spill] sm:$0xff] }
 0x9bf   : > { %v5061_v9 = vpop.eup %5060  ;;  %3307 = vrot.lane.b32.xlu1 %v3290_v47, %s5263_s23 }
 0x9c0   : > { %v3119_v23 = vpop.xlane.xlu1 %3118  ;;  %v3278_v43 = vmul.f32 %v5061_v9, %v6903_v32  ;;  %v5063_v45 = vpop.eup %5062 }
 0x9c1   : > { %5072 = vrcp.f32 %v3119_v23  ;;  %v3283_v4 = vmul.f32 %v5063_v45, %v6909_v13  ;;  %v7426_v23 = vld [vmem:[#allocation74_spill] sm:$0xff] }
 0x9c2   : > { %v3291_v11 = vpack.c.bf16 %v3278_v43, %v3277_v15  ;;  %5074 = vrcp.f32 %v3113_v25  ;;  %v7423_v25 = vld [vmem:[#allocation77_spill] sm:$0xff]  ;;  %v7427_v43 = vld [vmem:[#allocation76_spill] sm:$0xff] }
 0x9c3   : > { %v5065_v26 = vpop.eup %5064  ;;  %v3339_v53 = vld [vmem:[#allocation4 + $0x10] sm:$0xff] }
 0x9c4   : > { %4604 = vmatprep.mubr.bf16.mxu1 %v3339_v53  ;;  %3309 = vrot.lane.b32.xlu1 %v3291_v11, %s5263_s23  ;;  %v3115_v59 = vpop.xlane.xlu1 %3114  ;;  %v3284_v2 = vmul.f32 %v5065_v26, %v6913_v22  ;;  %v5067_v17 = vpop.eup %5066 }
 0x9c5   : > { %5076 = vrcp.f32 %v3115_v59  ;;  %v3281_v50 = vmul.f32 %v5067_v17, %v6911_v1  ;;  %v7019_v17 = vld [vmem:[%s7235_s7] ss:$0 sm:$0xff] }
 0x9c6   : > { %v3294_v55 = vpack.c.bf16 %v3284_v2, %v3283_v4 }
 0x9c7   : > { %v5069_v49 = vpop.eup %5068 }
 0x9c8   : > { %3311 = vrot.lane.b32.xlu1 %v3292_v46, %s5263_s23  ;;  %v2789_v32 = vpop.permute.xlu1 %2788  ;;  %v3282_v20 = vmul.f32 %v5069_v49, %v6915_v16  ;;  %v5071_v60 = vpop.eup %5070  ;;  %v3739_v49 = vld [vmem:[%s5495_s13 + $0x10] sm:$0xff] }
 0x9c9   : > { %2810 = vst.msk [vmem:[#allocation4 + $0x18] sm:$0xff] %vm2806_vm1, %v2789_v32  ;;  %v3287_v13 = vmul.f32 %v5071_v60, %v6955_v36 }
 0x9ca   : > { %v3293_v35 = vpack.c.bf16 %v3282_v20, %v3281_v50  ;;  %v3737_v20 = vld [vmem:[%s5495_s13] sm:$0xff] }
 0x9cb   : > { %v5073_v39 = vpop.eup %5072 }
 0x9cc   : > { %3313 = vrot.lane.b32.xlu0 %v3293_v35, %s5263_s23  ;;  %v3288_v22 = vmul.f32 %v5073_v39, %v6962_v63  ;;  %v5075_v28 = vpop.eup %5074 }
 0x9cd   : > { %v3285_v1 = vmul.f32 %v5075_v28, %v6959_v58 }
 0x9ce   : > { %v3296_v34 = vpack.c.bf16 %v3288_v22, %v3287_v13  ;;  %v3740_v13 = vld [vmem:[%s5495_s13 + $0x18] sm:$0xff] }
 0x9cf   : > { %v5077_v29 = vpop.eup %5076 }
 0x9d0   : > { %3315 = vrot.lane.b32.xlu0 %v3294_v55, %s5263_s23  ;;  %v3340_v10 = vld [vmem:[#allocation4 + $0x18] sm:$0xff]  ;;  %v3286_v16 = vmul.f32 %v5077_v29, %v6964_v44 }
 0x9d1   : > { %4605 = vmatmul.mubr.bf16.gmra.mrb[116].mxu1 %v3340_v10  ;;  %v3738_v10 = vld [vmem:[%s5495_s13 + $0x8] sm:$0xff] }
 0x9d2   : > { %v3295_v12 = vpack.c.bf16 %v3286_v16, %v3285_v1 }
 0x9d4   : > { %3317 = vrot.lane.b32.xlu0 %v3295_v12, %s5263_s23 }
 0x9d8   : > { %3319 = vrot.lane.b32.xlu0 %v3296_v34, %s5263_s23 }
 0x9ec   : > { %v2070_v42 = vpop.xlane.xlu0 %2069 }
 0x9ed   : > { %5078 = vrcp.f32 %v2070_v42 }
 0x9f0   : > { %v2084_v36 = vpop.xlane.xlu0 %2083 }
 0x9f4   : > { %v2072_v5 = vpop.xlane.xlu0 %2071 }
 0x9f7   : > { %v5079_v63 = vpop.eup %5078 }
 0x9f8   : > { %v2088_v48 = vpop.xlane.xlu0 %2087  ;;  %v2068_v41 = vpop.xlane.xlu1 %2067  ;;  %v2217_v31 = vmul.f32 %v5079_v63, %v7420_v37  ;;  %v3743_v37 = vld [vmem:[%s5495_s13 + $0x30] sm:$0xff] }
 0x9f9   : > { %5080 = vrcp.f32 %v2068_v41 }
 0x9fa   : > { %5082 = vrcp.f32 %v2084_v36 }
 0x9fc   : > { %v2791_v7 = vpop.permute.xlu0 %2790  ;;  %v2086_v0 = vpop.xlane.xlu1 %2085 }
 0x9fd   : > { %2811 = vst.msk [vmem:[#allocation4 + $0x20] sm:$0xff] %vm2806_vm1, %v2791_v7  ;;  %5084 = vrcp.f32 %v2086_v0 }
 0x9fe   : > { %5086 = vrcp.f32 %v2072_v5 }
 0xa00   : > { %v2797_v58 = vpop.permute.xlu0 %2796  ;;  %v2074_v38 = vpop.xlane.xlu1 %2073 }
 0xa01   : > { %2814 = vst.msk [vmem:[#allocation4 + $0x38] sm:$0xff] %vm2806_vm1, %v2797_v58  ;;  %5088 = vrcp.f32 %v2074_v38 }
 0xa02   : > { %5090 = vrcp.f32 %v2088_v48 }
 0xa03   : > { %v5081_v44 = vpop.eup %5080 }
 0xa04   : > { %v3341_v56 = vld [vmem:[#allocation4 + $0x20] sm:$0xff]  ;;  %v2090_v40 = vpop.xlane.xlu1 %2089  ;;  %v5083_v52 = vpop.eup %5082  ;;  %v2216_v30 = vmul.f32 %v5081_v44, %v7421_v62 }
 0xa05   : > { %4608 = vmatprep.mubr.bf16.mxu1 %v3341_v56  ;;  %5092 = vrcp.f32 %v2090_v40  ;;  %v2224_v33 = vmul.f32 %v5083_v52, %v7422_v27  ;;  %v3744_v27 = vld [vmem:[%s5495_s13 + $0x38] sm:$0xff] }
 0xa06   : > { %v2230_v47 = vpack.c.bf16 %v2217_v31, %v2216_v30  ;;  %v3741_v30 = vld [vmem:[%s5495_s13 + $0x20] sm:$0xff] }
 0xa07   : > { %v5085_v8 = vpop.eup %5084 }
 0xa08   : > { %v2225_v54 = vmul.f32 %v5085_v8, %v7423_v25  ;;  %v2793_v19 = vpop.permute.xlu1 %2792  ;;  %v5087_v6 = vpop.eup %5086  ;;  %2238 = vst.msk [vmem:[#allocation5 + $0x10] sm:$0xff] %vm1423_vm0, %v2230_v47  ;;  %v3344_v59 = vld [vmem:[#allocation4 + $0x38] sm:$0xff] }
 0xa09   : > { %2812 = vst.msk [vmem:[#allocation4 + $0x28] sm:$0xff] %vm2806_vm1, %v2793_v19  ;;  %v2218_v18 = vmul.f32 %v5087_v6, %v7424_v57  ;;  %v3742_v19 = vld [vmem:[%s5495_s13 + $0x28] sm:$0xff] }
 0xa0a   : > { %v2234_v24 = vpack.c.bf16 %v2225_v54, %v2224_v33 }
 0xa0b   : > { %v5089_v14 = vpop.eup %5088 }
 0xa0c   : > { %v2219_v61 = vmul.f32 %v5089_v14, %v7425_v3  ;;  %v2795_v51 = vpop.permute.xlu1 %2794  ;;  %2242 = vst.msk [vmem:[#allocation5 + $0x30] sm:$0xff] %vm1423_vm0, %v2234_v24  ;;  %v5091_v21 = vpop.eup %5090  ;;  %v3747_v3 = vld [vmem:[%s5495_s13 + $0x50] sm:$0xff] }
 0xa0d   : > { %2813 = vst.msk [vmem:[#allocation4 + $0x30] sm:$0xff] %vm2806_vm1, %v2795_v51  ;;  %v2226_v15 = vmul.f32 %v5091_v21, %v7426_v23  ;;  %v3745_v21 = vld [vmem:[%s5495_s13 + $0x40] sm:$0xff]  ;;  %v3748_v23 = vld [vmem:[%s5495_s13 + $0x58] sm:$0xff] }
 0xa0e   : > { %v2231_v46 = vpack.c.bf16 %v2219_v61, %v2218_v18 }
 0xa0f   : > { %v5093_v9 = vpop.eup %5092 }
 0xa10   : > { %v2227_v45 = vmul.f32 %v5093_v9, %v7427_v43  ;;  %v3342_v11 = vld [vmem:[#allocation4 + $0x28] sm:$0xff]  ;;  %2239 = vst.msk [vmem:[#allocation5 + $0x18] sm:$0xff] %vm1423_vm0, %v2231_v46 }
 0xa11   : > { %4609 = vmatmul.mubr.bf16.gmra.mrb[120].mxu1 %v3342_v11  ;;  %v3746_v11 = vld [vmem:[%s5495_s13 + $0x48] sm:$0xff] }
 0xa12   : > { %v2235_v26 = vpack.c.bf16 %v2227_v45, %v2226_v15 }
 0xa14   : > { %v3343_v53 = vld [vmem:[#allocation4 + $0x30] sm:$0xff]  ;;  %2243 = vst.msk [vmem:[#allocation5 + $0x38] sm:$0xff] %vm1423_vm0, %v2235_v26 }
 0xa15   : > { %4612 = vmatprep.mubr.bf16.mxu1 %v3343_v53 }
 0xa19   : > { %4613 = vmatmul.mubr.bf16.gmra.mrb[124].mxu1 %v3344_v59 }
 0xa2d   : > { %v3306_v4 = vpop.permute.xlu1 %3305 }
 0xa2e   : > { %3329 = vst.msk [vmem:[#allocation5] sm:$0xff] %vm2806_vm1, %v3306_v4 }
 0xa31   : > { %v3308_v2 = vpop.permute.xlu1 %3307 }
 0xa32   : > { %3330 = vst.msk [vmem:[#allocation5 + $0x8] sm:$0xff] %vm2806_vm1, %v3308_v2 }
 0xa34   : > { %v4602_v55 = vpop.f32.mrb[112].mxu1 }
 0xa35   : > { %v3459_v32 = vadd.f32 %v4602_v55, %v7019_v17  ;;  %v3450_v50 = vpop.f32.mrb[113].mxu1  ;;  %v3513_v22 = vld [vmem:[#allocation5] sm:$0xff]  ;;  %v3751_v55 = vld [vmem:[%s5495_s13 + $0x70] sm:$0xff] }
 0xa36   : > { %v3451_v60 = vadd.f32 %v7019_v17, %v3450_v50  ;;  %v3310_v35 = vpop.permute.xlu1 %3309  ;;  %v4603_v39 = vpop.f32.mrb[114].mxu1  ;;  %4632 = vmatprep.mubr.bf16.mxu0 %v3513_v22  ;;  %v3749_v50 = vld [vmem:[%s5495_s13 + $0x60] sm:$0xff] }
 0xa37   : > { %v3755_v28 = vadd.f32 %v3739_v49, %v3459_v32  ;;  %3331 = vst.msk [vmem:[#allocation5 + $0x10] sm:$0xff] %vm2806_vm1, %v3310_v35  ;;  %v3462_v34 = vadd.f32 %v4603_v39, %v7019_v17  ;;  %v3453_v29 = vpop.f32.mrb[115].mxu1  ;;  %v3752_v35 = vld [vmem:[%s5495_s13 + $0x78] sm:$0xff] }
 0xa38   : > { %v3753_v1 = vadd.f32 %v3737_v20, %v3451_v60  ;;  %v3454_v16 = vadd.f32 %v7019_v17, %v3453_v29 }
 0xa39   : > { %3771 = vst [vmem:[%s7032_s30 + $0x10] sm:$0xff] %v3755_v28  ;;  %v3756_v12 = vadd.f32 %v3740_v13, %v3462_v34  ;;  %v3514_v5 = vld [vmem:[#allocation5 + $0x8] sm:$0xff] }
 0xa3a   : > { %3769 = vst [vmem:[%s7032_s30] sm:$0xff] %v3753_v1  ;;  %v3754_v42 = vadd.f32 %v3738_v10, %v3454_v16  ;;  %v3312_v36 = vpop.permute.xlu1 %3311  ;;  %4633 = vmatmul.mubr.bf16.vlgmr.msra.gmra.mrb[112].mxu0 %v3514_v5  ;;  %v3750_v28 = vld [vmem:[%s5495_s13 + $0x68] sm:$0xff]  ;;  %s3791_s13 = scalar_lea.sflag [#allocation13], %s5488_s24 }
 0xa3b   : > { %3772 = vst [vmem:[%s7032_s30 + $0x18] sm:$0xff] %v3756_v12  ;;  %3332 = vst.msk [vmem:[#allocation5 + $0x18] sm:$0xff] %vm2806_vm1, %v3312_v36 }
 0xa3c   : > { %3770 = vst [vmem:[%s7032_s30 + $0x8] sm:$0xff] %v3754_v42 }
 0xa3e   : > { %v3314_v48 = vpop.permute.xlu0 %3313  ;;  %v3515_v41 = vld [vmem:[#allocation5 + $0x10] sm:$0xff] }
 0xa3f   : > { %3333 = vst.msk [vmem:[#allocation5 + $0x20] sm:$0xff] %vm2806_vm1, %v3314_v48  ;;  %4636 = vmatprep.mubr.bf16.mxu0 %v3515_v41 }
 0xa42   : > { %v3316_v7 = vpop.permute.xlu0 %3315  ;;  %v3516_v0 = vld [vmem:[#allocation5 + $0x18] sm:$0xff] }
 0xa43   : > { %3334 = vst.msk [vmem:[#allocation5 + $0x28] sm:$0xff] %vm2806_vm1, %v3316_v7  ;;  %4637 = vmatmul.mubr.bf16.gmra.mrb[116].mxu0 %v3516_v0 }
 0xa46   : > { %v3318_v58 = vpop.permute.xlu0 %3317  ;;  %v3517_v38 = vld [vmem:[#allocation5 + $0x20] sm:$0xff] }
 0xa47   : > { %3335 = vst.msk [vmem:[#allocation5 + $0x30] sm:$0xff] %vm2806_vm1, %v3318_v58  ;;  %4640 = vmatprep.mubr.bf16.mxu1 %v3517_v38 }
 0xa4a   : > { %v3320_v63 = vpop.permute.xlu0 %3319  ;;  %v3518_v44 = vld [vmem:[#allocation5 + $0x28] sm:$0xff] }
 0xa4b   : > { %3336 = vst.msk [vmem:[#allocation5 + $0x38] sm:$0xff] %vm2806_vm1, %v3320_v63  ;;  %4641 = vmatmul.mubr.bf16.vlgmr.msra.gmra.mrb[128].mxu1 %v3518_v44 }
 0xa4e   : > { %v3519_v56 = vld [vmem:[#allocation5 + $0x30] sm:$0xff] }
 0xa4f   : > { %4644 = vmatprep.mubr.bf16.mxu1 %v3519_v56 }
 0xa52   : > { %v3520_v40 = vld [vmem:[#allocation5 + $0x38] sm:$0xff] }
 0xa53   : > { %4645 = vmatmul.mubr.bf16.gmra.mrb[132].mxu1 %v3520_v40 }
 0xaa4   : > { %v4606_v52 = vpop.f32.mrb[116].mxu1 }
 0xaa5   : > { %v3475_v31 = vadd.f32 %v4606_v52, %v7019_v17  ;;  %v3466_v62 = vpop.f32.mrb[117].mxu1 }
 0xaa6   : > { %v3467_v8 = vadd.f32 %v7019_v17, %v3466_v62  ;;  %v4607_v47 = vpop.f32.mrb[118].mxu1 }
 0xaa7   : > { %v3759_v33 = vadd.f32 %v3743_v37, %v3475_v31  ;;  %v3478_v25 = vadd.f32 %v4607_v47, %v7019_v17  ;;  %v3469_v54 = vpop.f32.mrb[119].mxu1 }
 0xaa8   : > { %v3757_v6 = vadd.f32 %v3741_v30, %v3467_v8  ;;  %v3470_v24 = vadd.f32 %v7019_v17, %v3469_v54 }
 0xaa9   : > { %3775 = vst [vmem:[%s7032_s30 + $0x30] sm:$0xff] %v3759_v33  ;;  %v3760_v14 = vadd.f32 %v3744_v27, %v3478_v25 }
 0xaaa   : > { %3773 = vst [vmem:[%s7032_s30 + $0x20] sm:$0xff] %v3757_v6  ;;  %v3758_v57 = vadd.f32 %v3742_v19, %v3470_v24 }
 0xaab   : > { %3776 = vst [vmem:[%s7032_s30 + $0x38] sm:$0xff] %v3760_v14 }
 0xaac   : > { %3774 = vst [vmem:[%s7032_s30 + $0x28] sm:$0xff] %v3758_v57 }
 0xae4   : > { %v4610_v18 = vpop.f32.mrb[120].mxu1 }
 0xae5   : > { %v3491_v61 = vadd.f32 %v4610_v18, %v7019_v17  ;;  %v3482_v51 = vpop.f32.mrb[121].mxu1 }
 0xae6   : > { %v3483_v46 = vadd.f32 %v7019_v17, %v3482_v51  ;;  %v4611_v9 = vpop.f32.mrb[122].mxu1 }
 0xae7   : > { %v3763_v15 = vadd.f32 %v3747_v3, %v3491_v61  ;;  %v3494_v43 = vadd.f32 %v4611_v9, %v7019_v17  ;;  %v3485_v45 = vpop.f32.mrb[123].mxu1 }
 0xae8   : > { %v3761_v26 = vadd.f32 %v3745_v21, %v3483_v46  ;;  %v3486_v53 = vadd.f32 %v7019_v17, %v3485_v45 }
 0xae9   : > { %3779 = vst [vmem:[%s7032_s30 + $0x50] sm:$0xff] %v3763_v15  ;;  %v3764_v59 = vadd.f32 %v3748_v23, %v3494_v43 }
 0xaea   : > { %3777 = vst [vmem:[%s7032_s30 + $0x40] sm:$0xff] %v3761_v26  ;;  %v3762_v4 = vadd.f32 %v3746_v11, %v3486_v53 }
 0xaeb   : > { %3780 = vst [vmem:[%s7032_s30 + $0x58] sm:$0xff] %v3764_v59 }
 0xaec   : > { %3778 = vst [vmem:[%s7032_s30 + $0x48] sm:$0xff] %v3762_v4  ;;  %v4614_v2 = vpop.f32.mrb[124].mxu1 }
 0xaed   : > { %v3507_v49 = vadd.f32 %v4614_v2, %v7019_v17  ;;  %v3498_v32 = vpop.f32.mrb[125].mxu1 }
 0xaee   : > { %v3499_v20 = vadd.f32 %v7019_v17, %v3498_v32  ;;  %v4615_v60 = vpop.f32.mrb[126].mxu1 }
 0xaef   : > { %v3767_v39 = vadd.f32 %v3751_v55, %v3507_v49  ;;  %v3510_v13 = vadd.f32 %v4615_v60, %v7019_v17  ;;  %v3501_v22 = vpop.f32.mrb[127].mxu1 }
 0xaf0   : > { %v3765_v34 = vadd.f32 %v3749_v50, %v3499_v20  ;;  %v3502_v29 = vadd.f32 %v7019_v17, %v3501_v22 }
 0xaf1   : > { %3783 = vst [vmem:[%s7032_s30 + $0x70] sm:$0xff] %v3767_v39  ;;  %v3768_v10 = vadd.f32 %v3752_v35, %v3510_v13 }
 0xaf2   : > { %3781 = vst [vmem:[%s7032_s30 + $0x60] sm:$0xff] %v3765_v34  ;;  %v3766_v1 = vadd.f32 %v3750_v28, %v3502_v29 }
 0xaf3   : > { %3784 = vst [vmem:[%s7032_s30 + $0x78] sm:$0xff] %v3768_v10 }
 0xaf4   : > { %3782 = vst [vmem:[%s7032_s30 + $0x68] sm:$0xff] %v3766_v1 }
 0xaf5   : > { %5167 = shalt.err (!%p5164_p11)
}
 0xaf6   : > { %s5168_s23 = scalar_lea.hbm %s7084_s26, 2048  ;;  %s5172_s14 = scalar_lea.hbm %s7239_s11, 4096 }
 0xaf7   : > { %p5169_p3 = scmp.ne.s32.totalorder %s7084_s26, %s5168_s23  ;;  %p5173_p2 = scmp.lt.u32.totalorder %s7084_s26, %s7239_s11 }
 0xaf8   : > { %p5174_p4 = scmp.lt.u32.totalorder %s5172_s14, %s5168_s23  ;;  %p5176_p13 = scmp.lt.u32.totalorder %s5168_s23, %s7084_s26 }
 0xaf9   : > { %p5170_p8 = pnand %p5169_p3, %p7428_p1 }
 0xafa   : > { %p5175_p6 = por %p5174_p4, %p5173_p2 }
 0xafb   : > { %p5171_p0 = pneg %p5170_p8 }
 0xafc   : > { %p5177_p12 = por %p5176_p13, %p5175_p6 }
 0xafe   : > { %p5178_p10 = pnand %p5177_p12, %p5171_p0 }
 0xb00   : > { %5181 = shalt.err (!%p5178_p10)
}
 0xb01   : > { %s5265_s0 = smov 128   ;;  %s5266_s15 = smov 8   ;;  %v7120_v17 = vld [vmem:[%s7237_s9] ss:$0 sm:$0xff]  ;;  %v3691_v12 = vld [vmem:[%s5503_s17 + $0x10] sm:$0xff]  ;;  %v3692_v7 = vld [vmem:[%s5503_s17 + $0x18] sm:$0xff] }
 0xb02   : > { %4701 = dma.vmem_to_hbm [thread:$0]  (%p7428_p1), %s7086_s28, 2048, %s7084_s26, %s3791_s13, %s5265_s0, %s5265_s0, %s5266_s15  }
 0xb03   : > { %v3689_v5 = vld [vmem:[%s5503_s17] sm:$0xff]  ;;  %v3690_v63 = vld [vmem:[%s5503_s17 + $0x8] sm:$0xff]  ;;  %s7131_s28 = scalar_lea.vmem [#allocation11], %s5491_s16  ;;  %v3695_v31 = vld [vmem:[%s5503_s17 + $0x30] sm:$0xff]  ;;  %s7177_s22 = scalar_lea.hbm %s7238_s10, %s4070_s19 }
 0xb04   : > { %v3693_v8 = vld [vmem:[%s5503_s17 + $0x20] sm:$0xff]  ;;  %v3696_v33 = vld [vmem:[%s5503_s17 + $0x38] sm:$0xff]  ;;  %v3694_v6 = vld [vmem:[%s5503_s17 + $0x28] sm:$0xff]  ;;  %s3804_s16 = sshll.u32 %s7131_s28, 4  ;;  %s5267_s14 = smov [#allocation11]   ;;  %s7179_s16 = int_to_ptr.vmem [resolvable:$true] %s3804_s16 }
 0xb05   : > { %v3699_v61 = vld [vmem:[%s5503_s17 + $0x50] sm:$0xff]  ;;  %v3697_v46 = vld [vmem:[%s5503_s17 + $0x40] sm:$0xff]  ;;  %v3700_v15 = vld [vmem:[%s5503_s17 + $0x58] sm:$0xff]  ;;  %s5182_s30 = scalar_lea.vmem %s7179_s16, 2048  ;;  %s5186_s21 = sshll.u32 %s5267_s14, 4  ;;  %s5187_s21 = int_to_ptr.vmem [resolvable:$false] %s5186_s21 }
 0xb06   : > { %v3698_v26 = vld [vmem:[%s5503_s17 + $0x48] sm:$0xff]  ;;  %v3703_v49 = vld [vmem:[%s5503_s17 + $0x70] sm:$0xff]  ;;  %v3701_v20 = vld [vmem:[%s5503_s17 + $0x60] sm:$0xff]  ;;  %p5183_p5 = scmp.ne.s32.totalorder %s7179_s16, %s5182_s30  ;;  %s5188_s25 = scalar_lea.vmem %s5187_s21, 4096 }
 0xb07   : > { %v3704_v39 = vld [vmem:[%s5503_s17 + $0x78] sm:$0xff]  ;;  %v3702_v34 = vld [vmem:[%s5503_s17 + $0x68] sm:$0xff]  ;;  %s3786_s17 = scalar_lea.sflag [#allocation8], %s5488_s24  ;;  %p5189_p11 = scmp.lt.s32.totalorder %s7179_s16, %s5187_s21 }
 0xb08   : > { %p5184_p7 = pnand %p5183_p5, %p7428_p1  ;;  %p5190_p3 = scmp.lt.s32.totalorder %s5188_s25, %s5182_s30 }
 0xb0a   : > { %p5185_p9 = pneg %p5184_p7  ;;  %p5191_p8 = por %p5190_p3, %p5189_p11 }
 0xb0c   : > { %p5192_p0 = pnand %p5191_p8, %p5185_p9 }
 0xb0d   : > { %v4634_v16 = vpop.f32.mrb[112].mxu0 }
 0xb0e   : > { %v3635_v42 = vadd.f32 %v4634_v16, %v7120_v17  ;;  %v3626_v36 = vpop.f32.mrb[113].mxu0 }
 0xb0f   : > { %v3627_v48 = vadd.f32 %v7120_v17, %v3626_v36  ;;  %v4635_v41 = vpop.f32.mrb[114].mxu0 }
 0xb10   : > { %v3707_v0 = vadd.f32 %v3691_v12, %v3635_v42  ;;  %v3638_v58 = vadd.f32 %v4635_v41, %v7120_v17  ;;  %v3629_v38 = vpop.f32.mrb[115].mxu0 }
 0xb11   : > { %v3705_v44 = vadd.f32 %v3689_v5, %v3627_v48  ;;  %v3630_v56 = vadd.f32 %v7120_v17, %v3629_v38 }
 0xb12   : > { %3723 = vst [vmem:[%s7131_s28 + $0x10] sm:$0xff] %v3707_v0  ;;  %v3708_v40 = vadd.f32 %v3692_v7, %v3638_v58 }
 0xb13   : > { %3721 = vst [vmem:[%s7131_s28] sm:$0xff] %v3705_v44  ;;  %v3706_v52 = vadd.f32 %v3690_v63, %v3630_v56 }
 0xb14   : > { %3724 = vst [vmem:[%s7131_s28 + $0x18] sm:$0xff] %v3708_v40 }
 0xb15   : > { %3722 = vst [vmem:[%s7131_s28 + $0x8] sm:$0xff] %v3706_v52 }
 0xb16   : > { %v4638_v37 = vpop.f32.mrb[116].mxu0 }
 0xb17   : > { %v3651_v62 = vadd.f32 %v4638_v37, %v7120_v17  ;;  %v3642_v30 = vpop.f32.mrb[117].mxu0 }
 0xb18   : > { %v3643_v47 = vadd.f32 %v7120_v17, %v3642_v30  ;;  %v4639_v27 = vpop.f32.mrb[118].mxu0 }
 0xb19   : > { %v3711_v25 = vadd.f32 %v3695_v31, %v3651_v62  ;;  %v3654_v54 = vadd.f32 %v4639_v27, %v7120_v17  ;;  %v3645_v19 = vpop.f32.mrb[119].mxu0 }
 0xb1a   : > { %v3709_v24 = vadd.f32 %v3693_v8, %v3643_v47  ;;  %v3646_v14 = vadd.f32 %v7120_v17, %v3645_v19 }
 0xb1b   : > { %3727 = vst [vmem:[%s7131_s28 + $0x30] sm:$0xff] %v3711_v25  ;;  %v3712_v57 = vadd.f32 %v3696_v33, %v3654_v54 }
 0xb1c   : > { %3725 = vst [vmem:[%s7131_s28 + $0x20] sm:$0xff] %v3709_v24  ;;  %v3710_v18 = vadd.f32 %v3694_v6, %v3646_v14 }
 0xb1d   : > { %3728 = vst [vmem:[%s7131_s28 + $0x38] sm:$0xff] %v3712_v57 }
 0xb1e   : > { %3726 = vst [vmem:[%s7131_s28 + $0x28] sm:$0xff] %v3710_v18  ;;  %v4642_v3 = vpop.f32.mrb[128].mxu1 }
 0xb1f   : > { %v3667_v51 = vadd.f32 %v4642_v3, %v7120_v17  ;;  %v3658_v21 = vpop.f32.mrb[129].mxu1 }
 0xb20   : > { %v3659_v9 = vadd.f32 %v7120_v17, %v3658_v21  ;;  %v4643_v23 = vpop.f32.mrb[130].mxu1 }
 0xb21   : > { %v3715_v43 = vadd.f32 %v3699_v61, %v3667_v51  ;;  %v3670_v45 = vadd.f32 %v4643_v23, %v7120_v17  ;;  %v3661_v11 = vpop.f32.mrb[131].mxu1 }
 0xb22   : > { %v3713_v53 = vadd.f32 %v3697_v46, %v3659_v9  ;;  %v3662_v59 = vadd.f32 %v7120_v17, %v3661_v11 }
 0xb23   : > { %3731 = vst [vmem:[%s7131_s28 + $0x50] sm:$0xff] %v3715_v43  ;;  %v3716_v4 = vadd.f32 %v3700_v15, %v3670_v45 }
 0xb24   : > { %3729 = vst [vmem:[%s7131_s28 + $0x40] sm:$0xff] %v3713_v53  ;;  %v3714_v2 = vadd.f32 %v3698_v26, %v3662_v59 }
 0xb25   : > { %3732 = vst [vmem:[%s7131_s28 + $0x58] sm:$0xff] %v3716_v4 }
 0xb26   : > { %3730 = vst [vmem:[%s7131_s28 + $0x48] sm:$0xff] %v3714_v2  ;;  %v4646_v55 = vpop.f32.mrb[132].mxu1 }
 0xb27   : > { %v3683_v32 = vadd.f32 %v4646_v55, %v7120_v17  ;;  %v3674_v50 = vpop.f32.mrb[133].mxu1 }
 0xb28   : > { %v3675_v60 = vadd.f32 %v7120_v17, %v3674_v50  ;;  %v4647_v35 = vpop.f32.mrb[134].mxu1 }
 0xb29   : > { %v3719_v13 = vadd.f32 %v3703_v49, %v3683_v32  ;;  %v3686_v22 = vadd.f32 %v4647_v35, %v7120_v17  ;;  %v3677_v28 = vpop.f32.mrb[135].mxu1 }
 0xb2a   : > { %v3717_v29 = vadd.f32 %v3701_v20, %v3675_v60  ;;  %v3678_v10 = vadd.f32 %v7120_v17, %v3677_v28 }
 0xb2b   : > { %3735 = vst [vmem:[%s7131_s28 + $0x70] sm:$0xff] %v3719_v13  ;;  %v3720_v1 = vadd.f32 %v3704_v39, %v3686_v22 }
 0xb2c   : > { %3733 = vst [vmem:[%s7131_s28 + $0x60] sm:$0xff] %v3717_v29  ;;  %v3718_v16 = vadd.f32 %v3702_v34, %v3678_v10 }
 0xb2d   : > { %3736 = vst [vmem:[%s7131_s28 + $0x78] sm:$0xff] %v3720_v1 }
 0xb2e   : > { %3734 = vst [vmem:[%s7131_s28 + $0x68] sm:$0xff] %v3718_v16 }
 0xb2f   : > { %5195 = shalt.err (!%p5192_p0)
}
 0xb30   : > { %s5196_s19 = scalar_lea.hbm %s7177_s22, 2048  ;;  %s5200_s23 = scalar_lea.hbm %s7238_s10, 4096 }
 0xb31   : > { %p5197_p2 = scmp.ne.s32.totalorder %s7177_s22, %s5196_s19  ;;  %p5201_p13 = scmp.lt.u32.totalorder %s7177_s22, %s7238_s10 }
 0xb32   : > { %p5202_p12 = scmp.lt.u32.totalorder %s5200_s23, %s5196_s19  ;;  %p5204_p5 = scmp.lt.u32.totalorder %s5196_s19, %s7177_s22 }
 0xb33   : > { %p5198_p4 = pnand %p5197_p2, %p7428_p1 }
 0xb34   : > { %p5203_p10 = por %p5202_p12, %p5201_p13 }
 0xb35   : > { %p5199_p6 = pneg %p5198_p4 }
 0xb36   : > { %p5205_p7 = por %p5204_p5, %p5203_p10 }
 0xb38   : > { %p5206_p9 = pnand %p5205_p7, %p5199_p6 }
 0xb3a   : > { %5209 = shalt.err (!%p5206_p9)
}
 0xb3b   : > { %4700 = dma.vmem_to_hbm [thread:$0]  (%p7428_p1), %s7179_s16, 2048, %s7177_s22, %s3786_s17, %s5265_s0, %s5265_s0, %s5266_s15  }
 0xb3c PF: > { %s7429_s13 = sld [smem:[#allocation18_spill]]  ;;  %s7430_s30 = sld [smem:[#allocation22_spill]] }
 0xb3d   : > { %p7432_p3 = scmp.ge.s32.totalorder %s5256_s20, 2 }
 0xb42   : > { %s3835_s14 = sand.u32 1, %s7429_s13   ;;  %p7431_p11 = scmp.ne.s32.totalorder %s7430_s30, 0 }
 0xb43   : > { %s3836_s21 = scalar_lea.sflag [#allocation8], %s3835_s14 }
 0xb44   : > { %p4712_p8 = pnand %p7432_p3, %p7431_p11 }
 0xb46   : > { %5235 = dma.done.wait (!%p4712_p8), %s3836_s21, 2048  }
 0xb47   : > { %5237 = vsyncadd (!%p4712_p8), %s3836_s21, 4294965248  ;;  %s3845_s29 = scalar_lea.sflag [#allocation13], %s3835_s14 }
 0xb48   : > { %5239 = dma.done.wait (!%p4712_p8), %s3845_s29, 2048  }
 0xb49   : > { %5241 = vsyncadd (!%p4712_p8), %s3845_s29, 4294965248  ;;  %s7433_s20 = sld [smem:[#allocation20_spill]]  ;;  %s7434_s24 = sld [smem:[#allocation19_spill]] }
 0xb4a   : > { %s7435_s19 = sld [smem:[#allocation21_spill]]  ;;  %s7436_s17 = smov %s5248_s18 }
 0xb4f   : > { %p31_p1 = scmp.ge.s32.totalorder %s7433_s20, 4   ;;  %s7437_s18 = smov %s7434_s24 }
 0xb51   :  { %33 = sbr.rel (!%p31_p1) target bundleno = 11 (0xb), region = 135 }
 0xb58   :  { %3850 = vsyncpa [#allocation7], 1 }
 0xb59   :  { %3852 = vsyncpa [#allocation7 + $0x1], 1 }
 0xb5a   :  { %3853 = vsyncpa [#allocation10], 1 }
 0xb5b   :  { %3855 = vsyncpa [#allocation10 + $0x1], 1 }
 0xb5c   :  { %3856 = vsyncpa [#allocation8], 1 }
 0xb5d   :  { %3858 = vsyncpa [#allocation8 + $0x1], 1 }
 0xb5e   :  { %3859 = vsyncpa [#allocation13], 1 }
 0xb5f   :  { %3861 = vsyncpa [#allocation13 + $0x1], 1 }

</bundles_post_ra>
